<compile_context>
chip_gen: v6e
topology: v6e:2x2x1
jax: 0.10.0
libtpu: 0.0.40
codegen_flags: <defaults>
</compile_context>

<pallas_src>
import functools

import jax
import jax.numpy as jnp
from jax import lax
from jax.experimental import pallas as pl
from jax.experimental.pallas import tpu as pltpu


def _vmem_limit_bytes():
    """~75% of the physical per-core VMEM (v5e/v6e: 128 MiB, v7x: 64 MiB)."""
    cap = 128 * 1024 * 1024
    try:
        cap = int(getattr(pltpu.get_tpu_info(), "vmem_capacity_bytes", cap))
    except Exception:
        pass
    return int(min(cap * 3 // 4, 112 * 1024 * 1024))


# ----------------------------- parameter utils -----------------------------

def _fold_bn(w, gamma, beta, mean, var, eps=1e-5):
    """Fold eval-mode BatchNorm2d into a bias-free conv weight."""
    scale = gamma / jnp.sqrt(var + eps)
    w_f = w * scale.reshape((-1,) + (1,) * (w.ndim - 1))
    b_f = beta - mean * scale
    return w_f, b_f


def init_params(key, C, T):
    keys = iter(jax.random.split(key, 64))

    def nrm(shape, scale=0.3):
        return scale * jax.random.normal(next(keys), shape, jnp.float32)

    def bn_stats(ch):
        gamma = 1.0 + 0.1 * jax.random.normal(next(keys), (ch,), jnp.float32)
        beta = 0.1 * jax.random.normal(next(keys), (ch,), jnp.float32)
        mean = 0.1 * jax.random.normal(next(keys), (ch,), jnp.float32)
        var = 1.0 + 0.1 * jax.random.uniform(next(keys), (ch,), jnp.float32)
        return gamma, beta, mean, var

    def conv1x1_bn(cin, cout):
        w = nrm((cout, cin))                       # torch conv weight layout
        wf, bf = _fold_bn(w, *bn_stats(cout))
        return wf.T, bf.reshape(1, cout)           # (cin, cout), (1, cout)

    p = {}
    # query_project: 2 x (conv1x1 C->T + BN + ReLU)
    p["wq1"], p["bq1"] = conv1x1_bn(C, T)
    p["wq2"], p["bq2"] = conv1x1_bn(T, T)
    # key_project: first conv is 2C->T; split rows into x_global / x parts.
    wk1, p["bk1"] = conv1x1_bn(2 * C, T)
    p["wk1g"], p["wk1x"] = wk1[:C], wk1[C:]
    p["wk2"], p["bk2"] = conv1x1_bn(T, T)
    # value_project: conv1x1 2C->T
    wv, p["bv"] = conv1x1_bn(2 * C, T)
    p["wvg"], p["wvx"] = wv[:C], wv[C:]
    # out_project: conv1x1 T->C
    p["wo"], p["bo"] = conv1x1_bn(T, C)
    # bottleneck: conv3x3 2C->C (pad=1) + BN + ReLU, folded and split into the
    # x-part and the feats_il-part.
    w3 = nrm((C, 2 * C, 3, 3))
    w3f, b3f = _fold_bn(w3, *bn_stats(C))
    p["w_bx"] = jnp.transpose(w3f[:, :C], (2, 3, 1, 0)).reshape(9, C, C)
    p["w_bf"] = jnp.transpose(w3f[:, C:], (2, 3, 1, 0)).reshape(9, C, C)
    p["b_b"] = b3f.reshape(1, C)
    return p


# -------------------------------- kernels ----------------------------------

def _qkv_projection_kernel(x_ref, b1_ref, w1_ref, w2_ref, b2_ref, qkv_ref):
    """Fused q/k/v projection.

    layer1: x @ [wq1 | wk1x | wvx | 0]  (+ per-batch bias incl. folded global
            mean contribution), ReLU.
    layer2: h @ blockdiag(wq2*scale, wk2, I_T), ReLU (relu(relu(v)) == relu(v)).
    Output: lane-dense (TP, CP) slab, cols [0:T)=q, [T:2T)=k, [2T:3T)=v.
    """
    x = x_ref[0]                                              # (TP, C) bf16
    h = jnp.dot(x, w1_ref[...], preferred_element_type=jnp.float32) + b1_ref[0]
    h = jnp.maximum(h, 0.0)
    y = jnp.dot(h.astype(jnp.bfloat16), w2_ref[...],
                preferred_element_type=jnp.float32) + b2_ref[...]
    qkv_ref[0] = jnp.maximum(y, 0.0).astype(qkv_ref.dtype)


def _attention_single_kernel(qkv_ref, wo_ref, bo_ref, out_ref):
    """Attention + fused out-projection when all KV fits one tile (nK == 1)."""
    T = wo_ref.shape[0]
    q = qkv_ref[0, :, 0:T]                                    # (N, T) bf16
    k = qkv_ref[0, :, T:2 * T]
    v = qkv_ref[0, :, 2 * T:3 * T]
    s = lax.dot_general(q, k, (((1,), (1,)), ((), ())),
                        preferred_element_type=jnp.float32)   # (N, N) f32
    m = jnp.max(s, axis=-1, keepdims=True)
    p = jnp.exp(s - m)
    l = jnp.sum(p, axis=-1, keepdims=True)
    ctx = jnp.dot(p.astype(jnp.bfloat16), v, preferred_element_type=jnp.float32)
    ctx = ctx * pl.reciprocal(l, approx=True)
    y = jnp.dot(ctx.astype(jnp.bfloat16), wo_ref[...],
                preferred_element_type=jnp.float32) + bo_ref[...]
    out_ref[0] = jnp.maximum(y, 0.0).astype(out_ref.dtype)


def _attention_flash_kernel(qs_ref, kv_ref, wo_ref, bo_ref, out_ref,
                            m_sc, l_sc, acc_sc):
    """Flash (online-softmax) attention for nK > 1, out-projection fused."""
    T = wo_ref.shape[0]
    ki = pl.program_id(2)

    @pl.when(ki == 0)
    def _():
        m_sc[...] = jnp.full(m_sc.shape, -jnp.inf, m_sc.dtype)
        l_sc[...] = jnp.zeros(l_sc.shape, l_sc.dtype)
        acc_sc[...] = jnp.zeros(acc_sc.shape, acc_sc.dtype)

    q = qs_ref[0, :, 0:T]                                     # (TQ, T) bf16
    k = kv_ref[0, :, T:2 * T]                                 # (TK, T) bf16
    v = kv_ref[0, :, 2 * T:3 * T]                             # (TK, T) bf16
    s = lax.dot_general(q, k, (((1,), (1,)), ((), ())),
                        preferred_element_type=jnp.float32)   # (TQ, TK) f32

    m_prev = m_sc[...]
    m_new = jnp.maximum(m_prev, jnp.max(s, axis=-1, keepdims=True))
    alpha = jnp.exp(m_prev - m_new)
    p = jnp.exp(s - m_new)
    l_sc[...] = alpha * l_sc[...] + jnp.sum(p, axis=-1, keepdims=True)
    acc_sc[...] = alpha * acc_sc[...] + jnp.dot(
        p.astype(jnp.bfloat16), v, preferred_element_type=jnp.float32)
    m_sc[...] = m_new

    @pl.when(ki == pl.num_programs(2) - 1)
    def _():
        ctx = acc_sc[...] * pl.reciprocal(l_sc[...], approx=True)
        y = jnp.dot(ctx.astype(jnp.bfloat16), wo_ref[...],
                    preferred_element_type=jnp.float32) + bo_ref[...]
        out_ref[0] = jnp.maximum(y, 0.0).astype(out_ref.dtype)


def _bottleneck3x3_kernel(xf0_ref, xf1_ref, xf2_ref, w_ref, b_ref, out_ref,
                          slab_ref):
    """3x3 conv on cat([x, feats_il]) for a TH-row block.

    The three refs are wrapper-side row-shifted views of the padded input
    (dy = 0/1/2 halo).  An im2col slab (TH*W, 9*2C) is assembled in VMEM
    scratch and contracted in a single MXU matmul against the packed weight.
    """
    _, th, w_out, _ = out_ref.shape
    c2 = xf0_ref.shape[3]                                     # 2C
    rows = (xf0_ref, xf1_ref, xf2_ref)
    for dy in range(3):
        for dx in range(3):
            t = 3 * dy + dx
            piece = rows[dy][0, :, dx:dx + w_out, :]          # (TH, W, 2C)
            slab_ref[:, t * c2:(t + 1) * c2] = piece.reshape(th * w_out, c2)
    y = jnp.dot(slab_ref[...], w_ref[...],
                preferred_element_type=jnp.float32)           # (TH*W, C)
    y = jnp.maximum(y + b_ref[...], 0.0)
    out_ref[0] = y.reshape(out_ref.shape[1:]).astype(out_ref.dtype)


# -------------------------------- wrapper -----------------------------------

def _pick_row_tile(H, W, max_tokens):
    """Largest divisor r of H with r*W <= max_tokens (token tile = r*W)."""
    best = 1
    for r in range(1, H + 1):
        if H % r == 0 and r * W <= max_tokens:
            best = r
    return best


def _const_spec(shape):
    zeros = (0,) * len(shape)
    return pl.BlockSpec(shape, lambda *args, _z=zeros: _z)


def image_level_context_forward(x_nchw, params, max_tile=512):
    B, C, H, W = x_nchw.shape
    HW = H * W
    T = params["wq1"].shape[1]
    bf16, f32 = jnp.bfloat16, jnp.float32
    vmem = _vmem_limit_bytes()

    rows_per_tile = _pick_row_tile(H, W, max_tile)
    TQ = rows_per_tile * W            # token tile for projection & attention
    TH = rows_per_tile                # output-row tile for the 3x3 bottleneck
    CP = ((3 * T + 127) // 128) * 128 # lane-dense width of the packed q|k|v slab

    x_nhwc = jnp.transpose(x_nchw, (0, 2, 3, 1)).astype(f32)     # (B,H,W,C)
    x_tok_f32 = x_nhwc.reshape(B, HW, C)
    x_tok = x_tok_f32.astype(bf16)

    # AdaptiveAvgPool2d((1,1)) + bilinear upsample of a 1x1 map == constant
    # broadcast of the spatial mean (any align_corners).  Its contribution to
    # the 2C->T key/value convs is prefolded into per-batch biases.
    xg = jnp.mean(x_tok_f32, axis=1, keepdims=True)              # (B,1,C) f32
    kgb = jnp.einsum("boc,ct->bot", xg, params["wk1g"]) + params["bk1"]
    vgb = jnp.einsum("boc,ct->bot", xg, params["wvg"]) + params["bv"]

    # Packed projection weights.  1/sqrt(T) folded into the q branch of layer 2
    # (ReLU commutes with a positive scale).  Pad columns 3T..CP with zeros so
    # the qkv slab is 128-lane dense.
    scale = float(T) ** -0.5
    pad1 = CP - 3 * T
    w1 = jnp.concatenate(
        [params["wq1"], params["wk1x"], params["wvx"],
         jnp.zeros((C, pad1), f32)], axis=1).astype(bf16)        # (C, CP)
    b1 = jnp.concatenate(
        [jnp.broadcast_to(params["bq1"], (B, 1, T)), kgb, vgb,
         jnp.zeros((B, 1, pad1), f32)], axis=-1)                 # (B, 1, CP)
    w2 = jnp.zeros((CP, CP), f32)
    w2 = w2.at[0:T, 0:T].set(params["wq2"] * scale)
    w2 = w2.at[T:2 * T, T:2 * T].set(params["wk2"])
    w2 = w2.at[2 * T:3 * T, 2 * T:3 * T].set(jnp.eye(T, dtype=f32))
    w2 = w2.astype(bf16)
    b2 = jnp.concatenate(
        [params["bq2"] * scale, params["bk2"],
         jnp.zeros((1, CP - 2 * T), f32)], axis=1)               # (1, CP)

    wo = params["wo"].astype(bf16)
    bo = params["bo"]

    # ---- kernel 1: fused q/k/v projection into one lane-dense slab ----
    nP = HW // TQ
    qkv = pl.pallas_call(
        _qkv_projection_kernel,
        out_shape=jax.ShapeDtypeStruct((B, HW, CP), bf16),
        grid=(B, nP),
        in_specs=[pl.BlockSpec((1, TQ, C), lambda b, i: (b, i, 0)),
                  pl.BlockSpec((1, 1, CP), lambda b, i: (b, 0, 0)),
                  _const_spec(w1.shape), _const_spec(w2.shape),
                  _const_spec(b2.shape)],
        out_specs=pl.BlockSpec((1, TQ, CP), lambda b, i: (b, i, 0)),
        compiler_params=pltpu.CompilerParams(
            dimension_semantics=("parallel", "parallel"),
            vmem_limit_bytes=vmem),
    )(x_tok, b1, w1, w2, b2)

    # ---- kernel 2: attention + fused out-projection ----
    nQ = HW // TQ
    if nQ == 1:
        # single KV tile: plain softmax, no online-softmax bookkeeping.
        feats_il_tok = pl.pallas_call(
            _attention_single_kernel,
            out_shape=jax.ShapeDtypeStruct((B, HW, C), bf16),
            grid=(B,),
            in_specs=[pl.BlockSpec((1, HW, CP), lambda b: (b, 0, 0)),
                      _const_spec(wo.shape), _const_spec(bo.shape)],
            out_specs=pl.BlockSpec((1, HW, C), lambda b: (b, 0, 0)),
            compiler_params=pltpu.CompilerParams(
                dimension_semantics=("parallel",),
                vmem_limit_bytes=vmem),
        )(qkv, wo, bo)
    else:
        feats_il_tok = pl.pallas_call(
            _attention_flash_kernel,
            out_shape=jax.ShapeDtypeStruct((B, HW, C), bf16),
            grid=(B, nQ, nQ),
            in_specs=[pl.BlockSpec((1, TQ, CP), lambda b, qi, ki: (b, qi, 0)),
                      pl.BlockSpec((1, TQ, CP), lambda b, qi, ki: (b, ki, 0)),
                      _const_spec(wo.shape), _const_spec(bo.shape)],
            out_specs=pl.BlockSpec((1, TQ, C), lambda b, qi, ki: (b, qi, 0)),
            scratch_shapes=[pltpu.VMEM((TQ, 1), f32),
                            pltpu.VMEM((TQ, 1), f32),
                            pltpu.VMEM((TQ, T), f32)],
            compiler_params=pltpu.CompilerParams(
                dimension_semantics=("parallel", "parallel", "arbitrary"),
                vmem_limit_bytes=vmem),
        )(qkv, qkv, wo, bo)

    # ---- kernel 3: 3x3 bottleneck conv, TH-row blocks, single-matmul im2col ----
    feats_il = feats_il_tok.reshape(B, H, W, C)
    xf = jnp.concatenate([x_nhwc.astype(bf16), feats_il], axis=-1)   # (B,H,W,2C)
    xf_pad = jnp.pad(xf, ((0, 0), (1, 1), (1, 1), (0, 0)))
    xf_dy = [xf_pad[:, dy:dy + H] for dy in range(3)]                # row halos
    w_pack = jnp.concatenate([params["w_bx"], params["w_bf"]],
                             axis=1).reshape(9 * 2 * C, C).astype(bf16)
    b_b = params["b_b"]

    out_nhwc = pl.pallas_call(
        _bottleneck3x3_kernel,
        out_shape=jax.ShapeDtypeStruct((B, H, W, C), f32),
        grid=(B, H // TH),
        in_specs=[pl.BlockSpec((1, TH, W + 2, 2 * C), lambda b, r: (b, r, 0, 0)),
                  pl.BlockSpec((1, TH, W + 2, 2 * C), lambda b, r: (b, r, 0, 0)),
                  pl.BlockSpec((1, TH, W + 2, 2 * C), lambda b, r: (b, r, 0, 0)),
                  _const_spec(w_pack.shape), _const_spec(b_b.shape)],
        out_specs=pl.BlockSpec((1, TH, W, C), lambda b, r: (b, r, 0, 0)),
        scratch_shapes=[pltpu.VMEM((TH * W, 9 * 2 * C), bf16)],
        compiler_params=pltpu.CompilerParams(
            dimension_semantics=("parallel", "parallel"),
            vmem_limit_bytes=vmem),
    )(xf_dy[0], xf_dy[1], xf_dy[2], w_pack, b_b)

    return jnp.transpose(out_nhwc, (0, 3, 1, 2))


# --------------------------- pure-JAX reference ------------------------------

def _reference_forward(x, p):
    B, C, H, W = x.shape
    HW = H * W
    relu = lambda a: jnp.maximum(a, 0.0)
    xs = jnp.transpose(x, (0, 2, 3, 1)).astype(jnp.float32)      # (B,H,W,C)
    xt = xs.reshape(B, HW, C)
    xg = jnp.mean(xt, axis=1, keepdims=True)
    q = relu(relu(xt @ p["wq1"] + p["bq1"]) @ p["wq2"] + p["bq2"])
    kk = relu(relu(xg @ p["wk1g"] + xt @ p["wk1x"] + p["bk1"]) @ p["wk2"] + p["bk2"])
    v = relu(xg @ p["wvg"] + xt @ p["wvx"] + p["bv"])
    T = p["wq2"].shape[0]
    sim = jnp.einsum("bqt,bkt->bqk", q, kk) * (float(T) ** -0.5)
    attn = jax.nn.softmax(sim, axis=-1)
    ctx = jnp.einsum("bqk,bkt->bqt", attn, v)
    feats = relu(ctx @ p["wo"] + p["bo"]).reshape(B, H, W, C)
    xp = jnp.pad(xs, ((0, 0), (1, 1), (1, 1), (0, 0)))
    fp = jnp.pad(feats, ((0, 0), (1, 1), (1, 1), (0, 0)))
    acc = jnp.zeros((B, H, W, C), jnp.float32)
    for dy in range(3):
        for dx in range(3):
            t = dy * 3 + dx
            acc += jnp.einsum("bhwc,cd->bhwd", xp[:, dy:dy + H, dx:dx + W], p["w_bx"][t])
            acc += jnp.einsum("bhwc,cd->bhwd", fp[:, dy:dy + H, dx:dx + W], p["w_bf"][t])
    out = relu(acc + p["b_b"])
    return jnp.transpose(out, (0, 3, 1, 2))


if __name__ == "__main__":
    # small shapes: batch=2, feats_channels=8, spatial=16x16, transform=32
    B, C, H, W, T = 2, 8, 16, 16, 32
    key = jax.random.PRNGKey(0)
    kx, kp = jax.random.split(key)
    x = jax.random.normal(kx, (B, C, H, W), jnp.float32)
    params = init_params(kp, C, T)
    ref = _reference_forward(x, params)

    # Large-tile path: whole KV in one tile -> plain-softmax attention kernel.
    fwd = jax.jit(functools.partial(image_level_context_forward, max_tile=512))
    out = jax.block_until_ready(fwd(x, params))
    assert out.shape == (B, C, H, W)
    assert bool(jnp.all(jnp.isfinite(out)))
    assert bool(jnp.allclose(out, ref, rtol=0.1, atol=0.1)), (
        float(jnp.max(jnp.abs(out - ref))))

    # Small-tile path: exercises the flash (multi-KV-tile) attention kernel and
    # multi-block 3x3 bottleneck grid.
    fwd2 = jax.jit(functools.partial(image_level_context_forward, max_tile=128))
    out2 = jax.block_until_ready(fwd2(x, params))
    assert bool(jnp.allclose(out2, ref, rtol=0.1, atol=0.1)), (
        float(jnp.max(jnp.abs(out2 - ref))))

    print("KERNEL_OK")
</pallas_src>

<mosaic_0001>
module attributes {stable_mosaic.version = 11 : i64} {
  func.func @_attention_single_kernel(%arg0: i32, %arg1: memref<1x256x128xbf16, #tpu.memory_space<vmem>>, %arg2: memref<32x8xbf16, #tpu.memory_space<vmem>>, %arg3: memref<1x8xf32, #tpu.memory_space<vmem>>, %arg4: memref<1x256x8xbf16, #tpu.memory_space<vmem>>) attributes {dimension_semantics = [#tpu.dimension_semantics<parallel>], iteration_bounds = array<i64: 2>, scalar_prefetch = 0 : i64, scratch_operands = 0 : i64, tpu.core_type = #tpu.core_type<tc>, window_params = [{transform_indices = @transform_0, window_bounds = array<i64: 1, 256, 128>}, {pipeline_mode = #tpu.pipeline_mode<synchronous>, transform_indices = @transform_1, window_bounds = array<i64: 32, 8>}, {pipeline_mode = #tpu.pipeline_mode<synchronous>, transform_indices = @transform_2, window_bounds = array<i64: 1, 8>}, {transform_indices = @transform_3, window_bounds = array<i64: 1, 256, 8>}]} {
    %c0 = arith.constant 0 : index
    %c0_0 = arith.constant 0 : index
    %c0_1 = arith.constant 0 : index
    %0 = vector.load %arg1[%c0, %c0_0, %c0_1] : memref<1x256x128xbf16, #tpu.memory_space<vmem>>, vector<1x256x32xbf16>
    %1 = vector.shape_cast %0 : vector<1x256x32xbf16> to vector<256x32xbf16>
    %c0_2 = arith.constant 0 : index
    %c0_3 = arith.constant 0 : index
    %c32 = arith.constant 32 : index
    %2 = vector.load %arg1[%c0_2, %c0_3, %c32] : memref<1x256x128xbf16, #tpu.memory_space<vmem>>, vector<1x256x32xbf16>
    %3 = vector.shape_cast %2 : vector<1x256x32xbf16> to vector<256x32xbf16>
    %c0_4 = arith.constant 0 : index
    %c0_5 = arith.constant 0 : index
    %c64 = arith.constant 64 : index
    %4 = vector.load %arg1[%c0_4, %c0_5, %c64] : memref<1x256x128xbf16, #tpu.memory_space<vmem>>, vector<1x256x32xbf16>
    %5 = vector.shape_cast %4 : vector<1x256x32xbf16> to vector<256x32xbf16>
    %cst = arith.constant dense<0.000000e+00> : vector<256x256xf32>
    %6 = tpu.matmul %1, %3, %cst {dimension_numbers = #tpu.dot_dimension_numbers<[1], [1], [0], [0], [0, 0, 1, 0], [], []>} : vector<256x32xbf16>, vector<256x32xbf16>, vector<256x256xf32> -> vector<256x256xf32>
    %cst_6 = arith.constant dense<0xFF800000> : vector<256xf32>
    %7 = vector.multi_reduction <maximumf>, %6, %cst_6 [1] : vector<256x256xf32> to vector<256xf32>
    %8 = vector.shape_cast %7 : vector<256xf32> to vector<256x1xf32>
    %9 = vector.broadcast %8 : vector<256x1xf32> to vector<256x256xf32>
    %10 = arith.subf %6, %9 : vector<256x256xf32>
    %11 = math.exp %10 : vector<256x256xf32>
    %cst_7 = arith.constant dense<0.000000e+00> : vector<256xf32>
    %12 = vector.multi_reduction <add>, %11, %cst_7 [1] : vector<256x256xf32> to vector<256xf32>
    %13 = vector.shape_cast %12 : vector<256xf32> to vector<256x1xf32>
    %14 = arith.truncf %11 : vector<256x256xf32> to vector<256x256xbf16>
    %cst_8 = arith.constant dense<0.000000e+00> : vector<256x32xf32>
    %15 = tpu.matmul %14, %5, %cst_8 {dimension_numbers = #tpu.dot_dimension_numbers<[1], [0], [0], [1], [0, 0, 1, 1], [], []>} : vector<256x256xbf16>, vector<256x32xbf16>, vector<256x32xf32> -> vector<256x32xf32>
    %16 = tpu.reciprocal %13 {approx = true} : vector<256x1xf32> -> vector<256x1xf32>
    %17 = vector.broadcast %16 : vector<256x1xf32> to vector<256x32xf32>
    %18 = arith.mulf %15, %17 : vector<256x32xf32>
    %19 = arith.truncf %18 : vector<256x32xf32> to vector<256x32xbf16>
    %c0_9 = arith.constant 0 : index
    %c0_10 = arith.constant 0 : index
    %20 = vector.load %arg2[%c0_9, %c0_10] : memref<32x8xbf16, #tpu.memory_space<vmem>>, vector<32x8xbf16>
    %cst_11 = arith.constant dense<0.000000e+00> : vector<256x8xf32>
    %21 = tpu.matmul %19, %20, %cst_11 {dimension_numbers = #tpu.dot_dimension_numbers<[1], [0], [0], [1], [0, 0, 1, 1], [], []>} : vector<256x32xbf16>, vector<32x8xbf16>, vector<256x8xf32> -> vector<256x8xf32>
    %c0_12 = arith.constant 0 : index
    %c0_13 = arith.constant 0 : index
    %22 = vector.load %arg3[%c0_12, %c0_13] : memref<1x8xf32, #tpu.memory_space<vmem>>, vector<1x8xf32>
    %23 = vector.broadcast %22 : vector<1x8xf32> to vector<256x8xf32>
    %24 = arith.addf %21, %23 : vector<256x8xf32>
    %cst_14 = arith.constant 0.000000e+00 : f32
    %25 = vector.broadcast %cst_14 : f32 to vector<256x8xf32>
    %26 = arith.maximumf %24, %25 : vector<256x8xf32>
    %27 = arith.truncf %26 : vector<256x8xf32> to vector<256x8xbf16>
    %c0_15 = arith.constant 0 : index
    %c0_16 = arith.constant 0 : index
    %c0_17 = arith.constant 0 : index
    %28 = vector.load %arg4[%c0_15, %c0_16, %c0_17] : memref<1x256x8xbf16, #tpu.memory_space<vmem>>, vector<1x256x8xbf16>
    %29 = vector.shape_cast %28 : vector<1x256x8xbf16> to vector<256x8xbf16>
    %30 = vector.shape_cast %27 : vector<256x8xbf16> to vector<1x256x8xbf16>
    tpu.vector_store %arg4[%c0_15, %c0_16, %c0_17], %30 {strides = array<i32>} : memref<1x256x8xbf16, #tpu.memory_space<vmem>>, vector<1x256x8xbf16>,
    return
  }
  func.func @transform_0(%arg0: i32) -> (i32, i32, i32) {
    %c0_i32 = arith.constant 0 : i32
    %c0_i32_0 = arith.constant 0 : i32
    %c0_i32_1 = arith.constant 0 : i32
    return %arg0, %c0_i32, %c0_i32_0 : i32, i32, i32
  }
  func.func @transform_1(%arg0: i32) -> (i32, i32) {
    %c0_i32 = arith.constant 0 : i32
    %c0_i32_0 = arith.constant 0 : i32
    %c0_i32_1 = arith.constant 0 : i32
    return %c0_i32, %c0_i32_0 : i32, i32
  }
  func.func @transform_2(%arg0: i32) -> (i32, i32) {
    %c0_i32 = arith.constant 0 : i32
    %c0_i32_0 = arith.constant 0 : i32
    %c0_i32_1 = arith.constant 0 : i32
    return %c0_i32, %c0_i32_0 : i32, i32
  }
  func.func @transform_3(%arg0: i32) -> (i32, i32, i32) {
    %c0_i32 = arith.constant 0 : i32
    %c0_i32_0 = arith.constant 0 : i32
    %c0_i32_1 = arith.constant 0 : i32
    return %arg0, %c0_i32, %c0_i32_0 : i32, i32, i32
  }
}

module attributes {stable_mosaic.version = 11 : i64} {
  func.func @_qkv_projection_kernel(%arg0: i32, %arg1: i32, %arg2: memref<1x256x8xbf16, #tpu.memory_space<vmem>>, %arg3: memref<1x1x128xf32, #tpu.memory_space<vmem>>, %arg4: memref<8x128xbf16, #tpu.memory_space<vmem>>, %arg5: memref<128x128xbf16, #tpu.memory_space<vmem>>, %arg6: memref<1x128xf32, #tpu.memory_space<vmem>>, %arg7: memref<1x256x128xbf16, #tpu.memory_space<vmem>>) attributes {dimension_semantics = [#tpu.dimension_semantics<parallel>, #tpu.dimension_semantics<parallel>], iteration_bounds = array<i64: 2, 1>, scalar_prefetch = 0 : i64, scratch_operands = 0 : i64, tpu.core_type = #tpu.core_type<tc>, window_params = [{transform_indices = @transform_0, window_bounds = array<i64: 1, 256, 8>}, {transform_indices = @transform_1, window_bounds = array<i64: 1, 1, 128>}, {pipeline_mode = #tpu.pipeline_mode<synchronous>, transform_indices = @transform_2, window_bounds = array<i64: 8, 128>}, {pipeline_mode = #tpu.pipeline_mode<synchronous>, transform_indices = @transform_3, window_bounds = array<i64: 128, 128>}, {pipeline_mode = #tpu.pipeline_mode<synchronous>, transform_indices = @transform_4, window_bounds = array<i64: 1, 128>}, {transform_indices = @transform_5, window_bounds = array<i64: 1, 256, 128>}]} {
    %c0 = arith.constant 0 : index
    %c0_0 = arith.constant 0 : index
    %c0_1 = arith.constant 0 : index
    %0 = vector.load %arg2[%c0, %c0_0, %c0_1] : memref<1x256x8xbf16, #tpu.memory_space<vmem>>, vector<1x256x8xbf16>
    %1 = vector.shape_cast %0 : vector<1x256x8xbf16> to vector<256x8xbf16>
    %c0_2 = arith.constant 0 : index
    %c0_3 = arith.constant 0 : index
    %2 = vector.load %arg4[%c0_2, %c0_3] : memref<8x128xbf16, #tpu.memory_space<vmem>>, vector<8x128xbf16>
    %cst = arith.constant dense<0.000000e+00> : vector<256x128xf32>
    %3 = tpu.matmul %1, %2, %cst {dimension_numbers = #tpu.dot_dimension_numbers<[1], [0], [0], [1], [0, 0, 1, 1], [], []>} : vector<256x8xbf16>, vector<8x128xbf16>, vector<256x128xf32> -> vector<256x128xf32>
    %c0_4 = arith.constant 0 : index
    %c0_5 = arith.constant 0 : index
    %c0_6 = arith.constant 0 : index
    %4 = vector.load %arg3[%c0_4, %c0_5, %c0_6] : memref<1x1x128xf32, #tpu.memory_space<vmem>>, vector<1x1x128xf32>
    %5 = vector.shape_cast %4 : vector<1x1x128xf32> to vector<1x128xf32>
    %6 = vector.broadcast %5 : vector<1x128xf32> to vector<256x128xf32>
    %7 = arith.addf %3, %6 : vector<256x128xf32>
    %cst_7 = arith.constant 0.000000e+00 : f32
    %8 = vector.broadcast %cst_7 : f32 to vector<256x128xf32>
    %9 = arith.maximumf %7, %8 : vector<256x128xf32>
    %10 = arith.truncf %9 : vector<256x128xf32> to vector<256x128xbf16>
    %c0_8 = arith.constant 0 : index
    %c0_9 = arith.constant 0 : index
    %11 = vector.load %arg5[%c0_8, %c0_9] : memref<128x128xbf16, #tpu.memory_space<vmem>>, vector<128x128xbf16>
    %cst_10 = arith.constant dense<0.000000e+00> : vector<256x128xf32>
    %12 = tpu.matmul %10, %11, %cst_10 {dimension_numbers = #tpu.dot_dimension_numbers<[1], [0], [0], [1], [0, 0, 1, 1], [], []>} : vector<256x128xbf16>, vector<128x128xbf16>, vector<256x128xf32> -> vector<256x128xf32>
    %c0_11 = arith.constant 0 : index
    %c0_12 = arith.constant 0 : index
    %13 = vector.load %arg6[%c0_11, %c0_12] : memref<1x128xf32, #tpu.memory_space<vmem>>, vector<1x128xf32>
    %14 = vector.broadcast %13 : vector<1x128xf32> to vector<256x128xf32>
    %15 = arith.addf %12, %14 : vector<256x128xf32>
    %cst_13 = arith.constant 0.000000e+00 : f32
    %16 = vector.broadcast %cst_13 : f32 to vector<256x128xf32>
    %17 = arith.maximumf %15, %16 : vector<256x128xf32>
    %18 = arith.truncf %17 : vector<256x128xf32> to vector<256x128xbf16>
    %c0_14 = arith.constant 0 : index
    %c0_15 = arith.constant 0 : index
    %c0_16 = arith.constant 0 : index
    %19 = vector.load %arg7[%c0_14, %c0_15, %c0_16] : memref<1x256x128xbf16, #tpu.memory_space<vmem>>, vector<1x256x128xbf16>
    %20 = vector.shape_cast %19 : vector<1x256x128xbf16> to vector<256x128xbf16>
    %21 = vector.shape_cast %18 : vector<256x128xbf16> to vector<1x256x128xbf16>
    tpu.vector_store %arg7[%c0_14, %c0_15, %c0_16], %21 {strides = array<i32>} : memref<1x256x128xbf16, #tpu.memory_space<vmem>>, vector<1x256x128xbf16>,
    return
  }
  func.func @transform_0(%arg0: i32, %arg1: i32) -> (i32, i32, i32) {
    %c0_i32 = arith.constant 0 : i32
    %c0_i32_0 = arith.constant 0 : i32
    return %arg0, %arg1, %c0_i32 : i32, i32, i32
  }
  func.func @transform_1(%arg0: i32, %arg1: i32) -> (i32, i32, i32) {
    %c0_i32 = arith.constant 0 : i32
    %c0_i32_0 = arith.constant 0 : i32
    %c0_i32_1 = arith.constant 0 : i32
    return %arg0, %c0_i32, %c0_i32_0 : i32, i32, i32
  }
  func.func @transform_2(%arg0: i32, %arg1: i32) -> (i32, i32) {
    %c0_i32 = arith.constant 0 : i32
    %c0_i32_0 = arith.constant 0 : i32
    %c0_i32_1 = arith.constant 0 : i32
    return %c0_i32, %c0_i32_0 : i32, i32
  }
  func.func @transform_3(%arg0: i32, %arg1: i32) -> (i32, i32) {
    %c0_i32 = arith.constant 0 : i32
    %c0_i32_0 = arith.constant 0 : i32
    %c0_i32_1 = arith.constant 0 : i32
    return %c0_i32, %c0_i32_0 : i32, i32
  }
  func.func @transform_4(%arg0: i32, %arg1: i32) -> (i32, i32) {
    %c0_i32 = arith.constant 0 : i32
    %c0_i32_0 = arith.constant 0 : i32
    %c0_i32_1 = arith.constant 0 : i32
    return %c0_i32, %c0_i32_0 : i32, i32
  }
  func.func @transform_5(%arg0: i32, %arg1: i32) -> (i32, i32, i32) {
    %c0_i32 = arith.constant 0 : i32
    %c0_i32_0 = arith.constant 0 : i32
    return %arg0, %arg1, %c0_i32 : i32, i32, i32
  }
}

module attributes {stable_mosaic.version = 11 : i64} {
  func.func @_bottleneck3x3_kernel(%arg0: i32, %arg1: i32, %arg2: memref<1x16x18x16xbf16, #tpu.memory_space<vmem>>, %arg3: memref<1x16x18x16xbf16, #tpu.memory_space<vmem>>, %arg4: memref<1x16x18x16xbf16, #tpu.memory_space<vmem>>, %arg5: memref<144x8xbf16, #tpu.memory_space<vmem>>, %arg6: memref<1x8xf32, #tpu.memory_space<vmem>>, %arg7: memref<1x16x16x8xf32, #tpu.memory_space<vmem>>, %arg8: memref<256x144xbf16, #tpu.memory_space<vmem>>) attributes {dimension_semantics = [#tpu.dimension_semantics<parallel>, #tpu.dimension_semantics<parallel>], iteration_bounds = array<i64: 2, 1>, scalar_prefetch = 0 : i64, scratch_operands = 1 : i64, tpu.core_type = #tpu.core_type<tc>, window_params = [{transform_indices = @transform_0, window_bounds = array<i64: 1, 16, 18, 16>}, {transform_indices = @transform_1, window_bounds = array<i64: 1, 16, 18, 16>}, {transform_indices = @transform_2, window_bounds = array<i64: 1, 16, 18, 16>}, {pipeline_mode = #tpu.pipeline_mode<synchronous>, transform_indices = @transform_3, window_bounds = array<i64: 144, 8>}, {pipeline_mode = #tpu.pipeline_mode<synchronous>, transform_indices = @transform_4, window_bounds = array<i64: 1, 8>}, {transform_indices = @transform_5, window_bounds = array<i64: 1, 16, 16, 8>}]} {
    %c0 = arith.constant 0 : index
    %c0_0 = arith.constant 0 : index
    %c0_1 = arith.constant 0 : index
    %c0_2 = arith.constant 0 : index
    %0 = vector.load %arg2[%c0, %c0_0, %c0_1, %c0_2] : memref<1x16x18x16xbf16, #tpu.memory_space<vmem>>, vector<1x16x16x16xbf16>
    %1 = vector.shape_cast %0 : vector<1x16x16x16xbf16> to vector<16x16x16xbf16>
    %2 = vector.shape_cast %1 : vector<16x16x16xbf16> to vector<256x16xbf16>
    %c0_3 = arith.constant 0 : index
    %c0_4 = arith.constant 0 : index
    %3 = vector.load %arg8[%c0_3, %c0_4] : memref<256x144xbf16, #tpu.memory_space<vmem>>, vector<256x16xbf16>
    tpu.vector_store %arg8[%c0_3, %c0_4], %2 {strides = array<i32>} : memref<256x144xbf16, #tpu.memory_space<vmem>>, vector<256x16xbf16>,
    %c0_5 = arith.constant 0 : index
    %c0_6 = arith.constant 0 : index
    %c1 = arith.constant 1 : index
    %c0_7 = arith.constant 0 : index
    %4 = vector.load %arg2[%c0_5, %c0_6, %c1, %c0_7] : memref<1x16x18x16xbf16, #tpu.memory_space<vmem>>, vector<1x16x16x16xbf16>
    %5 = vector.shape_cast %4 : vector<1x16x16x16xbf16> to vector<16x16x16xbf16>
    %6 = vector.shape_cast %5 : vector<16x16x16xbf16> to vector<256x16xbf16>
    %c0_8 = arith.constant 0 : index
    %c16 = arith.constant 16 : index
    %7 = vector.load %arg8[%c0_8, %c16] : memref<256x144xbf16, #tpu.memory_space<vmem>>, vector<256x16xbf16>
    tpu.vector_store %arg8[%c0_8, %c16], %6 {strides = array<i32>} : memref<256x144xbf16, #tpu.memory_space<vmem>>, vector<256x16xbf16>,
    %c0_9 = arith.constant 0 : index
    %c0_10 = arith.constant 0 : index
    %c2 = arith.constant 2 : index
    %c0_11 = arith.constant 0 : index
    %8 = vector.load %arg2[%c0_9, %c0_10, %c2, %c0_11] : memref<1x16x18x16xbf16, #tpu.memory_space<vmem>>, vector<1x16x16x16xbf16>
    %9 = vector.shape_cast %8 : vector<1x16x16x16xbf16> to vector<16x16x16xbf16>
    %10 = vector.shape_cast %9 : vector<16x16x16xbf16> to vector<256x16xbf16>
    %c0_12 = arith.constant 0 : index
    %c32 = arith.constant 32 : index
    %11 = vector.load %arg8[%c0_12, %c32] : memref<256x144xbf16, #tpu.memory_space<vmem>>, vector<256x16xbf16>
    tpu.vector_store %arg8[%c0_12, %c32], %10 {strides = array<i32>} : memref<256x144xbf16, #tpu.memory_space<vmem>>, vector<256x16xbf16>,
    %c0_13 = arith.constant 0 : index
    %c0_14 = arith.constant 0 : index
    %c0_15 = arith.constant 0 : index
    %c0_16 = arith.constant 0 : index
    %12 = vector.load %arg3[%c0_13, %c0_14, %c0_15, %c0_16] : memref<1x16x18x16xbf16, #tpu.memory_space<vmem>>, vector<1x16x16x16xbf16>
    %13 = vector.shape_cast %12 : vector<1x16x16x16xbf16> to vector<16x16x16xbf16>
    %14 = vector.shape_cast %13 : vector<16x16x16xbf16> to vector<256x16xbf16>
    %c0_17 = arith.constant 0 : index
    %c48 = arith.constant 48 : index
    %15 = vector.load %arg8[%c0_17, %c48] : memref<256x144xbf16, #tpu.memory_space<vmem>>, vector<256x16xbf16>
    tpu.vector_store %arg8[%c0_17, %c48], %14 {strides = array<i32>} : memref<256x144xbf16, #tpu.memory_space<vmem>>, vector<256x16xbf16>,
    %c0_18 = arith.constant 0 : index
    %c0_19 = arith.constant 0 : index
    %c1_20 = arith.constant 1 : index
    %c0_21 = arith.constant 0 : index
    %16 = vector.load %arg3[%c0_18, %c0_19, %c1_20, %c0_21] : memref<1x16x18x16xbf16, #tpu.memory_space<vmem>>, vector<1x16x16x16xbf16>
    %17 = vector.shape_cast %16 : vector<1x16x16x16xbf16> to vector<16x16x16xbf16>
    %18 = vector.shape_cast %17 : vector<16x16x16xbf16> to vector<256x16xbf16>
    %c0_22 = arith.constant 0 : index
    %c64 = arith.constant 64 : index
    %19 = vector.load %arg8[%c0_22, %c64] : memref<256x144xbf16, #tpu.memory_space<vmem>>, vector<256x16xbf16>
    tpu.vector_store %arg8[%c0_22, %c64], %18 {strides = array<i32>} : memref<256x144xbf16, #tpu.memory_space<vmem>>, vector<256x16xbf16>,
    %c0_23 = arith.constant 0 : index
    %c0_24 = arith.constant 0 : index
    %c2_25 = arith.constant 2 : index
    %c0_26 = arith.constant 0 : index
    %20 = vector.load %arg3[%c0_23, %c0_24, %c2_25, %c0_26] : memref<1x16x18x16xbf16, #tpu.memory_space<vmem>>, vector<1x16x16x16xbf16>
    %21 = vector.shape_cast %20 : vector<1x16x16x16xbf16> to vector<16x16x16xbf16>
    %22 = vector.shape_cast %21 : vector<16x16x16xbf16> to vector<256x16xbf16>
    %c0_27 = arith.constant 0 : index
    %c80 = arith.constant 80 : index
    %23 = vector.load %arg8[%c0_27, %c80] : memref<256x144xbf16, #tpu.memory_space<vmem>>, vector<256x16xbf16>
    tpu.vector_store %arg8[%c0_27, %c80], %22 {strides = array<i32>} : memref<256x144xbf16, #tpu.memory_space<vmem>>, vector<256x16xbf16>,
    %c0_28 = arith.constant 0 : index
    %c0_29 = arith.constant 0 : index
    %c0_30 = arith.constant 0 : index
    %c0_31 = arith.constant 0 : index
    %24 = vector.load %arg4[%c0_28, %c0_29, %c0_30, %c0_31] : memref<1x16x18x16xbf16, #tpu.memory_space<vmem>>, vector<1x16x16x16xbf16>
    %25 = vector.shape_cast %24 : vector<1x16x16x16xbf16> to vector<16x16x16xbf16>
    %26 = vector.shape_cast %25 : vector<16x16x16xbf16> to vector<256x16xbf16>
    %c0_32 = arith.constant 0 : index
    %c96 = arith.constant 96 : index
    %27 = vector.load %arg8[%c0_32, %c96] : memref<256x144xbf16, #tpu.memory_space<vmem>>, vector<256x16xbf16>
    tpu.vector_store %arg8[%c0_32, %c96], %26 {strides = array<i32>} : memref<256x144xbf16, #tpu.memory_space<vmem>>, vector<256x16xbf16>,
    %c0_33 = arith.constant 0 : index
    %c0_34 = arith.constant 0 : index
    %c1_35 = arith.constant 1 : index
    %c0_36 = arith.constant 0 : index
    %28 = vector.load %arg4[%c0_33, %c0_34, %c1_35, %c0_36] : memref<1x16x18x16xbf16, #tpu.memory_space<vmem>>, vector<1x16x16x16xbf16>
    %29 = vector.shape_cast %28 : vector<1x16x16x16xbf16> to vector<16x16x16xbf16>
    %30 = vector.shape_cast %29 : vector<16x16x16xbf16> to vector<256x16xbf16>
    %c0_37 = arith.constant 0 : index
    %c112 = arith.constant 112 : index
    %31 = vector.load %arg8[%c0_37, %c112] : memref<256x144xbf16, #tpu.memory_space<vmem>>, vector<256x16xbf16>
    tpu.vector_store %arg8[%c0_37, %c112], %30 {strides = array<i32>} : memref<256x144xbf16, #tpu.memory_space<vmem>>, vector<256x16xbf16>,
    %c0_38 = arith.constant 0 : index
    %c0_39 = arith.constant 0 : index
    %c2_40 = arith.constant 2 : index
    %c0_41 = arith.constant 0 : index
    %32 = vector.load %arg4[%c0_38, %c0_39, %c2_40, %c0_41] : memref<1x16x18x16xbf16, #tpu.memory_space<vmem>>, vector<1x16x16x16xbf16>
    %33 = vector.shape_cast %32 : vector<1x16x16x16xbf16> to vector<16x16x16xbf16>
    %34 = vector.shape_cast %33 : vector<16x16x16xbf16> to vector<256x16xbf16>
    %c0_42 = arith.constant 0 : index
    %c128 = arith.constant 128 : index
    %35 = vector.load %arg8[%c0_42, %c128] : memref<256x144xbf16, #tpu.memory_space<vmem>>, vector<256x16xbf16>
    tpu.vector_store %arg8[%c0_42, %c128], %34 {strides = array<i32>} : memref<256x144xbf16, #tpu.memory_space<vmem>>, vector<256x16xbf16>,
    %c0_43 = arith.constant 0 : index
    %c0_44 = arith.constant 0 : index
    %36 = vector.load %arg8[%c0_43, %c0_44] : memref<256x144xbf16, #tpu.memory_space<vmem>>, vector<256x144xbf16>
    %c0_45 = arith.constant 0 : index
    %c0_46 = arith.constant 0 : index
    %37 = vector.load %arg5[%c0_45, %c0_46] : memref<144x8xbf16, #tpu.memory_space<vmem>>, vector<144x8xbf16>
    %cst = arith.constant dense<0.000000e+00> : vector<256x8xf32>
    %38 = tpu.matmul %36, %37, %cst {dimension_numbers = #tpu.dot_dimension_numbers<[1], [0], [0], [1], [0, 0, 1, 1], [], []>} : vector<256x144xbf16>, vector<144x8xbf16>, vector<256x8xf32> -> vector<256x8xf32>
    %c0_47 = arith.constant 0 : index
    %c0_48 = arith.constant 0 : index
    %39 = vector.load %arg6[%c0_47, %c0_48] : memref<1x8xf32, #tpu.memory_space<vmem>>, vector<1x8xf32>
    %40 = vector.broadcast %39 : vector<1x8xf32> to vector<256x8xf32>
    %41 = arith.addf %38, %40 : vector<256x8xf32>
    %cst_49 = arith.constant 0.000000e+00 : f32
    %42 = vector.broadcast %cst_49 : f32 to vector<256x8xf32>
    %43 = arith.maximumf %41, %42 : vector<256x8xf32>
    %44 = vector.shape_cast %43 : vector<256x8xf32> to vector<16x16x8xf32>
    %c0_50 = arith.constant 0 : index
    %c0_51 = arith.constant 0 : index
    %c0_52 = arith.constant 0 : index
    %c0_53 = arith.constant 0 : index
    %45 = vector.load %arg7[%c0_50, %c0_51, %c0_52, %c0_53] : memref<1x16x16x8xf32, #tpu.memory_space<vmem>>, vector<1x16x16x8xf32>
    %46 = vector.shape_cast %45 : vector<1x16x16x8xf32> to vector<16x16x8xf32>
    %47 = vector.shape_cast %44 : vector<16x16x8xf32> to vector<1x16x16x8xf32>
    tpu.vector_store %arg7[%c0_50, %c0_51, %c0_52, %c0_53], %47 {strides = array<i32>} : memref<1x16x16x8xf32, #tpu.memory_space<vmem>>, vector<1x16x16x8xf32>,
    return
  }
  func.func @transform_0(%arg0: i32, %arg1: i32) -> (i32, i32, i32, i32) {
    %c0_i32 = arith.constant 0 : i32
    %c0_i32_0 = arith.constant 0 : i32
    %c0_i32_1 = arith.constant 0 : i32
    return %arg0, %arg1, %c0_i32, %c0_i32_0 : i32, i32, i32, i32
  }
  func.func @transform_1(%arg0: i32, %arg1: i32) -> (i32, i32, i32, i32) {
    %c0_i32 = arith.constant 0 : i32
    %c0_i32_0 = arith.constant 0 : i32
    %c0_i32_1 = arith.constant 0 : i32
    return %arg0, %arg1, %c0_i32, %c0_i32_0 : i32, i32, i32, i32
  }
  func.func @transform_2(%arg0: i32, %arg1: i32) -> (i32, i32, i32, i32) {
    %c0_i32 = arith.constant 0 : i32
    %c0_i32_0 = arith.constant 0 : i32
    %c0_i32_1 = arith.constant 0 : i32
    return %arg0, %arg1, %c0_i32, %c0_i32_0 : i32, i32, i32, i32
  }
  func.func @transform_3(%arg0: i32, %arg1: i32) -> (i32, i32) {
    %c0_i32 = arith.constant 0 : i32
    %c0_i32_0 = arith.constant 0 : i32
    %c0_i32_1 = arith.constant 0 : i32
    return %c0_i32, %c0_i32_0 : i32, i32
  }
  func.func @transform_4(%arg0: i32, %arg1: i32) -> (i32, i32) {
    %c0_i32 = arith.constant 0 : i32
    %c0_i32_0 = arith.constant 0 : i32
    %c0_i32_1 = arith.constant 0 : i32
    return %c0_i32, %c0_i32_0 : i32, i32
  }
  func.func @transform_5(%arg0: i32, %arg1: i32) -> (i32, i32, i32, i32) {
    %c0_i32 = arith.constant 0 : i32
    %c0_i32_0 = arith.constant 0 : i32
    %c0_i32_1 = arith.constant 0 : i32
    return %arg0, %arg1, %c0_i32, %c0_i32_0 : i32, i32, i32, i32
  }
}

</mosaic_0001>

<bundles_post_ra>
// kernel: image_level_context_forward.3
= control target key start
LH: loop header
LB: loop body
LE: loop exit
PB: predicated region body
PF: predicated region fallthrough
CT: control target
= control target key end

     0   :  { %s1637_s18 = smov 0   ;;  %s1639_s19 = smov 0   ;;  %s1831_s0 = inlined_call_operand.vmem [shape: bf16[2,256,8], index: 0, kind: input, shape index: {}]   ;;  %s1832_s1 = inlined_call_operand.vmem [shape: f32[2,1,128], index: 1, kind: input, shape index: {}]   ;;  %s1833_s2 = inlined_call_operand.vmem [shape: bf16[8,128], index: 2, kind: input, shape index: {}]   ;;  %s1834_s3 = inlined_call_operand.vmem [shape: bf16[128,128], index: 3, kind: input, shape index: {}]   ;;  %s1835_s4 = inlined_call_operand.vmem [shape: f32[1,128], index: 4, kind: input, shape index: {}]   ;;  %s1836_s5 = inlined_call_operand.vmem [shape: bf16[2,256,128], index: 5, kind: output, shape index: {}]  }
   0x1   :  { %s1641_s20 = smov 0  }
   0x2 LB: > { %s27_s21 = sadd.s32 1, %s1601_s19  ;;  %p1185_p0 = scmp.ge.s32.totalorder %s1605_s20, 1  ;;  %s1605_s20 = sphi %s1641_s20, %s15_s20   ;;  %s1601_s19 = sphi %s1639_s19, %s1838_s19   ;;  %s1597_s18 = sphi %s1637_s18, %s1837_s18  }
   0x3   : > { %p29_p1 = scmp.ge.s32.totalorder %s27_s21, 2  ;;  %p216_p2 = scmp.lt.s32.totalorder %s1605_s20, 3 }
   0x5   : > { %s1840_s21 = smov (%p29_p1, %s27_s21), 0  ;;  %p217_p3 = pnand %p1185_p0, %p216_p2 }
   0x6   : > { %p256_p4 = scmp.lt.s32.totalorder (!%p217_p3), %s1597_s18, 1 }
   0x7   : > { %220 = sbr.rel (%p217_p3) target bundleno = 485 (0x1e5), region = 40 }
   0xc   : > { %v311_v0 = vld [vmem:[%s1833_s2] sm:$0xf]  ;;  %vm448_vm0 = vcmask 1043456   ;;  %v1575_v1 = vld [vmem:[%s1834_s3 + $0x38] sm:$0xff]   ;;  %s1842_s18 = smov (!%p256_p4, %s1597_s18), 1  ;;  %v1576_v3 = vld [vmem:[%s1834_s3 + $0x30] sm:$0xff]  }
   0xd   : > { %1534 = vmatprep.subr.msk.bf16.mxu0 %vm448_vm0, %v311_v0  ;;  %v450_v2 = vsel %vm448_vm0, %v311_v0, 0  ;;  %1518 = vmatprep.subr.bf16.mxu1 %v1575_v1  ;;  %s1266_s28 = sshll.u32 %s1842_s18, 7  ;;  %vm399_vm1 = vcmask 64512   ;;  %v1577_v4 = vld [vmem:[%s1834_s3 + $0x28] sm:$0xff]   ;;  %v1578_v8 = vld [vmem:[%s1834_s3 + $0x20] sm:$0xff]   ;;  %v1579_v9 = vld [vmem:[%s1834_s3 + $0x18] sm:$0xff]   ;;  %s267_s25 = scalar_lea.vmem %s1832_s1, %s1842_s18 }
   0xe   : > { %1437 = vmatpush3.bf16.msra.mxu0 %v450_v2  ;;  %1526 = vmatpush3.bf16.msra.mxu1 %v1575_v1  ;;  %s1672_s6 = scalar_lea.vmem %s1831_s0, %s1266_s28  ;;  %v1580_v23 = vld [vmem:[%s1834_s3 + $0x10] sm:$0xff]   ;;  %v1581_v24 = vld [vmem:[%s1834_s3 + $0x8] sm:$0xff]   ;;  %v1582_v25 = vld [vmem:[%s1834_s3] sm:$0xff]  }
   0xf   : > { %1470 = vmatprep.subr.bf16.mxu0 %v1575_v1  ;;  %1519 = vmatprep.subr.bf16.mxu1 %v1576_v3  ;;  %v1559_v5 = vld [vmem:[%s1672_s6] sm:$0xff]   ;;  %v1560_v6 = vld [vmem:[%s1672_s6 + $0x8] sm:$0xff]   ;;  %v1561_v7 = vld [vmem:[%s1672_s6 + $0x10] sm:$0xff]  }
  0x10   : > { %1438 = vmatprep.mubr.msk.bf16.mxu0 %vm399_vm1, %v1559_v5  ;;  %v1562_v10 = vld [vmem:[%s1672_s6 + $0x18] sm:$0xff]   ;;  %v1563_v11 = vld [vmem:[%s1672_s6 + $0x20] sm:$0xff]   ;;  %v1564_v12 = vld [vmem:[%s1672_s6 + $0x28] sm:$0xff]  }
  0x11   : > { %1439 = vmatmul.mubr.msk.bf16.vlgmr.msra.gmra.mxu0 %vm399_vm1, %v1560_v6  ;;  %v1565_v13 = vld [vmem:[%s1672_s6 + $0x30] sm:$0xff]   ;;  %v1566_v14 = vld [vmem:[%s1672_s6 + $0x38] sm:$0xff]   ;;  %v1567_v15 = vld [vmem:[%s1672_s6 + $0x40] sm:$0xff]  }
  0x12   : > { %1527 = vmatpush3.bf16.msra.mxu1 %v1576_v3  ;;  %1442 = vmatprep.mubr.msk.bf16.mxu0 %vm399_vm1, %v1561_v7  ;;  %v1568_v16 = vld [vmem:[%s1672_s6 + $0x48] sm:$0xff]   ;;  %v1569_v17 = vld [vmem:[%s1672_s6 + $0x50] sm:$0xff]   ;;  %v1570_v18 = vld [vmem:[%s1672_s6 + $0x58] sm:$0xff]  }
  0x13   : > { %1520 = vmatprep.subr.bf16.mxu1 %v1577_v4  ;;  %1471 = vmatpush3.bf16.msra.mxu0 %v1575_v1  ;;  %v1571_v19 = vld [vmem:[%s1672_s6 + $0x60] sm:$0xff]   ;;  %v1572_v20 = vld [vmem:[%s1672_s6 + $0x68] sm:$0xff]   ;;  %v1573_v21 = vld [vmem:[%s1672_s6 + $0x70] sm:$0xff]  }
  0x14   : > { %1472 = vmatprep.subr.bf16.mxu0 %v1576_v3  ;;  %v1574_v22 = vld [vmem:[%s1672_s6 + $0x78] sm:$0xff]   ;;  %v1728_v28 = vld [vmem:[%s267_s25] ss:$0 sm:$0xff]  ;;  %s1776_s6 = scalar_lea.vmem %s1836_s5, %s1266_s28 }
  0x16   : > { %1528 = vmatpush3.bf16.msra.mxu1 %v1577_v4 }
  0x17   : > { %1521 = vmatprep.subr.bf16.mxu1 %v1578_v8  ;;  %1473 = vmatpush3.bf16.msra.mxu0 %v1576_v3 }
  0x18   : > { %1474 = vmatprep.subr.bf16.mxu0 %v1577_v4 }
  0x19   : > { %1443 = vmatmul.mubr.msk.bf16.gmra.mxu0 %vm399_vm1, %v1562_v10 }
  0x1a   : > { %1529 = vmatpush3.bf16.msra.mxu1 %v1578_v8  ;;  %1446 = vmatprep.mubr.msk.bf16.mxu0 %vm399_vm1, %v1563_v11 }
  0x1b   : > { %1522 = vmatprep.subr.bf16.mxu1 %v1579_v9  ;;  %1475 = vmatpush3.bf16.msra.mxu0 %v1577_v4 }
  0x1c   : > { %1476 = vmatprep.subr.bf16.mxu0 %v1578_v8 }
  0x1e   : > { %1530 = vmatpush3.bf16.msra.mxu1 %v1579_v9 }
  0x1f   : > { %1477 = vmatpush3.bf16.msra.mxu0 %v1578_v8  ;;  %1523 = vmatprep.subr.bf16.mxu1 %v1580_v23 }
  0x20   : > { %1478 = vmatprep.subr.bf16.mxu0 %v1579_v9 }
  0x21   : > { %1447 = vmatmul.mubr.msk.bf16.gmra.mxu0 %vm399_vm1, %v1564_v12 }
  0x22   : > { %1450 = vmatprep.mubr.msk.bf16.mxu0 %vm399_vm1, %v1565_v13  ;;  %1531 = vmatpush3.bf16.msra.mxu1 %v1580_v23 }
  0x23   : > { %1479 = vmatpush3.bf16.msra.mxu0 %v1579_v9  ;;  %1524 = vmatprep.subr.bf16.mxu1 %v1581_v24 }
  0x24   : > { %1480 = vmatprep.subr.bf16.mxu0 %v1580_v23 }
  0x26   : > { %1532 = vmatpush3.bf16.msra.mxu1 %v1581_v24 }
  0x27   : > { %1481 = vmatpush3.bf16.msra.mxu0 %v1580_v23  ;;  %1525 = vmatprep.subr.bf16.mxu1 %v1582_v25 }
  0x28   : > { %1482 = vmatprep.subr.bf16.mxu0 %v1581_v24 }
  0x29   : > { %1451 = vmatmul.mubr.msk.bf16.gmra.mxu0 %vm399_vm1, %v1566_v14 }
  0x2a   : > { %1454 = vmatprep.mubr.msk.bf16.mxu0 %vm399_vm1, %v1567_v15  ;;  %1533 = vmatpush3.bf16.msra.mxu1 %v1582_v25 }
  0x2b   : > { %1483 = vmatpush3.bf16.msra.mxu0 %v1581_v24 }
  0x2c   : > { %1484 = vmatprep.subr.bf16.mxu0 %v1582_v25 }
  0x2f   : > { %1485 = vmatpush3.bf16.msra.mxu0 %v1582_v25 }
  0x31   : > { %1455 = vmatmul.mubr.msk.bf16.gmra.mxu0 %vm399_vm1, %v1568_v16 }
  0x32   : > { %1458 = vmatprep.mubr.msk.bf16.mxu0 %vm399_vm1, %v1569_v17 }
  0x39   : > { %1459 = vmatmul.mubr.msk.bf16.gmra.mxu0 %vm399_vm1, %v1570_v18 }
  0x3a   : > { %1462 = vmatprep.mubr.msk.bf16.mxu0 %vm399_vm1, %v1571_v19 }
  0x41   : > { %1463 = vmatmul.mubr.msk.bf16.gmra.mxu0 %vm399_vm1, %v1572_v20 }
  0x42   : > { %1466 = vmatprep.mubr.msk.bf16.mxu0 %vm399_vm1, %v1573_v21 }
  0x49   : > { %1467 = vmatmul.mubr.msk.bf16.gmra.mxu0 %vm399_vm1, %v1574_v22 }
  0xd1   : > { %v1440_v26 = vpop.f32.mrf.mxu0 }
  0xd2   : > { %v495_v32 = vadd.f32 %v1440_v26, %v1728_v28 }
  0xd3   : > { %v486_v27 = vpop.f32.mrf.mxu0 }
  0xd4   : > { %v487_v30 = vadd.f32 %v1728_v28, %v486_v27  ;;  %v615_v39 = vmax.f32 %v495_v32, 0.0 }
  0xd5   : > { %v1441_v29 = vpop.f32.mrf.mxu0 }
  0xd6   : > { %v498_v31 = vadd.f32 %v1441_v29, %v1728_v28  ;;  %v613_v37 = vmax.f32 %v487_v30, 0.0 }
  0xd7   : > { %v489_v33 = vpop.f32.mrf.mxu0 }
  0xd8   : > { %v490_v34 = vadd.f32 %v1728_v28, %v489_v33  ;;  %v616_v35 = vmax.f32 %v498_v31, 0.0 }
  0xd9   : > { %v1444_v36 = vpop.f32.mrf.mxu0 }
  0xda   : > { %v614_v38 = vmax.f32 %v490_v34, 0.0  ;;  %v646_v42 = vpack.c.bf16 %v616_v35, %v615_v39  ;;  %v511_v46 = vadd.f32 %v1444_v36, %v1728_v28 }
  0xdb   : > { %v502_v40 = vpop.f32.mrf.mxu0 }
  0xdc   : > { %v645_v41 = vpack.c.bf16 %v614_v38, %v613_v37  ;;  %v503_v44 = vadd.f32 %v1728_v28, %v502_v40  ;;  %v619_v53 = vmax.f32 %v511_v46, 0.0 }
  0xdd   : > { %v1445_v43 = vpop.f32.mrf.mxu0 }
  0xde   : > { %v514_v45 = vadd.f32 %v1445_v43, %v1728_v28  ;;  %1486 = vmatprep.mubr.bf16.mxu0 %v645_v41  ;;  %v617_v51 = vmax.f32 %v503_v44, 0.0 }
  0xdf   : > { %v505_v47 = vpop.f32.mrf.mxu0  ;;  %1487 = vmatmul.mubr.bf16.vlgmr.msra.gmra.mxu0 %v646_v42 }
  0xe0   : > { %v506_v48 = vadd.f32 %v1728_v28, %v505_v47  ;;  %v620_v49 = vmax.f32 %v514_v45, 0.0 }
  0xe1   : > { %v1448_v50 = vpop.f32.mrf.mxu0 }
  0xe2   : > { %v618_v52 = vmax.f32 %v506_v48, 0.0  ;;  %v648_v56 = vpack.c.bf16 %v620_v49, %v619_v53  ;;  %v527_v60 = vadd.f32 %v1448_v50, %v1728_v28 }
  0xe3   : > { %v518_v54 = vpop.f32.mrf.mxu0 }
  0xe4   : > { %v647_v55 = vpack.c.bf16 %v618_v52, %v617_v51  ;;  %v519_v58 = vadd.f32 %v1728_v28, %v518_v54  ;;  %v623_v3 = vmax.f32 %v527_v60, 0.0 }
  0xe5   : > { %v1449_v57 = vpop.f32.mrf.mxu0 }
  0xe6   : > { %v530_v59 = vadd.f32 %v1449_v57, %v1728_v28  ;;  %1490 = vmatprep.mubr.bf16.mxu1 %v647_v55  ;;  %v621_v1 = vmax.f32 %v519_v58, 0.0 }
  0xe7   : > { %v521_v61 = vpop.f32.mrf.mxu0  ;;  %1491 = vmatmul.mubr.bf16.vlgmr.msra.gmra.mxu1 %v648_v56 }
  0xe8   : > { %v522_v62 = vadd.f32 %v1728_v28, %v521_v61  ;;  %v624_v63 = vmax.f32 %v530_v59, 0.0 }
  0xe9   : > { %v1452_v0 = vpop.f32.mrf.mxu0 }
  0xea   : > { %v622_v2 = vmax.f32 %v522_v62, 0.0  ;;  %v650_v6 = vpack.c.bf16 %v624_v63, %v623_v3  ;;  %v543_v10 = vadd.f32 %v1452_v0, %v1728_v28 }
  0xeb   : > { %v534_v4 = vpop.f32.mrf.mxu0 }
  0xec   : > { %v649_v5 = vpack.c.bf16 %v622_v2, %v621_v1  ;;  %v535_v8 = vadd.f32 %v1728_v28, %v534_v4  ;;  %v627_v17 = vmax.f32 %v543_v10, 0.0 }
  0xed   : > { %v1453_v7 = vpop.f32.mrf.mxu0 }
  0xee   : > { %v546_v9 = vadd.f32 %v1453_v7, %v1728_v28  ;;  %1494 = vmatprep.mubr.bf16.mxu1 %v649_v5  ;;  %v625_v15 = vmax.f32 %v535_v8, 0.0 }
  0xef   : > { %v537_v11 = vpop.f32.mrf.mxu0  ;;  %1495 = vmatmul.mubr.bf16.gmra.mxu1 %v650_v6 }
  0xf0   : > { %v538_v12 = vadd.f32 %v1728_v28, %v537_v11  ;;  %v628_v13 = vmax.f32 %v546_v9, 0.0 }
  0xf1   : > { %v1456_v14 = vpop.f32.mrf.mxu0 }
  0xf2   : > { %v626_v16 = vmax.f32 %v538_v12, 0.0  ;;  %v652_v20 = vpack.c.bf16 %v628_v13, %v627_v17  ;;  %v559_v24 = vadd.f32 %v1456_v14, %v1728_v28  ;;  %v1765_v13 = vld [vmem:[%s1835_s4] ss:$0 sm:$0xff] }
  0xf3   : > { %v550_v18 = vpop.f32.mrf.mxu0 }
  0xf4   : > { %v651_v19 = vpack.c.bf16 %v626_v16, %v625_v15  ;;  %v551_v22 = vadd.f32 %v1728_v28, %v550_v18  ;;  %v631_v32 = vmax.f32 %v559_v24, 0.0 }
  0xf5   : > { %v1457_v21 = vpop.f32.mrf.mxu0 }
  0xf6   : > { %v562_v23 = vadd.f32 %v1457_v21, %v1728_v28  ;;  %1498 = vmatprep.mubr.bf16.mxu1 %v651_v19  ;;  %v629_v30 = vmax.f32 %v551_v22, 0.0 }
  0xf7   : > { %v553_v25 = vpop.f32.mrf.mxu0  ;;  %1499 = vmatmul.mubr.bf16.gmra.mxu1 %v652_v20 }
  0xf8   : > { %v554_v26 = vadd.f32 %v1728_v28, %v553_v25  ;;  %v632_v27 = vmax.f32 %v562_v23, 0.0 }
  0xf9   : > { %v1460_v29 = vpop.f32.mrf.mxu0 }
  0xfa   : > { %v630_v31 = vmax.f32 %v554_v26, 0.0  ;;  %v654_v35 = vpack.c.bf16 %v632_v27, %v631_v32  ;;  %v575_v39 = vadd.f32 %v1460_v29, %v1728_v28 }
  0xfb   : > { %v566_v33 = vpop.f32.mrf.mxu0 }
  0xfc   : > { %v653_v34 = vpack.c.bf16 %v630_v31, %v629_v30  ;;  %v567_v37 = vadd.f32 %v1728_v28, %v566_v33  ;;  %v635_v46 = vmax.f32 %v575_v39, 0.0 }
  0xfd   : > { %v1461_v36 = vpop.f32.mrf.mxu0 }
  0xfe   : > { %v578_v38 = vadd.f32 %v1461_v36, %v1728_v28  ;;  %1502 = vmatprep.mubr.bf16.mxu1 %v653_v34  ;;  %v633_v44 = vmax.f32 %v567_v37, 0.0 }
  0xff   : > { %v569_v40 = vpop.f32.mrf.mxu0  ;;  %1503 = vmatmul.mubr.bf16.gmra.mxu1 %v654_v35 }
 0x100   : > { %v570_v41 = vadd.f32 %v1728_v28, %v569_v40  ;;  %v636_v42 = vmax.f32 %v578_v38, 0.0 }
 0x101   : > { %v1464_v43 = vpop.f32.mrf.mxu0 }
 0x102   : > { %v634_v45 = vmax.f32 %v570_v41, 0.0  ;;  %v656_v49 = vpack.c.bf16 %v636_v42, %v635_v46  ;;  %v591_v53 = vadd.f32 %v1464_v43, %v1728_v28 }
 0x103   : > { %v582_v47 = vpop.f32.mrf.mxu0 }
 0x104   : > { %v655_v48 = vpack.c.bf16 %v634_v45, %v633_v44  ;;  %v583_v51 = vadd.f32 %v1728_v28, %v582_v47  ;;  %v639_v60 = vmax.f32 %v591_v53, 0.0 }
 0x105   : > { %v1465_v50 = vpop.f32.mrf.mxu0 }
 0x106   : > { %v594_v52 = vadd.f32 %v1465_v50, %v1728_v28  ;;  %1506 = vmatprep.mubr.bf16.mxu1 %v655_v48  ;;  %v637_v58 = vmax.f32 %v583_v51, 0.0 }
 0x107   : > { %v585_v54 = vpop.f32.mrf.mxu0  ;;  %1507 = vmatmul.mubr.bf16.gmra.mxu1 %v656_v49 }
 0x108   : > { %v586_v55 = vadd.f32 %v1728_v28, %v585_v54  ;;  %v640_v56 = vmax.f32 %v594_v52, 0.0 }
 0x109   : > { %v1468_v57 = vpop.f32.mrf.mxu0 }
 0x10a   : > { %v638_v59 = vmax.f32 %v586_v55, 0.0  ;;  %v658_v63 = vpack.c.bf16 %v640_v56, %v639_v60  ;;  %v607_v3 = vadd.f32 %v1468_v57, %v1728_v28 }
 0x10b   : > { %v598_v61 = vpop.f32.mrf.mxu0 }
 0x10c   : > { %v657_v62 = vpack.c.bf16 %v638_v59, %v637_v58  ;;  %v599_v1 = vadd.f32 %v1728_v28, %v598_v61  ;;  %v643_v9 = vmax.f32 %v607_v3, 0.0 }
 0x10d   : > { %v1469_v0 = vpop.f32.mrf.mxu0 }
 0x10e   : > { %v610_v2 = vadd.f32 %v1469_v0, %v1728_v28  ;;  %1510 = vmatprep.mubr.bf16.mxu1 %v657_v62  ;;  %v641_v7 = vmax.f32 %v599_v1, 0.0 }
 0x10f   : > { %v601_v4 = vpop.f32.mrf.mxu0  ;;  %1511 = vmatmul.mubr.bf16.gmra.mxu1 %v658_v63 }
 0x110   : > { %v602_v5 = vadd.f32 %v1728_v28, %v601_v4  ;;  %v644_v6 = vmax.f32 %v610_v2, 0.0 }
 0x112   : > { %v642_v8 = vmax.f32 %v602_v5, 0.0  ;;  %v660_v11 = vpack.c.bf16 %v644_v6, %v643_v9 }
 0x114   : > { %v659_v10 = vpack.c.bf16 %v642_v8, %v641_v7 }
 0x116   : > { %1514 = vmatprep.mubr.bf16.mxu1 %v659_v10 }
 0x117   : > { %1515 = vmatmul.mubr.bf16.gmra.mxu1 %v660_v11 }
 0x19f   : > { %v1488_v12 = vpop.f32.mrf.mxu0 }
 0x1a0   : > { %v775_v15 = vadd.f32 %v1488_v12, %v1765_v13 }
 0x1a1   : > { %v766_v14 = vpop.f32.mrf.mxu0 }
 0x1a2   : > { %v767_v28 = vadd.f32 %v1765_v13, %v766_v14  ;;  %v895_v19 = vmax.f32 %v775_v15, 0.0 }
 0x1a3   : > { %v1489_v16 = vpop.f32.mrf.mxu0 }
 0x1a4   : > { %v778_v17 = vadd.f32 %v1489_v16, %v1765_v13  ;;  %v893_v23 = vmax.f32 %v767_v28, 0.0 }
 0x1a5   : > { %v769_v18 = vpop.f32.mrf.mxu0 }
 0x1a6   : > { %v896_v20 = vmax.f32 %v778_v17, 0.0  ;;  %v770_v21 = vadd.f32 %v1765_v13, %v769_v18 }
 0x1a7   : > { %v1492_v22 = vpop.f32.mrf.mxu1 }
 0x1a8   : > { %v1308_v24 = vpack.c.bf16 %v896_v20, %v895_v19  ;;  %v894_v25 = vmax.f32 %v770_v21, 0.0  ;;  %v791_v29 = vadd.f32 %v1492_v22, %v1765_v13 }
 0x1a9   : > { %v782_v26 = vpop.f32.mrf.mxu1 }
 0x1aa   : > { %1380 = vst [vmem:[%s1776_s6 + $0x8] sm:$0xff] %v1308_v24   ;;  %v1303_v27 = vpack.c.bf16 %v894_v25, %v893_v23  ;;  %v783_v31 = vadd.f32 %v1765_v13, %v782_v26  ;;  %v899_v34 = vmax.f32 %v791_v29, 0.0 }
 0x1ab   : > { %v1493_v30 = vpop.f32.mrf.mxu1 }
 0x1ac   : > { %1304 = vst [vmem:[%s1776_s6] sm:$0xff] %v1303_v27   ;;  %v794_v32 = vadd.f32 %v1493_v30, %v1765_v13  ;;  %v897_v38 = vmax.f32 %v783_v31, 0.0 }
 0x1ad   : > { %v785_v33 = vpop.f32.mrf.mxu1 }
 0x1ae   : > { %v900_v35 = vmax.f32 %v794_v32, 0.0  ;;  %v786_v36 = vadd.f32 %v1765_v13, %v785_v33 }
 0x1af   : > { %v1496_v37 = vpop.f32.mrf.mxu1 }
 0x1b0   : > { %v1318_v39 = vpack.c.bf16 %v900_v35, %v899_v34  ;;  %v898_v40 = vmax.f32 %v786_v36, 0.0  ;;  %v807_v43 = vadd.f32 %v1496_v37, %v1765_v13 }
 0x1b1   : > { %v798_v41 = vpop.f32.mrf.mxu1 }
 0x1b2   : > { %1382 = vst [vmem:[%s1776_s6 + $0x18] sm:$0xff] %v1318_v39   ;;  %v1313_v42 = vpack.c.bf16 %v898_v40, %v897_v38  ;;  %v799_v45 = vadd.f32 %v1765_v13, %v798_v41  ;;  %v903_v48 = vmax.f32 %v807_v43, 0.0 }
 0x1b3   : > { %v1497_v44 = vpop.f32.mrf.mxu1 }
 0x1b4   : > { %1381 = vst [vmem:[%s1776_s6 + $0x10] sm:$0xff] %v1313_v42   ;;  %v810_v46 = vadd.f32 %v1497_v44, %v1765_v13  ;;  %v901_v52 = vmax.f32 %v799_v45, 0.0 }
 0x1b5   : > { %v801_v47 = vpop.f32.mrf.mxu1 }
 0x1b6   : > { %v904_v49 = vmax.f32 %v810_v46, 0.0  ;;  %v802_v50 = vadd.f32 %v1765_v13, %v801_v47 }
 0x1b7   : > { %v1500_v51 = vpop.f32.mrf.mxu1 }
 0x1b8   : > { %v1328_v53 = vpack.c.bf16 %v904_v49, %v903_v48  ;;  %v902_v54 = vmax.f32 %v802_v50, 0.0  ;;  %v823_v57 = vadd.f32 %v1500_v51, %v1765_v13 }
 0x1b9   : > { %v814_v55 = vpop.f32.mrf.mxu1 }
 0x1ba   : > { %1384 = vst [vmem:[%s1776_s6 + $0x28] sm:$0xff] %v1328_v53   ;;  %v1323_v56 = vpack.c.bf16 %v902_v54, %v901_v52  ;;  %v815_v59 = vadd.f32 %v1765_v13, %v814_v55  ;;  %v907_v62 = vmax.f32 %v823_v57, 0.0 }
 0x1bb   : > { %v1501_v58 = vpop.f32.mrf.mxu1 }
 0x1bc   : > { %1383 = vst [vmem:[%s1776_s6 + $0x20] sm:$0xff] %v1323_v56   ;;  %v826_v60 = vadd.f32 %v1501_v58, %v1765_v13  ;;  %v905_v2 = vmax.f32 %v815_v59, 0.0 }
 0x1bd   : > { %v817_v61 = vpop.f32.mrf.mxu1 }
 0x1be   : > { %v908_v63 = vmax.f32 %v826_v60, 0.0  ;;  %v818_v0 = vadd.f32 %v1765_v13, %v817_v61 }
 0x1bf   : > { %v1504_v1 = vpop.f32.mrf.mxu1 }
 0x1c0   : > { %v1338_v3 = vpack.c.bf16 %v908_v63, %v907_v62  ;;  %v906_v4 = vmax.f32 %v818_v0, 0.0  ;;  %v839_v7 = vadd.f32 %v1504_v1, %v1765_v13 }
 0x1c1   : > { %v830_v5 = vpop.f32.mrf.mxu1 }
 0x1c2   : > { %1386 = vst [vmem:[%s1776_s6 + $0x38] sm:$0xff] %v1338_v3   ;;  %v1333_v6 = vpack.c.bf16 %v906_v4, %v905_v2  ;;  %v831_v9 = vadd.f32 %v1765_v13, %v830_v5  ;;  %v911_v12 = vmax.f32 %v839_v7, 0.0 }
 0x1c3   : > { %v1505_v8 = vpop.f32.mrf.mxu1 }
 0x1c4   : > { %1385 = vst [vmem:[%s1776_s6 + $0x30] sm:$0xff] %v1333_v6   ;;  %v842_v10 = vadd.f32 %v1505_v8, %v1765_v13  ;;  %v909_v28 = vmax.f32 %v831_v9, 0.0 }
 0x1c5   : > { %v833_v11 = vpop.f32.mrf.mxu1 }
 0x1c6   : > { %v912_v14 = vmax.f32 %v842_v10, 0.0  ;;  %v834_v15 = vadd.f32 %v1765_v13, %v833_v11 }
 0x1c7   : > { %v1508_v16 = vpop.f32.mrf.mxu1 }
 0x1c8   : > { %v1348_v17 = vpack.c.bf16 %v912_v14, %v911_v12  ;;  %v910_v18 = vmax.f32 %v834_v15, 0.0  ;;  %v855_v21 = vadd.f32 %v1508_v16, %v1765_v13 }
 0x1c9   : > { %v846_v19 = vpop.f32.mrf.mxu1 }
 0x1ca   : > { %1388 = vst [vmem:[%s1776_s6 + $0x48] sm:$0xff] %v1348_v17   ;;  %v1343_v20 = vpack.c.bf16 %v910_v18, %v909_v28  ;;  %v847_v23 = vadd.f32 %v1765_v13, %v846_v19  ;;  %v915_v26 = vmax.f32 %v855_v21, 0.0 }
 0x1cb   : > { %v1509_v22 = vpop.f32.mrf.mxu1 }
 0x1cc   : > { %1387 = vst [vmem:[%s1776_s6 + $0x40] sm:$0xff] %v1343_v20   ;;  %v858_v24 = vadd.f32 %v1509_v22, %v1765_v13  ;;  %v913_v31 = vmax.f32 %v847_v23, 0.0 }
 0x1cd   : > { %v849_v25 = vpop.f32.mrf.mxu1 }
 0x1ce   : > { %v916_v27 = vmax.f32 %v858_v24, 0.0  ;;  %v850_v29 = vadd.f32 %v1765_v13, %v849_v25 }
 0x1cf   : > { %v1512_v30 = vpop.f32.mrf.mxu1 }
 0x1d0   : > { %v1358_v32 = vpack.c.bf16 %v916_v27, %v915_v26  ;;  %v914_v33 = vmax.f32 %v850_v29, 0.0  ;;  %v871_v36 = vadd.f32 %v1512_v30, %v1765_v13 }
 0x1d1   : > { %v862_v34 = vpop.f32.mrf.mxu1 }
 0x1d2   : > { %1390 = vst [vmem:[%s1776_s6 + $0x58] sm:$0xff] %v1358_v32   ;;  %v1353_v35 = vpack.c.bf16 %v914_v33, %v913_v31  ;;  %v863_v38 = vadd.f32 %v1765_v13, %v862_v34  ;;  %v919_v41 = vmax.f32 %v871_v36, 0.0 }
 0x1d3   : > { %v1513_v37 = vpop.f32.mrf.mxu1 }
 0x1d4   : > { %1389 = vst [vmem:[%s1776_s6 + $0x50] sm:$0xff] %v1353_v35   ;;  %v874_v39 = vadd.f32 %v1513_v37, %v1765_v13  ;;  %v917_v45 = vmax.f32 %v863_v38, 0.0 }
 0x1d5   : > { %v865_v40 = vpop.f32.mrf.mxu1 }
 0x1d6   : > { %v920_v42 = vmax.f32 %v874_v39, 0.0  ;;  %v866_v43 = vadd.f32 %v1765_v13, %v865_v40 }
 0x1d7   : > { %v1516_v44 = vpop.f32.mrf.mxu1 }
 0x1d8   : > { %v1368_v46 = vpack.c.bf16 %v920_v42, %v919_v41  ;;  %v918_v47 = vmax.f32 %v866_v43, 0.0  ;;  %v887_v50 = vadd.f32 %v1516_v44, %v1765_v13 }
 0x1d9   : > { %v878_v48 = vpop.f32.mrf.mxu1 }
 0x1da   : > { %1392 = vst [vmem:[%s1776_s6 + $0x68] sm:$0xff] %v1368_v46   ;;  %v1363_v49 = vpack.c.bf16 %v918_v47, %v917_v45  ;;  %v879_v52 = vadd.f32 %v1765_v13, %v878_v48  ;;  %v923_v55 = vmax.f32 %v887_v50, 0.0 }
 0x1db   : > { %v1517_v51 = vpop.f32.mrf.mxu1 }
 0x1dc   : > { %1391 = vst [vmem:[%s1776_s6 + $0x60] sm:$0xff] %v1363_v49   ;;  %v890_v53 = vadd.f32 %v1517_v51, %v1765_v13  ;;  %v921_v58 = vmax.f32 %v879_v52, 0.0 }
 0x1dd   : > { %v881_v54 = vpop.f32.mrf.mxu1 }
 0x1de   : > { %v924_v56 = vmax.f32 %v890_v53, 0.0  ;;  %v882_v57 = vadd.f32 %v1765_v13, %v881_v54 }
 0x1e0   : > { %v1378_v59 = vpack.c.bf16 %v924_v56, %v923_v55  ;;  %v922_v60 = vmax.f32 %v882_v57, 0.0 }
 0x1e2   : > { %1394 = vst [vmem:[%s1776_s6 + $0x78] sm:$0xff] %v1378_v59   ;;  %v1373_v61 = vpack.c.bf16 %v922_v60, %v921_v58 }
 0x1e4   : > { %1393 = vst [vmem:[%s1776_s6 + $0x70] sm:$0xff] %v1373_v61  }
 0x1e5 PF: > { %s15_s20 = sadd.s32 1, %s1605_s20   ;;  %s1837_s18 = smov %s1601_s19 }
 0x1e6   : > { %p12_p5 = scmp.ge.s32.totalorder %s15_s20, 4   ;;  %s1838_s19 = smov %s1840_s21 }
 0x1e8   :  { %14 = sbr.rel (!%p12_p5) target bundleno = 2 (0x2), region = 73 }

// kernel: image_level_context_forward.4
= control target key start
LH: loop header
LB: loop body
LE: loop exit
PB: predicated region body
PF: predicated region fallthrough
CT: control target
= control target key end

     0   :  { %s2407_s12 = smov 0   ;;  %s3209_s0 = inlined_call_operand.vmem [shape: bf16[2,256,128], index: 0, kind: input, shape index: {}]   ;;  %s3210_s1 = inlined_call_operand.vmem [shape: bf16[32,8], index: 1, kind: input, shape index: {}]   ;;  %s3211_s2 = inlined_call_operand.vmem [shape: f32[1,8], index: 2, kind: input, shape index: {}]   ;;  %s3212_s3 = inlined_call_operand.vmem [shape: bf16[2,256,8], index: 3, kind: output, shape index: {}]  }
   0x1 LB: > { %s1791_s13 = sadd.s32 4294967295, %s2383_s12   ;;  %p1795_p0 = scmp.ge.s32.totalorder %s2383_s12, 1  ;;  %s2383_s12 = sphi %s2407_s12, %s13_s12  }
   0x2   : > { %p137_p1 = scmp.lt.s32.totalorder %s2383_s12, 3 }
   0x4   : > { %p138_p2 = pnand %p1795_p0, %p137_p1 }
   0x6   : > { %141 = sbr.rel (%p138_p2) target bundleno = 1139 (0x473), region = 32 }
   0xb   : > { %p161_p3 = scmp.lt.s32.totalorder %s1791_s13, 1  ;;  %s2385_s18 = smov 96   ;;  %vm316_vm0 = vcmask 261120   ;;  %vm1703_vm1 = vcmask 60416  }
   0xc   : > { %s2386_s19 = smov 64  }
   0xd   : > { %s3253_s13 = smov (!%p161_p3, %s1791_s13), 1 }
   0xe   : > { %s1885_s14 = sshll.u32 %s3253_s13, 7 }
   0xf   : > { %s2423_s17 = scalar_lea.vmem %s3209_s0, %s1885_s14  ;;  %s3110_s28 = scalar_lea.vmem %s3212_s3, %s1885_s14 }
  0x10   : > { %v2426_v0 = vld [vmem:[%s2423_s17 + $0x38] sm:$0xff]   ;;  %v2434_v2 = vld [vmem:[%s2423_s17 + $0x30] sm:$0xff]   ;;  %v2444_v4 = vld [vmem:[%s2423_s17 + $0x28] sm:$0xff]  }
  0x11   : > { %v2429_v1 = vld [vmem:[%s2423_s17 + $0x78] sm:$0xff]   ;;  %298 = vrot.lane.b32.xlu0 %v2426_v0, %s2385_s18  ;;  %296 = vrot.lane.b32.xlu1 %v2434_v2, %s2385_s18  ;;  %v2439_v3 = vld [vmem:[%s2423_s17 + $0x70] sm:$0xff]  }
  0x12   : > { %v2449_v5 = vld [vmem:[%s2423_s17 + $0x68] sm:$0xff]   ;;  %v2454_v6 = vld [vmem:[%s2423_s17 + $0x20] sm:$0xff]   ;;  %v2464_v8 = vld [vmem:[%s2423_s17 + $0x18] sm:$0xff]  }
  0x13   : > { %v2459_v7 = vld [vmem:[%s2423_s17 + $0x60] sm:$0xff]   ;;  %v2472_v10 = vld [vmem:[%s2423_s17 + $0x58] sm:$0xff]   ;;  %v2479_v11 = vld [vmem:[%s2423_s17 + $0x10] sm:$0xff]  }
  0x14   : > { %v2467_v9 = vld [vmem:[%s2423_s17] sm:$0xff]   ;;  %v2484_v12 = vld [vmem:[%s2423_s17 + $0x50] sm:$0xff]   ;;  %v2489_v13 = vld [vmem:[%s2423_s17 + $0x8] sm:$0xff]  }
  0x15   : > { %314 = vrot.lane.b32.xlu0 %v2429_v1, %s2385_s18  ;;  %312 = vrot.lane.b32.xlu1 %v2439_v3, %s2385_s18  ;;  %v2494_v14 = vld [vmem:[%s2423_s17 + $0x48] sm:$0xff]   ;;  %v2501_v15 = vld [vmem:[%s2423_s17 + $0x40] sm:$0xff]  }
  0x16   : > { %1935 = vmatprep.mubr.msk.bf16.mxu0 %vm316_vm0, %v2467_v9 }
  0x19   : > { %294 = vrot.lane.b32.xlu0 %v2444_v4, %s2385_s18  ;;  %310 = vrot.lane.b32.xlu1 %v2449_v5, %s2385_s18 }
  0x1d   : > { %292 = vrot.lane.b32.xlu0 %v2454_v6, %s2385_s18  ;;  %308 = vrot.lane.b32.xlu1 %v2459_v7, %s2385_s18 }
  0x21   : > { %290 = vrot.lane.b32.xlu0 %v2464_v8, %s2385_s18  ;;  %306 = vrot.lane.b32.xlu1 %v2472_v10, %s2385_s18 }
  0x25   : > { %288 = vrot.lane.b32.xlu0 %v2479_v11, %s2385_s18  ;;  %304 = vrot.lane.b32.xlu1 %v2484_v12, %s2385_s18 }
  0x29   : > { %286 = vrot.lane.b32.xlu0 %v2489_v13, %s2385_s18  ;;  %302 = vrot.lane.b32.xlu1 %v2494_v14, %s2385_s18 }
  0x2d   : > { %284 = vrot.lane.b32.xlu0 %v2467_v9, %s2385_s18  ;;  %300 = vrot.lane.b32.xlu1 %v2501_v15, %s2385_s18 }
  0x31   : > { %1036 = vrot.lane.b32.xlu1 %v2426_v0, %s2386_s19  ;;  %1052 = vrot.lane.b32.xlu0 %v2429_v1, %s2386_s19 }
  0x35   : > { %1034 = vrot.lane.b32.xlu1 %v2434_v2, %s2386_s19  ;;  %1050 = vrot.lane.b32.xlu0 %v2439_v3, %s2386_s19 }
  0x39   : > { %1032 = vrot.lane.b32.xlu1 %v2444_v4, %s2386_s19  ;;  %1048 = vrot.lane.b32.xlu0 %v2449_v5, %s2386_s19 }
  0x3d   : > { %1030 = vrot.lane.b32.xlu1 %v2454_v6, %s2386_s19  ;;  %1046 = vrot.lane.b32.xlu0 %v2459_v7, %s2386_s19 }
  0x41   : > { %1028 = vrot.lane.b32.xlu1 %v2464_v8, %s2386_s19  ;;  %1044 = vrot.lane.b32.xlu0 %v2472_v10, %s2386_s19 }
  0x45   : > { %1026 = vrot.lane.b32.xlu1 %v2479_v11, %s2386_s19  ;;  %1042 = vrot.lane.b32.xlu0 %v2484_v12, %s2386_s19 }
  0x49   : > { %1024 = vrot.lane.b32.xlu1 %v2489_v13, %s2386_s19  ;;  %1040 = vrot.lane.b32.xlu0 %v2494_v14, %s2386_s19 }
  0x83   : > { %v299_v16 = vpop.permute.xlu0 %298  ;;  %v297_v17 = vpop.permute.xlu1 %296 }
  0x84   : > { %v387_v19 = vsel %vm316_vm0, %v299_v16, 0  ;;  %v384_v22 = vsel %vm316_vm0, %v297_v17, 0 }
  0x87   : > { %v315_v18 = vpop.permute.xlu0 %314  ;;  %v313_v20 = vpop.permute.xlu1 %312 }
  0x88   : > { %2149 = vmatprep.subr.msk.bf16.mxu0 %vm316_vm0, %v315_v18 }
  0x89   : > { %1920 = vmatpush3.bf16.xpose.msra.mxu0 %v387_v19 }
  0x8a   : > { %2150 = vmatprep.subr.msk.bf16.mxu0 %vm316_vm0, %v313_v20 }
  0x8b   : > { %v311_v21 = vpop.permute.xlu1 %310  ;;  %v295_v23 = vpop.permute.xlu0 %294 }
  0x8c   : > { %v381_v24 = vsel %vm316_vm0, %v295_v23, 0 }
  0x8f   : > { %v309_v25 = vpop.permute.xlu1 %308  ;;  %v293_v26 = vpop.permute.xlu0 %292 }
  0x90   : > { %v378_v27 = vsel %vm316_vm0, %v293_v26, 0 }
  0x91   : > { %1922 = vmatpush3.bf16.xpose.msra.mxu0 %v384_v22 }
  0x92   : > { %2151 = vmatprep.subr.msk.bf16.mxu0 %vm316_vm0, %v311_v21 }
  0x93   : > { %v307_v28 = vpop.permute.xlu1 %306  ;;  %v291_v29 = vpop.permute.xlu0 %290 }
  0x94   : > { %v375_v30 = vsel %vm316_vm0, %v291_v29, 0 }
  0x97   : > { %v305_v31 = vpop.permute.xlu1 %304  ;;  %v289_v32 = vpop.permute.xlu0 %288 }
  0x98   : > { %v372_v33 = vsel %vm316_vm0, %v289_v32, 0 }
  0x99   : > { %1924 = vmatpush3.bf16.xpose.msra.mxu0 %v381_v24 }
  0x9a   : > { %2152 = vmatprep.subr.msk.bf16.mxu0 %vm316_vm0, %v309_v25 }
  0x9b   : > { %v303_v34 = vpop.permute.xlu1 %302  ;;  %v287_v35 = vpop.permute.xlu0 %286 }
  0x9c   : > { %v369_v36 = vsel %vm316_vm0, %v287_v35, 0 }
  0x9f   : > { %v301_v37 = vpop.permute.xlu1 %300  ;;  %v285_v38 = vpop.permute.xlu0 %284 }
  0xa0   : > { %v366_v39 = vsel %vm316_vm0, %v285_v38, 0 }
  0xa1   : > { %1926 = vmatpush3.bf16.xpose.msra.mxu0 %v378_v27 }
  0xa2   : > { %2153 = vmatprep.subr.msk.bf16.mxu0 %vm316_vm0, %v307_v28 }
  0xa3   : > { %v1053_v40 = vpop.permute.xlu0 %1052  ;;  %v1037_v41 = vpop.permute.xlu1 %1036 }
  0xa4   : > { %2133 = vmatprep.subr.bf16.mxu1 %v1053_v40 }
  0xa5   : > { %2141 = vmatpush3.bf16.msra.mxu1 %v1037_v41 }
  0xa7   : > { %v1051_v42 = vpop.permute.xlu0 %1050  ;;  %v1035_v43 = vpop.permute.xlu1 %1034 }
  0xa8   : > { %2134 = vmatprep.subr.bf16.mxu1 %v1051_v42 }
  0xa9   : > { %1928 = vmatpush3.bf16.xpose.msra.mxu0 %v375_v30  ;;  %2142 = vmatpush3.bf16.msra.mxu1 %v1035_v43 }
  0xaa   : > { %2154 = vmatprep.subr.msk.bf16.mxu0 %vm316_vm0, %v305_v31 }
  0xab   : > { %v1049_v44 = vpop.permute.xlu0 %1048  ;;  %v1033_v45 = vpop.permute.xlu1 %1032 }
  0xac   : > { %2135 = vmatprep.subr.bf16.mxu1 %v1049_v44 }
  0xad   : > { %2143 = vmatpush3.bf16.msra.mxu1 %v1033_v45 }
  0xaf   : > { %v1047_v46 = vpop.permute.xlu0 %1046  ;;  %v1031_v47 = vpop.permute.xlu1 %1030 }
  0xb0   : > { %2136 = vmatprep.subr.bf16.mxu1 %v1047_v46 }
  0xb1   : > { %1930 = vmatpush3.bf16.xpose.msra.mxu0 %v372_v33  ;;  %2144 = vmatpush3.bf16.msra.mxu1 %v1031_v47 }
  0xb2   : > { %2155 = vmatprep.subr.msk.bf16.mxu0 %vm316_vm0, %v303_v34 }
  0xb3   : > { %v1045_v48 = vpop.permute.xlu0 %1044  ;;  %v1029_v49 = vpop.permute.xlu1 %1028 }
  0xb4   : > { %2137 = vmatprep.subr.bf16.mxu1 %v1045_v48 }
  0xb5   : > { %2145 = vmatpush3.bf16.msra.mxu1 %v1029_v49 }
  0xb7   : > { %v1043_v50 = vpop.permute.xlu0 %1042  ;;  %v1027_v51 = vpop.permute.xlu1 %1026 }
  0xb8   : > { %2138 = vmatprep.subr.bf16.mxu1 %v1043_v50 }
  0xb9   : > { %1932 = vmatpush3.bf16.xpose.msra.mxu0 %v369_v36  ;;  %2146 = vmatpush3.bf16.msra.mxu1 %v1027_v51 }
  0xba   : > { %2156 = vmatprep.subr.msk.bf16.mxu0 %vm316_vm0, %v301_v37 }
  0xbb   : > { %v1041_v52 = vpop.permute.xlu0 %1040  ;;  %v1025_v53 = vpop.permute.xlu1 %1024 }
  0xbc   : > { %2139 = vmatprep.subr.bf16.mxu1 %v1041_v52 }
  0xbd   : > { %2147 = vmatpush3.bf16.msra.mxu1 %v1025_v53 }
  0xc1   : > { %1934 = vmatpush3.bf16.xpose.msra.mxu0 %v366_v39 }
  0xc2   : > { %1967 = vmatprep.subr.bf16.mxu0 %v1053_v40 }
  0xc8   : > { %1936 = vmatmul.mubr.msk.bf16.vlgmr.msra.gmra.mxu0 %vm316_vm0, %v2467_v9 }
  0xc9   : > { %1937 = vmatprep.mubr.msk.bf16.mxu0 %vm316_vm0, %v2489_v13  ;;  %1968 = vmatpush3.bf16.msra.mxu0 %v1037_v41 }
  0xca   : > { %1969 = vmatprep.subr.bf16.mxu0 %v1051_v42 }
  0xcd   : > { %1970 = vmatpush3.bf16.msra.mxu0 %v1035_v43 }
  0xce   : > { %1971 = vmatprep.subr.bf16.mxu0 %v1049_v44 }
  0xd0   : > { %1938 = vmatmul.mubr.msk.bf16.gmra.mxu0 %vm316_vm0, %v2489_v13 }
  0xd1   : > { %1939 = vmatprep.mubr.msk.bf16.mxu0 %vm316_vm0, %v2479_v11  ;;  %1972 = vmatpush3.bf16.msra.mxu0 %v1033_v45 }
  0xd2   : > { %1973 = vmatprep.subr.bf16.mxu0 %v1047_v46 }
  0xd5   : > { %1974 = vmatpush3.bf16.msra.mxu0 %v1031_v47 }
  0xd6   : > { %1975 = vmatprep.subr.bf16.mxu0 %v1045_v48 }
  0xd8   : > { %1940 = vmatmul.mubr.msk.bf16.gmra.mxu0 %vm316_vm0, %v2479_v11 }
  0xd9   : > { %1941 = vmatprep.mubr.msk.bf16.mxu0 %vm316_vm0, %v2464_v8  ;;  %1976 = vmatpush3.bf16.msra.mxu0 %v1029_v49 }
  0xda   : > { %1977 = vmatprep.subr.bf16.mxu0 %v1043_v50 }
  0xdd   : > { %1978 = vmatpush3.bf16.msra.mxu0 %v1027_v51 }
  0xde   : > { %1979 = vmatprep.subr.bf16.mxu0 %v1041_v52 }
  0xe0   : > { %1942 = vmatmul.mubr.msk.bf16.gmra.mxu0 %vm316_vm0, %v2464_v8 }
  0xe1   : > { %1943 = vmatprep.mubr.msk.bf16.mxu0 %vm316_vm0, %v2454_v6  ;;  %1980 = vmatpush3.bf16.msra.mxu0 %v1025_v53 }
  0xe8   : > { %1944 = vmatmul.mubr.msk.bf16.gmra.mxu0 %vm316_vm0, %v2454_v6 }
  0xe9   : > { %1945 = vmatprep.mubr.msk.bf16.mxu0 %vm316_vm0, %v2444_v4 }
  0xf0   : > { %1946 = vmatmul.mubr.msk.bf16.gmra.mxu0 %vm316_vm0, %v2444_v4 }
  0xf1   : > { %1947 = vmatprep.mubr.msk.bf16.mxu0 %vm316_vm0, %v2434_v2 }
  0xf8   : > { %1948 = vmatmul.mubr.msk.bf16.gmra.mxu0 %vm316_vm0, %v2434_v2 }
  0xf9   : > { %1949 = vmatprep.mubr.msk.bf16.mxu0 %vm316_vm0, %v2426_v0 }
 0x100   : > { %1950 = vmatmul.mubr.msk.bf16.gmra.mxu0 %vm316_vm0, %v2426_v0 }
 0x101   : > { %1951 = vmatprep.mubr.msk.bf16.mxu0 %vm316_vm0, %v2501_v15 }
 0x108   : > { %1952 = vmatmul.mubr.msk.bf16.gmra.mxu0 %vm316_vm0, %v2501_v15 }
 0x109   : > { %1953 = vmatprep.mubr.msk.bf16.mxu0 %vm316_vm0, %v2494_v14 }
 0x110   : > { %1954 = vmatmul.mubr.msk.bf16.gmra.mxu0 %vm316_vm0, %v2494_v14 }
 0x111   : > { %1955 = vmatprep.mubr.msk.bf16.mxu0 %vm316_vm0, %v2484_v12 }
 0x118   : > { %1956 = vmatmul.mubr.msk.bf16.gmra.mxu0 %vm316_vm0, %v2484_v12 }
 0x119   : > { %1957 = vmatprep.mubr.msk.bf16.mxu0 %vm316_vm0, %v2472_v10 }
 0x120   : > { %1958 = vmatmul.mubr.msk.bf16.gmra.mxu0 %vm316_vm0, %v2472_v10 }
 0x121   : > { %1959 = vmatprep.mubr.msk.bf16.mxu0 %vm316_vm0, %v2459_v7 }
 0x128   : > { %1960 = vmatmul.mubr.msk.bf16.gmra.mxu0 %vm316_vm0, %v2459_v7 }
 0x129   : > { %1961 = vmatprep.mubr.msk.bf16.mxu0 %vm316_vm0, %v2449_v5 }
 0x130   : > { %1962 = vmatmul.mubr.msk.bf16.gmra.mxu0 %vm316_vm0, %v2449_v5 }
 0x131   : > { %1963 = vmatprep.mubr.msk.bf16.mxu0 %vm316_vm0, %v2439_v3 }
 0x138   : > { %1964 = vmatmul.mubr.msk.bf16.gmra.mxu0 %vm316_vm0, %v2439_v3 }
 0x139   : > { %1965 = vmatprep.mubr.msk.bf16.mxu0 %vm316_vm0, %v2429_v1 }
 0x140   : > { %1966 = vmatmul.mubr.msk.bf16.gmra.mxu0 %vm316_vm0, %v2429_v1 }
 0x188   : > { %v2613_v54 = vpop.f32.mrf.mxu0 }
 0x18a   : > { %v2615_v55 = vpop.f32.mrf.mxu0 }
 0x18b   : > { %v606_v47 = vmax.f32 %v2613_v54, %v2615_v55 }
 0x18c   : > { %v2617_v56 = vpop.f32.mrf.mxu0 }
 0x18e   : > { %v2619_v57 = vpop.f32.mrf.mxu0 }
 0x18f   : > { %v609_v50 = vmax.f32 %v2617_v56, %v2619_v57 }
 0x190   : > { %v2621_v58 = vpop.f32.mrf.mxu0 }
 0x192   : > { %v2623_v59 = vpop.f32.mrf.mxu0 }
 0x194   : > { %v2625_v60 = vpop.f32.mrf.mxu0 }
 0x196   : > { %v2627_v61 = vpop.f32.mrf.mxu0 }
 0x198   : > { %v2629_v62 = vpop.f32.mrf.mxu0 }
 0x19a   : > { %v2631_v63 = vpop.f32.mrf.mxu0 }
 0x19b   : > { %v618_v0 = vmax.f32 %v2629_v62, %v2631_v63 }
 0x19c   : > { %v2635_v1 = vpop.f32.mrf.mxu0 }
 0x19d   : > { %619 = vmax.xlane.f32.xlu0 %v618_v0 }
 0x19e   : > { %v2637_v2 = vpop.f32.mrf.mxu0 }
 0x19f   : > { %v621_v3 = vmax.f32 %v2635_v1, %v2637_v2 }
 0x1a0   : > { %v2641_v4 = vpop.f32.mrf.mxu0 }
 0x1a1   : > { %622 = vmax.xlane.f32.xlu1 %v621_v3 }
 0x1a2   : > { %v2643_v5 = vpop.f32.mrf.mxu0 }
 0x1a3   : > { %v624_v6 = vmax.f32 %v2641_v4, %v2643_v5 }
 0x1a4   : > { %v2647_v7 = vpop.f32.mrf.mxu0 }
 0x1a5   : > { %625 = vmax.xlane.f32.xlu0 %v624_v6 }
 0x1a6   : > { %v2649_v8 = vpop.f32.mrf.mxu0 }
 0x1a7   : > { %v627_v10 = vmax.f32 %v2647_v7, %v2649_v8 }
 0x1a8   : > { %v2653_v11 = vpop.f32.mrf.mxu0 }
 0x1a9   : > { %628 = vmax.xlane.f32.xlu1 %v627_v10 }
 0x1aa   : > { %v2655_v12 = vpop.f32.mrf.mxu0 }
 0x1ab   : > { %v630_v13 = vmax.f32 %v2653_v11, %v2655_v12 }
 0x1ac   : > { %v2659_v14 = vpop.f32.mrf.mxu0 }
 0x1ad   : > { %631 = vmax.xlane.f32.xlu0 %v630_v13  ;;  %v612_v13 = vmax.f32 %v2621_v58, %v2623_v59 }
 0x1ae   : > { %v2661_v16 = vpop.f32.mrf.mxu0 }
 0x1af   : > { %v633_v17 = vmax.f32 %v2659_v14, %v2661_v16 }
 0x1b0   : > { %v2665_v18 = vpop.f32.mrf.mxu0 }
 0x1b1   : > { %634 = vmax.xlane.f32.xlu1 %v633_v17  ;;  %v615_v17 = vmax.f32 %v2625_v60, %v2627_v61 }
 0x1b2   : > { %v2667_v19 = vpop.f32.mrf.mxu0 }
 0x1b3   : > { %v636_v41 = vmax.f32 %v2665_v18, %v2667_v19 }
 0x1b4   : > { %v2669_v20 = vpop.f32.mrf.mxu0 }
 0x1b6   : > { %v2671_v21 = vpop.f32.mrf.mxu0 }
 0x1b7   : > { %v639_v22 = vmax.f32 %v2669_v20, %v2671_v21 }
 0x1b8   : > { %v2675_v23 = vpop.f32.mrf.mxu0 }
 0x1b9   : > { %640 = vmax.xlane.f32.xlu1 %v639_v22 }
 0x1ba   : > { %v2677_v24 = vpop.f32.mrf.mxu0 }
 0x1bb   : > { %v642_v43 = vmax.f32 %v2675_v23, %v2677_v24 }
 0x1bc   : > { %v2679_v25 = vpop.f32.mrf.mxu0 }
 0x1be   : > { %v2681_v26 = vpop.f32.mrf.mxu0 }
 0x1bf   : > { %v645_v51 = vmax.f32 %v2679_v25, %v2681_v26 }
 0x1c0   : > { %v2683_v27 = vpop.f32.mrf.mxu0 }
 0x1c2   : > { %v2685_v28 = vpop.f32.mrf.mxu0 }
 0x1c3   : > { %1038 = vrot.lane.b32.xlu0 %v2501_v15, %s2386_s19  ;;  %v648_v0 = vmax.f32 %v2683_v27, %v2685_v28 }
 0x1c4   : > { %v2689_v29 = vpop.f32.mrf.mxu0 }
 0x1c6   : > { %v2691_v30 = vpop.f32.mrf.mxu0 }
 0x1c7   : > { %v651_v3 = vmax.f32 %v2689_v29, %v2691_v30 }
 0x1c8   : > { %v2693_v31 = vpop.f32.mrf.mxu0 }
 0x1ca   : > { %1022 = vrot.lane.b32.xlu1 %v2467_v9, %s2386_s19  ;;  %v2697_v32 = vpop.f32.mrf.mxu0 }
 0x1cc   : > { %v2699_v33 = vpop.f32.mrf.mxu0 }
 0x1cd   : > { %3226 = vst [vmem:[#allocation2_spill] sm:$0xff] %v2699_v33 }
 0x1ce   : > { %v2701_v34 = vpop.f32.mrf.mxu0 }
 0x1d0   : > { %v2703_v35 = vpop.f32.mrf.mxu0 }
 0x1d1   : > { %3227 = vst [vmem:[#allocation3_spill] sm:$0xff] %v2703_v35 }
 0x1d2   : > { %v2705_v36 = vpop.f32.mrf.mxu0 }
 0x1d4   : > { %v2707_v15 = vpop.f32.mrf.mxu0 }
 0x1d5   : > { %3228 = vst [vmem:[#allocation4_spill] sm:$0xff] %v2707_v15 }
 0x1d6   : > { %v2709_v37 = vpop.f32.mrf.mxu0 }
 0x1d8   : > { %v2711_v38 = vpop.f32.mrf.mxu0 }
 0x1da   : > { %v2713_v39 = vpop.f32.mrf.mxu0 }
 0x1dc   : > { %v2715_v40 = vpop.f32.mrf.mxu0 }
 0x1dd   : > { %3229 = vst [vmem:[#allocation5_spill] sm:$0xff] %v2715_v40 }
 0x1de   : > { %v2717_v9 = vpop.f32.mrf.mxu0 }
 0x1e0   : > { %v2721_v42 = vpop.f32.mrf.mxu0 }
 0x1e2   : > { %637 = vmax.xlane.f32.xlu0 %v636_v41  ;;  %v2725_v44 = vpop.f32.mrf.mxu0 }
 0x1e4   : > { %v2727_v45 = vpop.f32.mrf.mxu0 }
 0x1e5   : > { %3230 = vst [vmem:[#allocation6_spill] sm:$0xff] %v2727_v45 }
 0x1e6   : > { %643 = vmax.xlane.f32.xlu0 %v642_v43  ;;  %v2729_v46 = vpop.f32.mrf.mxu0  ;;  %v654_v43 = vmax.f32 %v2693_v31, %v2697_v32 }
 0x1e8   : > { %v2733_v48 = vpop.f32.mrf.mxu0 }
 0x1ea   : > { %607 = vmax.xlane.f32.xlu0 %v606_v47  ;;  %v2735_v49 = vpop.f32.mrf.mxu0  ;;  %v657_v47 = vmax.f32 %v2699_v33, %v2701_v34  ;;  %v669_v33 = vmax.f32 %v2715_v40, %v2717_v9 }
 0x1ec   : > { %v2741_v52 = vpop.f32.mrf.mxu0 }
 0x1ed   : > { %3231 = vst [vmem:[#allocation7_spill] sm:$0xff] %v2741_v52 }
 0x1ee   : > { %610 = vmax.xlane.f32.xlu0 %v609_v50  ;;  %646 = vmax.xlane.f32.xlu1 %v645_v51  ;;  %v2743_v53 = vpop.f32.mrf.mxu0  ;;  %v660_v51 = vmax.f32 %v2703_v35, %v2705_v36 }
 0x1f0   : > { %v2749_v6 = vpop.f32.mrf.mxu0 }
 0x1f2   : > { %649 = vmax.xlane.f32.xlu1 %v648_v0  ;;  %652 = vmax.xlane.f32.xlu0 %v651_v3  ;;  %v2751_v10 = vpop.f32.mrf.mxu0  ;;  %v663_v0 = vmax.f32 %v2707_v15, %v2709_v37  ;;  %v675_v15 = vmax.f32 %v2727_v45, %v2729_v46 }
 0x1f4   : > { %v2757_v22 = vpop.f32.mrf.mxu0 }
 0x1f5   : > { %3232 = vst [vmem:[#allocation8_spill] sm:$0xff] %v2757_v22 }
 0x1f6   : > { %613 = vmax.xlane.f32.xlu1 %v612_v13  ;;  %616 = vmax.xlane.f32.xlu0 %v615_v17  ;;  %v2759_v41 = vpop.f32.mrf.mxu0  ;;  %v666_v17 = vmax.f32 %v2711_v38, %v2713_v39 }
 0x1f8   : > { %v2765_v50 = vpop.f32.mrf.mxu0 }
 0x1f9   : > { %3233 = vst [vmem:[#allocation9_spill] sm:$0xff] %v2765_v50 }
 0x1fa   : > { %655 = vmax.xlane.f32.xlu1 %v654_v43  ;;  %658 = vmax.xlane.f32.xlu0 %v657_v47  ;;  %v2771_v3 = vpop.f32.mrf.mxu0  ;;  %v672_v47 = vmax.f32 %v2721_v42, %v2725_v44 }
 0x1fb   : > { %3234 = vst [vmem:[#allocation10_spill] sm:$0xff] %v2771_v3 }
 0x1fc   : > { %v2773_v13 = vpop.f32.mrf.mxu0 }
 0x1fd   : > { %3235 = vst [vmem:[#allocation11_spill] sm:$0xff] %v2773_v13 }
 0x1fe   : > { %661 = vmax.xlane.f32.xlu1 %v660_v51  ;;  %664 = vmax.xlane.f32.xlu0 %v663_v0  ;;  %v2779_v43 = vpop.f32.mrf.mxu0  ;;  %v678_v51 = vmax.f32 %v2733_v48, %v2735_v49  ;;  %v681_v0 = vmax.f32 %v2741_v52, %v2743_v53 }
 0x1ff   : > { %3236 = vst [vmem:[#allocation12_spill] sm:$0xff] %v2779_v43 }
 0x200   : > { %v2785_v35 = vpop.f32.mrf.mxu0 }
 0x201   : > { %3237 = vst [vmem:[#allocation13_spill] sm:$0xff] %v2785_v35 }
 0x202   : > { %667 = vmax.xlane.f32.xlu1 %v666_v17  ;;  %670 = vmax.xlane.f32.xlu0 %v669_v33  ;;  %v2791_v40 = vpop.f32.mrf.mxu0  ;;  %v684_v33 = vmax.f32 %v2749_v6, %v2751_v10  ;;  %v687_v17 = vmax.f32 %v2757_v22, %v2759_v41 }
 0x203   : > { %3238 = vst [vmem:[#allocation14_spill] sm:$0xff] %v2791_v40 }
 0x204   : > { %v2797_v45 = vpop.f32.mrf.mxu0 }
 0x206   : > { %673 = vmax.xlane.f32.xlu1 %v672_v47  ;;  %676 = vmax.xlane.f32.xlu0 %v675_v15  ;;  %v690_v15 = vmax.f32 %v2765_v50, %v2771_v3  ;;  %v693_v47 = vmax.f32 %v2773_v13, %v2779_v43  ;;  %v2803_v52 = vpop.f32.mrf.mxu0 }
 0x20a   : > { %679 = vmax.xlane.f32.xlu1 %v678_v51  ;;  %682 = vmax.xlane.f32.xlu0 %v681_v0  ;;  %v696_v51 = vmax.f32 %v2785_v35, %v2791_v40  ;;  %v699_v0 = vmax.f32 %v2797_v45, %v2803_v52 }
 0x20e   : > { %685 = vmax.xlane.f32.xlu1 %v684_v33  ;;  %688 = vmax.xlane.f32.xlu0 %v687_v17 }
 0x212   : > { %691 = vmax.xlane.f32.xlu1 %v690_v15  ;;  %694 = vmax.xlane.f32.xlu0 %v693_v47 }
 0x216   : > { %697 = vmax.xlane.f32.xlu1 %v696_v51  ;;  %700 = vmax.xlane.f32.xlu0 %v699_v0 }
 0x226   : > { %v620_v33 = vpop.xlane.xlu0 %619 }
 0x227   : > { %v710_v17 = vsub.f32 %v2629_v62, %v620_v33  ;;  %v711_v3 = vsub.f32 %v2631_v63, %v620_v33 }
 0x229   : > { %v782_v50 = vmul.f32 1.442695, %v710_v17  ;;  %v784_v22 = vmul.f32 1.442695, %v711_v3 }
 0x22a   : > { %v623_v13 = vpop.xlane.xlu1 %622 }
 0x22b   : > { %2185 = vpow2.f32 %v782_v50  ;;  %v712_v15 = vsub.f32 %v2635_v1, %v623_v13  ;;  %v713_v47 = vsub.f32 %v2637_v2, %v623_v13 }
 0x22c   : > { %2187 = vpow2.f32 %v784_v22 }
 0x22d   : > { %v786_v40 = vmul.f32 1.442695, %v712_v15  ;;  %v788_v35 = vmul.f32 1.442695, %v713_v47 }
 0x22e   : > { %v626_v43 = vpop.xlane.xlu0 %625 }
 0x22f   : > { %2189 = vpow2.f32 %v786_v40  ;;  %v714_v51 = vsub.f32 %v2641_v4, %v626_v43  ;;  %v715_v0 = vsub.f32 %v2643_v5, %v626_v43 }
 0x230   : > { %2191 = vpow2.f32 %v788_v35 }
 0x231   : > { %v790_v62 = vmul.f32 1.442695, %v714_v51  ;;  %v792_v63 = vmul.f32 1.442695, %v715_v0 }
 0x232   : > { %v629_v33 = vpop.xlane.xlu1 %628 }
 0x233   : > { %2193 = vpow2.f32 %v790_v62  ;;  %v716_v50 = vsub.f32 %v2647_v7, %v629_v33  ;;  %v717_v1 = vsub.f32 %v2649_v8, %v629_v33 }
 0x234   : > { %2195 = vpow2.f32 %v792_v63 }
 0x235   : > { %v794_v2 = vmul.f32 1.442695, %v716_v50  ;;  %v796_v22 = vmul.f32 1.442695, %v717_v1 }
 0x236   : > { %v632_v3 = vpop.xlane.xlu0 %631 }
 0x237   : > { %2197 = vpow2.f32 %v794_v2  ;;  %v718_v40 = vsub.f32 %v2653_v11, %v632_v3  ;;  %v719_v4 = vsub.f32 %v2655_v12, %v632_v3 }
 0x238   : > { %v2186_v13 = vpop.eup %2185  ;;  %2199 = vpow2.f32 %v796_v22 }
 0x239   : > { %v2188_v5 = vpop.eup %2187  ;;  %v798_v35 = vmul.f32 1.442695, %v718_v40  ;;  %v800_v43 = vmul.f32 1.442695, %v719_v4 }
 0x23a   : > { %v1039_v17 = vpop.permute.xlu0 %1038  ;;  %v635_v15 = vpop.xlane.xlu1 %634  ;;  %v2819_v47 = vadd.f32 %v2188_v5, %v2186_v13 }
 0x23b   : > { %2201 = vpow2.f32 %v798_v35  ;;  %v720_v7 = vsub.f32 %v2659_v14, %v635_v15  ;;  %v721_v8 = vsub.f32 %v2661_v16, %v635_v15  ;;  %1981 = vmatprep.subr.bf16.mxu0 %v1039_v17  ;;  %2140 = vmatprep.subr.bf16.mxu1 %v1039_v17 }
 0x23c   : > { %v2190_v51 = vpop.eup %2189  ;;  %2203 = vpow2.f32 %v800_v43 }
 0x23d   : > { %v2192_v11 = vpop.eup %2191  ;;  %v802_v12 = vmul.f32 1.442695, %v720_v7  ;;  %v804_v0 = vmul.f32 1.442695, %v721_v8  ;;  %v994_v4 = vpack.c.bf16 %v2190_v51, %v2186_v13 }
 0x23e   : > { %v995_v62 = vpack.c.bf16 %v2192_v11, %v2188_v5  ;;  %v2823_v63 = vadd.f32 %v2192_v11, %v2190_v51 }
 0x23f   : > { %2205 = vpow2.f32 %v802_v12 }
 0x240   : > { %v2194_v33 = vpop.eup %2193  ;;  %2207 = vpow2.f32 %v804_v0  ;;  %1118 = vmatprep.mubr.bf16.mxu1 %v995_v62  ;;  %v2183_v0 = vld [vmem:[%s3210_s1 + $0x8] sm:$0xff]  }
 0x241   : > { %v2196_v50 = vpop.eup %2195 }
 0x242   : > { %v641_v1 = vpop.xlane.xlu1 %640  ;;  %v2825_v2 = vadd.f32 %v2196_v50, %v2194_v33 }
 0x243   : > { %v724_v13 = vsub.f32 %v2669_v20, %v641_v1  ;;  %v725_v51 = vsub.f32 %v2671_v21, %v641_v1 }
 0x244   : > { %v2198_v14 = vpop.eup %2197 }
 0x245   : > { %v2200_v16 = vpop.eup %2199  ;;  %v996_v8 = vpack.c.bf16 %v2198_v14, %v2194_v33  ;;  %v810_v62 = vmul.f32 1.442695, %v724_v13 }
 0x246   : > { %v1023_v22 = vpop.permute.xlu1 %1022  ;;  %v2827_v3 = vadd.f32 %v2200_v16, %v2198_v14  ;;  %v997_v35 = vpack.c.bf16 %v2200_v16, %v2196_v50  ;;  %v812_v50 = vmul.f32 1.442695, %v725_v51 }
 0x247   : > { %1982 = vmatpush3.bf16.msra.mxu0 %v1023_v22  ;;  %2148 = vmatpush3.bf16.msra.mxu1 %v1023_v22  ;;  %2209 = vpow2.f32 %v810_v62 }
 0x248   : > { %v2202_v40 = vpop.eup %2201  ;;  %2097 = vmatprep.subr.bf16.mxu1 %v2183_v0  ;;  %2211 = vpow2.f32 %v812_v50 }
 0x249   : > { %v2204_v5 = vpop.eup %2203 }
 0x24a   : > { %1119 = vmatmul.mubr.bf16.vlgmr.msra.gmra.mxu1 %v994_v4  ;;  %v2829_v43 = vadd.f32 %v2204_v5, %v2202_v40 }
 0x24b   : > { %1126 = vmatprep.mubr.bf16.mxu1 %v997_v35  ;;  %2098 = vmatpush3.bf16.msra.mxu1 %v2183_v0 }
 0x24c   : > { %v2206_v17 = vpop.eup %2205 }
 0x24d   : > { %v2208_v15 = vpop.eup %2207  ;;  %v998_v12 = vpack.c.bf16 %v2206_v17, %v2202_v40 }
 0x24e   : > { %v2831_v7 = vadd.f32 %v2208_v15, %v2206_v17  ;;  %v999_v11 = vpack.c.bf16 %v2208_v15, %v2204_v5 }
 0x252   : > { %1127 = vmatmul.mubr.bf16.gmra.mxu1 %v996_v8 }
 0x253   : > { %1134 = vmatprep.mubr.bf16.mxu1 %v999_v11 }
 0x254   : > { %v2848_v51 = vpop.eup %2209 }
 0x25a   : > { %1135 = vmatmul.mubr.bf16.gmra.mxu1 %v998_v12 }
 0x26b   : > { %v638_v16 = vpop.xlane.xlu0 %637 }
 0x26c   : > { %v722_v33 = vsub.f32 %v2665_v18, %v638_v16  ;;  %v723_v14 = vsub.f32 %v2667_v19, %v638_v16 }
 0x26e   : > { %v806_v22 = vmul.f32 1.442695, %v722_v33  ;;  %v808_v40 = vmul.f32 1.442695, %v723_v14  ;;  %v2850_v33 = vpop.eup %2211 }
 0x26f   : > { %v644_v4 = vpop.xlane.xlu0 %643 }
 0x270   : > { %2213 = vpow2.f32 %v806_v22  ;;  %v726_v5 = vsub.f32 %v2675_v23, %v644_v4  ;;  %v727_v20 = vsub.f32 %v2677_v24, %v644_v4 }
 0x271   : > { %2215 = vpow2.f32 %v808_v40 }
 0x272   : > { %v814_v17 = vmul.f32 1.442695, %v726_v5  ;;  %v816_v19 = vmul.f32 1.442695, %v727_v20 }
 0x273   : > { %v608_v35 = vpop.xlane.xlu0 %607 }
 0x274   : > { %v702_v21 = vsub.f32 %v2613_v54, %v608_v35  ;;  %v703_v1 = vsub.f32 %v2615_v55, %v608_v35 }
 0x276   : > { %v766_v18 = vmul.f32 1.442695, %v702_v21  ;;  %v768_v15 = vmul.f32 1.442695, %v703_v1 }
 0x277   : > { %v611_v8 = vpop.xlane.xlu0 %610  ;;  %v647_v11 = vpop.xlane.xlu1 %646 }
 0x278   : > { %2217 = vpow2.f32 %v766_v18  ;;  %v704_v12 = vsub.f32 %v2617_v56, %v611_v8  ;;  %v705_v0 = vsub.f32 %v2619_v57, %v611_v8  ;;  %v728_v23 = vsub.f32 %v2679_v25, %v647_v11 }
 0x279   : > { %2219 = vpow2.f32 %v768_v15  ;;  %v729_v24 = vsub.f32 %v2681_v26, %v647_v11 }
 0x27a   : > { %2221 = vpow2.f32 %v814_v17  ;;  %v770_v54 = vmul.f32 1.442695, %v704_v12  ;;  %v772_v13 = vmul.f32 1.442695, %v705_v0  ;;  %v818_v55 = vmul.f32 1.442695, %v728_v23 }
 0x27b   : > { %2223 = vpow2.f32 %v816_v19  ;;  %v820_v62 = vmul.f32 1.442695, %v729_v24  ;;  %v650_v50 = vpop.xlane.xlu1 %649  ;;  %v653_v16 = vpop.xlane.xlu0 %652  ;;  %v3239_v24 = vld [vmem:[#allocation2_spill] sm:$0xff] }
 0x27c   : > { %2225 = vpow2.f32 %v770_v54  ;;  %v730_v56 = vsub.f32 %v2683_v27, %v650_v50  ;;  %v731_v57 = vsub.f32 %v2685_v28, %v650_v50  ;;  %v732_v25 = vsub.f32 %v2689_v29, %v653_v16 }
 0x27d   : > { %v2855_v26 = vpop.eup %2213  ;;  %2227 = vpow2.f32 %v772_v13  ;;  %v733_v14 = vsub.f32 %v2691_v30, %v653_v16 }
 0x27e   : > { %v2858_v22 = vpop.eup %2215  ;;  %2229 = vpow2.f32 %v818_v55  ;;  %v822_v40 = vmul.f32 1.442695, %v730_v56  ;;  %v824_v4 = vmul.f32 1.442695, %v731_v57  ;;  %v826_v5 = vmul.f32 1.442695, %v732_v25 }
 0x27f   : > { %2231 = vpow2.f32 %v820_v62  ;;  %v828_v20 = vmul.f32 1.442695, %v733_v14  ;;  %v614_v35 = vpop.xlane.xlu1 %613  ;;  %v617_v21 = vpop.xlane.xlu0 %616  ;;  %v1001_v27 = vpack.c.bf16 %v2850_v33, %v2858_v22  ;;  %v1000_v28 = vpack.c.bf16 %v2848_v51, %v2855_v26 }
 0x280   : > { %2233 = vpow2.f32 %v822_v40  ;;  %v706_v29 = vsub.f32 %v2621_v58, %v614_v35  ;;  %v707_v30 = vsub.f32 %v2623_v59, %v614_v35  ;;  %v708_v1 = vsub.f32 %v2625_v60, %v617_v21 }
 0x281   : > { %2235 = vpow2.f32 %v824_v4  ;;  %v709_v17 = vsub.f32 %v2627_v61, %v617_v21  ;;  %1142 = vmatprep.mubr.bf16.mxu1 %v1001_v27 }
 0x282   : > { %2237 = vpow2.f32 %v826_v5  ;;  %v774_v18 = vmul.f32 1.442695, %v706_v29  ;;  %v776_v15 = vmul.f32 1.442695, %v707_v30  ;;  %v778_v19 = vmul.f32 1.442695, %v708_v1  ;;  %1143 = vmatmul.mubr.bf16.gmra.mxu1 %v1000_v28 }
 0x283   : > { %2239 = vpow2.f32 %v828_v20  ;;  %v780_v8 = vmul.f32 1.442695, %v709_v17  ;;  %v656_v11 = vpop.xlane.xlu1 %655  ;;  %v659_v12 = vpop.xlane.xlu0 %658 }
 0x284   : > { %2241 = vpow2.f32 %v774_v18  ;;  %v735_v58 = vsub.f32 %v2697_v32, %v656_v11  ;;  %v734_v59 = vsub.f32 %v2693_v31, %v656_v11  ;;  %v737_v60 = vsub.f32 %v2701_v34, %v659_v12  ;;  %v3241_v18 = vld [vmem:[#allocation4_spill] sm:$0xff] }
 0x285   : > { %v2218_v0 = vpop.eup %2217  ;;  %2243 = vpow2.f32 %v776_v15  ;;  %v736_v54 = vsub.f32 %v3239_v24, %v659_v12 }
 0x286   : > { %v2220_v61 = vpop.eup %2219  ;;  %2245 = vpow2.f32 %v778_v19  ;;  %v832_v23 = vmul.f32 1.442695, %v735_v58  ;;  %v836_v55 = vmul.f32 1.442695, %v737_v60  ;;  %v830_v31 = vmul.f32 1.442695, %v734_v59 }
 0x287   : > { %v2872_v13 = vpop.eup %2221  ;;  %2247 = vpow2.f32 %v780_v8  ;;  %v662_v62 = vpop.xlane.xlu1 %661  ;;  %v894_v16 = vadd.f32 %v2220_v61, %v2218_v0  ;;  %v834_v14 = vmul.f32 1.442695, %v736_v54 }
 0x288   : > { %v665_v50 = vpop.xlane.xlu0 %664  ;;  %v2874_v56 = vpop.eup %2223  ;;  %v739_v32 = vsub.f32 %v2705_v36, %v662_v62  ;;  %2249 = vpow2.f32 %v832_v23  ;;  %v3240_v36 = vld [vmem:[#allocation3_spill] sm:$0xff] }
 0x289   : > { %v2226_v57 = vpop.eup %2225  ;;  %v741_v34 = vsub.f32 %v2709_v37, %v665_v50  ;;  %895 = vadd.xlane.f32.xlu1 %v894_v16  ;;  %2251 = vpow2.f32 %v836_v55  ;;  %v738_v29 = vsub.f32 %v3240_v36, %v662_v62  ;;  %v740_v15 = vsub.f32 %v3241_v18, %v665_v50 }
 0x28a   : > { %v2228_v25 = vpop.eup %2227  ;;  %v840_v4 = vmul.f32 1.442695, %v739_v32  ;;  %2253 = vpow2.f32 %v830_v31  ;;  %v990_v1 = vpack.c.bf16 %v2226_v57, %v2218_v0 }
 0x28b   : > { %v2878_v40 = vpop.eup %2229  ;;  %v991_v5 = vpack.c.bf16 %v2228_v25, %v2220_v61  ;;  %v897_v20 = vadd.f32 %v2228_v25, %v2226_v57  ;;  %v844_v21 = vmul.f32 1.442695, %v741_v34  ;;  %v668_v27 = vpop.xlane.xlu1 %667  ;;  %2255 = vpow2.f32 %v834_v14  ;;  %v3242_v34 = vld [vmem:[#allocation5_spill] sm:$0xff] }
 0x28c   : > { %v2880_v35 = vpop.eup %2231  ;;  %v671_v30 = vpop.xlane.xlu0 %670  ;;  %2257 = vpow2.f32 %v840_v4  ;;  %v743_v8 = vsub.f32 %v2713_v39, %v668_v27  ;;  %v1002_v11 = vpack.c.bf16 %v2878_v40, %v2872_v13  ;;  %v838_v59 = vmul.f32 1.442695, %v738_v29 }
 0x28d   : > { %v2882_v28 = vpop.eup %2233  ;;  %1102 = vmatprep.mubr.bf16.mxu0 %v991_v5  ;;  %v1003_v37 = vpack.c.bf16 %v2880_v35, %v2874_v56  ;;  %898 = vadd.xlane.f32.xlu0 %v897_v20  ;;  %2259 = vpow2.f32 %v844_v21  ;;  %v745_v58 = vsub.f32 %v2717_v9, %v671_v30  ;;  %v842_v23 = vmul.f32 1.442695, %v740_v15 }
 0x28e   : > { %v2887_v17 = vpop.eup %2235  ;;  %1103 = vmatmul.mubr.bf16.vlgmr.msra.gmra.mxu0 %v990_v1  ;;  %v848_v39 = vmul.f32 1.442695, %v743_v8  ;;  %2261 = vpow2.f32 %v838_v59  ;;  %v742_v16 = vsub.f32 %v2711_v38, %v668_v27  ;;  %v744_v25 = vsub.f32 %v3242_v34, %v671_v30 }
 0x28f   : > { %v2890_v19 = vpop.eup %2237  ;;  %1150 = vmatprep.mubr.bf16.mxu1 %v1003_v37  ;;  %v852_v62 = vmul.f32 1.442695, %v745_v58  ;;  %v674_v50 = vpop.xlane.xlu1 %673  ;;  %2263 = vpow2.f32 %v842_v23 }
 0x290   : > { %v2895_v12 = vpop.eup %2239  ;;  %1151 = vmatmul.mubr.bf16.gmra.mxu1 %v1002_v11  ;;  %v677_v32 = vpop.xlane.xlu0 %676  ;;  %2265 = vpow2.f32 %v848_v39  ;;  %v747_v14 = vsub.f32 %v2725_v44, %v674_v50  ;;  %v1004_v5 = vpack.c.bf16 %v2890_v19, %v2882_v28  ;;  %v846_v21 = vmul.f32 1.442695, %v742_v16  ;;  %v3243_v11 = vld [vmem:[#allocation6_spill] sm:$0xff] }
 0x291   : > { %v2242_v0 = vpop.eup %2241  ;;  %v1005_v60 = vpack.c.bf16 %v2895_v12, %v2887_v17  ;;  %2267 = vpow2.f32 %v852_v62  ;;  %v749_v38 = vsub.f32 %v2729_v46, %v677_v32  ;;  %v850_v44 = vmul.f32 1.442695, %v744_v25  ;;  %v3244_v62 = vld [vmem:[#allocation7_spill] sm:$0xff] }
 0x292   : > { %v2244_v61 = vpop.eup %2243  ;;  %v856_v30 = vmul.f32 1.442695, %v747_v14  ;;  %2269 = vpow2.f32 %v846_v21  ;;  %v746_v15 = vsub.f32 %v2721_v42, %v674_v50  ;;  %v748_v58 = vsub.f32 %v3243_v11, %v677_v32 }
 0x293   : > { %v2246_v24 = vpop.eup %2245  ;;  %1158 = vmatprep.mubr.bf16.mxu1 %v1005_v60  ;;  %v900_v54 = vadd.f32 %v2244_v61, %v2242_v0  ;;  %v860_v46 = vmul.f32 1.442695, %v749_v38  ;;  %v680_v1 = vpop.xlane.xlu1 %679  ;;  %2271 = vpow2.f32 %v850_v44  ;;  %v933_v32 = vadd.f32 %v2880_v35, %v2878_v40  ;;  %v3245_v40 = vld [vmem:[#allocation8_spill] sm:$0xff]  ;;  %v3246_v38 = vld [vmem:[#allocation9_spill] sm:$0xff] }
 0x294   : > { %v2248_v55 = vpop.eup %2247  ;;  %v992_v4 = vpack.c.bf16 %v2246_v24, %v2242_v0  ;;  %v683_v8 = vpop.xlane.xlu0 %682  ;;  %2273 = vpow2.f32 %v856_v30  ;;  %v854_v59 = vmul.f32 1.442695, %v746_v15  ;;  %v3249_v15 = vld [vmem:[#allocation11_spill] sm:$0xff] }
 0x295   : > { %v993_v9 = vpack.c.bf16 %v2248_v55, %v2244_v61  ;;  %901 = vadd.xlane.f32.xlu1 %v900_v54  ;;  %v903_v57 = vadd.f32 %v2248_v55, %v2246_v24  ;;  %v2901_v31 = vpop.eup %2249  ;;  %2275 = vpow2.f32 %v860_v46  ;;  %v753_v0 = vsub.f32 %v2743_v53, %v683_v8 }
 0x296   : > { %v2907_v20 = vpop.eup %2251  ;;  %v858_v61 = vmul.f32 1.442695, %v748_v58  ;;  %v924_v24 = vadd.f32 %v2858_v22, %v2855_v26  ;;  %2277 = vpow2.f32 %v854_v59  ;;  %v750_v54 = vsub.f32 %v2733_v48, %v680_v1 }
 0x297   : > { %1110 = vmatprep.mubr.bf16.mxu0 %v993_v9  ;;  %904 = vadd.xlane.f32.xlu0 %v903_v57  ;;  %v1007_v27 = vpack.c.bf16 %v2907_v20, %v2901_v31  ;;  %v2912_v36 = vpop.eup %2253  ;;  %v868_v53 = vmul.f32 1.442695, %v753_v0  ;;  %v752_v50 = vsub.f32 %v3244_v62, %v683_v8 }
 0x298   : > { %1111 = vmatmul.mubr.bf16.gmra.mxu0 %v992_v4  ;;  %1159 = vmatmul.mubr.bf16.gmra.mxu1 %v1004_v5  ;;  %v2915_v29 = vpop.eup %2255  ;;  %v689_v55 = vpop.xlane.xlu0 %688  ;;  %2279 = vpow2.f32 %v858_v61  ;;  %v939_v5 = vadd.f32 %v2895_v12, %v2890_v19  ;;  %v942_v19 = vadd.f32 %v2912_v36, %v2901_v31 }
 0x299   : > { %907 = vadd.xlane.f32.xlu1 %v2819_v47  ;;  %1166 = vmatprep.mubr.bf16.mxu1 %v1007_v27  ;;  %v2918_v37 = vpop.eup %2257  ;;  %v751_v47 = vsub.f32 %v2735_v49, %v680_v1  ;;  %v757_v22 = vsub.f32 %v2759_v41, %v689_v55  ;;  %v866_v9 = vmul.f32 1.442695, %v752_v50  ;;  %v756_v35 = vsub.f32 %v3245_v40, %v689_v55  ;;  %v3247_v27 = vld [vmem:[#allocation10_spill] sm:$0xff] }
 0x29a   : > { %v2920_v18 = vpop.eup %2259  ;;  %v945_v58 = vadd.f32 %v2915_v29, %v2907_v20 }
 0x29b   : > { %910 = vadd.xlane.f32.xlu0 %v2823_v63  ;;  %v1006_v63 = vpack.c.bf16 %v2915_v29, %v2912_v36  ;;  %v1009_v42 = vpack.c.bf16 %v2920_v18, %v2918_v37  ;;  %v2932_v60 = vpop.eup %2261  ;;  %v874_v12 = vmul.f32 1.442695, %v756_v35  ;;  %v3251_v36 = vld [vmem:[#allocation14_spill] sm:$0xff] }
 0x29c   : > { %v2935_v49 = vpop.eup %2263  ;;  %v695_v25 = vpop.xlane.xlu0 %694  ;;  %v948_v29 = vadd.f32 %v2932_v60, %v2918_v37 }
 0x29d   : > { %913 = vadd.xlane.f32.xlu1 %v2825_v2  ;;  %v864_v2 = vmul.f32 1.442695, %v751_v47  ;;  %v2938_v23 = vpop.eup %2265  ;;  %v1008_v26 = vpack.c.bf16 %v2935_v49, %v2932_v60  ;;  %v760_v8 = vsub.f32 %v3249_v15, %v695_v25  ;;  %v2184_v47 = vld [vmem:[%s3210_s1] sm:$0xff]  }
 0x29e   : > { %v2942_v39 = vpop.eup %2267  ;;  %2099 = vmatprep.subr.bf16.mxu1 %v2184_v47 }
 0x29f   : > { %916 = vadd.xlane.f32.xlu0 %v2827_v3  ;;  %v686_v3 = vpop.xlane.xlu1 %685  ;;  %2281 = vpow2.f32 %v864_v2  ;;  %v1011_v48 = vpack.c.bf16 %v2942_v39, %v2938_v23  ;;  %2100 = vmatpush3.bf16.msra.mxu1 %v2184_v47 }
 0x2a0   : > { %1167 = vmatmul.mubr.bf16.gmra.mxu1 %v1006_v63  ;;  %2283 = vpow2.f32 %v868_v53  ;;  %v754_v41 = vsub.f32 %v2749_v6, %v686_v3  ;;  %v701_v11 = vpop.xlane.xlu0 %700 }
 0x2a1   : > { %1174 = vmatprep.mubr.bf16.mxu1 %v1009_v42  ;;  %919 = vadd.xlane.f32.xlu1 %v2829_v43  ;;  %v927_v43 = vadd.f32 %v2850_v33, %v2848_v51  ;;  %v930_v51 = vadd.f32 %v2874_v56, %v2872_v13  ;;  %v862_v33 = vmul.f32 1.442695, %v750_v54  ;;  %v876_v13 = vmul.f32 1.442695, %v757_v22  ;;  %v3250_v42 = vld [vmem:[#allocation13_spill] sm:$0xff] }
 0x2a2   : > { %v936_v56 = vadd.f32 %v2887_v17, %v2882_v28  ;;  %v870_v21 = vmul.f32 1.442695, %v754_v41  ;;  %v3248_v17 = vld [vmem:[#allocation12_spill] sm:$0xff]  ;;  %v764_v20 = vsub.f32 %v2797_v45, %v701_v11  ;;  %v882_v54 = vmul.f32 1.442695, %v760_v8 }
 0x2a3   : > { %922 = vadd.xlane.f32.xlu0 %v2831_v7  ;;  %v755_v7 = vsub.f32 %v2751_v10, %v686_v3  ;;  %v692_v16 = vpop.xlane.xlu1 %691  ;;  %v2958_v10 = vpop.eup %2269  ;;  %2285 = vpow2.f32 %v862_v33  ;;  %v761_v46 = vsub.f32 %v3248_v17, %v695_v25  ;;  %v765_v55 = vsub.f32 %v2803_v52, %v701_v11 }
 0x2a4   : > { %v2960_v57 = vpop.eup %2271  ;;  %2287 = vpow2.f32 %v866_v9  ;;  %v758_v6 = vsub.f32 %v3246_v38, %v692_v16  ;;  %v759_v44 = vsub.f32 %v3247_v27, %v692_v16  ;;  %v890_v45 = vmul.f32 1.442695, %v764_v20 }
 0x2a5   : > { %925 = vadd.xlane.f32.xlu1 %v924_v24  ;;  %v872_v34 = vmul.f32 1.442695, %v755_v7  ;;  %v2963_v14 = vpop.eup %2273  ;;  %v1010_v28 = vpack.c.bf16 %v2960_v57, %v2958_v10  ;;  %v884_v53 = vmul.f32 1.442695, %v761_v46  ;;  %v954_v37 = vadd.f32 %v2958_v10, %v2938_v23 }
 0x2a6   : > { %v2967_v4 = vpop.eup %2275  ;;  %v878_v0 = vmul.f32 1.442695, %v758_v6  ;;  %v880_v31 = vmul.f32 1.442695, %v759_v44  ;;  %v892_v60 = vmul.f32 1.442695, %v765_v55  ;;  %v957_v52 = vadd.f32 %v2960_v57, %v2942_v39 }
 0x2a7   : > { %928 = vadd.xlane.f32.xlu0 %v927_v43  ;;  %2289 = vpow2.f32 %v872_v34  ;;  %v698_v30 = vpop.xlane.xlu1 %697  ;;  %v1013_v1 = vpack.c.bf16 %v2967_v4, %v2963_v14  ;;  %v2278_v63 = vpop.eup %2277  ;;  %v951_v43 = vadd.f32 %v2935_v49, %v2920_v18 }
 0x2a8   : > { %1175 = vmatmul.mubr.bf16.gmra.mxu1 %v1008_v26  ;;  %2291 = vpow2.f32 %v876_v13  ;;  %v762_v59 = vsub.f32 %v3250_v42, %v698_v30  ;;  %v2280_v61 = vpop.eup %2279  ;;  %v763_v2 = vsub.f32 %v3251_v36, %v698_v30 }
 0x2a9   : > { %1182 = vmatprep.mubr.bf16.mxu1 %v1011_v48  ;;  %931 = vadd.xlane.f32.xlu1 %v930_v51  ;;  %2293 = vpow2.f32 %v870_v21  ;;  %v1012_v7 = vpack.c.bf16 %v2280_v61, %v2278_v63  ;;  %v960_v48 = vadd.f32 %v2278_v63, %v2963_v14  ;;  %v963_v23 = vadd.f32 %v2280_v61, %v2967_v4 }
 0x2aa   : > { %2295 = vpow2.f32 %v874_v12  ;;  %v886_v62 = vmul.f32 1.442695, %v762_v59  ;;  %v888_v50 = vmul.f32 1.442695, %v763_v2 }
 0x2ab   : > { %934 = vadd.xlane.f32.xlu0 %v933_v32  ;;  %2297 = vpow2.f32 %v878_v0 }
 0x2ac   : > { %v2282_v3 = vpop.eup %2281  ;;  %2299 = vpow2.f32 %v880_v31 }
 0x2ad   : > { %937 = vadd.xlane.f32.xlu1 %v936_v56  ;;  %v2284_v24 = vpop.eup %2283  ;;  %2301 = vpow2.f32 %v884_v53 }
 0x2ae   : > { %v1015_v26 = vpack.c.bf16 %v2284_v24, %v2282_v3  ;;  %2303 = vpow2.f32 %v882_v54 }
 0x2af   : > { %940 = vadd.xlane.f32.xlu0 %v939_v5  ;;  %2305 = vpow2.f32 %v886_v62 }
 0x2b0   : > { %1183 = vmatmul.mubr.bf16.gmra.mxu1 %v1010_v28  ;;  %v2286_v18 = vpop.eup %2285  ;;  %2307 = vpow2.f32 %v888_v50 }
 0x2b1   : > { %1190 = vmatprep.mubr.bf16.mxu1 %v1013_v1  ;;  %943 = vadd.xlane.f32.xlu1 %v942_v19  ;;  %v2288_v49 = vpop.eup %2287  ;;  %2309 = vpow2.f32 %v890_v45  ;;  %v966_v39 = vadd.f32 %v2286_v18, %v2282_v3 }
 0x2b2   : > { %2311 = vpow2.f32 %v892_v60  ;;  %v1014_v33 = vpack.c.bf16 %v2288_v49, %v2286_v18  ;;  %v969_v10 = vadd.f32 %v2288_v49, %v2284_v24 }
 0x2b3   : > { %946 = vadd.xlane.f32.xlu0 %v945_v58 }
 0x2b4   : > { %v2290_v22 = vpop.eup %2289 }
 0x2b5   : > { %949 = vadd.xlane.f32.xlu1 %v948_v29  ;;  %v2292_v51 = vpop.eup %2291 }
 0x2b6   : > { %v1017_v16 = vpack.c.bf16 %v2292_v51, %v2290_v22  ;;  %v2294_v32 = vpop.eup %2293 }
 0x2b7   : > { %952 = vadd.xlane.f32.xlu0 %v951_v43  ;;  %v2296_v9 = vpop.eup %2295  ;;  %v972_v34 = vadd.f32 %v2294_v32, %v2290_v22 }
 0x2b8   : > { %1191 = vmatmul.mubr.bf16.gmra.mxu1 %v1012_v7  ;;  %v2298_v57 = vpop.eup %2297  ;;  %v975_v14 = vadd.f32 %v2296_v9, %v2292_v51  ;;  %v1016_v4 = vpack.c.bf16 %v2296_v9, %v2294_v32 }
 0x2b9   : > { %1198 = vmatprep.mubr.bf16.mxu1 %v1015_v26  ;;  %955 = vadd.xlane.f32.xlu1 %v954_v37  ;;  %v2300_v41 = vpop.eup %2299 }
 0x2ba   : > { %v2302_v25 = vpop.eup %2301  ;;  %v978_v5 = vadd.f32 %v2300_v41, %v2298_v57 }
 0x2bb   : > { %958 = vadd.xlane.f32.xlu0 %v957_v52  ;;  %v2304_v13 = vpop.eup %2303  ;;  %v1019_v35 = vpack.c.bf16 %v2302_v25, %v2300_v41 }
 0x2bc   : > { %v2306_v56 = vpop.eup %2305  ;;  %v981_v6 = vadd.f32 %v2304_v13, %v2302_v25  ;;  %v1018_v30 = vpack.c.bf16 %v2304_v13, %v2298_v57 }
 0x2bd   : > { %961 = vadd.xlane.f32.xlu1 %v960_v48  ;;  %v2308_v40 = vpop.eup %2307 }
 0x2be   : > { %v2310_v38 = vpop.eup %2309  ;;  %v984_v27 = vadd.f32 %v2308_v40, %v2306_v56 }
 0x2bf   : > { %964 = vadd.xlane.f32.xlu0 %v963_v23  ;;  %v2312_v21 = vpop.eup %2311  ;;  %v1020_v17 = vpack.c.bf16 %v2310_v38, %v2306_v56 }
 0x2c0   : > { %1199 = vmatmul.mubr.bf16.gmra.mxu1 %v1014_v33  ;;  %v987_v44 = vadd.f32 %v2312_v21, %v2310_v38  ;;  %v1021_v28 = vpack.c.bf16 %v2312_v21, %v2308_v40 }
 0x2c1   : > { %1206 = vmatprep.mubr.bf16.mxu1 %v1017_v16  ;;  %967 = vadd.xlane.f32.xlu1 %v966_v39 }
 0x2c3   : > { %970 = vadd.xlane.f32.xlu0 %v969_v10 }
 0x2c5   : > { %973 = vadd.xlane.f32.xlu1 %v972_v34 }
 0x2c7   : > { %976 = vadd.xlane.f32.xlu0 %v975_v14 }
 0x2c8   : > { %1207 = vmatmul.mubr.bf16.gmra.mxu1 %v1016_v4 }
 0x2c9   : > { %1214 = vmatprep.mubr.bf16.mxu1 %v1019_v35  ;;  %979 = vadd.xlane.f32.xlu1 %v978_v5 }
 0x2cb   : > { %982 = vadd.xlane.f32.xlu0 %v981_v6 }
 0x2cd   : > { %985 = vadd.xlane.f32.xlu1 %v984_v27 }
 0x2cf   : > { %988 = vadd.xlane.f32.xlu0 %v987_v44 }
 0x2d0   : > { %1215 = vmatmul.mubr.bf16.gmra.mxu1 %v1018_v30 }
 0x2d1   : > { %1222 = vmatprep.mubr.bf16.mxu1 %v1021_v28 }
 0x2d8   : > { %1223 = vmatmul.mubr.bf16.gmra.mxu1 %v1020_v17 }
 0x30a   : > { %v3001_v46 = vpop.f32.mrf.mxu1 }
 0x30c   : > { %v3003_v1 = vpop.f32.mrf.mxu1 }
 0x30d   : > { %v1997_v38 = vadd.f32 %v3003_v1, %v3001_v46 }
 0x30e   : > { %v3005_v19 = vpop.f32.mrf.mxu1 }
 0x310   : > { %v3007_v12 = vpop.f32.mrf.mxu1 }
 0x311   : > { %v2000_v6 = vadd.f32 %v3007_v12, %v3005_v19 }
 0x312   : > { %v3009_v15 = vpop.f32.mrf.mxu1  ;;  %v896_v58 = vpop.xlane.xlu1 %895 }
 0x313   : > { %2313 = vrcp.f32 %v896_v58 }
 0x314   : > { %v3011_v8 = vpop.f32.mrf.mxu1 }
 0x316   : > { %v3013_v11 = vpop.f32.mrf.mxu1  ;;  %v899_v63 = vpop.xlane.xlu0 %898 }
 0x317   : > { %2315 = vrcp.f32 %v899_v63 }
 0x318   : > { %v3015_v47 = vpop.f32.mrf.mxu1 }
 0x31a   : > { %v3017_v0 = vpop.f32.mrf.mxu1 }
 0x31c   : > { %v3019_v61 = vpop.f32.mrf.mxu1 }
 0x31e   : > { %v902_v42 = vpop.xlane.xlu1 %901  ;;  %v3021_v2 = vpop.f32.mrf.mxu1 }
 0x320   : > { %v905_v59 = vpop.xlane.xlu0 %904  ;;  %v3023_v3 = vpop.f32.mrf.mxu1 }
 0x321   : > { %v2314_v23 = vpop.eup %2313 }
 0x322   : > { %v908_v31 = vpop.xlane.xlu1 %907 }
 0x323   : > { %2317 = vrcp.f32 %v908_v31 }
 0x324   : > { %v911_v36 = vpop.xlane.xlu0 %910  ;;  %v2316_v39 = vpop.eup %2315 }
 0x325   : > { %2319 = vrcp.f32 %v911_v36 }
 0x326   : > { %v914_v53 = vpop.xlane.xlu1 %913  ;;  %2321 = vrcp.f32 %v902_v42 }
 0x327   : > { %2323 = vrcp.f32 %v905_v59 }
 0x328   : > { %v917_v20 = vpop.xlane.xlu0 %916  ;;  %2325 = vrcp.f32 %v914_v53 }
 0x329   : > { %2327 = vrcp.f32 %v917_v20 }
 0x32a   : > { %v920_v24 = vpop.xlane.xlu1 %919 }
 0x32b   : > { %2329 = vrcp.f32 %v920_v24 }
 0x32c   : > { %v923_v55 = vpop.xlane.xlu0 %922 }
 0x32d   : > { %2331 = vrcp.f32 %v923_v55 }
 0x32e   : > { %v926_v62 = vpop.xlane.xlu1 %925 }
 0x330   : > { %v929_v50 = vpop.xlane.xlu0 %928  ;;  %v2318_v56 = vpop.eup %2317 }
 0x331   : > { %v1267_v42 = vmul.f32 %v2318_v56, %v1997_v38  ;;  %2333 = vrcp.f32 %v929_v50  ;;  %v2006_v50 = vadd.f32 %v3015_v47, %v3013_v11 }
 0x332   : > { %v932_v60 = vpop.xlane.xlu1 %931  ;;  %v2320_v35 = vpop.eup %2319 }
 0x333   : > { %v2322_v44 = vpop.eup %2321  ;;  %v1268_v59 = vmul.f32 %v2320_v35, %v2000_v6 }
 0x334   : > { %v935_v18 = vpop.xlane.xlu0 %934  ;;  %v2324_v17 = vpop.eup %2323 }
 0x335   : > { %v2326_v53 = vpop.eup %2325  ;;  %2335 = vrcp.f32 %v935_v18  ;;  %v1297_v24 = vpack.c.bf16 %v1268_v59, %v1267_v42  ;;  %v2009_v18 = vadd.f32 %v3019_v61, %v3017_v0 }
 0x336   : > { %v938_v41 = vpop.xlane.xlu1 %937  ;;  %v2328_v1 = vpop.eup %2327  ;;  %2337 = vrcp.f32 %v926_v62  ;;  %v2012_v62 = vadd.f32 %v3023_v3, %v3021_v2 }
 0x337   : > { %2339 = vrcp.f32 %v932_v60 }
 0x338   : > { %v941_v34 = vpop.xlane.xlu0 %940  ;;  %v2330_v12 = vpop.eup %2329 }
 0x339   : > { %2341 = vrcp.f32 %v941_v34 }
 0x33a   : > { %v944_v30 = vpop.xlane.xlu1 %943  ;;  %v2332_v55 = vpop.eup %2331 }
 0x33c   : > { %v947_v58 = vpop.xlane.xlu0 %946 }
 0x33d   : > { %2343 = vrcp.f32 %v947_v58 }
 0x33e   : > { %2345 = vrcp.f32 %v938_v41 }
 0x33f   : > { %2347 = vrcp.f32 %v944_v30 }
 0x342   : > { %v3025_v29 = vpop.f32.mrf.mxu1 }
 0x344   : > { %v3027_v54 = vpop.f32.mrf.mxu1 }
 0x346   : > { %v3029_v43 = vpop.f32.mrf.mxu1 }
 0x348   : > { %v3031_v7 = vpop.f32.mrf.mxu1 }
 0x349   : > { %v2018_v0 = vadd.f32 %v3031_v7, %v3029_v43 }
 0x34e   : > { %v1983_v45 = vpop.f32.mrf.mxu0 }
 0x350   : > { %v3033_v26 = vpop.f32.mrf.mxu1  ;;  %v1984_v37 = vpop.f32.mrf.mxu0 }
 0x351   : > { %v1985_v22 = vadd.f32 %v1984_v37, %v1983_v45  ;;  %v2003_v45 = vadd.f32 %v3011_v8, %v3009_v15  ;;  %v950_v37 = vpop.xlane.xlu1 %949  ;;  %v1271_v15 = vmul.f32 %v2330_v12, %v2009_v18  ;;  %v1272_v8 = vmul.f32 %v2332_v55, %v2012_v62 }
 0x352   : > { %v3035_v52 = vpop.f32.mrf.mxu1  ;;  %v1986_v49 = vpop.f32.mrf.mxu0 }
 0x353   : > { %v1263_v32 = vmul.f32 %v2314_v23, %v1985_v22  ;;  %v1269_v22 = vmul.f32 %v2326_v53, %v2003_v45 }
 0x354   : > { %v3037_v48 = vpop.f32.mrf.mxu1  ;;  %v1987_v51 = vpop.f32.mrf.mxu0 }
 0x355   : > { %v1988_v33 = vadd.f32 %v1987_v51, %v1986_v49  ;;  %v953_v49 = vpop.xlane.xlu0 %952  ;;  %v1270_v51 = vmul.f32 %v2328_v1, %v2006_v50  ;;  %v956_v47 = vpop.xlane.xlu1 %955 }
 0x356   : > { %v3039_v16 = vpop.f32.mrf.mxu1  ;;  %2349 = vrcp.f32 %v953_v49 }
 0x357   : > { %v1264_v10 = vmul.f32 %v2316_v39, %v1988_v33  ;;  %v1298_v61 = vpack.c.bf16 %v1270_v51, %v1269_v22  ;;  %v2024_v3 = vadd.f32 %v3039_v16, %v3037_v48  ;;  %v1299_v39 = vpack.c.bf16 %v1272_v8, %v1271_v15 }
 0x358   : > { %v3041_v9 = vpop.f32.mrf.mxu1  ;;  %v1989_v57 = vpop.f32.mrf.mxu0 }
 0x359   : > { %v1295_v25 = vpack.c.bf16 %v1264_v10, %v1263_v32  ;;  %v959_v2 = vpop.xlane.xlu0 %958  ;;  %v2015_v32 = vadd.f32 %v3027_v54, %v3025_v29  ;;  %v2334_v10 = vpop.eup %2333 }
 0x35a   : > { %v1990_v14 = vpop.f32.mrf.mxu0  ;;  %v3043_v13 = vpop.f32.mrf.mxu1  ;;  %v1274_v7 = vmul.f32 %v2334_v10, %v2018_v0  ;;  %2351 = vrcp.f32 %v959_v2 }
 0x35b   : > { %2101 = vmatprep.mubr.msk.bf16.mxu1 %vm316_vm0, %v1295_v25  ;;  %v1991_v5 = vadd.f32 %v1990_v14, %v1989_v57  ;;  %v2021_v57 = vadd.f32 %v3035_v52, %v3033_v26  ;;  %v2336_v43 = vpop.eup %2335  ;;  %v962_v56 = vpop.xlane.xlu1 %961  ;;  %2353 = vrcp.f32 %v950_v37  ;;  %v2027_v6 = vadd.f32 %v3043_v13, %v3041_v9 }
 0x35c   : > { %v1992_v4 = vpop.f32.mrf.mxu0  ;;  %v3045_v40 = vpop.f32.mrf.mxu1  ;;  %v1276_v25 = vmul.f32 %v2336_v43, %v2024_v3  ;;  %2355 = vrcp.f32 %v956_v47 }
 0x35d   : > { %v1265_v31 = vmul.f32 %v2322_v44, %v1991_v5  ;;  %v2338_v34 = vpop.eup %2337  ;;  %v965_v29 = vpop.xlane.xlu0 %964  ;;  %2357 = vrcp.f32 %v962_v56 }
 0x35e   : > { %v1993_v21 = vpop.f32.mrf.mxu0  ;;  %v3052_v27 = vpop.f32.mrf.mxu1  ;;  %v1273_v16 = vmul.f32 %v2338_v34, %v2015_v32  ;;  %2359 = vrcp.f32 %v965_v29 }
 0x35f   : > { %v1994_v28 = vadd.f32 %v1993_v21, %v1992_v4  ;;  %v2340_v48 = vpop.eup %2339  ;;  %v2030_v26 = vadd.f32 %v3052_v27, %v3045_v40 }
 0x360   : > { %v3054_v63 = vpop.f32.mrf.mxu1  ;;  %v1275_v54 = vmul.f32 %v2340_v48, %v2021_v57  ;;  %v1300_v35 = vpack.c.bf16 %v1274_v7, %v1273_v16  ;;  %v2342_v21 = vpop.eup %2341 }
 0x361   : > { %v1266_v36 = vmul.f32 %v2324_v17, %v1994_v28  ;;  %v2344_v28 = vpop.eup %2343  ;;  %v968_v17 = vpop.xlane.xlu1 %967  ;;  %v1278_v58 = vmul.f32 %v2342_v21, %v2030_v26 }
 0x362   : > { %v3056_v46 = vpop.f32.mrf.mxu1  ;;  %v1301_v52 = vpack.c.bf16 %v1276_v25, %v1275_v54  ;;  %v2346_v40 = vpop.eup %2345  ;;  %2361 = vrcp.f32 %v968_v17 }
 0x363   : > { %v1296_v19 = vpack.c.bf16 %v1266_v36, %v1265_v31  ;;  %v2033_v44 = vadd.f32 %v3056_v46, %v3054_v63  ;;  %v971_v27 = vpop.xlane.xlu0 %970  ;;  %v2348_v31 = vpop.eup %2347  ;;  %v1277_v9 = vmul.f32 %v2346_v40, %v2027_v6 }
 0x364   : > { %v2034_v20 = vpop.f32.mrf.mxu1  ;;  %2363 = vrcp.f32 %v971_v27 }
 0x365   : > { %2102 = vmatmul.mubr.msk.bf16.vlgmr.msra.gmra.mxu1 %vm316_vm0, %v1296_v19  ;;  %v1279_v13 = vmul.f32 %v2348_v31, %v2033_v44  ;;  %v1302_v53 = vpack.c.bf16 %v1278_v58, %v1277_v9  ;;  %v974_v50 = vpop.xlane.xlu1 %973 }
 0x366   : > { %v2035_v60 = vpop.f32.mrf.mxu1  ;;  %2105 = vmatprep.mubr.msk.bf16.mxu1 %vm316_vm0, %v1297_v24  ;;  %2365 = vrcp.f32 %v974_v50 }
 0x367   : > { %v2036_v5 = vadd.f32 %v2035_v60, %v2034_v20  ;;  %v2350_v20 = vpop.eup %2349  ;;  %v977_v62 = vpop.xlane.xlu0 %976 }
 0x368   : > { %v3068_v23 = vpop.f32.mrf.mxu1  ;;  %v2352_v45 = vpop.eup %2351  ;;  %2367 = vrcp.f32 %v977_v62 }
 0x369   : > { %v1280_v42 = vmul.f32 %v2344_v28, %v2036_v5  ;;  %v2354_v18 = vpop.eup %2353  ;;  %v980_v10 = vpop.xlane.xlu1 %979 }
 0x36a   : > { %v2038_v11 = vpop.f32.mrf.mxu1  ;;  %v2356_v22 = vpop.eup %2355  ;;  %2369 = vrcp.f32 %v980_v10 }
 0x36b   : > { %v1303_v46 = vpack.c.bf16 %v1280_v42, %v1279_v13  ;;  %v2039_v12 = vadd.f32 %v2038_v11, %v3068_v23  ;;  %v983_v7 = vpop.xlane.xlu0 %982 }
 0x36c   : > { %v2040_v33 = vpop.f32.mrf.mxu1  ;;  %2371 = vrcp.f32 %v983_v7 }
 0x36d   : > { %2106 = vmatmul.mubr.msk.bf16.gmra.mxu1 %vm316_vm0, %v1298_v61  ;;  %v1281_v51 = vmul.f32 %v2354_v18, %v2039_v12  ;;  %v2358_v61 = vpop.eup %2357 }
 0x36e   : > { %v2041_v41 = vpop.f32.mrf.mxu1  ;;  %2109 = vmatprep.mubr.msk.bf16.mxu1 %vm316_vm0, %v1299_v39 }
 0x36f   : > { %v2042_v63 = vadd.f32 %v2041_v41, %v2040_v33  ;;  %v2360_v33 = vpop.eup %2359  ;;  %v989_v6 = vpop.xlane.xlu0 %988 }
 0x370   : > { %v2043_v14 = vpop.f32.mrf.mxu1  ;;  %v2362_v32 = vpop.eup %2361 }
 0x371   : > { %v1282_v37 = vmul.f32 %v2350_v20, %v2042_v63  ;;  %v2364_v43 = vpop.eup %2363 }
 0x372   : > { %v2044_v4 = vpop.f32.mrf.mxu1 }
 0x373   : > { %v2045_v24 = vadd.f32 %v2044_v4, %v2043_v14  ;;  %v1304_v23 = vpack.c.bf16 %v1282_v37, %v1281_v51  ;;  %v2366_v26 = vpop.eup %2365  ;;  %v3101_v37 = vld [vmem:[%s3211_s2] ss:$0 sm:$0xff] }
 0x374   : > { %v2046_v38 = vpop.f32.mrf.mxu1 }
 0x375   : > { %2110 = vmatmul.mubr.msk.bf16.gmra.mxu1 %vm316_vm0, %v1300_v35  ;;  %v1283_v15 = vmul.f32 %v2356_v22, %v2045_v24 }
 0x376   : > { %v2047_v30 = vpop.f32.mrf.mxu1  ;;  %2113 = vmatprep.mubr.msk.bf16.mxu1 %vm316_vm0, %v1301_v52  ;;  %v986_v52 = vpop.xlane.xlu1 %985 }
 0x377   : > { %v2048_v1 = vadd.f32 %v2047_v30, %v2046_v38  ;;  %v2368_v38 = vpop.eup %2367  ;;  %2373 = vrcp.f32 %v986_v52 }
 0x378   : > { %v2049_v59 = vpop.f32.mrf.mxu1  ;;  %2375 = vrcp.f32 %v989_v6  ;;  %v2370_v42 = vpop.eup %2369 }
 0x379   : > { %v1284_v49 = vmul.f32 %v2352_v45, %v2048_v1  ;;  %v2372_v31 = vpop.eup %2371 }
 0x37a   : > { %v2050_v36 = vpop.f32.mrf.mxu1 }
 0x37b   : > { %v1305_v47 = vpack.c.bf16 %v1284_v49, %v1283_v15  ;;  %v2051_v2 = vadd.f32 %v2050_v36, %v2049_v59 }
 0x37c   : > { %v2052_v19 = vpop.f32.mrf.mxu1 }
 0x37d   : > { %2114 = vmatmul.mubr.msk.bf16.gmra.mxu1 %vm316_vm0, %v1302_v53  ;;  %v1285_v25 = vmul.f32 %v2358_v61, %v2051_v2 }
 0x37e   : > { %v2053_v55 = vpop.f32.mrf.mxu1  ;;  %2117 = vmatprep.mubr.msk.bf16.mxu1 %vm316_vm0, %v1303_v46 }
 0x37f   : > { %v2054_v11 = vadd.f32 %v2053_v55, %v2052_v19 }
 0x380   : > { %v2055_v60 = vpop.f32.mrf.mxu1 }
 0x381   : > { %v1286_v57 = vmul.f32 %v2360_v33, %v2054_v11 }
 0x382   : > { %v2056_v8 = vpop.f32.mrf.mxu1 }
 0x383   : > { %v2057_v3 = vadd.f32 %v2056_v8, %v2055_v60  ;;  %v1306_v56 = vpack.c.bf16 %v1286_v57, %v1285_v25 }
 0x384   : > { %v2058_v0 = vpop.f32.mrf.mxu1  ;;  %v2374_v12 = vpop.eup %2373 }
 0x385   : > { %2118 = vmatmul.mubr.msk.bf16.gmra.mxu1 %vm316_vm0, %v1304_v23  ;;  %v1287_v14 = vmul.f32 %v2362_v32, %v2057_v3  ;;  %v2376_v24 = vpop.eup %2375 }
 0x386   : > { %v2059_v39 = vpop.f32.mrf.mxu1  ;;  %2121 = vmatprep.mubr.msk.bf16.mxu1 %vm316_vm0, %v1305_v47 }
 0x387   : > { %v2060_v41 = vadd.f32 %v2059_v39, %v2058_v0 }
 0x388   : > { %v2061_v34 = vpop.f32.mrf.mxu1 }
 0x389   : > { %v1288_v48 = vmul.f32 %v2364_v43, %v2060_v41 }
 0x38a   : > { %v2062_v16 = vpop.f32.mrf.mxu1 }
 0x38b   : > { %v1307_v29 = vpack.c.bf16 %v1288_v48, %v1287_v14  ;;  %v2063_v4 = vadd.f32 %v2062_v16, %v2061_v34 }
 0x38c   : > { %v2064_v54 = vpop.f32.mrf.mxu1 }
 0x38d   : > { %2122 = vmatmul.mubr.msk.bf16.gmra.mxu1 %vm316_vm0, %v1306_v56  ;;  %v1289_v44 = vmul.f32 %v2366_v26, %v2063_v4 }
 0x38e   : > { %v2065_v35 = vpop.f32.mrf.mxu1  ;;  %2125 = vmatprep.mubr.msk.bf16.mxu1 %vm316_vm0, %v1307_v29 }
 0x38f   : > { %v2066_v5 = vadd.f32 %v2065_v35, %v2064_v54 }
 0x390   : > { %v2067_v21 = vpop.f32.mrf.mxu1 }
 0x391   : > { %v1290_v30 = vmul.f32 %v2368_v38, %v2066_v5 }
 0x392   : > { %v2068_v28 = vpop.f32.mrf.mxu1 }
 0x393   : > { %v1308_v17 = vpack.c.bf16 %v1290_v30, %v1289_v44  ;;  %v2069_v40 = vadd.f32 %v2068_v28, %v2067_v21 }
 0x394   : > { %v2070_v58 = vpop.f32.mrf.mxu1 }
 0x395   : > { %2126 = vmatmul.mubr.msk.bf16.gmra.mxu1 %vm316_vm0, %v1308_v17  ;;  %v1291_v13 = vmul.f32 %v2370_v42, %v2069_v40 }
 0x396   : > { %v2071_v27 = vpop.f32.mrf.mxu1 }
 0x397   : > { %v2072_v59 = vadd.f32 %v2071_v27, %v2070_v58 }
 0x398   : > { %v2073_v9 = vpop.f32.mrf.mxu1 }
 0x399   : > { %v1292_v36 = vmul.f32 %v2372_v31, %v2072_v59 }
 0x39a   : > { %v2074_v53 = vpop.f32.mrf.mxu1 }
 0x39b   : > { %v1309_v63 = vpack.c.bf16 %v1292_v36, %v1291_v13  ;;  %v2075_v1 = vadd.f32 %v2074_v53, %v2073_v9 }
 0x39c   : > { %v2076_v46 = vpop.f32.mrf.mxu1 }
 0x39d   : > { %2129 = vmatprep.mubr.msk.bf16.mxu1 %vm316_vm0, %v1309_v63  ;;  %v1293_v55 = vmul.f32 %v2374_v12, %v2075_v1 }
 0x39e   : > { %v2077_v19 = vpop.f32.mrf.mxu1 }
 0x39f   : > { %v2078_v20 = vadd.f32 %v2077_v19, %v2076_v46 }
 0x3a1   : > { %v1294_v45 = vmul.f32 %v2376_v24, %v2078_v20 }
 0x3a3   : > { %v1310_v50 = vpack.c.bf16 %v1294_v45, %v1293_v55 }
 0x3a5   : > { %2130 = vmatmul.mubr.msk.bf16.gmra.mxu1 %vm316_vm0, %v1310_v50 }
 0x425   : > { %v2103_v18 = vpop.f32.mrf.mxu1 }
 0x426   : > { %v1425_v62 = vadd.f32 %v2103_v18, %v3101_v37 }
 0x427   : > { %v1416_v49 = vpop.f32.mrf.mxu1 }
 0x428   : > { %v1545_v60 = vmax.f32 %v1425_v62, 0.0  ;;  %v1417_v22 = vadd.f32 %v3101_v37, %v1416_v49 }
 0x429   : > { %v2104_v51 = vpop.f32.mrf.mxu1 }
 0x42a   : > { %v1889_v15 = vpack.c.bf16 %v1545_v60, %v1545_v60  ;;  %v1543_v8 = vmax.f32 %v1417_v22, 0.0  ;;  %v1428_v23 = vadd.f32 %v2104_v51, %v3101_v37 }
 0x42b   : > { %v1419_v11 = vpop.f32.mrf.mxu1 }
 0x42c   : > { %1706 = vst.msk [vmem:[%s3110_s28 + $0x8] sm:$0xf] %vm1703_vm1, %v1889_v15  ;;  %v1887_v47 = vpack.c.bf16 %v1543_v8, %v1543_v8  ;;  %v1546_v0 = vmax.f32 %v1428_v23, 0.0  ;;  %v1420_v61 = vadd.f32 %v3101_v37, %v1419_v11 }
 0x42d   : > { %v2107_v2 = vpop.f32.mrf.mxu1 }
 0x42e   : > { %1704 = vst.msk [vmem:[%s3110_s28] sm:$0xf] %vm1703_vm1, %v1887_v47  ;;  %v1890_v3 = vpack.c.bf16 %v1546_v0, %v1546_v0  ;;  %v1544_v33 = vmax.f32 %v1420_v61, 0.0  ;;  %v1441_v39 = vadd.f32 %v2107_v2, %v3101_v37 }
 0x42f   : > { %v1432_v32 = vpop.f32.mrf.mxu1 }
 0x430   : > { %1707 = vst.msk [vmem:[%s3110_s28 + $0xc] sm:$0xf] %vm1703_vm1, %v1890_v3  ;;  %v1888_v10 = vpack.c.bf16 %v1544_v33, %v1544_v33  ;;  %v1549_v57 = vmax.f32 %v1441_v39, 0.0  ;;  %v1433_v41 = vadd.f32 %v3101_v37, %v1432_v32 }
 0x431   : > { %v2108_v43 = vpop.f32.mrf.mxu1 }
 0x432   : > { %1705 = vst.msk [vmem:[%s3110_s28 + $0x4] sm:$0xf] %vm1703_vm1, %v1888_v10  ;;  %v1893_v7 = vpack.c.bf16 %v1549_v57, %v1549_v57  ;;  %v1547_v34 = vmax.f32 %v1433_v41, 0.0  ;;  %v1444_v25 = vadd.f32 %v2108_v43, %v3101_v37 }
 0x433   : > { %v1435_v14 = vpop.f32.mrf.mxu1 }
 0x434   : > { %1710 = vst.msk [vmem:[%s3110_s28 + $0x18] sm:$0xf] %vm1703_vm1, %v1893_v7  ;;  %v1891_v48 = vpack.c.bf16 %v1547_v34, %v1547_v34  ;;  %v1550_v16 = vmax.f32 %v1444_v25, 0.0  ;;  %v1436_v56 = vadd.f32 %v3101_v37, %v1435_v14 }
 0x435   : > { %v2111_v29 = vpop.f32.mrf.mxu1 }
 0x436   : > { %1708 = vst.msk [vmem:[%s3110_s28 + $0x10] sm:$0xf] %vm1703_vm1, %v1891_v48  ;;  %v1894_v54 = vpack.c.bf16 %v1550_v16, %v1550_v16  ;;  %v1548_v4 = vmax.f32 %v1436_v56, 0.0  ;;  %v1457_v35 = vadd.f32 %v2111_v29, %v3101_v37 }
 0x437   : > { %v1448_v26 = vpop.f32.mrf.mxu1 }
 0x438   : > { %1711 = vst.msk [vmem:[%s3110_s28 + $0x1c] sm:$0xf] %vm1703_vm1, %v1894_v54  ;;  %v1892_v52 = vpack.c.bf16 %v1548_v4, %v1548_v4  ;;  %v1553_v5 = vmax.f32 %v1457_v35, 0.0  ;;  %v1449_v38 = vadd.f32 %v3101_v37, %v1448_v26 }
 0x439   : > { %v2112_v6 = vpop.f32.mrf.mxu1 }
 0x43a   : > { %1709 = vst.msk [vmem:[%s3110_s28 + $0x14] sm:$0xf] %vm1703_vm1, %v1892_v52  ;;  %v1897_v21 = vpack.c.bf16 %v1553_v5, %v1553_v5  ;;  %v1551_v44 = vmax.f32 %v1449_v38, 0.0  ;;  %v1460_v30 = vadd.f32 %v2112_v6, %v3101_v37 }
 0x43b   : > { %v1451_v28 = vpop.f32.mrf.mxu1 }
 0x43c   : > { %1714 = vst.msk [vmem:[%s3110_s28 + $0x28] sm:$0xf] %vm1703_vm1, %v1897_v21  ;;  %v1895_v17 = vpack.c.bf16 %v1551_v44, %v1551_v44  ;;  %v1554_v58 = vmax.f32 %v1460_v30, 0.0  ;;  %v1452_v40 = vadd.f32 %v3101_v37, %v1451_v28 }
 0x43d   : > { %v2115_v27 = vpop.f32.mrf.mxu1 }
 0x43e   : > { %1712 = vst.msk [vmem:[%s3110_s28 + $0x20] sm:$0xf] %vm1703_vm1, %v1895_v17  ;;  %v1898_v42 = vpack.c.bf16 %v1554_v58, %v1554_v58  ;;  %v1552_v59 = vmax.f32 %v1452_v40, 0.0  ;;  %v1473_v31 = vadd.f32 %v2115_v27, %v3101_v37 }
 0x43f   : > { %v1464_v9 = vpop.f32.mrf.mxu1 }
 0x440   : > { %1715 = vst.msk [vmem:[%s3110_s28 + $0x2c] sm:$0xf] %vm1703_vm1, %v1898_v42  ;;  %v1896_v13 = vpack.c.bf16 %v1552_v59, %v1552_v59  ;;  %v1557_v36 = vmax.f32 %v1473_v31, 0.0  ;;  %v1465_v53 = vadd.f32 %v3101_v37, %v1464_v9 }
 0x441   : > { %v2116_v63 = vpop.f32.mrf.mxu1 }
 0x442   : > { %1713 = vst.msk [vmem:[%s3110_s28 + $0x24] sm:$0xf] %vm1703_vm1, %v1896_v13  ;;  %v1901_v46 = vpack.c.bf16 %v1557_v36, %v1557_v36  ;;  %v1555_v1 = vmax.f32 %v1465_v53, 0.0  ;;  %v1476_v19 = vadd.f32 %v2116_v63, %v3101_v37 }
 0x443   : > { %v1467_v12 = vpop.f32.mrf.mxu1 }
 0x444   : > { %1718 = vst.msk [vmem:[%s3110_s28 + $0x38] sm:$0xf] %vm1703_vm1, %v1901_v46  ;;  %v1899_v20 = vpack.c.bf16 %v1555_v1, %v1555_v1  ;;  %v1558_v24 = vmax.f32 %v1476_v19, 0.0  ;;  %v1468_v55 = vadd.f32 %v3101_v37, %v1467_v12 }
 0x445   : > { %v2119_v45 = vpop.f32.mrf.mxu1 }
 0x446   : > { %1716 = vst.msk [vmem:[%s3110_s28 + $0x30] sm:$0xf] %vm1703_vm1, %v1899_v20  ;;  %v1902_v50 = vpack.c.bf16 %v1558_v24, %v1558_v24  ;;  %v1556_v18 = vmax.f32 %v1468_v55, 0.0  ;;  %v1489_v62 = vadd.f32 %v2119_v45, %v3101_v37 }
 0x447   : > { %v1480_v49 = vpop.f32.mrf.mxu1 }
 0x448   : > { %1719 = vst.msk [vmem:[%s3110_s28 + $0x3c] sm:$0xf] %vm1703_vm1, %v1902_v50  ;;  %v1900_v60 = vpack.c.bf16 %v1556_v18, %v1556_v18  ;;  %v1561_v22 = vmax.f32 %v1489_v62, 0.0  ;;  %v1481_v51 = vadd.f32 %v3101_v37, %v1480_v49 }
 0x449   : > { %v2120_v15 = vpop.f32.mrf.mxu1 }
 0x44a   : > { %1717 = vst.msk [vmem:[%s3110_s28 + $0x34] sm:$0xf] %vm1703_vm1, %v1900_v60  ;;  %v1905_v8 = vpack.c.bf16 %v1561_v22, %v1561_v22  ;;  %v1559_v23 = vmax.f32 %v1481_v51, 0.0  ;;  %v1492_v11 = vadd.f32 %v2120_v15, %v3101_v37 }
 0x44b   : > { %v1483_v47 = vpop.f32.mrf.mxu1 }
 0x44c   : > { %1722 = vst.msk [vmem:[%s3110_s28 + $0x48] sm:$0xf] %vm1703_vm1, %v1905_v8  ;;  %v1903_v0 = vpack.c.bf16 %v1559_v23, %v1559_v23  ;;  %v1562_v61 = vmax.f32 %v1492_v11, 0.0  ;;  %v1484_v2 = vadd.f32 %v3101_v37, %v1483_v47 }
 0x44d   : > { %v2123_v3 = vpop.f32.mrf.mxu1 }
 0x44e   : > { %1720 = vst.msk [vmem:[%s3110_s28 + $0x40] sm:$0xf] %vm1703_vm1, %v1903_v0  ;;  %v1906_v33 = vpack.c.bf16 %v1562_v61, %v1562_v61  ;;  %v1560_v39 = vmax.f32 %v1484_v2, 0.0  ;;  %v1505_v32 = vadd.f32 %v2123_v3, %v3101_v37 }
 0x44f   : > { %v1496_v10 = vpop.f32.mrf.mxu1 }
 0x450   : > { %1723 = vst.msk [vmem:[%s3110_s28 + $0x4c] sm:$0xf] %vm1703_vm1, %v1906_v33  ;;  %v1904_v57 = vpack.c.bf16 %v1560_v39, %v1560_v39  ;;  %v1565_v41 = vmax.f32 %v1505_v32, 0.0  ;;  %v1497_v43 = vadd.f32 %v3101_v37, %v1496_v10 }
 0x451   : > { %v2124_v7 = vpop.f32.mrf.mxu1 }
 0x452   : > { %1721 = vst.msk [vmem:[%s3110_s28 + $0x44] sm:$0xf] %vm1703_vm1, %v1904_v57  ;;  %v1909_v34 = vpack.c.bf16 %v1565_v41, %v1565_v41  ;;  %v1563_v25 = vmax.f32 %v1497_v43, 0.0  ;;  %v1508_v14 = vadd.f32 %v2124_v7, %v3101_v37 }
 0x453   : > { %v1499_v48 = vpop.f32.mrf.mxu1 }
 0x454   : > { %1726 = vst.msk [vmem:[%s3110_s28 + $0x58] sm:$0xf] %vm1703_vm1, %v1909_v34  ;;  %v1907_v16 = vpack.c.bf16 %v1563_v25, %v1563_v25  ;;  %v1566_v56 = vmax.f32 %v1508_v14, 0.0  ;;  %v1500_v29 = vadd.f32 %v3101_v37, %v1499_v48 }
 0x455   : > { %v2127_v54 = vpop.f32.mrf.mxu1 }
 0x456   : > { %1724 = vst.msk [vmem:[%s3110_s28 + $0x50] sm:$0xf] %vm1703_vm1, %v1907_v16  ;;  %v1910_v4 = vpack.c.bf16 %v1566_v56, %v1566_v56  ;;  %v1564_v35 = vmax.f32 %v1500_v29, 0.0  ;;  %v1521_v26 = vadd.f32 %v2127_v54, %v3101_v37 }
 0x457   : > { %v1512_v52 = vpop.f32.mrf.mxu1 }
 0x458   : > { %1727 = vst.msk [vmem:[%s3110_s28 + $0x5c] sm:$0xf] %vm1703_vm1, %v1910_v4  ;;  %v1908_v5 = vpack.c.bf16 %v1564_v35, %v1564_v35  ;;  %v1569_v38 = vmax.f32 %v1521_v26, 0.0  ;;  %v1513_v6 = vadd.f32 %v3101_v37, %v1512_v52 }
 0x459   : > { %v2128_v21 = vpop.f32.mrf.mxu1 }
 0x45a   : > { %1725 = vst.msk [vmem:[%s3110_s28 + $0x54] sm:$0xf] %vm1703_vm1, %v1908_v5  ;;  %v1913_v44 = vpack.c.bf16 %v1569_v38, %v1569_v38  ;;  %v1567_v30 = vmax.f32 %v1513_v6, 0.0  ;;  %v1524_v28 = vadd.f32 %v2128_v21, %v3101_v37 }
 0x45b   : > { %v1515_v17 = vpop.f32.mrf.mxu1 }
 0x45c   : > { %1730 = vst.msk [vmem:[%s3110_s28 + $0x68] sm:$0xf] %vm1703_vm1, %v1913_v44  ;;  %v1911_v58 = vpack.c.bf16 %v1567_v30, %v1567_v30  ;;  %v1570_v40 = vmax.f32 %v1524_v28, 0.0  ;;  %v1516_v27 = vadd.f32 %v3101_v37, %v1515_v17 }
 0x45e   : > { %1728 = vst.msk [vmem:[%s3110_s28 + $0x60] sm:$0xf] %vm1703_vm1, %v1911_v58  ;;  %v1914_v42 = vpack.c.bf16 %v1570_v40, %v1570_v40  ;;  %v1568_v59 = vmax.f32 %v1516_v27, 0.0 }
 0x460   : > { %1731 = vst.msk [vmem:[%s3110_s28 + $0x6c] sm:$0xf] %vm1703_vm1, %v1914_v42  ;;  %v1912_v31 = vpack.c.bf16 %v1568_v59, %v1568_v59 }
 0x462   : > { %1729 = vst.msk [vmem:[%s3110_s28 + $0x64] sm:$0xf] %vm1703_vm1, %v1912_v31 }
 0x465   : > { %v2131_v9 = vpop.f32.mrf.mxu1 }
 0x466   : > { %v1537_v13 = vadd.f32 %v2131_v9, %v3101_v37 }
 0x467   : > { %v1528_v36 = vpop.f32.mrf.mxu1 }
 0x468   : > { %v1573_v53 = vmax.f32 %v1537_v13, 0.0  ;;  %v1529_v63 = vadd.f32 %v3101_v37, %v1528_v36 }
 0x469   : > { %v2132_v46 = vpop.f32.mrf.mxu1 }
 0x46a   : > { %v1917_v1 = vpack.c.bf16 %v1573_v53, %v1573_v53  ;;  %v1571_v19 = vmax.f32 %v1529_v63, 0.0  ;;  %v1540_v12 = vadd.f32 %v2132_v46, %v3101_v37 }
 0x46b   : > { %v1531_v20 = vpop.f32.mrf.mxu1 }
 0x46c   : > { %1734 = vst.msk [vmem:[%s3110_s28 + $0x78] sm:$0xf] %vm1703_vm1, %v1917_v1  ;;  %v1915_v24 = vpack.c.bf16 %v1571_v19, %v1571_v19  ;;  %v1574_v55 = vmax.f32 %v1540_v12, 0.0  ;;  %v1532_v45 = vadd.f32 %v3101_v37, %v1531_v20 }
 0x46e   : > { %1732 = vst.msk [vmem:[%s3110_s28 + $0x70] sm:$0xf] %vm1703_vm1, %v1915_v24  ;;  %v1918_v50 = vpack.c.bf16 %v1574_v55, %v1574_v55  ;;  %v1572_v18 = vmax.f32 %v1532_v45, 0.0 }
 0x470   : > { %1735 = vst.msk [vmem:[%s3110_s28 + $0x7c] sm:$0xf] %vm1703_vm1, %v1918_v50  ;;  %v1916_v62 = vpack.c.bf16 %v1572_v18, %v1572_v18 }
 0x472   : > { %1733 = vst.msk [vmem:[%s3110_s28 + $0x74] sm:$0xf] %vm1703_vm1, %v1916_v62 }
 0x473 PF: > { %s13_s12 = sadd.s32 1, %s2383_s12  }
 0x474   : > { %p10_p4 = scmp.ge.s32.totalorder %s13_s12, 4  }
 0x476   :  { %12 = sbr.rel (!%p10_p4) target bundleno = 1 (0x1), region = 62 }

// kernel: image_level_context_forward.5
= control target key start
LH: loop header
LB: loop body
LE: loop exit
PB: predicated region body
PF: predicated region fallthrough
CT: control target
= control target key end

     0   :  { %s4379_s18 = smov 0   ;;  %s4381_s19 = smov 0   ;;  %s5952_s0 = inlined_call_operand.vmem [shape: bf16[2,16,18,16], index: 0, kind: input, shape index: {}]   ;;  %s5953_s1 = inlined_call_operand.vmem [shape: bf16[2,16,18,16], index: 1, kind: input, shape index: {}]   ;;  %s5954_s2 = inlined_call_operand.vmem [shape: bf16[2,16,18,16], index: 2, kind: input, shape index: {}]   ;;  %s5955_s3 = inlined_call_operand.vmem [shape: bf16[144,8], index: 3, kind: input, shape index: {}]   ;;  %s5956_s4 = inlined_call_operand.vmem [shape: f32[1,8], index: 4, kind: input, shape index: {}]   ;;  %s5957_s5 = inlined_call_operand.vmem [shape: f32[2,16,16,8], index: 5, kind: output, shape index: {}]  }
   0x1   :  { %s4383_s20 = smov 0  }
   0x2 LB: > { %s27_s21 = sadd.s32 1, %s4335_s19  ;;  %p4106_p0 = scmp.ge.s32.totalorder %s4339_s20, 1  ;;  %s4339_s20 = sphi %s4383_s20, %s15_s20   ;;  %s4335_s19 = sphi %s4381_s19, %s5963_s19   ;;  %s4331_s18 = sphi %s4379_s18, %s5962_s18  }
   0x3   : > { %p29_p1 = scmp.ge.s32.totalorder %s27_s21, 2  ;;  %p245_p2 = scmp.lt.s32.totalorder %s4339_s20, 3 }
   0x5   : > { %s5965_s21 = smov (%p29_p1, %s27_s21), 0  ;;  %p246_p3 = pnand %p4106_p0, %p245_p2 }
   0x6   : > { %p304_p4 = scmp.lt.s32.totalorder (!%p246_p3), %s4331_s18, 1  ;;  %s4341_s26 = smov (!%p246_p3), 16  }
   0x7   : > { %249 = sbr.rel (%p246_p3) target bundleno = 796 (0x31c), region = 40  ;;  %s4342_s27 = smov (!%p246_p3), 32  }
   0x8   : > { %s4343_s6 = smov (!%p246_p3), 48   ;;  %s4344_s10 = smov (!%p246_p3), 64  }
   0x9   : > { %s4345_s11 = smov (!%p246_p3), 80   ;;  %s4347_s16 = smov (!%p246_p3), 96  }
   0xc   : > { %s5967_s18 = smov (!%p304_p4, %s4331_s18), 1  ;;  %vm461_vm0 = vsmask.f32 3328  ;;  %vm462_vm1 = vsmask.f32 7440  ;;  %vm380_vm3 = vcmask 125952  }
   0xd   : > { %s4400_s22 = smul.u32 192, %s5967_s18  ;;  %vm4417_vm2 = vmor %vm461_vm0, %vm462_vm1  ;;  %vm1073_vm4 = vcmask 1042432   ;;  %vm1074_vm5 = vcmask 1046532   ;;  %vm944_vm7 = vcmask 257152   ;;  %vm1284_vm8 = vcmask 388352  }
   0xe   : > { %vm4561_vm6 = vmor %vm1073_vm4, %vm1074_vm5  ;;  %vm1477_vm9 = vcmask 519552   ;;  %vm2038_vm10 = vcmask 650752   ;;  %vm2375_vm11 = vcmask 781952   ;;  %vm2568_vm12 = vcmask 913152  }
   0xf   : > { %s4406_s25 = scalar_lea.vmem %s5952_s0, %s4400_s22  ;;  %s4715_s30 = scalar_lea.vmem %s5953_s1, %s4400_s22  ;;  %vm3129_vm13 = vcmask 1044352   ;;  %vm3689_vm14 = vcmask 130048   ;;  %vm3931_vm15 = vcmask 64512  }
  0x10   : > { %v416_v0 = vld [vmem:[%s4406_s25 + $0xc] sm:$0xf]  ;;  %v417_v1 = vld [vmem:[%s4406_s25 + $0x10] sm:$0xf]  ;;  %v413_v2 = vld [vmem:[%s4406_s25] sm:$0xf]  ;;  %s4785_s9 = scalar_lea.vmem %s5954_s2, %s4400_s22 }
  0x11   : > { %v489_v3 = vshrl.u32 %v416_v0, 16  ;;  %v492_v4 = vshll.u32 %v416_v0, 16  ;;  %v498_v5 = vshll.u32 %v417_v1, 16  ;;  %v502_v6 = vshrl.u32 %v417_v1, 16  ;;  %v414_v7 = vld [vmem:[%s4406_s25 + $0x4] sm:$0xf] }
  0x12   : > { %v465_v8 = vshrl.u32 %v413_v2, 16  ;;  %v468_v9 = vshll.u32 %v413_v2, 16  ;;  %v474_v10 = vshll.u32 %v414_v7, 16  ;;  %v478_v11 = vshrl.u32 %v414_v7, 16  ;;  %v418_v12 = vld [vmem:[%s4406_s25 + $0x14] sm:$0x1] }
  0x13   : > { %v491_v13 = vrot.slane %v489_v3, 4  ;;  %v494_v14 = vrot.slane %v492_v4, 5  ;;  %v500_v15 = vrot.slane %v498_v5, 5  ;;  %v504_v16 = vrot.slane %v502_v6, 4  ;;  %v415_v17 = vld [vmem:[%s4406_s25 + $0x8] sm:$0x1] }
  0x14   : > { %v467_v18 = vrot.slane %v465_v8, 4  ;;  %v470_v19 = vrot.slane %v468_v9, 5  ;;  %v476_v20 = vrot.slane %v474_v10, 5  ;;  %v480_v21 = vrot.slane %v478_v11, 4  ;;  %v420_v22 = vld [vmem:[%s4406_s25 + $0x1c] sm:$0xf] }
  0x15   : > { %v495_v23 = vor.u32 %v494_v14, %v491_v13  ;;  %v505_v24 = vor.u32 %v504_v16, %v500_v15  ;;  %v508_v25 = vshll.u32 %v418_v12, 16  ;;  %v484_v26 = vshll.u32 %v415_v17, 16  ;;  %v421_v30 = vld [vmem:[%s4406_s25 + $0x20] sm:$0x1]  ;;  %v419_v33 = vld [vmem:[%s4406_s25 + $0x18] sm:$0xf] }
  0x16   : > { %v471_v28 = vor.u32 %v470_v19, %v467_v18  ;;  %v481_v29 = vor.u32 %v480_v21, %v476_v20  ;;  %v522_v31 = vshll.u32 %v420_v22, 16  ;;  %v526_v32 = vshrl.u32 %v420_v22, 16  ;;  %v423_v42 = vld [vmem:[%s4406_s25 + $0x28] sm:$0xf]  ;;  %v424_v47 = vld [vmem:[%s4406_s25 + $0x2c] sm:$0x1] }
  0x17   : > { %v496_v34 = vrot.slane %v495_v23, 4  ;;  %v506_v35 = vrot.slane %v505_v24, 4  ;;  %v510_v36 = vrot.slane %v508_v25, 5  ;;  %v486_v37 = vrot.slane %v484_v26, 5  ;;  %v422_v48 = vld [vmem:[%s4406_s25 + $0x24] sm:$0xf] }
  0x18   : > { %v472_v38 = vrot.slane %v471_v28, 4  ;;  %v482_v39 = vrot.slane %v481_v29, 4  ;;  %v524_v40 = vrot.slane %v522_v31, 5  ;;  %v528_v41 = vrot.slane %v526_v32, 4  ;;  %v426_v53 = vld [vmem:[%s4406_s25 + $0x34] sm:$0xf] }
  0x19   : > { %v501_v43 = vsel %vm4417_vm2, %v496_v34, %v500_v15  ;;  %v511_v44 = vsel %vm4417_vm2, %v506_v35, %v510_v36  ;;  %v532_v45 = vshll.u32 %v421_v30, 16  ;;  %v513_v46 = vshrl.u32 %v419_v33, 16  ;;  %v427_v62 = vld [vmem:[%s4406_s25 + $0x38] sm:$0x1]  ;;  %v425_v3 = vld [vmem:[%s4406_s25 + $0x30] sm:$0xf] }
  0x1a   : > { %852 = vrot.lane.b32.xlu1 %v501_v43, %s4341_s26  ;;  %v477_v49 = vsel %vm4417_vm2, %v472_v38, %v476_v20  ;;  %v487_v50 = vsel %vm4417_vm2, %v482_v39, %v486_v37  ;;  %v529_v51 = vor.u32 %v528_v41, %v524_v40  ;;  %v516_v52 = vshll.u32 %v419_v33, 16  ;;  %v429_v8 = vld [vmem:[%s4406_s25 + $0x40] sm:$0xf]  ;;  %v430_v17 = vld [vmem:[%s4406_s25 + $0x44] sm:$0x1] }
  0x1b   : > { %848 = vrot.lane.b32.xlu0 %v477_v49, %s4341_s26  ;;  %v534_v54 = vrot.slane %v532_v45, 5  ;;  %v515_v55 = vrot.slane %v513_v46, 4  ;;  %v546_v56 = vshll.u32 %v423_v42, 16  ;;  %v550_v57 = vshrl.u32 %v423_v42, 16  ;;  %v428_v22 = vld [vmem:[%s4406_s25 + $0x3c] sm:$0xf] }
  0x1c   : > { %v530_v58 = vrot.slane %v529_v51, 4  ;;  %v518_v59 = vrot.slane %v516_v52, 5  ;;  %v556_v60 = vshll.u32 %v424_v47, 16  ;;  %v537_v61 = vshrl.u32 %v422_v48, 16  ;;  %v432_v28 = vld [vmem:[%s4406_s25 + $0x4c] sm:$0xf] }
  0x1d   : > { %v548_v63 = vrot.slane %v546_v56, 5  ;;  %v552_v0 = vrot.slane %v550_v57, 4  ;;  %v540_v1 = vshll.u32 %v422_v48, 16  ;;  %v570_v2 = vshll.u32 %v426_v53, 16  ;;  %v433_v37 = vld [vmem:[%s4406_s25 + $0x50] sm:$0x1] }
  0x1e   : > { %854 = vrot.lane.b32.xlu1 %v511_v44, %s4341_s26  ;;  %v535_v4 = vsel %vm4417_vm2, %v530_v58, %v534_v54  ;;  %v519_v5 = vor.u32 %v518_v59, %v515_v55  ;;  %v558_v6 = vrot.slane %v556_v60, 5  ;;  %v539_v7 = vrot.slane %v537_v61, 4  ;;  %v431_v42 = vld [vmem:[%s4406_s25 + $0x48] sm:$0xf]  ;;  %v435_v47 = vld [vmem:[%s4406_s25 + $0x58] sm:$0xf] }
  0x1f   : > { %850 = vrot.lane.b32.xlu0 %v487_v50, %s4341_s26  ;;  %v553_v9 = vor.u32 %v552_v0, %v548_v63  ;;  %v542_v10 = vrot.slane %v540_v1, 5  ;;  %v572_v11 = vrot.slane %v570_v2, 5  ;;  %v574_v12 = vshrl.u32 %v426_v53, 16  ;;  %v436_v56 = vld [vmem:[%s4406_s25 + $0x5c] sm:$0x1] }
  0x20   : > { %v520_v13 = vrot.slane %v519_v5, 4  ;;  %v580_v14 = vshll.u32 %v427_v62, 16  ;;  %v561_v15 = vshrl.u32 %v425_v3, 16  ;;  %v564_v16 = vshll.u32 %v425_v3, 16  ;;  %v434_v61 = vld [vmem:[%s4406_s25 + $0x54] sm:$0xf] }
  0x21   : > { %v554_v18 = vrot.slane %v553_v9, 4  ;;  %v543_v19 = vor.u32 %v542_v10, %v539_v7  ;;  %v576_v20 = vrot.slane %v574_v12, 4  ;;  %v594_v21 = vshll.u32 %v429_v8, 16 }
  0x22   : > { %858 = vrot.lane.b32.xlu1 %v535_v4, %s4341_s26  ;;  %v525_v23 = vsel %vm4417_vm2, %v520_v13, %v524_v40  ;;  %v582_v24 = vrot.slane %v580_v14, 5  ;;  %v563_v25 = vrot.slane %v561_v15, 4  ;;  %v566_v26 = vrot.slane %v564_v16, 5  ;;  %v439_v15 = vld [vmem:[%s4406_s25 + $0x68] sm:$0x1] }
  0x23   : > { %856 = vrot.lane.b32.xlu0 %v525_v23, %s4341_s26  ;;  %v559_v29 = vsel %vm4417_vm2, %v554_v18, %v558_v6  ;;  %v544_v30 = vrot.slane %v543_v19, 4  ;;  %v577_v31 = vor.u32 %v576_v20, %v572_v11  ;;  %v596_v32 = vrot.slane %v594_v21, 5  ;;  %v438_v6 = vld [vmem:[%s4406_s25 + $0x64] sm:$0xf]  ;;  %v437_v16 = vld [vmem:[%s4406_s25 + $0x60] sm:$0xf] }
  0x24   : > { %v567_v33 = vor.u32 %v566_v26, %v563_v25  ;;  %v598_v34 = vshrl.u32 %v429_v8, 16  ;;  %v604_v35 = vshll.u32 %v430_v17, 16  ;;  %v585_v36 = vshrl.u32 %v428_v22, 16  ;;  %v441_v25 = vld [vmem:[%s4406_s25 + $0x70] sm:$0xf] }
  0x25   : > { %v549_v38 = vsel %vm4417_vm2, %v544_v30, %v548_v63  ;;  %v578_v39 = vrot.slane %v577_v31, 4  ;;  %v588_v40 = vshll.u32 %v428_v22, 16  ;;  %v618_v41 = vshll.u32 %v432_v28, 16 }
  0x26   : > { %862 = vrot.lane.b32.xlu1 %v559_v29, %s4341_s26  ;;  %v568_v43 = vrot.slane %v567_v33, 4  ;;  %v600_v44 = vrot.slane %v598_v34, 4  ;;  %v606_v45 = vrot.slane %v604_v35, 5  ;;  %v587_v46 = vrot.slane %v585_v36, 4  ;;  %v442_v35 = vld [vmem:[%s4406_s25 + $0x74] sm:$0x1] }
  0x27   : > { %860 = vrot.lane.b32.xlu0 %v549_v38, %s4341_s26  ;;  %v583_v48 = vsel %vm4417_vm2, %v578_v39, %v582_v24  ;;  %v590_v49 = vrot.slane %v588_v40, 5  ;;  %v620_v50 = vrot.slane %v618_v41, 5  ;;  %v622_v51 = vshrl.u32 %v432_v28, 16  ;;  %v440_v36 = vld [vmem:[%s4406_s25 + $0x6c] sm:$0xf] }
  0x28   : > { %v573_v52 = vsel %vm4417_vm2, %v568_v43, %v572_v11  ;;  %v601_v53 = vor.u32 %v600_v44, %v596_v32  ;;  %v628_v54 = vshll.u32 %v433_v37, 16  ;;  %v609_v55 = vshrl.u32 %v431_v42, 16 }
  0x29   : > { %v591_v57 = vor.u32 %v590_v49, %v587_v46  ;;  %v624_v58 = vrot.slane %v622_v51, 4  ;;  %v612_v59 = vshll.u32 %v431_v42, 16  ;;  %v642_v60 = vshll.u32 %v435_v47, 16 }
  0x2a   : > { %866 = vrot.lane.b32.xlu1 %v583_v48, %s4341_s26  ;;  %v602_v62 = vrot.slane %v601_v53, 4  ;;  %v630_v63 = vrot.slane %v628_v54, 5  ;;  %v611_v0 = vrot.slane %v609_v55, 4  ;;  %v646_v1 = vshrl.u32 %v435_v47, 16  ;;  %v445_v54 = vld [vmem:[%s4406_s25 + $0x80] sm:$0x1] }
  0x2b   : > { %864 = vrot.lane.b32.xlu0 %v573_v52, %s4341_s26  ;;  %v592_v2 = vrot.slane %v591_v57, 4  ;;  %v625_v3 = vor.u32 %v624_v58, %v620_v50  ;;  %v614_v4 = vrot.slane %v612_v59, 5  ;;  %v644_v5 = vrot.slane %v642_v60, 5  ;;  %v443_v55 = vld [vmem:[%s4406_s25 + $0x78] sm:$0xf] }
  0x2c   : > { %v607_v7 = vsel %vm4417_vm2, %v602_v62, %v606_v45  ;;  %v648_v8 = vrot.slane %v646_v1, 4  ;;  %v652_v9 = vshll.u32 %v436_v56, 16  ;;  %v633_v10 = vshrl.u32 %v434_v61, 16  ;;  %v444_v45 = vld [vmem:[%s4406_s25 + $0x7c] sm:$0xf] }
  0x2d   : > { %v597_v11 = vsel %vm4417_vm2, %v592_v2, %v596_v32  ;;  %v626_v12 = vrot.slane %v625_v3, 4  ;;  %v615_v13 = vor.u32 %v614_v4, %v611_v0  ;;  %v636_v14 = vshll.u32 %v434_v61, 16  ;;  %v447_v0 = vld [vmem:[%s4406_s25 + $0x88] sm:$0xf] }
  0x2e   : > { %870 = vrot.lane.b32.xlu1 %v607_v7, %s4341_s26  ;;  %v649_v17 = vor.u32 %v648_v8, %v644_v5  ;;  %v654_v18 = vrot.slane %v652_v9, 5  ;;  %v635_v19 = vrot.slane %v633_v10, 4  ;;  %v666_v20 = vshll.u32 %v438_v6, 16  ;;  %v446_v10 = vld [vmem:[%s4406_s25 + $0x84] sm:$0xf] }
  0x2f   : > { %868 = vrot.lane.b32.xlu0 %v597_v11, %s4341_s26  ;;  %v631_v21 = vsel %vm4417_vm2, %v626_v12, %v630_v63  ;;  %v616_v22 = vrot.slane %v615_v13, 4  ;;  %v638_v23 = vrot.slane %v636_v14, 5  ;;  %v670_v24 = vshrl.u32 %v438_v6, 16 }
  0x30   : > { %v650_v26 = vrot.slane %v649_v17, 4  ;;  %v668_v28 = vrot.slane %v666_v20, 5  ;;  %v676_v29 = vshll.u32 %v439_v15, 16  ;;  %v657_v30 = vshrl.u32 %v437_v16, 16 }
  0x31   : > { %v621_v31 = vsel %vm4417_vm2, %v616_v22, %v620_v50  ;;  %v639_v32 = vor.u32 %v638_v23, %v635_v19  ;;  %v672_v33 = vrot.slane %v670_v24, 4  ;;  %v660_v34 = vshll.u32 %v437_v16, 16  ;;  %v450_v19 = vld [vmem:[%s4406_s25 + $0x94] sm:$0xf]  ;;  %v451_v24 = vld [vmem:[%s4406_s25 + $0x98] sm:$0x1] }
  0x32   : > { %874 = vrot.lane.b32.xlu1 %v631_v21, %s4341_s26  ;;  %v655_v37 = vsel %vm4417_vm2, %v650_v26, %v654_v18  ;;  %v678_v38 = vrot.slane %v676_v29, 5  ;;  %v659_v39 = vrot.slane %v657_v30, 4  ;;  %v690_v40 = vshll.u32 %v441_v25, 16  ;;  %v449_v30 = vld [vmem:[%s4406_s25 + $0x90] sm:$0xf] }
  0x33   : > { %872 = vrot.lane.b32.xlu0 %v621_v31, %s4341_s26  ;;  %v640_v41 = vrot.slane %v639_v32, 4  ;;  %v673_v42 = vor.u32 %v672_v33, %v668_v28  ;;  %v662_v43 = vrot.slane %v660_v34, 5  ;;  %v694_v44 = vshrl.u32 %v441_v25, 16 }
  0x34   : > { %v692_v46 = vrot.slane %v690_v40, 5  ;;  %v700_v47 = vshll.u32 %v442_v35, 16  ;;  %v681_v48 = vshrl.u32 %v440_v36, 16  ;;  %v684_v49 = vshll.u32 %v440_v36, 16 }
  0x35   : > { %v645_v50 = vsel %vm4417_vm2, %v640_v41, %v644_v5  ;;  %v674_v51 = vrot.slane %v673_v42, 4  ;;  %v663_v52 = vor.u32 %v662_v43, %v659_v39  ;;  %v696_v53 = vrot.slane %v694_v44, 4  ;;  %v448_v5 = vld [vmem:[%s4406_s25 + $0x8c] sm:$0x1]  ;;  %v453_v39 = vld [vmem:[%s4406_s25 + $0xa0] sm:$0xf] }
  0x36   : > { %878 = vrot.lane.b32.xlu1 %v655_v37, %s4341_s26  ;;  %v702_v56 = vrot.slane %v700_v47, 5  ;;  %v683_v57 = vrot.slane %v681_v48, 4  ;;  %v686_v58 = vrot.slane %v684_v49, 5  ;;  %v714_v59 = vshll.u32 %v444_v45, 16  ;;  %v454_v48 = vld [vmem:[%s4406_s25 + $0xa4] sm:$0x1] }
  0x37   : > { %876 = vrot.lane.b32.xlu0 %v645_v50, %s4341_s26  ;;  %v679_v60 = vsel %vm4417_vm2, %v674_v51, %v678_v38  ;;  %v664_v61 = vrot.slane %v663_v52, 4  ;;  %v697_v62 = vor.u32 %v696_v53, %v692_v46  ;;  %v718_v63 = vshrl.u32 %v444_v45, 16  ;;  %v452_v49 = vld [vmem:[%s4406_s25 + $0x9c] sm:$0xf] }
  0x38   : > { %v687_v1 = vor.u32 %v686_v58, %v683_v57  ;;  %v716_v2 = vrot.slane %v714_v59, 5  ;;  %v724_v3 = vshll.u32 %v445_v54, 16  ;;  %v705_v4 = vshrl.u32 %v443_v55, 16  ;;  %v456_v58 = vld [vmem:[%s4406_s25 + $0xac] sm:$0xf] }
  0x39   : > { %v669_v6 = vsel %vm4417_vm2, %v664_v61, %v668_v28  ;;  %v698_v7 = vrot.slane %v697_v62, 4  ;;  %v720_v8 = vrot.slane %v718_v63, 4  ;;  %v708_v9 = vshll.u32 %v443_v55, 16 }
  0x3a   : > { %882 = vrot.lane.b32.xlu1 %v679_v60, %s4341_s26  ;;  %v688_v11 = vrot.slane %v687_v1, 4  ;;  %v726_v12 = vrot.slane %v724_v3, 5  ;;  %v707_v13 = vrot.slane %v705_v4, 4  ;;  %v738_v14 = vshll.u32 %v447_v0, 16  ;;  %v457_v3 = vld [vmem:[%s4406_s25 + $0xb0] sm:$0x1] }
  0x3b   : > { %880 = vrot.lane.b32.xlu0 %v669_v6, %s4341_s26  ;;  %v703_v15 = vsel %vm4417_vm2, %v698_v7, %v702_v56  ;;  %v721_v16 = vor.u32 %v720_v8, %v716_v2  ;;  %v710_v17 = vrot.slane %v708_v9, 5  ;;  %v742_v18 = vshrl.u32 %v447_v0, 16  ;;  %v455_v4 = vld [vmem:[%s4406_s25 + $0xa8] sm:$0xf] }
  0x3c   : > { %v693_v20 = vsel %vm4417_vm2, %v688_v11, %v692_v46  ;;  %v740_v21 = vrot.slane %v738_v14, 5  ;;  %v748_v22 = vshll.u32 %v448_v5, 16  ;;  %v729_v23 = vshrl.u32 %v446_v10, 16 }
  0x3d   : > { %v722_v25 = vrot.slane %v721_v16, 4  ;;  %v711_v26 = vor.u32 %v710_v17, %v707_v13  ;;  %v744_v28 = vrot.slane %v742_v18, 4  ;;  %v732_v29 = vshll.u32 %v446_v10, 16  ;;  %v459_v13 = vld [vmem:[%s4406_s25 + $0xb8] sm:$0xf] }
  0x3e   : > { %886 = vrot.lane.b32.xlu1 %v703_v15, %s4341_s26  ;;  %v750_v31 = vrot.slane %v748_v22, 5  ;;  %v731_v32 = vrot.slane %v729_v23, 4  ;;  %v762_v33 = vshll.u32 %v450_v19, 16  ;;  %v766_v34 = vshrl.u32 %v450_v19, 16  ;;  %v460_v22 = vld [vmem:[%s4406_s25 + $0xbc] sm:$0x1] }
  0x3f   : > { %884 = vrot.lane.b32.xlu0 %v693_v20, %s4341_s26  ;;  %v727_v35 = vsel %vm4417_vm2, %v722_v25, %v726_v12  ;;  %v712_v36 = vrot.slane %v711_v26, 4  ;;  %v745_v37 = vor.u32 %v744_v28, %v740_v21  ;;  %v734_v38 = vrot.slane %v732_v29, 5  ;;  %v458_v23 = vld [vmem:[%s4406_s25 + $0xb4] sm:$0xf] }
  0x40   : > { %v764_v40 = vrot.slane %v762_v33, 5  ;;  %v768_v41 = vrot.slane %v766_v34, 4  ;;  %v772_v42 = vshll.u32 %v451_v24, 16  ;;  %v753_v43 = vshrl.u32 %v449_v30, 16 }
  0x41   : > { %v717_v44 = vsel %vm4417_vm2, %v712_v36, %v716_v2  ;;  %v746_v45 = vrot.slane %v745_v37, 4  ;;  %v735_v46 = vor.u32 %v734_v38, %v731_v32  ;;  %v756_v47 = vshll.u32 %v449_v30, 16  ;;  %v978_v37 = vld [vmem:[%s4406_s25 + $0x4] sm:$0xf] }
  0x42   : > { %890 = vrot.lane.b32.xlu1 %v727_v35, %s4341_s26  ;;  %v769_v50 = vor.u32 %v768_v41, %v764_v40  ;;  %v774_v51 = vrot.slane %v772_v42, 5  ;;  %v755_v52 = vrot.slane %v753_v43, 4  ;;  %v786_v53 = vshll.u32 %v453_v39, 16 }
  0x43   : > { %888 = vrot.lane.b32.xlu0 %v717_v44, %s4341_s26  ;;  %v751_v54 = vsel %vm4417_vm2, %v746_v45, %v750_v31  ;;  %v736_v55 = vrot.slane %v735_v46, 4  ;;  %v758_v56 = vrot.slane %v756_v47, 5  ;;  %v790_v57 = vshrl.u32 %v453_v39, 16 }
  0x44   : > { %v770_v59 = vrot.slane %v769_v50, 4  ;;  %v788_v60 = vrot.slane %v786_v53, 5  ;;  %v796_v61 = vshll.u32 %v454_v48, 16  ;;  %v777_v62 = vshrl.u32 %v452_v49, 16  ;;  %v979_v48 = vld [vmem:[%s4406_s25 + $0x8] sm:$0x1] }
  0x45   : > { %v741_v63 = vsel %vm4417_vm2, %v736_v55, %v740_v21  ;;  %v759_v0 = vor.u32 %v758_v56, %v755_v52  ;;  %v792_v1 = vrot.slane %v790_v57, 4  ;;  %v780_v2 = vshll.u32 %v452_v49, 16  ;;  %v350_v56 = vld [vmem:[%s4406_s25 + $0xc] sm:$0xf] }
  0x46   : > { %894 = vrot.lane.b32.xlu1 %v751_v54, %s4341_s26  ;;  %v775_v5 = vsel %vm4417_vm2, %v770_v59, %v774_v51  ;;  %v798_v6 = vrot.slane %v796_v61, 5  ;;  %v779_v7 = vrot.slane %v777_v62, 4  ;;  %v810_v8 = vshll.u32 %v456_v58, 16  ;;  %v981_v51 = vld [vmem:[%s4406_s25 + $0x10] sm:$0xf] }
  0x47   : > { %892 = vrot.lane.b32.xlu0 %v741_v63, %s4341_s26  ;;  %v760_v9 = vrot.slane %v759_v0, 4  ;;  %v793_v10 = vor.u32 %v792_v1, %v788_v60  ;;  %v782_v11 = vrot.slane %v780_v2, 5  ;;  %v814_v12 = vshrl.u32 %v456_v58, 16  ;;  %v977_v54 = vld [vmem:[%s4406_s25] sm:$0xe] }
  0x48   : > { %v812_v14 = vrot.slane %v810_v8, 5  ;;  %v820_v15 = vshll.u32 %v457_v3, 16  ;;  %v801_v16 = vshrl.u32 %v455_v4, 16  ;;  %v804_v17 = vshll.u32 %v455_v4, 16  ;;  %383 = vst.msk [vmem:[#allocation2 + $0x10] sm:$0xf] %vm380_vm3, %v350_v56 }
  0x49   : > { %v765_v18 = vsel %vm4417_vm2, %v760_v9, %v764_v40  ;;  %v794_v19 = vrot.slane %v793_v10, 4  ;;  %v783_v20 = vor.u32 %v782_v11, %v779_v7  ;;  %v816_v21 = vrot.slane %v814_v12, 4  ;;  %v348_v61 = vld [vmem:[%s4406_s25] sm:$0xf]  ;;  %v982_v0 = vld [vmem:[%s4406_s25 + $0x14] sm:$0x1] }
  0x4a   : > { %898 = vrot.lane.b32.xlu1 %v775_v5, %s4341_s26  ;;  %v822_v24 = vrot.slane %v820_v15, 5  ;;  %v803_v25 = vrot.slane %v801_v16, 4  ;;  %v806_v26 = vrot.slane %v804_v17, 5  ;;  %v834_v28 = vshll.u32 %v459_v13, 16  ;;  %v984_v1 = vld [vmem:[%s4406_s25 + $0x1c] sm:$0xf] }
  0x4b   : > { %896 = vrot.lane.b32.xlu0 %v765_v18, %s4341_s26  ;;  %v799_v29 = vsel %vm4417_vm2, %v794_v19, %v798_v6  ;;  %v784_v30 = vrot.slane %v783_v20, 4  ;;  %v817_v31 = vor.u32 %v816_v21, %v812_v14  ;;  %v838_v32 = vshrl.u32 %v459_v13, 16  ;;  %381 = vst.msk [vmem:[#allocation2] sm:$0xf] %vm380_vm3, %v348_v61  ;;  %v980_v3 = vld [vmem:[%s4406_s25 + $0xc] sm:$0xe] }
  0x4c   : > { %v807_v33 = vor.u32 %v806_v26, %v803_v25  ;;  %v836_v34 = vrot.slane %v834_v28, 5  ;;  %v844_v35 = vshll.u32 %v460_v22, 16  ;;  %v825_v36 = vshrl.u32 %v458_v23, 16  ;;  %v351_v4 = vld [vmem:[%s4406_s25 + $0x10] sm:$0xf] }
  0x4d   : > { %v789_v38 = vsel %vm4417_vm2, %v784_v30, %v788_v60  ;;  %v818_v39 = vrot.slane %v817_v31, 4  ;;  %v840_v40 = vrot.slane %v838_v32, 4  ;;  %v828_v41 = vshll.u32 %v458_v23, 16  ;;  %v349_v5 = vld [vmem:[%s4406_s25 + $0x4] sm:$0xf] }
  0x4e   : > { %902 = vrot.lane.b32.xlu1 %v799_v29, %s4341_s26  ;;  %v808_v42 = vrot.slane %v807_v33, 4  ;;  %v846_v43 = vrot.slane %v844_v35, 5  ;;  %v827_v44 = vrot.slane %v825_v36, 4  ;;  %v1078_v49 = vrot.slane %v978_v37, 5  ;;  %384 = vst.msk [vmem:[#allocation2 + $0x18] sm:$0xf] %vm380_vm3, %v351_v4 }
  0x4f   : > { %900 = vrot.lane.b32.xlu0 %v789_v38, %s4341_s26  ;;  %v823_v45 = vsel %vm4417_vm2, %v818_v39, %v822_v24  ;;  %v841_v46 = vor.u32 %v840_v40, %v836_v34  ;;  %v830_v47 = vrot.slane %v828_v41, 5  ;;  %v1081_v55 = vrot.slane %v979_v48, 5  ;;  %382 = vst.msk [vmem:[#allocation2 + $0x8] sm:$0xf] %vm380_vm3, %v349_v5  ;;  %v985_v12 = vld [vmem:[%s4406_s25 + $0x20] sm:$0x1] }
  0x50   : > { %v813_v50 = vsel %vm4417_vm2, %v808_v42, %v812_v14  ;;  %v1080_v59 = vrot.slane %v1078_v49, 4  ;;  %v1085_v60 = vrot.slane %v981_v51, 5  ;;  %v4112_v63 = vrot.slane %v977_v54, 9  ;;  %v987_v13 = vld [vmem:[%s4406_s25 + $0x28] sm:$0xf] }
  0x51   : > { %v842_v52 = vrot.slane %v841_v46, 4  ;;  %v831_v53 = vor.u32 %v830_v47, %v827_v44  ;;  %v1088_v8 = vrot.slane %v982_v0, 5  ;;  %v1092_v9 = vrot.slane %v984_v1, 5  ;;  %v983_v14 = vld [vmem:[%s4406_s25 + $0x18] sm:$0xe] }
  0x52   : > { %906 = vrot.lane.b32.xlu1 %v823_v45, %s4341_s26  ;;  %v1082_v6 = vsel %vm4561_vm6, %v1080_v59, %v1081_v55  ;;  %v1087_v7 = vrot.slane %v1085_v60, 4  ;;  %v1079_v10 = vsel %vm4561_vm6, %v4112_v63, %v1078_v49  ;;  %v4113_v11 = vrot.slane %v980_v3, 9  ;;  %v353_v15 = vld [vmem:[%s4406_s25 + $0x1c] sm:$0xf]  ;;  %v352_v16 = vld [vmem:[%s4406_s25 + $0x18] sm:$0xf] }
  0x53   : > { %904 = vrot.lane.b32.xlu0 %v813_v50, %s4341_s26  ;;  %v847_v57 = vsel %vm4417_vm2, %v842_v52, %v846_v43  ;;  %v832_v58 = vrot.slane %v831_v53, 4  ;;  %386 = vst.msk [vmem:[#allocation2 + $0x28] sm:$0xf] %vm380_vm3, %v353_v15  ;;  %385 = vst.msk [vmem:[#allocation2 + $0x20] sm:$0xf] %vm380_vm3, %v352_v16  ;;  %v1094_v18 = vrot.slane %v1092_v9, 4 }
  0x54   : > { %v1089_v17 = vsel %vm4561_vm6, %v1087_v7, %v1088_v8  ;;  %v1095_v19 = vrot.slane %v985_v12, 5  ;;  %v988_v20 = vld [vmem:[%s4406_s25 + $0x2c] sm:$0x1]  ;;  %v1099_v21 = vrot.slane %v987_v13, 5  ;;  %v1086_v22 = vsel %vm4561_vm6, %v4113_v11, %v1085_v60  ;;  %v990_v24 = vld [vmem:[%s4406_s25 + $0x34] sm:$0xf] }
  0x55   : > { %v837_v2 = vsel %vm4417_vm2, %v832_v58, %v836_v34  ;;  %v4114_v23 = vrot.slane %v983_v14, 9  ;;  %v355_v25 = vld [vmem:[%s4406_s25 + $0x28] sm:$0xf]  ;;  %v986_v26 = vld [vmem:[%s4406_s25 + $0x24] sm:$0xe]  ;;  %v1102_v31 = vrot.slane %v988_v20, 5 }
  0x56   : > { %910 = vrot.lane.b32.xlu1 %v847_v57, %s4341_s26  ;;  %388 = vst.msk [vmem:[#allocation2 + $0x38] sm:$0xf] %vm380_vm3, %v355_v25  ;;  %v354_v28 = vld [vmem:[%s4406_s25 + $0x24] sm:$0xf]  ;;  %v1096_v29 = vsel %vm4561_vm6, %v1094_v18, %v1095_v19  ;;  %v1101_v30 = vrot.slane %v1099_v21, 4  ;;  %v1106_v33 = vrot.slane %v990_v24, 5 }
  0x57   : > { %908 = vrot.lane.b32.xlu0 %v837_v2, %s4341_s26  ;;  %387 = vst.msk [vmem:[#allocation2 + $0x30] sm:$0xf] %vm380_vm3, %v354_v28  ;;  %v991_v32 = vld [vmem:[%s4406_s25 + $0x38] sm:$0x1]  ;;  %v1093_v34 = vsel %vm4561_vm6, %v4114_v23, %v1092_v9  ;;  %v4115_v35 = vrot.slane %v986_v26, 9  ;;  %s4348_s26 = smov 112  }
  0x58   : > { %v993_v36 = vld [vmem:[%s4406_s25 + $0x40] sm:$0xf]  ;;  %v357_v37 = vld [vmem:[%s4406_s25 + $0x34] sm:$0xf]  ;;  %v989_v38 = vld [vmem:[%s4406_s25 + $0x30] sm:$0xe]  ;;  %v1103_v40 = vsel %vm4561_vm6, %v1101_v30, %v1102_v31 }
  0x59   : > { %390 = vst.msk [vmem:[#allocation2 + $0x48] sm:$0xf] %vm380_vm3, %v357_v37  ;;  %v356_v39 = vld [vmem:[%s4406_s25 + $0x30] sm:$0xf]  ;;  %v1108_v41 = vrot.slane %v1106_v33, 4  ;;  %v1109_v42 = vrot.slane %v991_v32, 5  ;;  %v1100_v45 = vsel %vm4561_vm6, %v4115_v35, %v1099_v21 }
  0x5a   : > { %1190 = vrot.lane.b32.xlu1 %v1082_v6, %s4342_s27  ;;  %389 = vst.msk [vmem:[#allocation2 + $0x40] sm:$0xf] %vm380_vm3, %v356_v39  ;;  %v994_v43 = vld [vmem:[%s4406_s25 + $0x44] sm:$0x1]  ;;  %v1113_v44 = vrot.slane %v993_v36, 5  ;;  %v4116_v46 = vrot.slane %v989_v38, 9 }
  0x5b   : > { %1188 = vrot.lane.b32.xlu0 %v1079_v10, %s4342_s27  ;;  %v996_v47 = vld [vmem:[%s4406_s25 + $0x4c] sm:$0xf]  ;;  %v359_v48 = vld [vmem:[%s4406_s25 + $0x40] sm:$0xf]  ;;  %v992_v49 = vld [vmem:[%s4406_s25 + $0x3c] sm:$0xe]  ;;  %v1110_v51 = vsel %vm4561_vm6, %v1108_v41, %v1109_v42 }
  0x5c   : > { %392 = vst.msk [vmem:[#allocation2 + $0x58] sm:$0xf] %vm380_vm3, %v359_v48  ;;  %v358_v50 = vld [vmem:[%s4406_s25 + $0x3c] sm:$0xf]  ;;  %v1115_v52 = vrot.slane %v1113_v44, 4  ;;  %v1116_v53 = vrot.slane %v994_v43, 5  ;;  %v1107_v56 = vsel %vm4561_vm6, %v4116_v46, %v1106_v33 }
  0x5d   : > { %391 = vst.msk [vmem:[#allocation2 + $0x50] sm:$0xf] %vm380_vm3, %v358_v50  ;;  %v997_v54 = vld [vmem:[%s4406_s25 + $0x50] sm:$0x1]  ;;  %v1120_v55 = vrot.slane %v996_v47, 5  ;;  %v4117_v57 = vrot.slane %v992_v49, 9 }
  0x5e   : > { %1194 = vrot.lane.b32.xlu1 %v1089_v17, %s4342_s27  ;;  %v999_v58 = vld [vmem:[%s4406_s25 + $0x58] sm:$0xf]  ;;  %v361_v59 = vld [vmem:[%s4406_s25 + $0x4c] sm:$0xf]  ;;  %v995_v60 = vld [vmem:[%s4406_s25 + $0x48] sm:$0xe]  ;;  %v1117_v0 = vsel %vm4561_vm6, %v1115_v52, %v1116_v53 }
  0x5f   : > { %1192 = vrot.lane.b32.xlu0 %v1086_v22, %s4342_s27  ;;  %394 = vst.msk [vmem:[#allocation2 + $0x68] sm:$0xf] %vm380_vm3, %v361_v59  ;;  %v360_v61 = vld [vmem:[%s4406_s25 + $0x48] sm:$0xf]  ;;  %v1000_v63 = vld [vmem:[%s4406_s25 + $0x5c] sm:$0x1]  ;;  %v1114_v5 = vsel %vm4561_vm6, %v4117_v57, %v1113_v44 }
  0x60   : > { %393 = vst.msk [vmem:[#allocation2 + $0x60] sm:$0xf] %vm380_vm3, %v360_v61  ;;  %v1122_v1 = vrot.slane %v1120_v55, 4  ;;  %v1123_v2 = vrot.slane %v997_v54, 5  ;;  %v1127_v3 = vrot.slane %v999_v58, 5  ;;  %v4118_v6 = vrot.slane %v995_v60, 9 }
  0x61   : > { %v363_v4 = vld [vmem:[%s4406_s25 + $0x58] sm:$0xf]  ;;  %v1002_v7 = vld [vmem:[%s4406_s25 + $0x64] sm:$0xf]  ;;  %v362_v8 = vld [vmem:[%s4406_s25 + $0x54] sm:$0xf] }
  0x62   : > { %1198 = vrot.lane.b32.xlu1 %v1096_v29, %s4342_s27  ;;  %396 = vst.msk [vmem:[#allocation2 + $0x78] sm:$0xf] %vm380_vm3, %v363_v4  ;;  %v998_v9 = vld [vmem:[%s4406_s25 + $0x54] sm:$0xe]  ;;  %395 = vst.msk [vmem:[#allocation2 + $0x70] sm:$0xf] %vm380_vm3, %v362_v8  ;;  %v1124_v12 = vsel %vm4561_vm6, %v1122_v1, %v1123_v2  ;;  %v1121_v16 = vsel %vm4561_vm6, %v4118_v6, %v1120_v55 }
  0x63   : > { %1196 = vrot.lane.b32.xlu0 %v1093_v34, %s4342_s27  ;;  %v365_v10 = vld [vmem:[%s4406_s25 + $0x64] sm:$0xf]  ;;  %v364_v11 = vld [vmem:[%s4406_s25 + $0x60] sm:$0xf]  ;;  %v1129_v13 = vrot.slane %v1127_v3, 4  ;;  %v1130_v14 = vrot.slane %v1000_v63, 5 }
  0x64   : > { %v1134_v15 = vrot.slane %v1002_v7, 5  ;;  %398 = vst.msk [vmem:[#allocation2 + $0x88] sm:$0xf] %vm380_vm3, %v365_v10  ;;  %397 = vst.msk [vmem:[#allocation2 + $0x80] sm:$0xf] %vm380_vm3, %v364_v11  ;;  %v4119_v17 = vrot.slane %v998_v9, 9 }
  0x65   : > { %v1003_v18 = vld [vmem:[%s4406_s25 + $0x68] sm:$0x1]  ;;  %v1005_v19 = vld [vmem:[%s4406_s25 + $0x70] sm:$0xf]  ;;  %v1001_v20 = vld [vmem:[%s4406_s25 + $0x60] sm:$0xe]  ;;  %v1131_v23 = vsel %vm4561_vm6, %v1129_v13, %v1130_v14 }
  0x66   : > { %1202 = vrot.lane.b32.xlu1 %v1103_v40, %s4342_s27  ;;  %v367_v21 = vld [vmem:[%s4406_s25 + $0x70] sm:$0xf]  ;;  %v366_v22 = vld [vmem:[%s4406_s25 + $0x6c] sm:$0xf]  ;;  %v1136_v24 = vrot.slane %v1134_v15, 4  ;;  %v1137_v25 = vrot.slane %v1003_v18, 5  ;;  %v1128_v29 = vsel %vm4561_vm6, %v4119_v17, %v1127_v3 }
  0x67   : > { %1200 = vrot.lane.b32.xlu0 %v1100_v45, %s4342_s27  ;;  %400 = vst.msk [vmem:[#allocation2 + $0x98] sm:$0xf] %vm380_vm3, %v367_v21  ;;  %399 = vst.msk [vmem:[#allocation2 + $0x90] sm:$0xf] %vm380_vm3, %v366_v22  ;;  %v1006_v26 = vld [vmem:[%s4406_s25 + $0x74] sm:$0x1] }
  0x68   : > { %v1141_v28 = vrot.slane %v1005_v19, 5  ;;  %v4120_v30 = vrot.slane %v1001_v20, 9  ;;  %v1008_v31 = vld [vmem:[%s4406_s25 + $0x7c] sm:$0xf]  ;;  %v1004_v33 = vld [vmem:[%s4406_s25 + $0x6c] sm:$0xe]  ;;  %v1138_v36 = vsel %vm4561_vm6, %v1136_v24, %v1137_v25 }
  0x69   : > { %v369_v32 = vld [vmem:[%s4406_s25 + $0x7c] sm:$0xf]  ;;  %v368_v34 = vld [vmem:[%s4406_s25 + $0x78] sm:$0xf]  ;;  %v1009_v35 = vld [vmem:[%s4406_s25 + $0x80] sm:$0x1] }
  0x6a   : > { %1206 = vrot.lane.b32.xlu1 %v1110_v51, %s4342_s27  ;;  %402 = vst.msk [vmem:[#allocation2 + $0xa8] sm:$0xf] %vm380_vm3, %v369_v32  ;;  %401 = vst.msk [vmem:[#allocation2 + $0xa0] sm:$0xf] %vm380_vm3, %v368_v34  ;;  %v1143_v37 = vrot.slane %v1141_v28, 4  ;;  %v1144_v38 = vrot.slane %v1006_v26, 5  ;;  %v1135_v41 = vsel %vm4561_vm6, %v4120_v30, %v1134_v15 }
  0x6b   : > { %1204 = vrot.lane.b32.xlu0 %v1107_v56, %s4342_s27  ;;  %v1148_v39 = vrot.slane %v1008_v31, 5  ;;  %v371_v40 = vld [vmem:[%s4406_s25 + $0x88] sm:$0xf]  ;;  %v4121_v42 = vrot.slane %v1004_v33, 9  ;;  %v370_v44 = vld [vmem:[%s4406_s25 + $0x84] sm:$0xf] }
  0x6c   : > { %v1011_v43 = vld [vmem:[%s4406_s25 + $0x88] sm:$0xf]  ;;  %404 = vst.msk [vmem:[#allocation2 + $0xb8] sm:$0xf] %vm380_vm3, %v371_v40  ;;  %v1007_v45 = vld [vmem:[%s4406_s25 + $0x78] sm:$0xe]  ;;  %v1145_v49 = vsel %vm4561_vm6, %v1143_v37, %v1144_v38 }
  0x6d   : > { %403 = vst.msk [vmem:[#allocation2 + $0xb0] sm:$0xf] %vm380_vm3, %v370_v44  ;;  %v373_v46 = vld [vmem:[%s4406_s25 + $0x94] sm:$0xf]  ;;  %v1012_v47 = vld [vmem:[%s4406_s25 + $0x8c] sm:$0x1]  ;;  %v1142_v54 = vsel %vm4561_vm6, %v4121_v42, %v1141_v28 }
  0x6e   : > { %1210 = vrot.lane.b32.xlu1 %v1117_v0, %s4342_s27  ;;  %406 = vst.msk [vmem:[#allocation2 + $0xc8] sm:$0xf] %vm380_vm3, %v373_v46  ;;  %v372_v48 = vld [vmem:[%s4406_s25 + $0x90] sm:$0xf]  ;;  %v1150_v50 = vrot.slane %v1148_v39, 4  ;;  %v1151_v51 = vrot.slane %v1009_v35, 5 }
  0x6f   : > { %1208 = vrot.lane.b32.xlu0 %v1114_v5, %s4342_s27  ;;  %v1155_v52 = vrot.slane %v1011_v43, 5  ;;  %v1014_v53 = vld [vmem:[%s4406_s25 + $0x94] sm:$0xf]  ;;  %405 = vst.msk [vmem:[#allocation2 + $0xc0] sm:$0xf] %vm380_vm3, %v372_v48  ;;  %v4122_v55 = vrot.slane %v1007_v45, 9 }
  0x70   : > { %v375_v56 = vld [vmem:[%s4406_s25 + $0xa0] sm:$0xf]  ;;  %v374_v57 = vld [vmem:[%s4406_s25 + $0x9c] sm:$0xf]  ;;  %v1010_v58 = vld [vmem:[%s4406_s25 + $0x84] sm:$0xe]  ;;  %v1152_v60 = vsel %vm4561_vm6, %v1150_v50, %v1151_v51 }
  0x71   : > { %408 = vst.msk [vmem:[#allocation2 + $0xd8] sm:$0xf] %vm380_vm3, %v375_v56  ;;  %407 = vst.msk [vmem:[#allocation2 + $0xd0] sm:$0xf] %vm380_vm3, %v374_v57  ;;  %v1162_v59 = vrot.slane %v1014_v53, 5  ;;  %v1157_v61 = vrot.slane %v1155_v52, 4  ;;  %v1149_v2 = vsel %vm4561_vm6, %v4122_v55, %v1148_v39 }
  0x72   : > { %1214 = vrot.lane.b32.xlu1 %v1124_v12, %s4342_s27  ;;  %v1158_v63 = vrot.slane %v1012_v47, 5  ;;  %v1015_v0 = vld [vmem:[%s4406_s25 + $0x98] sm:$0x1]  ;;  %v377_v1 = vld [vmem:[%s4406_s25 + $0xac] sm:$0xf]  ;;  %v4123_v3 = vrot.slane %v1010_v58, 9 }
  0x73   : > { %1212 = vrot.lane.b32.xlu0 %v1121_v16, %s4342_s27  ;;  %v1510_v4 = vld [vmem:[%s4715_s30] sm:$0xf]  ;;  %410 = vst.msk [vmem:[#allocation2 + $0xe8] sm:$0xf] %vm380_vm3, %v377_v1  ;;  %v376_v5 = vld [vmem:[%s4406_s25 + $0xa8] sm:$0xf] }
  0x74   : > { %v1013_v6 = vld [vmem:[%s4406_s25 + $0x90] sm:$0xe]  ;;  %409 = vst.msk [vmem:[#allocation2 + $0xe0] sm:$0xf] %vm380_vm3, %v376_v5  ;;  %v1164_v7 = vrot.slane %v1162_v59, 4  ;;  %v1165_v8 = vrot.slane %v1015_v0, 5  ;;  %v1159_v11 = vsel %vm4561_vm6, %v1157_v61, %v1158_v63  ;;  %v1156_v16 = vsel %vm4561_vm6, %v4123_v3, %v1155_v52 }
  0x75   : > { %v1016_v9 = vld [vmem:[%s4406_s25 + $0x9c] sm:$0xe]  ;;  %v4735_v10 = vld [vmem:[%s4406_s25 + $0xa0] sm:$0xf]  ;;  %v1559_v12 = vshrl.u32 %v1510_v4, 16  ;;  %v1562_v13 = vshll.u32 %v1510_v4, 16 }
  0x76   : > { %1218 = vrot.lane.b32.xlu1 %v1131_v23, %s4342_s27  ;;  %v379_v14 = vld [vmem:[%s4406_s25 + $0xb8] sm:$0xf]  ;;  %v378_v15 = vld [vmem:[%s4406_s25 + $0xb4] sm:$0xf]  ;;  %v4124_v17 = vrot.slane %v1013_v6, 9  ;;  %v1166_v20 = vsel %vm4561_vm6, %v1164_v7, %v1165_v8  ;;  %v4125_v21 = vrot.slane %v1016_v9, 9 }
  0x77   : > { %1216 = vrot.lane.b32.xlu0 %v1128_v29, %s4342_s27  ;;  %v1534_v18 = vld [vmem:[%s4715_s30 + $0x60] sm:$0xf]  ;;  %412 = vst.msk [vmem:[#allocation2 + $0xf8] sm:$0xf] %vm380_vm3, %v379_v14  ;;  %411 = vst.msk [vmem:[#allocation2 + $0xf0] sm:$0xf] %vm380_vm3, %v378_v15 }
  0x78   : > { %v1511_v19 = vld [vmem:[%s4715_s30 + $0x4] sm:$0xf]  ;;  %v1169_v22 = vrot.slane %v4735_v10, 5  ;;  %v1561_v23 = vrot.slane %v1559_v12, 4  ;;  %v1564_v24 = vrot.slane %v1562_v13, 5  ;;  %v1751_v25 = vshrl.u32 %v1534_v18, 16 }
  0x79   : > { %v1754_v26 = vshll.u32 %v1534_v18, 16  ;;  %v1163_v28 = vsel %vm4561_vm6, %v4124_v17, %v1162_v59  ;;  %v1568_v29 = vshll.u32 %v1511_v19, 16  ;;  %v1572_v30 = vshrl.u32 %v1511_v19, 16  ;;  %v1535_v31 = vld [vmem:[%s4715_s30 + $0x64] sm:$0xf] }
  0x7a   : > { %1222 = vrot.lane.b32.xlu1 %v1138_v36, %s4342_s27  ;;  %v1317_v32 = vld [vmem:[%s4715_s30] sm:$0xf]  ;;  %v1170_v33 = vsel %vm4561_vm6, %v4125_v21, %v1169_v22  ;;  %v1565_v34 = vor.u32 %v1564_v24, %v1561_v23  ;;  %v1753_v35 = vrot.slane %v1751_v25, 4  ;;  %v1760_v39 = vshll.u32 %v1535_v31, 16  ;;  %v1512_v43 = vld [vmem:[%s4715_s30 + $0x8] sm:$0x1] }
  0x7b   : > { %1220 = vrot.lane.b32.xlu0 %v1135_v41, %s4342_s27  ;;  %v1756_v36 = vrot.slane %v1754_v26, 5  ;;  %v1570_v38 = vrot.slane %v1568_v29, 5  ;;  %v1764_v40 = vshrl.u32 %v1535_v31, 16  ;;  %v1574_v41 = vrot.slane %v1572_v30, 4  ;;  %v1333_v44 = vld [vmem:[%s4715_s30 + $0x60] sm:$0xf] }
  0x7c   : > { %v1566_v45 = vrot.slane %v1565_v34, 4  ;;  %v1318_v48 = vld [vmem:[%s4715_s30 + $0x4] sm:$0xf]  ;;  %v1578_v51 = vshll.u32 %v1512_v43, 16  ;;  %v2071_v58 = vld [vmem:[%s4715_s30] sm:$0xe] }
  0x7d   : > { %v1757_v46 = vor.u32 %v1756_v36, %v1753_v35  ;;  %v1575_v50 = vor.u32 %v1574_v41, %v1570_v38  ;;  %v1766_v52 = vrot.slane %v1764_v40, 4  ;;  %v1334_v56 = vld [vmem:[%s4715_s30 + $0x64] sm:$0xf]  ;;  %v4128_v4 = vrot.slane %v2071_v58, 9  ;;  %v2095_v6 = vld [vmem:[%s4715_s30 + $0x60] sm:$0xe] }
  0x7e   : > { %1226 = vrot.lane.b32.xlu1 %v1145_v49, %s4342_s27  ;;  %v1762_v49 = vrot.slane %v1760_v39, 5  ;;  %v1571_v55 = vsel %vm4417_vm2, %v1566_v45, %v1570_v38  ;;  %v1580_v61 = vrot.slane %v1578_v51, 5  ;;  %v2072_v63 = vld [vmem:[%s4715_s30 + $0x4] sm:$0xf]  ;;  %v2601_v13 = vld [vmem:[%s4785_s9] sm:$0xf] }
  0x7f   : > { %1224 = vrot.lane.b32.xlu0 %v1142_v54, %s4342_s27  ;;  %v1536_v54 = vld [vmem:[%s4715_s30 + $0x68] sm:$0x1]  ;;  %v1758_v57 = vrot.slane %v1757_v46, 4  ;;  %v2169_v5 = vrot.slane %v2072_v63, 5  ;;  %v2096_v7 = vld [vmem:[%s4715_s30 + $0x64] sm:$0xf] }
  0x80   : > { %v1767_v0 = vor.u32 %v1766_v52, %v1762_v49  ;;  %v1770_v1 = vshll.u32 %v1536_v54, 16  ;;  %v2073_v15 = vld [vmem:[%s4715_s30 + $0x8] sm:$0x1]  ;;  %v2225_v17 = vrot.slane %v2096_v7, 5  ;;  %v2650_v19 = vshrl.u32 %v2601_v13, 16 }
  0x81   : > { %v1763_v3 = vsel %vm4417_vm2, %v1758_v57, %v1762_v49  ;;  %v2170_v18 = vsel %vm4561_vm6, %v4128_v4, %v2169_v5  ;;  %v2625_v21 = vld [vmem:[%s4785_s9 + $0x60] sm:$0xf]  ;;  %v2171_v25 = vrot.slane %v2169_v5, 4  ;;  %v2172_v26 = vrot.slane %v2073_v15, 5  ;;  %v2602_v30 = vld [vmem:[%s4785_s9 + $0x4] sm:$0xf] }
  0x82   : > { %1230 = vrot.lane.b32.xlu1 %v1152_v60, %s4342_s27  ;;  %v1576_v60 = vrot.slane %v1575_v50, 4  ;;  %v1772_v12 = vrot.slane %v1770_v1, 5  ;;  %v2227_v34 = vrot.slane %v2225_v17, 4  ;;  %v2652_v36 = vrot.slane %v2650_v19, 4  ;;  %v2603_v58 = vld [vmem:[%s4785_s9 + $0x8] sm:$0x1] }
  0x83   : > { %1228 = vrot.lane.b32.xlu0 %v1149_v2, %s4342_s27  ;;  %v2173_v39 = vsel %vm4561_vm6, %v2171_v25, %v2172_v26  ;;  %v2659_v40 = vshll.u32 %v2602_v30, 16  ;;  %v2663_v41 = vshrl.u32 %v2602_v30, 16  ;;  %v4346_v50 = vmov 0   ;;  %v1513_v5 = vld [vmem:[%s4715_s30 + $0xc] sm:$0xf] }
  0x84   : > { %v1581_v9 = vsel %vm4417_vm2, %v1576_v60, %v1580_v61  ;;  %3738 = vmatprep.subr.bf16.mxu0 %v4346_v50  ;;  %4221 = vmatprep.subr.bf16.mxu1 %v4346_v50  ;;  %v2424_v60 = vld [vmem:[%s4785_s9 + $0x60] sm:$0xf]  ;;  %v2409_v61 = vld [vmem:[%s4785_s9 + $0x4] sm:$0xf]  ;;  %v1586_v15 = vshll.u32 %v1513_v5, 16 }
  0x85   : > { %v2661_v52 = vrot.slane %v2659_v40, 5  ;;  %v1319_v40 = vld [vmem:[%s4715_s30 + $0xc] sm:$0xf]  ;;  %v1550_v10 = vld [vmem:[%s4715_s30 + $0xa0] sm:$0xf] }
  0x86   : > { %1234 = vrot.lane.b32.xlu1 %v1159_v11, %s4342_s27  ;;  %v1768_v11 = vrot.slane %v1767_v0, 4  ;;  %v1588_v30 = vrot.slane %v1586_v15, 5 }
  0x87   : > { %1232 = vrot.lane.b32.xlu0 %v1156_v16, %s4342_s27  ;;  %v4136_v16 = vrot.slane %v2095_v6, 9  ;;  %v4274_v6 = vld [vmem:[%s5955_s3 + $0x28] sm:$0xff]  }
  0x88   : > { %v1773_v24 = vsel %vm4417_vm2, %v1768_v11, %v1772_v12  ;;  %v2425_v12 = vld [vmem:[%s4785_s9 + $0x64] sm:$0xf] }
  0x89   : > { %v2226_v31 = vsel %vm4561_vm6, %v4136_v16, %v2225_v17 }
  0x8a   : > { %1238 = vrot.lane.b32.xlu1 %v1166_v20, %s4342_s27  ;;  %v2653_v20 = vshll.u32 %v2601_v13, 16  ;;  %v1514_v13 = vld [vmem:[%s4715_s30 + $0x10] sm:$0xf] }
  0x8b   : > { %1236 = vrot.lane.b32.xlu0 %v1163_v28, %s4342_s27  ;;  %v2097_v28 = vld [vmem:[%s4715_s30 + $0x68] sm:$0x1]  ;;  %v1592_v26 = vshll.u32 %v1514_v13, 16 }
  0x8c   : > { %v853_v37 = vpop.permute.xlu1 %852  ;;  %v2228_v35 = vrot.slane %v2097_v28, 5  ;;  %v1596_v28 = vshrl.u32 %v1514_v13, 16 }
  0x8d   : > { %947 = vst.msk [vmem:[#allocation2 + $0x10] sm:$0xf] %vm944_vm7, %v853_v37  ;;  %v849_v42 = vpop.permute.xlu0 %848  ;;  %v2655_v37 = vrot.slane %v2653_v20, 5 }
  0x8e   : > { %945 = vst.msk [vmem:[#allocation2] sm:$0xf] %vm944_vm7, %v849_v42  ;;  %1381 = vrot.lane.b32.xlu1 %v1317_v32, %s4343_s6  ;;  %v2842_v32 = vshrl.u32 %v2625_v21, 16  ;;  %v4272_v42 = vld [vmem:[%s5955_s3 + $0x38] sm:$0xff]  }
  0x8f   : > { %1240 = vrot.lane.b32.xlu0 %v1170_v33, %s4342_s27  ;;  %v2845_v33 = vshll.u32 %v2625_v21, 16  ;;  %v2656_v49 = vor.u32 %v2655_v37, %v2652_v36  ;;  %3739 = vmatpush1.bf16.msra.mxu0 %v4272_v42  ;;  %v1537_v21 = vld [vmem:[%s4715_s30 + $0x6c] sm:$0xf]  ;;  %v4276_v37 = vld [vmem:[%s5955_s3 + $0x18] sm:$0xff]  }
  0x90   : > { %v855_v47 = vpop.permute.xlu1 %854  ;;  %v2844_v45 = vrot.slane %v2842_v32, 4  ;;  %3740 = vmatprep.subr.bf16.mxu0 %v4346_v50  ;;  %4230 = vmatpush1.bf16.msra.mxu1 %v4272_v42  ;;  %v1778_v32 = vshll.u32 %v1537_v21, 16  ;;  %v1515_v42 = vld [vmem:[%s4715_s30 + $0x14] sm:$0x1] }
  0x91   : > { %948 = vst.msk [vmem:[#allocation2 + $0x18] sm:$0xf] %vm944_vm7, %v855_v47  ;;  %v851_v53 = vpop.permute.xlu0 %850  ;;  %v2847_v46 = vrot.slane %v2845_v33, 5  ;;  %v2408_v47 = vld [vmem:[%s4785_s9] sm:$0xf]  ;;  %4222 = vmatprep.subr.bf16.mxu1 %v4346_v50  ;;  %v2657_v63 = vrot.slane %v2656_v49, 4 }
  0x92   : > { %946 = vst.msk [vmem:[#allocation2 + $0x8] sm:$0xf] %vm944_vm7, %v851_v53  ;;  %1413 = vrot.lane.b32.xlu1 %v1333_v44, %s4343_s6  ;;  %v2626_v44 = vld [vmem:[%s4785_s9 + $0x64] sm:$0xf] }
  0x93   : > { %1383 = vrot.lane.b32.xlu0 %v1318_v48, %s4343_s6  ;;  %v2229_v48 = vsel %vm4561_vm6, %v2227_v34, %v2228_v35  ;;  %v2851_v53 = vshll.u32 %v2626_v44, 16  ;;  %v2855_v54 = vshrl.u32 %v2626_v44, 16  ;;  %v2662_v11 = vsel %vm4417_vm2, %v2657_v63, %v2661_v52 }
  0x94   : > { %v859_v59 = vpop.permute.xlu1 %858 }
  0x95   : > { %950 = vst.msk [vmem:[#allocation2 + $0x28] sm:$0xf] %vm944_vm7, %v859_v59  ;;  %v857_v2 = vpop.permute.xlu0 %856  ;;  %v2848_v59 = vor.u32 %v2847_v46, %v2844_v45  ;;  %v2853_v1 = vrot.slane %v2851_v53, 5  ;;  %v2857_v4 = vrot.slane %v2855_v54, 4  ;;  %v1780_v46 = vrot.slane %v1778_v32, 5 }
  0x96   : > { %949 = vst.msk [vmem:[#allocation2 + $0x20] sm:$0xf] %vm944_vm7, %v857_v2  ;;  %1942 = vrot.lane.b32.xlu1 %v1571_v55, %s4344_s10  ;;  %v2665_v55 = vrot.slane %v2663_v41, 4  ;;  %v4880_v41 = vrot.slane %v1592_v26, 5  ;;  %v1602_v54 = vshll.u32 %v1515_v42, 16 }
  0x97   : > { %1415 = vrot.lane.b32.xlu0 %v1334_v56, %s4343_s6  ;;  %v4273_v56 = vld [vmem:[%s5955_s3 + $0x30] sm:$0xff]   ;;  %v2858_v19 = vor.u32 %v2857_v4, %v2853_v1  ;;  %v3162_v4 = vld [vmem:[%s4785_s9] sm:$0xe]  ;;  %v3187_v26 = vld [vmem:[%s4785_s9 + $0x64] sm:$0xf] }
  0x98   : > { %v863_v8 = vpop.permute.xlu1 %862  ;;  %v2666_v2 = vor.u32 %v2665_v55, %v2661_v52  ;;  %3741 = vmatpush1.bf16.msra.mxu0 %v4273_v56  ;;  %4231 = vmatpush1.bf16.msra.mxu1 %v4273_v56  ;;  %v4277_v52 = vld [vmem:[%s5955_s3 + $0x10] sm:$0xff]   ;;  %v1335_v55 = vld [vmem:[%s4715_s30 + $0x6c] sm:$0xf] }
  0x99   : > { %952 = vst.msk [vmem:[#allocation2 + $0x38] sm:$0xf] %vm944_vm7, %v863_v8  ;;  %v861_v14 = vpop.permute.xlu0 %860  ;;  %v2627_v8 = vld [vmem:[%s4785_s9 + $0x68] sm:$0x1]  ;;  %3742 = vmatprep.subr.bf16.mxu0 %v4346_v50  ;;  %4223 = vmatprep.subr.bf16.mxu1 %v4346_v50  ;;  %v2859_v35 = vrot.slane %v2858_v19, 4  ;;  %v4279_v19 = vld [vmem:[%s5955_s3] sm:$0xff]  }
  0x9a   : > { %951 = vst.msk [vmem:[#allocation2 + $0x30] sm:$0xf] %vm944_vm7, %v861_v14  ;;  %1974 = vrot.lane.b32.xlu1 %v1763_v3, %s4344_s10  ;;  %v2669_v3 = vshll.u32 %v2603_v58, 16  ;;  %v1583_v14 = vshrl.u32 %v1513_v5, 16  ;;  %v2667_v17 = vrot.slane %v2666_v2, 4  ;;  %v2861_v20 = vshll.u32 %v2627_v8, 16 }
  0x9b   : > { %1944 = vrot.lane.b32.xlu0 %v1581_v9, %s4344_s10  ;;  %v2849_v9 = vrot.slane %v2848_v59, 4  ;;  %v4906_v2 = vld [vmem:[%s4715_s30 + $0xc] sm:$0xe]  ;;  %v1336_v5 = vld [vmem:[%s4715_s30 + $0x70] sm:$0xf] }
  0x9c   : > { %v867_v23 = vpop.permute.xlu1 %866  ;;  %3743 = vmatpush1.bf16.msra.mxu0 %v4274_v6  ;;  %4232 = vmatpush1.bf16.msra.mxu1 %v4274_v6  ;;  %v2863_v36 = vrot.slane %v2861_v20, 5  ;;  %v4914_v6 = vrot.slane %v1602_v54, 5  ;;  %v3164_v8 = vld [vmem:[%s4785_s9 + $0x8] sm:$0x1]  ;;  %v2604_v42 = vld [vmem:[%s4785_s9 + $0xc] sm:$0xf] }
  0x9d   : > { %954 = vst.msk [vmem:[#allocation2 + $0x48] sm:$0xf] %vm944_vm7, %v867_v23  ;;  %v865_v29 = vpop.permute.xlu0 %864  ;;  %v4275_v23 = vld [vmem:[%s5955_s3 + $0x20] sm:$0xff]   ;;  %3744 = vmatprep.subr.bf16.mxu0 %v4346_v50  ;;  %v2854_v25 = vsel %vm4417_vm2, %v2849_v9, %v2853_v1  ;;  %4224 = vmatprep.subr.bf16.mxu1 %v4346_v50  ;;  %v4144_v9 = vrot.slane %v3162_v4, 9  ;;  %v3263_v20 = vrot.slane %v3164_v8, 5  ;;  %v2677_v54 = vshll.u32 %v2604_v42, 16 }
  0x9e   : > { %953 = vst.msk [vmem:[#allocation2 + $0x40] sm:$0xf] %vm944_vm7, %v865_v29  ;;  %2279 = vrot.lane.b32.xlu1 %v2170_v18, %s4345_s11  ;;  %v2671_v18 = vrot.slane %v2669_v3, 5  ;;  %v1585_v29 = vrot.slane %v1583_v14, 4  ;;  %v1539_v3 = vld [vmem:[%s4715_s30 + $0x74] sm:$0x1] }
  0x9f   : > { %1976 = vrot.lane.b32.xlu0 %v1773_v24, %s4344_s10  ;;  %v2075_v14 = vld [vmem:[%s4715_s30 + $0x10] sm:$0xf] }
  0xa0   : > { %v871_v38 = vpop.permute.xlu1 %870  ;;  %v2672_v34 = vsel %vm4417_vm2, %v2667_v17, %v2671_v18  ;;  %3745 = vmatpush1.bf16.msra.mxu0 %v4275_v23  ;;  %4233 = vmatpush1.bf16.msra.mxu1 %v4275_v23  ;;  %v1589_v44 = vor.u32 %v1588_v30, %v1585_v29  ;;  %v1794_v18 = vshll.u32 %v1539_v3, 16  ;;  %v4129_v29 = vrot.slane %v4906_v2, 9 }
  0xa1   : > { %956 = vst.msk [vmem:[#allocation2 + $0x58] sm:$0xf] %vm944_vm7, %v871_v38  ;;  %v869_v43 = vpop.permute.xlu0 %868  ;;  %3746 = vmatprep.subr.bf16.mxu0 %v4346_v50  ;;  %4225 = vmatprep.subr.bf16.mxu1 %v4346_v50  ;;  %v2679_v3 = vrot.slane %v2677_v54, 5 }
  0xa2   : > { %955 = vst.msk [vmem:[#allocation2 + $0x50] sm:$0xf] %vm944_vm7, %v869_v43  ;;  %2311 = vrot.lane.b32.xlu1 %v2226_v31, %s4345_s11  ;;  %v1775_v31 = vshrl.u32 %v1537_v21, 16  ;;  %v1598_v43 = vrot.slane %v1596_v28, 4  ;;  %v1590_v56 = vrot.slane %v1589_v44, 4 }
  0xa3   : > { %2281 = vrot.lane.b32.xlu0 %v2173_v39, %s4345_s11  ;;  %v1538_v39 = vld [vmem:[%s4715_s30 + $0x70] sm:$0xf]  ;;  %v3186_v21 = vld [vmem:[%s4785_s9 + $0x60] sm:$0xe]  ;;  %v3188_v28 = vld [vmem:[%s4785_s9 + $0x68] sm:$0x1] }
  0xa4   : > { %v875_v51 = vpop.permute.xlu1 %874  ;;  %v1777_v45 = vrot.slane %v1775_v31, 4  ;;  %v1784_v49 = vshll.u32 %v1538_v39, 16  ;;  %3747 = vmatpush1.bf16.msra.mxu0 %v4276_v37  ;;  %4234 = vmatpush1.bf16.msra.mxu1 %v4276_v37  ;;  %v1599_v58 = vor.u32 %v1598_v43, %v4880_v41  ;;  %v4152_v30 = vrot.slane %v3186_v21, 9  ;;  %v2099_v37 = vld [vmem:[%s4715_s30 + $0x70] sm:$0xf]  ;;  %v4280_v43 = vld [vmem:[%s5955_s3 + $0x40] sm:$0xff]  }
  0xa5   : > { %958 = vst.msk [vmem:[#allocation2 + $0x68] sm:$0xf] %vm944_vm7, %v875_v51  ;;  %v873_v57 = vpop.permute.xlu0 %872  ;;  %v1788_v51 = vshrl.u32 %v1538_v39, 16  ;;  %3748 = vmatprep.subr.bf16.mxu0 %v4346_v50  ;;  %4226 = vmatprep.subr.bf16.mxu1 %v4346_v50  ;;  %v3316_v31 = vrot.slane %v3187_v26, 5  ;;  %v3319_v32 = vrot.slane %v3188_v28, 5 }
  0xa6   : > { %957 = vst.msk [vmem:[#allocation2 + $0x60] sm:$0xf] %vm944_vm7, %v873_v57  ;;  %2472 = vrot.lane.b32.xlu1 %v2408_v47, %s4347_s16  ;;  %v1781_v57 = vor.u32 %v1780_v46, %v1777_v45  ;;  %v1600_v13 = vrot.slane %v1599_v58, 4  ;;  %v2426_v26 = vld [vmem:[%s4785_s9 + $0x6c] sm:$0xf] }
  0xa7   : > { %2313 = vrot.lane.b32.xlu0 %v2229_v48, %s4345_s11  ;;  %v2864_v48 = vsel %vm4417_vm2, %v2859_v35, %v2863_v36  ;;  %v1790_v63 = vrot.slane %v1788_v51, 4  ;;  %v2176_v35 = vrot.slane %v2075_v14, 5  ;;  %v2098_v36 = vld [vmem:[%s4715_s30 + $0x6c] sm:$0xe]  ;;  %v3317_v44 = vsel %vm4561_vm6, %v4152_v30, %v3316_v31 }
  0xa8   : > { %v879_v0 = vpop.permute.xlu1 %878  ;;  %3749 = vmatpush1.bf16.msra.mxu0 %v4277_v52  ;;  %4235 = vmatpush1.bf16.msra.mxu1 %v4277_v52  ;;  %v3318_v45 = vrot.slane %v3316_v31, 4  ;;  %3418 = vst.msk [vmem:[#allocation2 + $0x84] sm:$0xf] %vm380_vm3, %v3317_v44  ;;  %v3165_v28 = vld [vmem:[%s4785_s9 + $0xc] sm:$0xe] }
  0xa9   : > { %960 = vst.msk [vmem:[#allocation2 + $0x78] sm:$0xf] %vm944_vm7, %v879_v0  ;;  %v877_v7 = vpop.permute.xlu0 %876  ;;  %v4278_v0 = vld [vmem:[%s5955_s3 + $0x8] sm:$0xff]   ;;  %3750 = vmatprep.subr.bf16.mxu0 %v4346_v50  ;;  %4227 = vmatprep.subr.bf16.mxu1 %v4346_v50  ;;  %v2177_v52 = vsel %vm4561_vm6, %v4129_v29, %v2176_v35  ;;  %v2178_v58 = vrot.slane %v2176_v35, 4  ;;  %v2630_v31 = vld [vmem:[%s4785_s9 + $0x74] sm:$0x1] }
  0xaa   : > { %959 = vst.msk [vmem:[#allocation2 + $0x70] sm:$0xf] %vm944_vm7, %v877_v7  ;;  %2504 = vrot.lane.b32.xlu1 %v2424_v60, %s4347_s16  ;;  %v1320_v60 = vld [vmem:[%s4715_s30 + $0x10] sm:$0xf]  ;;  %v3163_v7 = vld [vmem:[%s4785_s9 + $0x4] sm:$0xf]  ;;  %v3320_v51 = vsel %vm4561_vm6, %v3318_v45, %v3319_v32 }
  0xab   : > { %2474 = vrot.lane.b32.xlu0 %v2409_v61, %s4347_s16  ;;  %v4899_v61 = vrot.slane %v1784_v49, 5  ;;  %v3260_v15 = vrot.slane %v3163_v7, 5  ;;  %v2232_v49 = vrot.slane %v2099_v37, 5  ;;  %3419 = vst.msk [vmem:[#allocation2 + $0x8c] sm:$0xf] %vm380_vm3, %v3320_v51 }
  0xac   : > { %v883_v16 = vpop.permute.xlu1 %882  ;;  %3751 = vmatpush1.bf16.msra.mxu0 %v4278_v0  ;;  %4236 = vmatpush1.bf16.msra.mxu1 %v4278_v0  ;;  %v1516_v32 = vld [vmem:[%s4715_s30 + $0x18] sm:$0xf]  ;;  %v3166_v35 = vld [vmem:[%s4785_s9 + $0x10] sm:$0xf]  ;;  %v5006_v44 = vld [vmem:[%s4715_s30 + $0x1c] sm:$0xf] }
  0xad   : > { %962 = vst.msk [vmem:[#allocation2 + $0x88] sm:$0xf] %vm944_vm7, %v883_v16  ;;  %v881_v24 = vpop.permute.xlu0 %880  ;;  %v1791_v17 = vor.u32 %v1790_v63, %v4899_v61  ;;  %3752 = vmatprep.subr.bf16.mxu0 %v4346_v50  ;;  %4228 = vmatprep.subr.bf16.mxu1 %v4346_v50  ;;  %v2234_v8 = vrot.slane %v2232_v49, 4  ;;  %v1607_v45 = vshrl.u32 %v1516_v32, 16 }
  0xae   : > { %961 = vst.msk [vmem:[#allocation2 + $0x80] sm:$0xf] %vm944_vm7, %v881_v24  ;;  %3033 = vrot.lane.b32.xlu1 %v2662_v11, %s4348_s26  ;;  %v1595_v11 = vsel %vm4417_vm2, %v1590_v56, %v4880_v41  ;;  %v3261_v24 = vsel %vm4561_vm6, %v4144_v9, %v3260_v15  ;;  %v1796_v41 = vrot.slane %v1794_v18, 5  ;;  %v2606_v18 = vld [vmem:[%s4785_s9 + $0x14] sm:$0x1] }
  0xaf   : > { %2506 = vrot.lane.b32.xlu0 %v2425_v12, %s4347_s16  ;;  %v1782_v12 = vrot.slane %v1781_v57, 4  ;;  %3402 = vst.msk [vmem:[#allocation2 + $0x4] sm:$0xf] %vm380_vm3, %v3261_v24  ;;  %v2693_v30 = vshll.u32 %v2606_v18, 16 }
  0xb0   : > { %v887_v33 = vpop.permute.xlu1 %886  ;;  %3753 = vmatpush1.bf16.msra.mxu0 %v4279_v19  ;;  %4237 = vmatpush1.bf16.msra.mxu1 %v4279_v19 }
  0xb1   : > { %964 = vst.msk [vmem:[#allocation2 + $0x98] sm:$0xf] %vm944_vm7, %v887_v33  ;;  %v885_v38 = vpop.permute.xlu0 %884  ;;  %v1787_v33 = vsel %vm4417_vm2, %v1782_v12, %v4899_v61  ;;  %3768 = vmatprep.subr.bf16.mxu0 %v4346_v50  ;;  %4229 = vmatprep.subr.bf16.mxu1 %v4346_v50  ;;  %v2100_v61 = vld [vmem:[%s4715_s30 + $0x74] sm:$0x1]  ;;  %v2629_v12 = vld [vmem:[%s4785_s9 + $0x70] sm:$0xf] }
  0xb2   : > { %963 = vst.msk [vmem:[#allocation2 + $0x90] sm:$0xf] %vm944_vm7, %v885_v38  ;;  %3065 = vrot.lane.b32.xlu1 %v2854_v25, %s4348_s26  ;;  %v3262_v25 = vrot.slane %v3260_v15, 4  ;;  %v2235_v9 = vrot.slane %v2100_v61, 5  ;;  %v2410_v15 = vld [vmem:[%s4785_s9 + $0xc] sm:$0xf] }
  0xb3   : > { %3035 = vrot.lane.b32.xlu0 %v2672_v34, %s4348_s26  ;;  %v1605_v34 = vsel %vm4417_vm2, %v1600_v13, %v4914_v6  ;;  %v2879_v24 = vshrl.u32 %v2629_v12, 16  ;;  %v1540_v61 = vld [vmem:[%s4715_s30 + $0x78] sm:$0xf] }
  0xb4   : > { %v891_v47 = vpop.permute.xlu1 %890  ;;  %v3264_v38 = vsel %vm4561_vm6, %v3262_v25, %v3263_v20  ;;  %3769 = vmatpush2.bf16.msra.mxu0 %v4280_v43  ;;  %4238 = vmatpush2.bf16.msra.mxu1 %v4280_v43  ;;  %v2236_v21 = vsel %vm4561_vm6, %v2234_v8, %v2235_v9  ;;  %v2885_v43 = vshll.u32 %v2630_v31, 16 }
  0xb5   : > { %966 = vst.msk [vmem:[#allocation2 + $0xa8] sm:$0xf] %vm944_vm7, %v891_v47  ;;  %v889_v53 = vpop.permute.xlu0 %888  ;;  %v2076_v47 = vld [vmem:[%s4715_s30 + $0x14] sm:$0x1] }
  0xb6   : > { %965 = vst.msk [vmem:[#allocation2 + $0xa0] sm:$0xf] %vm944_vm7, %v889_v53  ;;  %1385 = vrot.lane.b32.xlu1 %v1319_v40, %s4343_s6  ;;  %v1792_v40 = vrot.slane %v1791_v17, 4  ;;  %v2674_v53 = vshrl.u32 %v2604_v42, 16  ;;  %v2179_v50 = vrot.slane %v2076_v47, 5 }
  0xb7   : > { %3067 = vrot.lane.b32.xlu0 %v2864_v48, %s4348_s26  ;;  %3403 = vst.msk [vmem:[#allocation2 + $0xc] sm:$0xf] %vm380_vm3, %v3264_v38  ;;  %v4137_v48 = vrot.slane %v2098_v36, 9  ;;  %v3167_v36 = vld [vmem:[%s4785_s9 + $0x14] sm:$0x1] }
  0xb8   : > { %v895_v59 = vpop.permute.xlu1 %894  ;;  %v1797_v57 = vsel %vm4417_vm2, %v1792_v40, %v1796_v41  ;;  %v2676_v2 = vrot.slane %v2674_v53, 4  ;;  %v2180_v7 = vsel %vm4561_vm6, %v2178_v58, %v2179_v50  ;;  %v2411_v38 = vld [vmem:[%s4785_s9 + $0x10] sm:$0xf]  ;;  %v2881_v40 = vrot.slane %v2879_v24, 4  ;;  %v3191_v58 = vld [vmem:[%s4785_s9 + $0x74] sm:$0x1] }
  0xb9   : > { %968 = vst.msk [vmem:[#allocation2 + $0xb8] sm:$0xf] %vm944_vm7, %v895_v59  ;;  %v893_v1 = vpop.permute.xlu0 %892  ;;  %v2605_v59 = vld [vmem:[%s4785_s9 + $0x10] sm:$0xf]  ;;  %v2233_v63 = vsel %vm4561_vm6, %v4137_v48, %v2232_v49  ;;  %v4145_v41 = vrot.slane %v3165_v28, 9  ;;  %v2695_v48 = vrot.slane %v2693_v30, 5 }
  0xba   : > { %967 = vst.msk [vmem:[#allocation2 + $0xb0] sm:$0xf] %vm944_vm7, %v893_v1  ;;  %1417 = vrot.lane.b32.xlu1 %v1335_v55, %s4343_s6  ;;  %v2628_v55 = vld [vmem:[%s4785_s9 + $0x6c] sm:$0xf]  ;;  %v2683_v4 = vshll.u32 %v2605_v59, 16  ;;  %v1610_v49 = vshll.u32 %v1516_v32, 16 }
  0xbb   : > { %1387 = vrot.lane.b32.xlu0 %v1320_v60, %s4343_s6  ;;  %v2866_v0 = vshrl.u32 %v2628_v55, 16  ;;  %v2869_v1 = vshll.u32 %v2628_v55, 16  ;;  %v3270_v51 = vrot.slane %v3167_v36, 5 }
  0xbc   : > { %v899_v16 = vpop.permute.xlu1 %898  ;;  %v2685_v17 = vrot.slane %v2683_v4, 5  ;;  %v1612_v4 = vrot.slane %v1610_v49, 5  ;;  %v2077_v49 = vld [vmem:[%s4715_s30 + $0x18] sm:$0xe] }
  0xbd   : > { %970 = vst.msk [vmem:[#allocation2 + $0xc8] sm:$0xf] %vm944_vm7, %v899_v16  ;;  %v897_v23 = vpop.permute.xlu0 %896  ;;  %v2868_v13 = vrot.slane %v2866_v0, 4  ;;  %v2871_v14 = vrot.slane %v2869_v1, 5  ;;  %v2680_v16 = vor.u32 %v2679_v3, %v2676_v2  ;;  %v2887_v0 = vrot.slane %v2885_v43, 5 }
  0xbe   : > { %969 = vst.msk [vmem:[#allocation2 + $0xc0] sm:$0xf] %vm944_vm7, %v897_v23  ;;  %1946 = vrot.lane.b32.xlu1 %v1595_v11, %s4344_s10  ;;  %v2875_v23 = vshll.u32 %v2629_v12, 16  ;;  %v1609_v1 = vrot.slane %v1607_v45, 4  ;;  %v1802_v12 = vshll.u32 %v1540_v61, 16 }
  0xbf   : > { %1419 = vrot.lane.b32.xlu0 %v1336_v5, %s4343_s6  ;;  %v2687_v5 = vshrl.u32 %v2605_v59, 16  ;;  %v2872_v29 = vor.u32 %v2871_v14, %v2868_v13  ;;  %v2427_v59 = vld [vmem:[%s4785_s9 + $0x70] sm:$0xf]  ;;  %v1542_v45 = vld [vmem:[%s4715_s30 + $0x80] sm:$0x1] }
  0xc0   : > { %v903_v39 = vpop.permute.xlu1 %902 }
  0xc1   : > { %972 = vst.msk [vmem:[#allocation2 + $0xd8] sm:$0xf] %vm944_vm7, %v903_v39  ;;  %v901_v46 = vpop.permute.xlu0 %900  ;;  %v2689_v19 = vrot.slane %v2687_v5, 4  ;;  %v2877_v39 = vrot.slane %v2875_v23, 5  ;;  %v2873_v47 = vrot.slane %v2872_v29, 4  ;;  %v1616_v5 = vshll.u32 %v5006_v44, 16 }
  0xc2   : > { %971 = vst.msk [vmem:[#allocation2 + $0xd0] sm:$0xf] %vm944_vm7, %v901_v46  ;;  %1978 = vrot.lane.b32.xlu1 %v1787_v33, %s4344_s10  ;;  %v2681_v33 = vrot.slane %v2680_v16, 4  ;;  %v3267_v46 = vrot.slane %v3166_v35, 5  ;;  %v1613_v23 = vor.u32 %v1612_v4, %v1609_v1  ;;  %v1337_v35 = vld [vmem:[%s4715_s30 + $0x78] sm:$0xf] }
  0xc3   : > { %1948 = vrot.lane.b32.xlu0 %v1605_v34, %s4344_s10  ;;  %v2690_v34 = vor.u32 %v2689_v19, %v2685_v17  ;;  %v2878_v8 = vsel %vm4417_vm2, %v2873_v47, %v2877_v39  ;;  %v1541_v19 = vld [vmem:[%s4715_s30 + $0x7c] sm:$0xf]  ;;  %v1618_v24 = vrot.slane %v1616_v5, 5  ;;  %v2079_v5 = vld [vmem:[%s4715_s30 + $0x20] sm:$0x1] }
  0xc4   : > { %v907_v56 = vpop.permute.xlu1 %906  ;;  %v2686_v53 = vsel %vm4417_vm2, %v2681_v33, %v2685_v17  ;;  %v3268_v55 = vsel %vm4561_vm6, %v4145_v41, %v3267_v46  ;;  %v1808_v30 = vshll.u32 %v1541_v19, 16  ;;  %v1812_v31 = vshrl.u32 %v1541_v19, 16  ;;  %v1338_v47 = vld [vmem:[%s4715_s30 + $0x7c] sm:$0xf] }
  0xc5   : > { %974 = vst.msk [vmem:[#allocation2 + $0xe8] sm:$0xf] %vm944_vm7, %v907_v56  ;;  %v905_v60 = vpop.permute.xlu0 %904  ;;  %v2691_v54 = vrot.slane %v2690_v34, 4  ;;  %v3269_v56 = vrot.slane %v3267_v46, 4  ;;  %v1518_v34 = vld [vmem:[%s4715_s30 + $0x20] sm:$0x1] }
  0xc6   : > { %973 = vst.msk [vmem:[#allocation2 + $0xe0] sm:$0xf] %vm944_vm7, %v905_v60  ;;  %2283 = vrot.lane.b32.xlu1 %v2177_v52, %s4345_s11  ;;  %v3189_v52 = vld [vmem:[%s4785_s9 + $0x6c] sm:$0xe]  ;;  %v2882_v60 = vor.u32 %v2881_v40, %v2877_v39  ;;  %v1614_v36 = vrot.slane %v1613_v23, 4  ;;  %v1810_v40 = vrot.slane %v1808_v30, 5 }
  0xc7   : > { %1980 = vrot.lane.b32.xlu0 %v1797_v57, %s4344_s10  ;;  %v3190_v57 = vld [vmem:[%s4785_s9 + $0x70] sm:$0xf]  ;;  %3404 = vst.msk [vmem:[#allocation2 + $0x14] sm:$0xf] %vm380_vm3, %v3268_v55  ;;  %v3271_v2 = vsel %vm4561_vm6, %v3269_v56, %v3270_v51  ;;  %v4153_v3 = vrot.slane %v3189_v52, 9  ;;  %v2696_v9 = vsel %vm4417_vm2, %v2691_v54, %v2695_v48  ;;  %v1814_v43 = vrot.slane %v1812_v31, 4 }
  0xc8   : > { %v911_v6 = vpop.permute.xlu1 %910  ;;  %3405 = vst.msk [vmem:[#allocation2 + $0x1c] sm:$0xf] %vm380_vm3, %v3271_v2  ;;  %v2883_v14 = vrot.slane %v2882_v60, 4  ;;  %v1322_v39 = vld [vmem:[%s4715_s30 + $0x1c] sm:$0xf]  ;;  %v1619_v46 = vsel %vm4417_vm2, %v1614_v36, %v1618_v24  ;;  %v1818_v56 = vshll.u32 %v1542_v45, 16 }
  0xc9   : > { %976 = vst.msk [vmem:[#allocation2 + $0xf8] sm:$0xf] %vm944_vm7, %v911_v6  ;;  %v909_v11 = vpop.permute.xlu0 %908  ;;  %v3323_v6 = vrot.slane %v3190_v57, 5  ;;  %v2078_v54 = vld [vmem:[%s4715_s30 + $0x1c] sm:$0xf]  ;;  %v1815_v55 = vor.u32 %v1814_v43, %v1810_v40 }
  0xca   : > { %975 = vst.msk [vmem:[#allocation2 + $0xf0] sm:$0xf] %vm944_vm7, %v909_v11  ;;  %2315 = vrot.lane.b32.xlu1 %v2233_v63, %s4345_s11  ;;  %v1799_v11 = vshrl.u32 %v1540_v61, 16  ;;  %v2888_v29 = vsel %vm4417_vm2, %v2883_v14, %v2887_v0  ;;  %v2101_v60 = vld [vmem:[%s4715_s30 + $0x78] sm:$0xe]  ;;  %v1820_v2 = vrot.slane %v1818_v56, 5 }
  0xcb   : > { %2285 = vrot.lane.b32.xlu0 %v2180_v7, %s4345_s11  ;;  %v3326_v7 = vrot.slane %v3191_v58, 5  ;;  %v3324_v16 = vsel %vm4561_vm6, %v4153_v3, %v3323_v6  ;;  %v3325_v17 = vrot.slane %v3323_v6, 4  ;;  %v2102_v61 = vld [vmem:[%s4715_s30 + $0x7c] sm:$0xf]  ;;  %v1816_v1 = vrot.slane %v1815_v55, 4 }
  0xcc   : > { %v1191_v20 = vpop.permute.xlu1 %1190  ;;  %3420 = vst.msk [vmem:[#allocation2 + $0x94] sm:$0xf] %vm380_vm3, %v3324_v16  ;;  %v2607_v3 = vld [vmem:[%s4785_s9 + $0x18] sm:$0xf]  ;;  %v4138_v6 = vrot.slane %v2101_v60, 9 }
  0xcd   : > { %1286 = vst.msk [vmem:[#allocation2 + $0x8] sm:$0xf] %vm1284_vm8, %v1191_v20  ;;  %v1189_v25 = vpop.permute.xlu0 %1188  ;;  %v3327_v20 = vsel %vm4561_vm6, %v3325_v17, %v3326_v7  ;;  %v2239_v7 = vrot.slane %v2102_v61, 5  ;;  %v2186_v17 = vrot.slane %v2079_v5, 5  ;;  %v2632_v30 = vld [vmem:[%s4785_s9 + $0x7c] sm:$0xf] }
  0xce   : > { %1285 = vst.msk [vmem:[#allocation2] sm:$0xf] %vm1284_vm8, %v1189_v25  ;;  %2476 = vrot.lane.b32.xlu1 %v2410_v15, %s4347_s16  ;;  %v1620_v15 = vshrl.u32 %v5006_v44, 16  ;;  %v1801_v25 = vrot.slane %v1799_v11, 4  ;;  %v2698_v11 = vshrl.u32 %v2607_v3, 16  ;;  %v2903_v43 = vshrl.u32 %v2632_v30, 16 }
  0xcf   : > { %2317 = vrot.lane.b32.xlu0 %v2236_v21, %s4345_s11  ;;  %v1321_v21 = vld [vmem:[%s4715_s30 + $0x18] sm:$0xf]  ;;  %3421 = vst.msk [vmem:[#allocation2 + $0x9c] sm:$0xf] %vm380_vm3, %v3327_v20  ;;  %v2608_v20 = vld [vmem:[%s4785_s9 + $0x1c] sm:$0xf] }
  0xd0   : > { %v1195_v37 = vpop.permute.xlu1 %1194  ;;  %v1622_v32 = vrot.slane %v1620_v15, 4  ;;  %v1821_v15 = vsel %vm4417_vm2, %v1816_v1, %v1820_v2  ;;  %v2707_v36 = vshll.u32 %v2608_v20, 16  ;;  %v2609_v56 = vld [vmem:[%s4785_s9 + $0x20] sm:$0x1]  ;;  %v2905_v60 = vrot.slane %v2903_v43, 4 }
  0xd1   : > { %1288 = vst.msk [vmem:[#allocation2 + $0x18] sm:$0xf] %vm1284_vm8, %v1195_v37  ;;  %v1193_v42 = vpop.permute.xlu0 %1192  ;;  %v3193_v1 = vld [vmem:[%s4785_s9 + $0x7c] sm:$0xf]  ;;  %v2717_v5 = vshll.u32 %v2609_v56, 16 }
  0xd2   : > { %1287 = vst.msk [vmem:[#allocation2 + $0x10] sm:$0xf] %vm1284_vm8, %v1193_v42  ;;  %2508 = vrot.lane.b32.xlu1 %v2426_v26, %s4347_s16  ;;  %v1804_v26 = vrot.slane %v1802_v12, 5  ;;  %v1623_v41 = vor.u32 %v1622_v32, %v1618_v24  ;;  %v1626_v42 = vshll.u32 %v1518_v34, 16  ;;  %v2701_v12 = vshll.u32 %v2607_v3, 16 }
  0xd3   : > { %2478 = vrot.lane.b32.xlu0 %v2411_v38, %s4347_s16  ;;  %v1323_v43 = vld [vmem:[%s4715_s30 + $0x24] sm:$0xf] }
  0xd4   : > { %v1199_v50 = vpop.permute.xlu1 %1198  ;;  %v1805_v37 = vor.u32 %v1804_v26, %v1801_v25  ;;  %v1624_v52 = vrot.slane %v1623_v41, 4  ;;  %v3168_v25 = vld [vmem:[%s4785_s9 + $0x18] sm:$0xe]  ;;  %v3169_v26 = vld [vmem:[%s4785_s9 + $0x1c] sm:$0xf] }
  0xd5   : > { %1290 = vst.msk [vmem:[#allocation2 + $0x28] sm:$0xf] %vm1284_vm8, %v1199_v50  ;;  %v1197_v63 = vpop.permute.xlu0 %1196  ;;  %v4130_v50 = vrot.slane %v2077_v49, 9  ;;  %v4146_v31 = vrot.slane %v3168_v25, 9  ;;  %v3274_v32 = vrot.slane %v3169_v26, 5 }
  0xd6   : > { %1289 = vst.msk [vmem:[#allocation2 + $0x20] sm:$0xf] %vm1284_vm8, %v1197_v63  ;;  %3037 = vrot.lane.b32.xlu1 %v2686_v53, %s4348_s26  ;;  %v1806_v48 = vrot.slane %v1805_v37, 4  ;;  %v1628_v53 = vrot.slane %v1626_v42, 5  ;;  %v2711_v37 = vshrl.u32 %v2608_v20, 16  ;;  %v2899_v42 = vshll.u32 %v2632_v30, 16 }
  0xd7   : > { %2510 = vrot.lane.b32.xlu0 %v2427_v59, %s4347_s16  ;;  %v2183_v59 = vrot.slane %v2078_v54, 5  ;;  %v3192_v54 = vld [vmem:[%s4785_s9 + $0x78] sm:$0xe]  ;;  %v1339_v56 = vld [vmem:[%s4715_s30 + $0x84] sm:$0xf] }
  0xd8   : > { %v1203_v13 = vpop.permute.xlu1 %1202  ;;  %v1811_v58 = vsel %vm4417_vm2, %v1806_v48, %v1810_v40  ;;  %v1629_v0 = vsel %vm4417_vm2, %v1624_v52, %v1628_v53  ;;  %v2713_v52 = vrot.slane %v2711_v37, 4  ;;  %v4154_v2 = vrot.slane %v3192_v54, 9 }
  0xd9   : > { %1292 = vst.msk [vmem:[#allocation2 + $0x38] sm:$0xf] %vm1284_vm8, %v1203_v13  ;;  %v1201_v18 = vpop.permute.xlu0 %1200  ;;  %v2631_v13 = vld [vmem:[%s4785_s9 + $0x78] sm:$0xf]  ;;  %v2185_v16 = vrot.slane %v2183_v59, 4 }
  0xda   : > { %1291 = vst.msk [vmem:[#allocation2 + $0x30] sm:$0xf] %vm1284_vm8, %v1201_v18  ;;  %3069 = vrot.lane.b32.xlu1 %v2878_v8, %s4348_s26  ;;  %v2103_v8 = vld [vmem:[%s4715_s30 + $0x80] sm:$0x1]  ;;  %v2890_v23 = vshrl.u32 %v2631_v13, 16  ;;  %v2893_v24 = vshll.u32 %v2631_v13, 16 }
  0xdb   : > { %3039 = vrot.lane.b32.xlu0 %v2696_v9, %s4348_s26  ;;  %v2184_v9 = vsel %vm4561_vm6, %v4130_v50, %v2183_v59  ;;  %v2242_v19 = vrot.slane %v2103_v8, 5  ;;  %v2187_v34 = vsel %vm4561_vm6, %v2185_v16, %v2186_v17  ;;  %v2901_v59 = vrot.slane %v2899_v42, 5  ;;  %v2429_v16 = vld [vmem:[%s4785_s9 + $0x7c] sm:$0xf]  ;;  %v1544_v42 = vld [vmem:[%s4715_s30 + $0x88] sm:$0xf] }
  0xdc   : > { %v1207_v28 = vpop.permute.xlu1 %1206  ;;  %v2892_v40 = vrot.slane %v2890_v23, 4  ;;  %v2895_v41 = vrot.slane %v2893_v24, 5  ;;  %v2719_v23 = vrot.slane %v2717_v5, 5  ;;  %v1543_v24 = vld [vmem:[%s4715_s30 + $0x84] sm:$0xf] }
  0xdd   : > { %1294 = vst.msk [vmem:[#allocation2 + $0x48] sm:$0xf] %vm1284_vm8, %v1207_v28  ;;  %v1205_v33 = vpop.permute.xlu0 %1204  ;;  %v2700_v28 = vrot.slane %v2698_v11, 4 }
  0xde   : > { %1293 = vst.msk [vmem:[#allocation2 + $0x40] sm:$0xf] %vm1284_vm8, %v1205_v33  ;;  %1389 = vrot.lane.b32.xlu1 %v1321_v21, %s4343_s6  ;;  %v2240_v21 = vsel %vm4561_vm6, %v4138_v6, %v2239_v7  ;;  %v2896_v50 = vor.u32 %v2895_v41, %v2892_v40  ;;  %v1519_v6 = vld [vmem:[%s4715_s30 + $0x24] sm:$0xf] }
  0xdf   : > { %3071 = vrot.lane.b32.xlu0 %v2888_v29, %s4348_s26  ;;  %v2703_v29 = vrot.slane %v2701_v12, 5  ;;  %v2906_v12 = vor.u32 %v2905_v60, %v2901_v59  ;;  %v1631_v17 = vshrl.u32 %v1519_v6, 16 }
  0xe0   : > { %v1211_v38 = vpop.permute.xlu1 %1210  ;;  %v2897_v11 = vrot.slane %v2896_v50, 4 }
  0xe1   : > { %1296 = vst.msk [vmem:[#allocation2 + $0x58] sm:$0xf] %vm1284_vm8, %v1211_v38  ;;  %v1209_v44 = vpop.permute.xlu0 %1208  ;;  %v2704_v45 = vor.u32 %v2703_v29, %v2700_v28  ;;  %v1520_v28 = vld [vmem:[%s4715_s30 + $0x28] sm:$0xf]  ;;  %v2907_v30 = vrot.slane %v2906_v12, 4 }
  0xe2   : > { %1295 = vst.msk [vmem:[#allocation2 + $0x50] sm:$0xf] %vm1284_vm8, %v1209_v44  ;;  %1421 = vrot.lane.b32.xlu1 %v1337_v35, %s4343_s6  ;;  %v2241_v35 = vrot.slane %v2239_v7, 4  ;;  %v2412_v44 = vld [vmem:[%s4785_s9 + $0x18] sm:$0xf]  ;;  %v2902_v29 = vsel %vm4417_vm2, %v2897_v11, %v2901_v59  ;;  %v1644_v40 = vshrl.u32 %v1520_v28, 16 }
  0xe3   : > { %1391 = vrot.lane.b32.xlu0 %v1322_v39, %s4343_s6  ;;  %v3275_v39 = vsel %vm4561_vm6, %v4146_v31, %v3274_v32  ;;  %v3194_v7 = vld [vmem:[%s4785_s9 + $0x80] sm:$0x1]  ;;  %v1324_v59 = vld [vmem:[%s4715_s30 + $0x28] sm:$0xf] }
  0xe4   : > { %v1215_v51 = vpop.permute.xlu1 %1214  ;;  %3406 = vst.msk [vmem:[#allocation2 + $0x24] sm:$0xf] %vm380_vm3, %v3275_v39  ;;  %v2243_v49 = vsel %vm4561_vm6, %v2241_v35, %v2242_v19  ;;  %v1823_v35 = vshrl.u32 %v1543_v24, 16  ;;  %v1640_v39 = vshll.u32 %v1520_v28, 16  ;;  %v2081_v11 = vld [vmem:[%s4715_s30 + $0x28] sm:$0xf] }
  0xe5   : > { %1298 = vst.msk [vmem:[#allocation2 + $0x68] sm:$0xf] %vm1284_vm8, %v1215_v51  ;;  %v1213_v57 = vpop.permute.xlu0 %1212  ;;  %v2709_v51 = vrot.slane %v2707_v36, 5  ;;  %v1826_v36 = vshll.u32 %v1543_v24, 16  ;;  %v2104_v24 = vld [vmem:[%s4715_s30 + $0x84] sm:$0xe] }
  0xe6   : > { %1297 = vst.msk [vmem:[#allocation2 + $0x60] sm:$0xf] %vm1284_vm8, %v1213_v57  ;;  %1950 = vrot.lane.b32.xlu1 %v1619_v46, %s4344_s10  ;;  %v3170_v46 = vld [vmem:[%s4785_s9 + $0x20] sm:$0x1]  ;;  %v2428_v57 = vld [vmem:[%s4785_s9 + $0x78] sm:$0xf] }
  0xe7   : > { %1423 = vrot.lane.b32.xlu0 %v1338_v47, %s4343_s6  ;;  %v3276_v47 = vrot.slane %v3274_v32, 4  ;;  %v3277_v53 = vrot.slane %v3170_v46, 5  ;;  %v1825_v46 = vrot.slane %v1823_v35, 4  ;;  %v2082_v28 = vld [vmem:[%s4715_s30 + $0x2c] sm:$0x1] }
  0xe8   : > { %v1219_v63 = vpop.permute.xlu1 %1218 }
  0xe9   : > { %1300 = vst.msk [vmem:[#allocation2 + $0x78] sm:$0xf] %vm1284_vm8, %v1219_v63  ;;  %v1217_v4 = vpop.permute.xlu0 %1216  ;;  %v3278_v61 = vsel %vm4561_vm6, %v3276_v47, %v3277_v53  ;;  %v2705_v63 = vrot.slane %v2704_v45, 4  ;;  %v1828_v47 = vrot.slane %v1826_v36, 5  ;;  %v1646_v53 = vrot.slane %v1644_v40, 4 }
  0xea   : > { %1299 = vst.msk [vmem:[#allocation2 + $0x70] sm:$0xf] %vm1284_vm8, %v1217_v4  ;;  %1982 = vrot.lane.b32.xlu1 %v1811_v58, %s4344_s10  ;;  %v2413_v58 = vld [vmem:[%s4785_s9 + $0x1c] sm:$0xf]  ;;  %v2714_v4 = vor.u32 %v2713_v52, %v2709_v51  ;;  %v1836_v52 = vshrl.u32 %v1544_v42, 16 }
  0xeb   : > { %1952 = vrot.lane.b32.xlu0 %v1629_v0, %s4344_s10  ;;  %v2633_v0 = vld [vmem:[%s4785_s9 + $0x80] sm:$0x1]  ;;  %3407 = vst.msk [vmem:[#allocation2 + $0x2c] sm:$0xf] %vm380_vm3, %v3278_v61 }
  0xec   : > { %v1223_v14 = vpop.permute.xlu1 %1222  ;;  %v2909_v13 = vshll.u32 %v2633_v0, 16  ;;  %v1838_v0 = vrot.slane %v1836_v52, 4 }
  0xed   : > { %1302 = vst.msk [vmem:[#allocation2 + $0x88] sm:$0xf] %vm1284_vm8, %v1223_v14  ;;  %v1221_v18 = vpop.permute.xlu0 %1220  ;;  %v3333_v14 = vrot.slane %v3194_v7, 5 }
  0xee   : > { %1301 = vst.msk [vmem:[#allocation2 + $0x80] sm:$0xf] %vm1284_vm8, %v1221_v18  ;;  %2287 = vrot.lane.b32.xlu1 %v2184_v9, %s4345_s11  ;;  %v3330_v9 = vrot.slane %v3193_v1, 5  ;;  %v1634_v18 = vshll.u32 %v1519_v6, 16  ;;  %v2911_v31 = vrot.slane %v2909_v13, 5 }
  0xef   : > { %1984 = vrot.lane.b32.xlu0 %v1821_v15, %s4344_s10  ;;  %v2710_v15 = vsel %vm4417_vm2, %v2705_v63, %v2709_v51  ;;  %v1832_v51 = vshll.u32 %v1544_v42, 16  ;;  %v2080_v6 = vld [vmem:[%s4715_s30 + $0x24] sm:$0xe] }
  0xf0   : > { %v1227_v33 = vpop.permute.xlu1 %1226  ;;  %v3331_v19 = vsel %vm4561_vm6, %v4154_v2, %v3330_v9  ;;  %v3332_v25 = vrot.slane %v3330_v9, 4  ;;  %v1545_v2 = vld [vmem:[%s4715_s30 + $0x8c] sm:$0x1] }
  0xf1   : > { %1304 = vst.msk [vmem:[#allocation2 + $0x98] sm:$0xf] %vm1284_vm8, %v1227_v33  ;;  %v1225_v38 = vpop.permute.xlu0 %1224  ;;  %v1633_v33 = vrot.slane %v1631_v17, 4  ;;  %v1834_v60 = vrot.slane %v1832_v51, 5  ;;  %v1842_v13 = vshll.u32 %v1545_v2, 16  ;;  %v2190_v17 = vrot.slane %v2081_v11, 5 }
  0xf2   : > { %1303 = vst.msk [vmem:[#allocation2 + $0x90] sm:$0xf] %vm1284_vm8, %v1225_v38  ;;  %2319 = vrot.lane.b32.xlu1 %v2240_v21, %s4345_s11  ;;  %v2715_v21 = vrot.slane %v2714_v4, 4  ;;  %v3334_v32 = vsel %vm4561_vm6, %v3332_v25, %v3333_v14  ;;  %v1340_v4 = vld [vmem:[%s4715_s30 + $0x88] sm:$0xf] }
  0xf3   : > { %2289 = vrot.lane.b32.xlu0 %v2187_v34, %s4345_s11  ;;  %3422 = vst.msk [vmem:[#allocation2 + $0xa4] sm:$0xf] %vm380_vm3, %v3331_v19  ;;  %v1636_v34 = vrot.slane %v1634_v18, 5  ;;  %3423 = vst.msk [vmem:[#allocation2 + $0xac] sm:$0xf] %vm380_vm3, %v3334_v32  ;;  %v1839_v12 = vor.u32 %v1838_v0, %v1834_v60 }
  0xf4   : > { %v1231_v48 = vpop.permute.xlu1 %1230  ;;  %v2720_v38 = vsel %vm4417_vm2, %v2715_v21, %v2719_v23  ;;  %v2610_v18 = vld [vmem:[%s4785_s9 + $0x24] sm:$0xf]  ;;  %v1844_v23 = vrot.slane %v1842_v13, 5  ;;  %v2105_v25 = vld [vmem:[%s4715_s30 + $0x88] sm:$0xf] }
  0xf5   : > { %1306 = vst.msk [vmem:[#allocation2 + $0xa8] sm:$0xf] %vm1284_vm8, %v1231_v48  ;;  %v1229_v55 = vpop.permute.xlu0 %1228  ;;  %v1637_v45 = vor.u32 %v1636_v34, %v1633_v33  ;;  %v1840_v21 = vrot.slane %v1839_v12, 4  ;;  %v2634_v32 = vld [vmem:[%s4785_s9 + $0x84] sm:$0xf]  ;;  %v4139_v34 = vrot.slane %v2104_v24, 9 }
  0xf6   : > { %1305 = vst.msk [vmem:[#allocation2 + $0xa0] sm:$0xf] %vm1284_vm8, %v1229_v55  ;;  %2480 = vrot.lane.b32.xlu1 %v2412_v44, %s4347_s16  ;;  %v2912_v44 = vsel %vm4417_vm2, %v2907_v30, %v2911_v31  ;;  %v1521_v55 = vld [vmem:[%s4715_s30 + $0x2c] sm:$0x1]  ;;  %v2722_v30 = vshrl.u32 %v2610_v18, 16  ;;  %v2725_v31 = vshll.u32 %v2610_v18, 16 }
  0xf7   : > { %2321 = vrot.lane.b32.xlu0 %v2243_v49, %s4345_s11  ;;  %v1642_v49 = vrot.slane %v1640_v39, 5  ;;  %v1650_v63 = vshll.u32 %v1521_v55, 16  ;;  %v2246_v35 = vrot.slane %v2105_v25, 5  ;;  %v2193_v39 = vrot.slane %v2082_v28, 5  ;;  %v3195_v2 = vld [vmem:[%s4785_s9 + $0x84] sm:$0xe] }
  0xf8   : > { %v1235_v3 = vpop.permute.xlu1 %1234  ;;  %v3197_v25 = vld [vmem:[%s4785_s9 + $0x8c] sm:$0x1] }
  0xf9   : > { %1308 = vst.msk [vmem:[#allocation2 + $0xb8] sm:$0xf] %vm1284_vm8, %v1235_v3  ;;  %v1233_v8 = vpop.permute.xlu0 %1232  ;;  %v1647_v61 = vor.u32 %v1646_v53, %v1642_v49  ;;  %v1652_v9 = vrot.slane %v1650_v63, 5  ;;  %v2247_v51 = vsel %vm4561_vm6, %v4139_v34, %v2246_v35 }
  0xfa   : > { %1307 = vst.msk [vmem:[#allocation2 + $0xb0] sm:$0xf] %vm1284_vm8, %v1233_v8  ;;  %2512 = vrot.lane.b32.xlu1 %v2428_v57, %s4347_s16  ;;  %v1638_v57 = vrot.slane %v1637_v45, 4  ;;  %v2917_v45 = vshll.u32 %v2634_v32, 16 }
  0xfb   : > { %2482 = vrot.lane.b32.xlu0 %v2413_v58, %s4347_s16  ;;  %v1829_v58 = vor.u32 %v1828_v47, %v1825_v46  ;;  %v1648_v8 = vrot.slane %v1647_v61, 4  ;;  %v2724_v46 = vrot.slane %v2722_v30, 4  ;;  %v2727_v47 = vrot.slane %v2725_v31, 5 }
  0xfc   : > { %v1239_v20 = vpop.permute.xlu1 %1238  ;;  %v1643_v3 = vsel %vm4417_vm2, %v1638_v57, %v1642_v49  ;;  %v3172_v49 = vld [vmem:[%s4785_s9 + $0x28] sm:$0xf] }
  0xfd   : > { %1310 = vst.msk [vmem:[#allocation2 + $0xc8] sm:$0xf] %vm1284_vm8, %v1239_v20  ;;  %v1237_v26 = vpop.permute.xlu0 %1236  ;;  %v1830_v5 = vrot.slane %v1829_v58, 4  ;;  %v1653_v20 = vsel %vm4417_vm2, %v1648_v8, %v1652_v9  ;;  %v3281_v53 = vrot.slane %v3172_v49, 5  ;;  %v2728_v0 = vor.u32 %v2727_v47, %v2724_v46 }
  0xfe   : > { %1309 = vst.msk [vmem:[#allocation2 + $0xc0] sm:$0xf] %vm1284_vm8, %v1237_v26  ;;  %3041 = vrot.lane.b32.xlu1 %v2710_v15, %s4348_s26 }
  0xff   : > { %2514 = vrot.lane.b32.xlu0 %v2429_v16, %s4347_s16  ;;  %v1835_v15 = vsel %vm4417_vm2, %v1830_v5, %v1834_v60  ;;  %v4131_v16 = vrot.slane %v2080_v6, 9  ;;  %v2919_v60 = vrot.slane %v2917_v45, 5  ;;  %v3283_v5 = vrot.slane %v3281_v53, 4 }
 0x100   : > { %v1382_v37 = vpop.permute.xlu1 %1381 }
 0x101   : > { %1478 = vst.msk [vmem:[#allocation2] sm:$0xf] %vm1477_vm9, %v1382_v37  ;;  %v1241_v41 = vpop.permute.xlu0 %1240  ;;  %v2191_v33 = vsel %vm4561_vm6, %v4131_v16, %v2190_v17  ;;  %v1845_v37 = vsel %vm4417_vm2, %v1840_v21, %v1844_v23  ;;  %v2729_v23 = vrot.slane %v2728_v0, 4  ;;  %v1325_v0 = vld [vmem:[%s4715_s30 + $0x30] sm:$0xf] }
 0x102   : > { %1311 = vst.msk [vmem:[#allocation2 + $0xd0] sm:$0xf] %vm1284_vm8, %v1241_v41  ;;  %3073 = vrot.lane.b32.xlu1 %v2902_v29, %s4348_s26  ;;  %v2106_v29 = vld [vmem:[%s4715_s30 + $0x8c] sm:$0x1]  ;;  %v2248_v41 = vrot.slane %v2246_v35, 4 }
 0x103   : > { %3043 = vrot.lane.b32.xlu0 %v2720_v38, %s4348_s26  ;;  %v2192_v38 = vrot.slane %v2190_v17, 4  ;;  %v2249_v42 = vrot.slane %v2106_v29, 5  ;;  %v2636_v35 = vld [vmem:[%s4785_s9 + $0x8c] sm:$0x1] }
 0x104   : > { %v1414_v48 = vpop.permute.xlu1 %1413  ;;  %v2933_v47 = vshll.u32 %v2636_v35, 16 }
 0x105   : > { %1494 = vst.msk [vmem:[#allocation2 + $0x80] sm:$0xf] %vm1477_vm9, %v1414_v48  ;;  %v1384_v54 = vpop.permute.xlu0 %1383  ;;  %v3171_v48 = vld [vmem:[%s4785_s9 + $0x24] sm:$0xe]  ;;  %v2194_v55 = vsel %vm4561_vm6, %v2192_v38, %v2193_v39  ;;  %v2250_v63 = vsel %vm4561_vm6, %v2248_v41, %v2249_v42  ;;  %v2431_v39 = vld [vmem:[%s4785_s9 + $0x88] sm:$0xf] }
 0x106   : > { %1479 = vst.msk [vmem:[#allocation2 + $0x8] sm:$0xf] %vm1477_vm9, %v1384_v54  ;;  %1393 = vrot.lane.b32.xlu1 %v1323_v43, %s4343_s6  ;;  %v2611_v43 = vld [vmem:[%s4785_s9 + $0x28] sm:$0xf]  ;;  %v4147_v52 = vrot.slane %v3171_v48, 9 }
 0x107   : > { %3075 = vrot.lane.b32.xlu0 %v2912_v44, %s4348_s26  ;;  %v2914_v44 = vshrl.u32 %v2634_v32, 16  ;;  %v2735_v57 = vshrl.u32 %v2611_v43, 16  ;;  %v1522_v32 = vld [vmem:[%s4715_s30 + $0x30] sm:$0xf] }
 0x108   : > { %v1943_v50 = vpop.permute.xlu1 %1942  ;;  %v3282_v61 = vsel %vm4561_vm6, %v4147_v52, %v3281_v53  ;;  %v1655_v41 = vshrl.u32 %v1522_v32, 16  ;;  %v1658_v42 = vshll.u32 %v1522_v32, 16  ;;  %v1546_v48 = vld [vmem:[%s4715_s30 + $0x90] sm:$0xf] }
 0x109   : > { %2039 = vst.msk [vmem:[#allocation2] sm:$0xf] %vm2038_vm10, %v1943_v50  ;;  %v1416_v1 = vpop.permute.xlu0 %1415  ;;  %v2635_v50 = vld [vmem:[%s4785_s9 + $0x88] sm:$0xf] }
 0x10a   : > { %1495 = vst.msk [vmem:[#allocation2 + $0x88] sm:$0xf] %vm1477_vm9, %v1416_v1  ;;  %1425 = vrot.lane.b32.xlu1 %v1339_v56, %s4343_s6  ;;  %v2731_v56 = vshll.u32 %v2611_v43, 16  ;;  %v3173_v1 = vld [vmem:[%s4785_s9 + $0x2c] sm:$0x1]  ;;  %v2923_v12 = vshll.u32 %v2635_v50, 16 }
 0x10b   : > { %1395 = vrot.lane.b32.xlu0 %v1324_v59, %s4343_s6  ;;  %v2916_v59 = vrot.slane %v2914_v44, 4  ;;  %3408 = vst.msk [vmem:[#allocation2 + $0x34] sm:$0xf] %vm380_vm3, %v3282_v61  ;;  %v3284_v6 = vrot.slane %v3173_v1, 5  ;;  %v2927_v13 = vshrl.u32 %v2635_v50, 16  ;;  %v1657_v53 = vrot.slane %v1655_v41, 4 }
 0x10c   : > { %v1975_v7 = vpop.permute.xlu1 %1974  ;;  %v2733_v11 = vrot.slane %v2731_v56, 5  ;;  %v2925_v29 = vrot.slane %v2923_v12, 5  ;;  %v1850_v56 = vshll.u32 %v1546_v48, 16 }
 0x10d   : > { %2055 = vst.msk [vmem:[#allocation2 + $0x80] sm:$0xf] %vm2038_vm10, %v1975_v7  ;;  %v1945_v14 = vpop.permute.xlu0 %1944  ;;  %v4155_v7 = vrot.slane %v3195_v2, 9  ;;  %v3285_v17 = vsel %vm4561_vm6, %v3283_v5, %v3284_v6  ;;  %v2920_v21 = vor.u32 %v2919_v60, %v2916_v59  ;;  %v2929_v31 = vrot.slane %v2927_v13, 4 }
 0x10e   : > { %2040 = vst.msk [vmem:[#allocation2 + $0x8] sm:$0xf] %vm2038_vm10, %v1945_v14  ;;  %1954 = vrot.lane.b32.xlu1 %v1643_v3, %s4344_s10  ;;  %v3196_v3 = vld [vmem:[%s4785_s9 + $0x88] sm:$0xf]  ;;  %v2612_v14 = vld [vmem:[%s4785_s9 + $0x2c] sm:$0x1]  ;;  %v2734_v38 = vsel %vm4417_vm2, %v2729_v23, %v2733_v11 }
 0x10f   : > { %1427 = vrot.lane.b32.xlu0 %v1340_v4, %s4343_s6  ;;  %v2414_v4 = vld [vmem:[%s4785_s9 + $0x24] sm:$0xf]  ;;  %v3337_v8 = vrot.slane %v3196_v3, 5  ;;  %3409 = vst.msk [vmem:[#allocation2 + $0x3c] sm:$0xf] %vm380_vm3, %v3285_v17  ;;  %v2741_v24 = vshll.u32 %v2612_v14, 16  ;;  %v2930_v46 = vor.u32 %v2929_v31, %v2925_v29 }
 0x110   : > { %v2280_v19 = vpop.permute.xlu1 %2279  ;;  %v2935_v59 = vrot.slane %v2933_v47, 5  ;;  %v4283_v14 = vld [vmem:[#allocation2 + $0x4] ss:$8 sps:$4 sm:$0xff]   ;;  %v1342_v31 = vld [vmem:[%s4715_s30 + $0x94] sm:$0xf] }
 0x111   : > { %2376 = vst.msk [vmem:[#allocation2] sm:$0xf] %vm2375_vm11, %v2280_v19  ;;  %v1977_v26 = vpop.permute.xlu0 %1976  ;;  %v3338_v18 = vsel %vm4561_vm6, %v4155_v7, %v3337_v8  ;;  %v2430_v19 = vld [vmem:[%s4785_s9 + $0x84] sm:$0xf]  ;;  %v2743_v45 = vrot.slane %v2741_v24, 5  ;;  %v2931_v50 = vrot.slane %v2930_v46, 4  ;;  %4202 = vmatprep.mubr.msk.bf16.mxu0 %vm3689_vm14, %v4283_v14 }
 0x112   : > { %2056 = vst.msk [vmem:[#allocation2 + $0x88] sm:$0xf] %vm2038_vm10, %v1977_v26  ;;  %1986 = vrot.lane.b32.xlu1 %v1835_v15, %s4344_s10  ;;  %v2737_v15 = vrot.slane %v2735_v57, 4  ;;  %v3339_v26 = vrot.slane %v3337_v8, 4  ;;  %v1548_v24 = vld [vmem:[%s4715_s30 + $0x98] sm:$0x1] }
 0x113   : > { %1956 = vrot.lane.b32.xlu0 %v1653_v20, %s4344_s10  ;;  %v2415_v20 = vld [vmem:[%s4785_s9 + $0x28] sm:$0xf]  ;;  %3424 = vst.msk [vmem:[#allocation2 + $0xb4] sm:$0xf] %vm380_vm3, %v3338_v18  ;;  %v2936_v6 = vsel %vm4417_vm2, %v2931_v50, %v2935_v59 }
 0x114   : > { %v2312_v36 = vpop.permute.xlu1 %2311  ;;  %v2738_v30 = vor.u32 %v2737_v15, %v2733_v11  ;;  %v1341_v15 = vld [vmem:[%s4715_s30 + $0x90] sm:$0xf] }
 0x115   : > { %2392 = vst.msk [vmem:[#allocation2 + $0x80] sm:$0xf] %vm2375_vm11, %v2312_v36  ;;  %v2282_v40 = vpop.permute.xlu0 %2281  ;;  %v2921_v36 = vrot.slane %v2920_v21, 4 }
 0x116   : > { %2377 = vst.msk [vmem:[#allocation2 + $0x8] sm:$0xf] %vm2375_vm11, %v2282_v40  ;;  %2291 = vrot.lane.b32.xlu1 %v2191_v33, %s4345_s11  ;;  %v3340_v33 = vrot.slane %v3197_v25, 5  ;;  %v1523_v40 = vld [vmem:[%s4715_s30 + $0x34] sm:$0xf]  ;;  %v2739_v44 = vrot.slane %v2738_v30, 4 }
 0x117   : > { %1988 = vrot.lane.b32.xlu0 %v1845_v37, %s4344_s10  ;;  %v1664_v52 = vshll.u32 %v1523_v40, 16  ;;  %v1668_v60 = vshrl.u32 %v1523_v40, 16 }
 0x118   : > { %v2473_v54 = vpop.permute.xlu1 %2472  ;;  %v3341_v37 = vsel %vm4561_vm6, %v3339_v26, %v3340_v33  ;;  %v2083_v33 = vld [vmem:[%s4715_s30 + $0x30] sm:$0xe] }
 0x119   : > { %2569 = vst.msk [vmem:[#allocation2] sm:$0xf] %vm2568_vm12, %v2473_v54  ;;  %v2314_v58 = vpop.permute.xlu0 %2313  ;;  %v1660_v54 = vrot.slane %v1658_v42, 5  ;;  %v1666_v2 = vrot.slane %v1664_v52, 5  ;;  %v1670_v11 = vrot.slane %v1668_v60, 4  ;;  %v4132_v42 = vrot.slane %v2083_v33, 9 }
 0x11a   : > { %2393 = vst.msk [vmem:[#allocation2 + $0x88] sm:$0xf] %vm2375_vm11, %v2314_v58  ;;  %2323 = vrot.lane.b32.xlu1 %v2247_v51, %s4345_s11  ;;  %v2926_v51 = vsel %vm4417_vm2, %v2921_v36, %v2925_v29  ;;  %v2744_v58 = vsel %vm4417_vm2, %v2739_v44, %v2743_v45  ;;  %v4286_v29 = vld [vmem:[#allocation2 + $0x84] ss:$8 sps:$4 sm:$0xff]   ;;  %v2107_v44 = vld [vmem:[%s4715_s30 + $0x90] sm:$0xe] }
 0x11b   : > { %2293 = vrot.lane.b32.xlu0 %v2194_v55, %s4345_s11  ;;  %3425 = vst.msk [vmem:[#allocation2 + $0xbc] sm:$0xf] %vm380_vm3, %v3341_v37  ;;  %v1847_v55 = vshrl.u32 %v1546_v48, 16  ;;  %v1661_v1 = vor.u32 %v1660_v54, %v1657_v53  ;;  %v1671_v21 = vor.u32 %v1670_v11, %v1666_v2  ;;  %4210 = vmatprep.mubr.msk.bf16.mxu1 %vm3689_vm14, %v4286_v29  ;;  %v2084_v37 = vld [vmem:[%s4715_s30 + $0x34] sm:$0xf]  ;;  %v4140_v54 = vrot.slane %v2107_v44, 9 }
 0x11c   : > { %v2505_v9 = vpop.permute.xlu1 %2504  ;;  %v2108_v45 = vld [vmem:[%s4715_s30 + $0x94] sm:$0xf]  ;;  %v2085_v53 = vld [vmem:[%s4715_s30 + $0x38] sm:$0x1]  ;;  %v3198_v29 = vld [vmem:[%s4785_s9 + $0x90] sm:$0xe] }
 0x11d   : > { %2585 = vst.msk [vmem:[#allocation2 + $0x80] sm:$0xf] %vm2568_vm12, %v2505_v9  ;;  %v2475_v16 = vpop.permute.xlu0 %2474  ;;  %v1849_v3 = vrot.slane %v1847_v55, 4  ;;  %v1524_v9 = vld [vmem:[%s4715_s30 + $0x38] sm:$0x1]  ;;  %v1662_v17 = vrot.slane %v1661_v1, 4 }
 0x11e   : > { %2570 = vst.msk [vmem:[#allocation2 + $0x8] sm:$0xf] %vm2568_vm12, %v2475_v16  ;;  %2484 = vrot.lane.b32.xlu1 %v2414_v4, %s4347_s16  ;;  %v1852_v4 = vrot.slane %v1850_v56, 5  ;;  %v1326_v16 = vld [vmem:[%s4715_s30 + $0x34] sm:$0xf]  ;;  %v1674_v23 = vshll.u32 %v1524_v9, 16 }
 0x11f   : > { %2325 = vrot.lane.b32.xlu0 %v2250_v63, %s4345_s11  ;;  %v1547_v63 = vld [vmem:[%s4715_s30 + $0x94] sm:$0xf]  ;;  %v1667_v30 = vsel %vm4417_vm2, %v1662_v17, %v1666_v2  ;;  %v1672_v35 = vrot.slane %v1671_v21, 4  ;;  %v2253_v55 = vrot.slane %v2108_v45, 5  ;;  %v2637_v56 = vld [vmem:[%s4785_s9 + $0x90] sm:$0xf] }
 0x120   : > { %v3034_v28 = vpop.permute.xlu1 %3033  ;;  %v1856_v7 = vshll.u32 %v1547_v63, 16  ;;  %v1860_v8 = vshrl.u32 %v1547_v63, 16  ;;  %v1853_v18 = vor.u32 %v1852_v4, %v1849_v3  ;;  %v1676_v36 = vrot.slane %v1674_v23, 5  ;;  %v2614_v2 = vld [vmem:[%s4785_s9 + $0x34] sm:$0xf] }
 0x121   : > { %3130 = vst.msk [vmem:[#allocation2] sm:$0xf] %vm3129_vm13, %v3034_v28  ;;  %v2507_v34 = vpop.permute.xlu0 %2506  ;;  %v2938_v3 = vshrl.u32 %v2637_v56, 16  ;;  %v2941_v4 = vshll.u32 %v2637_v56, 16  ;;  %v2255_v17 = vrot.slane %v2253_v55, 4 }
 0x122   : > { %2586 = vst.msk [vmem:[#allocation2 + $0x88] sm:$0xf] %vm2568_vm12, %v2507_v34  ;;  %2516 = vrot.lane.b32.xlu1 %v2430_v19, %s4347_s16  ;;  %v1862_v25 = vrot.slane %v1860_v8, 4  ;;  %v1854_v32 = vrot.slane %v1853_v18, 4  ;;  %v1677_v47 = vsel %vm4417_vm2, %v1672_v35, %v1676_v36  ;;  %v3175_v8 = vld [vmem:[%s4785_s9 + $0x34] sm:$0xf] }
 0x123   : > { %2486 = vrot.lane.b32.xlu0 %v2415_v20, %s4347_s16  ;;  %v1858_v20 = vrot.slane %v1856_v7, 5  ;;  %v3174_v7 = vld [vmem:[%s4785_s9 + $0x30] sm:$0xe]  ;;  %v3288_v14 = vrot.slane %v3175_v8, 5  ;;  %v2755_v18 = vshll.u32 %v2614_v2, 16  ;;  %v2940_v21 = vrot.slane %v2938_v3, 4 }
 0x124   : > { %v3066_v43 = vpop.permute.xlu1 %3065  ;;  %v2943_v23 = vrot.slane %v2941_v4, 5  ;;  %v2432_v44 = vld [vmem:[%s4785_s9 + $0x90] sm:$0xf]  ;;  %v2417_v56 = vld [vmem:[%s4785_s9 + $0x34] sm:$0xf] }
 0x125   : > { %3146 = vst.msk [vmem:[#allocation2 + $0x80] sm:$0xf] %vm3129_vm13, %v3066_v43  ;;  %v3036_v49 = vpop.permute.xlu0 %3035  ;;  %v1859_v41 = vsel %vm4417_vm2, %v1854_v32, %v1858_v20  ;;  %v2197_v43 = vrot.slane %v2084_v37, 5  ;;  %v3290_v32 = vrot.slane %v3288_v14, 4  ;;  %v2757_v36 = vrot.slane %v2755_v18, 5 }
 0x126   : > { %3131 = vst.msk [vmem:[#allocation2 + $0x8] sm:$0xf] %vm3129_vm13, %v3036_v49  ;;  %3045 = vrot.lane.b32.xlu1 %v2734_v38, %s4348_s26  ;;  %v1863_v38 = vor.u32 %v1862_v25, %v1858_v20  ;;  %v2944_v45 = vor.u32 %v2943_v23, %v2940_v21  ;;  %v2433_v3 = vld [vmem:[%s4785_s9 + $0x94] sm:$0xf]  ;;  %v1525_v8 = vld [vmem:[%s4715_s30 + $0x3c] sm:$0xf] }
 0x127   : > { %2518 = vrot.lane.b32.xlu0 %v2431_v39, %s4347_s16  ;;  %v1866_v39 = vshll.u32 %v1548_v24, 16  ;;  %v2199_v63 = vrot.slane %v2197_v43, 4  ;;  %v1549_v21 = vld [vmem:[%s4715_s30 + $0x9c] sm:$0xf] }
 0x128   : > { %v1386_v57 = vpop.permute.xlu1 %1385  ;;  %v1864_v48 = vrot.slane %v1863_v38, 4  ;;  %v3199_v38 = vld [vmem:[%s4785_s9 + $0x94] sm:$0xf] }
 0x129   : > { %1480 = vst.msk [vmem:[#allocation2 + $0x10] sm:$0xf] %vm1477_vm9, %v1386_v57  ;;  %v3068_v61 = vpop.permute.xlu0 %3067  ;;  %v1868_v49 = vrot.slane %v1866_v39, 5  ;;  %v2198_v57 = vsel %vm4561_vm6, %v4132_v42, %v2197_v43  ;;  %v4156_v39 = vrot.slane %v3198_v29, 9  ;;  %v3344_v43 = vrot.slane %v3199_v38, 5 }
 0x12a   : > { %3147 = vst.msk [vmem:[#allocation2 + $0x88] sm:$0xf] %vm3129_vm13, %v3068_v61  ;;  %3077 = vrot.lane.b32.xlu1 %v2926_v51, %s4348_s26  ;;  %v2613_v51 = vld [vmem:[%s4785_s9 + $0x30] sm:$0xf]  ;;  %v1884_v29 = vshrl.u32 %v1550_v10, 16 }
 0x12b   : > { %3047 = vrot.lane.b32.xlu0 %v2744_v58, %s4348_s26  ;;  %v2109_v58 = vld [vmem:[%s4715_s30 + $0x98] sm:$0x1]  ;;  %v2746_v50 = vshrl.u32 %v2613_v51, 16  ;;  %v2749_v59 = vshll.u32 %v2613_v51, 16  ;;  %v1869_v61 = vsel %vm4417_vm2, %v1864_v48, %v1868_v49 }
 0x12c   : > { %v1418_v5 = vpop.permute.xlu1 %1417  ;;  %v3200_v48 = vld [vmem:[%s4785_s9 + $0x98] sm:$0x1] }
 0x12d   : > { %1496 = vst.msk [vmem:[#allocation2 + $0x90] sm:$0xf] %vm1477_vm9, %v1418_v5  ;;  %v1388_v12 = vpop.permute.xlu0 %1387  ;;  %v4281_v13 = vld [vmem:[#allocation2] ss:$8 sps:$4 sm:$0xff]   ;;  %v2254_v5 = vsel %vm4561_vm6, %v4140_v54, %v2253_v55  ;;  %v2748_v9 = vrot.slane %v2746_v50, 4  ;;  %v2751_v11 = vrot.slane %v2749_v59, 5 }
 0x12e   : > { %1481 = vst.msk [vmem:[#allocation2 + $0x18] sm:$0xf] %vm1477_vm9, %v1388_v12  ;;  %1397 = vrot.lane.b32.xlu1 %v1325_v0, %s4343_s6  ;;  %3771 = vmatmul.mubr.bf16.vlgmr.msra.gmra.mxu0 %v4281_v13  ;;  %v2200_v0 = vrot.slane %v2085_v53, 5  ;;  %v2638_v12 = vld [vmem:[%s4785_s9 + $0x94] sm:$0xf]  ;;  %v4148_v13 = vrot.slane %v3174_v7, 9 }
 0x12f   : > { %3079 = vrot.lane.b32.xlu0 %v2936_v6, %s4348_s26  ;;  %v2256_v6 = vrot.slane %v2109_v58, 5  ;;  %v2947_v25 = vshll.u32 %v2638_v12, 16  ;;  %v2639_v51 = vld [vmem:[%s4785_s9 + $0x98] sm:$0x1]  ;;  %v3346_v53 = vrot.slane %v3344_v43, 4  ;;  %v3347_v54 = vrot.slane %v3200_v48, 5 }
 0x130   : > { %v1947_v19 = vpop.permute.xlu1 %1946  ;;  %v3289_v24 = vsel %vm4561_vm6, %v4148_v13, %v3288_v14 }
 0x131   : > { %2041 = vst.msk [vmem:[#allocation2 + $0x10] sm:$0xf] %vm2038_vm10, %v1947_v19  ;;  %v1420_v26 = vpop.permute.xlu0 %1419  ;;  %v4284_v28 = vld [vmem:[#allocation2 + $0x80] ss:$8 sps:$4 sm:$0xff]   ;;  %v2759_v19 = vshrl.u32 %v2614_v2, 16  ;;  %v2257_v35 = vsel %vm4561_vm6, %v2255_v17, %v2256_v6  ;;  %v3348_v59 = vsel %vm4561_vm6, %v3346_v53, %v3347_v54 }
 0x132   : > { %1497 = vst.msk [vmem:[#allocation2 + $0x98] sm:$0xf] %vm1477_vm9, %v1420_v26  ;;  %1429 = vrot.lane.b32.xlu1 %v1341_v15, %s4343_s6  ;;  %3835 = vmatmul.mubr.bf16.vlgmr.msra.gmra.mxu1 %v4284_v28  ;;  %v2951_v26 = vshrl.u32 %v2638_v12, 16  ;;  %v3176_v28 = vld [vmem:[%s4785_s9 + $0x38] sm:$0x1] }
 0x133   : > { %1399 = vrot.lane.b32.xlu0 %v1326_v16, %s4343_s6  ;;  %v2201_v16 = vsel %vm4561_vm6, %v2199_v63, %v2200_v0  ;;  %3410 = vst.msk [vmem:[#allocation2 + $0x44] sm:$0xf] %vm380_vm3, %v3289_v24  ;;  %v3291_v33 = vrot.slane %v3176_v28, 5  ;;  %v2761_v37 = vrot.slane %v2759_v19, 4  ;;  %3427 = vst.msk [vmem:[#allocation2 + $0xcc] sm:$0xf] %vm380_vm3, %v3348_v59 }
 0x134   : > { %v1979_v34 = vpop.permute.xlu1 %1978  ;;  %v2945_v0 = vrot.slane %v2944_v45, 4  ;;  %v1526_v6 = vld [vmem:[%s4715_s30 + $0x40] sm:$0xf]  ;;  %v1679_v19 = vshrl.u32 %v1525_v8, 16  ;;  %v1880_v28 = vshll.u32 %v1550_v10, 16  ;;  %v1886_v45 = vrot.slane %v1884_v29, 4 }
 0x135   : > { %2057 = vst.msk [vmem:[#allocation2 + $0x90] sm:$0xf] %vm2038_vm10, %v1979_v34  ;;  %v1949_v40 = vpop.permute.xlu0 %1948  ;;  %v3292_v42 = vsel %vm4561_vm6, %v3290_v32, %v3291_v33 }
 0x136   : > { %2042 = vst.msk [vmem:[#allocation2 + $0x18] sm:$0xf] %vm2038_vm10, %v1949_v40  ;;  %1958 = vrot.lane.b32.xlu1 %v1667_v30, %s4344_s10  ;;  %v2416_v30 = vld [vmem:[%s4785_s9 + $0x30] sm:$0xf]  ;;  %v1681_v32 = vrot.slane %v1679_v19, 4 }
 0x137   : > { %1431 = vrot.lane.b32.xlu0 %v1342_v31, %s4343_s6  ;;  %v2752_v31 = vor.u32 %v2751_v11, %v2748_v9  ;;  %3411 = vst.msk [vmem:[#allocation2 + $0x4c] sm:$0xf] %vm380_vm3, %v3292_v42  ;;  %v1171_v9 = vrot.slane %v1169_v22, 4 }
 0x138   : > { %v2284_v46 = vpop.permute.xlu1 %2283 }
 0x139   : > { %2378 = vst.msk [vmem:[#allocation2 + $0x10] sm:$0xf] %vm2375_vm11, %v2284_v46  ;;  %v1981_v52 = vpop.permute.xlu0 %1980  ;;  %v2949_v46 = vrot.slane %v2947_v25, 5  ;;  %v2753_v49 = vrot.slane %v2752_v31, 4  ;;  %v1527_v31 = vld [vmem:[%s4715_s30 + $0x44] sm:$0x1] }
 0x13a   : > { %2058 = vst.msk [vmem:[#allocation2 + $0x98] sm:$0xf] %vm2038_vm10, %v1981_v52  ;;  %1990 = vrot.lane.b32.xlu1 %v1859_v41, %s4344_s10  ;;  %v2615_v41 = vld [vmem:[%s4785_s9 + $0x38] sm:$0x1]  ;;  %v3345_v52 = vsel %vm4561_vm6, %v4156_v39, %v3344_v43  ;;  %v4287_v39 = vld [vmem:[#allocation2 + $0x14] ss:$8 sps:$4 sm:$0xff]  }
 0x13b   : > { %1960 = vrot.lane.b32.xlu0 %v1677_v47, %s4344_s10  ;;  %v2953_v47 = vrot.slane %v2951_v26, 4  ;;  %v2765_v58 = vshll.u32 %v2615_v41, 16  ;;  %3426 = vst.msk [vmem:[#allocation2 + $0xc4] sm:$0xf] %vm380_vm3, %v3345_v52  ;;  %v2758_v63 = vsel %vm4417_vm2, %v2753_v49, %v2757_v36  ;;  %v2950_v14 = vsel %vm4417_vm2, %v2945_v0, %v2949_v46  ;;  %4203 = vmatprep.mubr.msk.bf16.mxu0 %vm3689_vm14, %v4287_v39  ;;  %v1328_v41 = vld [vmem:[%s4715_s30 + $0x40] sm:$0xf] }
 0x13c   : > { %v2316_v60 = vpop.permute.xlu1 %2315  ;;  %v1698_v43 = vshll.u32 %v1527_v31, 16  ;;  %v1551_v49 = vld [vmem:[%s4715_s30 + $0xa4] sm:$0x1]  ;;  %v1343_v0 = vld [vmem:[%s4715_s30 + $0x9c] sm:$0xf] }
 0x13d   : > { %2394 = vst.msk [vmem:[#allocation2 + $0x90] sm:$0xf] %vm2375_vm11, %v2316_v60  ;;  %v2286_v1 = vpop.permute.xlu0 %2285  ;;  %v2954_v60 = vor.u32 %v2953_v47, %v2949_v46  ;;  %v1327_v47 = vld [vmem:[%s4715_s30 + $0x3c] sm:$0xf] }
 0x13e   : > { %2379 = vst.msk [vmem:[#allocation2 + $0x18] sm:$0xf] %vm2375_vm11, %v2286_v1  ;;  %2295 = vrot.lane.b32.xlu1 %v2198_v57, %s4345_s11  ;;  %v2762_v57 = vor.u32 %v2761_v37, %v2757_v36  ;;  %v1018_v1 = vld [vmem:[%s4406_s25 + $0xa4] sm:$0x1]  ;;  %v1700_v59 = vrot.slane %v1698_v43, 5 }
 0x13f   : > { %1992 = vrot.lane.b32.xlu0 %v1869_v61, %s4344_s10  ;;  %v2957_v61 = vshll.u32 %v2639_v51, 16  ;;  %v1172_v11 = vrot.slane %v1018_v1, 5  ;;  %v2955_v12 = vrot.slane %v2954_v60, 4 }
 0x140   : > { %v2477_v15 = vpop.permute.xlu1 %2476  ;;  %v2763_v4 = vrot.slane %v2762_v57, 4 }
 0x141   : > { %2571 = vst.msk [vmem:[#allocation2 + $0x10] sm:$0xf] %vm2568_vm12, %v2477_v15  ;;  %v2318_v20 = vpop.permute.xlu0 %2317  ;;  %v2959_v13 = vrot.slane %v2957_v61, 5  ;;  %v1688_v15 = vshll.u32 %v1526_v6, 16  ;;  %v1173_v23 = vsel %vm4561_vm6, %v1171_v9, %v1172_v11  ;;  %v1890_v61 = vshll.u32 %v1551_v49, 16 }
 0x142   : > { %2395 = vst.msk [vmem:[#allocation2 + $0x98] sm:$0xf] %vm2375_vm11, %v2318_v20  ;;  %2327 = vrot.lane.b32.xlu1 %v2254_v5, %s4345_s11  ;;  %v2767_v5 = vrot.slane %v2765_v58, 5  ;;  %v1682_v20 = vshll.u32 %v1525_v8, 16  ;;  %v1344_v58 = vld [vmem:[%s4715_s30 + $0xa0] sm:$0xf] }
 0x143   : > { %2297 = vrot.lane.b32.xlu0 %v2201_v16, %s4345_s11  ;;  %v1692_v16 = vshrl.u32 %v1526_v6, 16  ;;  %v2960_v24 = vsel %vm4417_vm2, %v2955_v12, %v2959_v13  ;;  %v5378_v25 = vrot.slane %v1688_v15, 5  ;;  %v2088_v13 = vld [vmem:[%s4715_s30 + $0x44] sm:$0x1] }
 0x144   : > { %v2509_v34 = vpop.permute.xlu1 %2508  ;;  %v2768_v18 = vsel %vm4417_vm2, %v2763_v4, %v2767_v5  ;;  %v1684_v33 = vrot.slane %v1682_v20, 5  ;;  %v2207_v20 = vrot.slane %v2088_v13, 5  ;;  %v3203_v13 = vld [vmem:[%s4785_s9 + $0xa4] sm:$0x1] }
 0x145   : > { %2587 = vst.msk [vmem:[#allocation2 + $0x90] sm:$0xf] %vm2568_vm12, %v2509_v34  ;;  %v2479_v40 = vpop.permute.xlu0 %2478  ;;  %v1694_v26 = vrot.slane %v1692_v16, 4  ;;  %v1871_v34 = vshrl.u32 %v1549_v21, 16  ;;  %v2086_v16 = vld [vmem:[%s4715_s30 + $0x3c] sm:$0xe] }
 0x146   : > { %2572 = vst.msk [vmem:[#allocation2 + $0x18] sm:$0xf] %vm2568_vm12, %v2479_v40  ;;  %2488 = vrot.lane.b32.xlu1 %v2416_v30, %s4347_s16  ;;  %v1685_v48 = vor.u32 %v1684_v33, %v1681_v32 }
 0x147   : > { %2329 = vrot.lane.b32.xlu0 %v2257_v35, %s4345_s11  ;;  %v1874_v35 = vshll.u32 %v1549_v21, 16  ;;  %v1695_v42 = vor.u32 %v1694_v26, %v5378_v25  ;;  %v1873_v51 = vrot.slane %v1871_v34, 4  ;;  %v2110_v26 = vld [vmem:[%s4715_s30 + $0x9c] sm:$0xe] }
 0x148   : > { %v3038_v55 = vpop.permute.xlu1 %3037  ;;  %v1686_v1 = vrot.slane %v1685_v48, 4 }
 0x149   : > { %3132 = vst.msk [vmem:[#allocation2 + $0x10] sm:$0xf] %vm3129_vm13, %v3038_v55  ;;  %v2511_v50 = vpop.permute.xlu0 %2510  ;;  %v1876_v52 = vrot.slane %v1874_v35, 5 }
 0x14a   : > { %2588 = vst.msk [vmem:[#allocation2 + $0x98] sm:$0xf] %vm2568_vm12, %v2511_v50  ;;  %2520 = vrot.lane.b32.xlu1 %v2432_v44, %s4347_s16  ;;  %v5388_v44 = vrot.slane %v1880_v28, 5  ;;  %v1696_v50 = vrot.slane %v1695_v42, 4  ;;  %v1691_v11 = vsel %vm4417_vm2, %v1686_v1, %v5378_v25  ;;  %v2112_v25 = vld [vmem:[%s4715_s30 + $0xa4] sm:$0x1] }
 0x14b   : > { %2490 = vrot.lane.b32.xlu0 %v2417_v56, %s4347_s16  ;;  %v4289_v56 = vld [vmem:[#allocation2 + $0x94] ss:$8 sps:$4 sm:$0xff]   ;;  %v2263_v35 = vrot.slane %v2112_v25, 5  ;;  %v2419_v1 = vld [vmem:[%s4785_s9 + $0x40] sm:$0xf] }
 0x14c   : > { %v3070_v2 = vpop.permute.xlu1 %3069  ;;  %4211 = vmatprep.mubr.msk.bf16.mxu1 %vm3689_vm14, %v4289_v56  ;;  %v1887_v60 = vor.u32 %v1886_v45, %v5388_v44  ;;  %v1701_v5 = vsel %vm4417_vm2, %v1696_v50, %v1700_v59  ;;  %v2618_v45 = vld [vmem:[%s4785_s9 + $0x44] sm:$0x1] }
 0x14d   : > { %3148 = vst.msk [vmem:[#allocation2 + $0x90] sm:$0xf] %vm3129_vm13, %v3070_v2  ;;  %v3040_v7 = vpop.permute.xlu0 %3039  ;;  %v1877_v2 = vor.u32 %v1876_v52, %v1873_v51  ;;  %v3179_v56 = vld [vmem:[%s4785_s9 + $0x44] sm:$0x1] }
 0x14e   : > { %3133 = vst.msk [vmem:[#allocation2 + $0x18] sm:$0xf] %vm3129_vm13, %v3040_v7  ;;  %3049 = vrot.lane.b32.xlu1 %v2758_v63, %s4348_s26  ;;  %v1888_v6 = vrot.slane %v1887_v60, 4  ;;  %v1892_v7 = vrot.slane %v1890_v61, 5  ;;  %v3298_v60 = vrot.slane %v3179_v56, 5 }
 0x14f   : > { %2522 = vrot.lane.b32.xlu0 %v2433_v3, %s4347_s16  ;;  %v2087_v3 = vld [vmem:[%s4715_s30 + $0x40] sm:$0xf]  ;;  %v1878_v12 = vrot.slane %v1877_v2, 4  ;;  %v2418_v2 = vld [vmem:[%s4785_s9 + $0x3c] sm:$0xf] }
 0x150   : > { %v1390_v17 = vpop.permute.xlu1 %1389  ;;  %v3436_v37 = vld [vmem:[#allocation2 + $0x10] sm:$0xff]  ;;  %v2204_v8 = vrot.slane %v2087_v3, 5 }
 0x151   : > { %1482 = vst.msk [vmem:[#allocation2 + $0x20] sm:$0xf] %vm1477_vm9, %v1390_v17  ;;  %v3072_v22 = vpop.permute.xlu0 %3071  ;;  %v2617_v17 = vld [vmem:[%s4785_s9 + $0x40] sm:$0xf] }
 0x152   : > { %3149 = vst.msk [vmem:[#allocation2 + $0x98] sm:$0xf] %vm3129_vm13, %v3072_v22  ;;  %3081 = vrot.lane.b32.xlu1 %v2950_v14, %s4348_s26  ;;  %v2111_v14 = vld [vmem:[%s4715_s30 + $0xa0] sm:$0xf]  ;;  %v2206_v19 = vrot.slane %v2204_v8, 4  ;;  %v2779_v29 = vshll.u32 %v2617_v17, 16 }
 0x153   : > { %3051 = vrot.lane.b32.xlu0 %v2768_v18, %s4348_s26  ;;  %v1893_v18 = vsel %vm4417_vm2, %v1888_v6, %v1892_v7  ;;  %v2260_v10 = vrot.slane %v2111_v14, 5  ;;  %v2616_v22 = vld [vmem:[%s4785_s9 + $0x3c] sm:$0xf] }
 0x154   : > { %v1422_v30 = vpop.permute.xlu1 %1421  ;;  %v3452_v54 = vld [vmem:[#allocation2 + $0x90] sm:$0xff]  ;;  %v2770_v31 = vshrl.u32 %v2616_v22, 16  ;;  %v2773_v32 = vshll.u32 %v2616_v22, 16  ;;  %v2208_v33 = vsel %vm4561_vm6, %v2206_v19, %v2207_v20  ;;  %v5437_v42 = vrot.slane %v2779_v29, 5 }
 0x155   : > { %1498 = vst.msk [vmem:[#allocation2 + $0xa0] sm:$0xf] %vm1477_vm9, %v1422_v30  ;;  %v1392_v36 = vpop.permute.xlu0 %1391  ;;  %v3437_v38 = vld [vmem:[#allocation2 + $0x18] sm:$0xff]  ;;  %v2783_v30 = vshrl.u32 %v2617_v17, 16  ;;  %v2262_v34 = vrot.slane %v2260_v10, 4  ;;  %v3354_v19 = vrot.slane %v3203_v13, 5 }
 0x156   : > { %1483 = vst.msk [vmem:[#allocation2 + $0x28] sm:$0xf] %vm1477_vm9, %v1392_v36  ;;  %1242 = vrot.lane.b32.xlu1 %v1173_v23, %s4342_s27  ;;  %v4163_v40 = vcombine.low %v3436_v37, %v3437_v38  ;;  %v1883_v23 = vsel %vm4417_vm2, %v1878_v12, %v5388_v44  ;;  %v4141_v36 = vrot.slane %v2110_v26, 9  ;;  %v2641_v37 = vld [vmem:[%s4785_s9 + $0xa0] sm:$0xf] }
 0x157   : > { %3083 = vrot.lane.b32.xlu0 %v2960_v24, %s4348_s26  ;;  %v4133_v24 = vrot.slane %v2086_v16, 9  ;;  %v2785_v43 = vrot.slane %v2783_v30, 4  ;;  %v3178_v44 = vld [vmem:[%s4785_s9 + $0x40] sm:$0xf]  ;;  %v2971_v48 = vshll.u32 %v2641_v37, 16  ;;  %v2264_v51 = vsel %vm4561_vm6, %v2262_v34, %v2263_v35 }
 0x158   : > { %v1951_v46 = vpop.permute.xlu1 %1950  ;;  %3779 = vmatmul.mubr.bf16.gmra.mxu0 %v4163_v40  ;;  %v2640_v40 = vld [vmem:[%s4785_s9 + $0x9c] sm:$0xf]  ;;  %v3295_v49 = vrot.slane %v3178_v44, 5  ;;  %v2261_v52 = vsel %vm4561_vm6, %v4141_v36, %v2260_v10  ;;  %v2435_v10 = vld [vmem:[%s4785_s9 + $0xa0] sm:$0xf] }
 0x159   : > { %2043 = vst.msk [vmem:[#allocation2 + $0x20] sm:$0xf] %vm2038_vm10, %v1951_v46  ;;  %v1424_v53 = vpop.permute.xlu0 %1423  ;;  %v3453_v55 = vld [vmem:[#allocation2 + $0x98] sm:$0xff]  ;;  %v2205_v39 = vsel %vm4561_vm6, %v4133_v24, %v2204_v8  ;;  %v2772_v46 = vrot.slane %v2770_v31, 4  ;;  %v5456_v3 = vrot.slane %v2971_v48, 5  ;;  %v2786_v7 = vor.u32 %v2785_v43, %v5437_v42 }
 0x15a   : > { %1499 = vst.msk [vmem:[#allocation2 + $0xa8] sm:$0xf] %vm1477_vm9, %v1424_v53  ;;  %1403 = vrot.lane.b32.xlu1 %v1328_v41, %s4343_s6  ;;  %v4179_v57 = vcombine.low %v3452_v54, %v3453_v55  ;;  %v2975_v53 = vshrl.u32 %v2641_v37, 16  ;;  %v2962_v54 = vshrl.u32 %v2640_v40, 16  ;;  %v3177_v55 = vld [vmem:[%s4785_s9 + $0x3c] sm:$0xe] }
 0x15b   : > { %1401 = vrot.lane.b32.xlu0 %v1327_v47, %s4343_s6  ;;  %v2775_v47 = vrot.slane %v2773_v32, 5  ;;  %v4149_v50 = vrot.slane %v3177_v55, 9  ;;  %v3297_v59 = vrot.slane %v3295_v49, 4  ;;  %v3201_v12 = vld [vmem:[%s4785_s9 + $0x9c] sm:$0xe] }
 0x15c   : > { %v1983_v63 = vpop.permute.xlu1 %1982  ;;  %3843 = vmatmul.mubr.bf16.gmra.mxu1 %v4179_v57  ;;  %v4157_v17 = vrot.slane %v3201_v12, 9  ;;  %v2434_v30 = vld [vmem:[%s4785_s9 + $0x9c] sm:$0xf]  ;;  %v1529_v44 = vld [vmem:[%s4715_s30 + $0x4c] sm:$0xf] }
 0x15d   : > { %2059 = vst.msk [vmem:[#allocation2 + $0xa0] sm:$0xf] %vm2038_vm10, %v1983_v63  ;;  %v1953_v4 = vpop.permute.xlu0 %1952  ;;  %v2789_v63 = vshll.u32 %v2618_v45, 16  ;;  %v2776_v8 = vor.u32 %v2775_v47, %v2772_v46  ;;  %v1528_v46 = vld [vmem:[%s4715_s30 + $0x48] sm:$0xf] }
 0x15e   : > { %2044 = vst.msk [vmem:[#allocation2 + $0x28] sm:$0xf] %vm2038_vm10, %v1953_v4  ;;  %1435 = vrot.lane.b32.xlu1 %v1344_v58, %s4343_s6  ;;  %v2965_v58 = vshll.u32 %v2640_v40, 16  ;;  %v3296_v4 = vsel %vm4561_vm6, %v4149_v50, %v3295_v49  ;;  %v1703_v55 = vshrl.u32 %v1528_v46, 16  ;;  %v1706_v56 = vshll.u32 %v1528_v46, 16 }
 0x15f   : > { %1433 = vrot.lane.b32.xlu0 %v1343_v0, %s4343_s6  ;;  %v3202_v0 = vld [vmem:[%s4785_s9 + $0xa0] sm:$0xf]  ;;  %3412 = vst.msk [vmem:[#allocation2 + $0x54] sm:$0xf] %vm380_vm3, %v3296_v4  ;;  %v2791_v24 = vrot.slane %v2789_v63, 5  ;;  %v2777_v31 = vrot.slane %v2776_v8, 4 }
 0x160   : > { %v2288_v9 = vpop.permute.xlu1 %2287  ;;  %v3351_v6 = vrot.slane %v3202_v0, 5  ;;  %v2967_v16 = vrot.slane %v2965_v58, 5  ;;  %v1552_v58 = vld [vmem:[%s4715_s30 + $0xa8] sm:$0xf]  ;;  %v1705_v8 = vrot.slane %v1703_v55, 4 }
 0x161   : > { %2380 = vst.msk [vmem:[#allocation2 + $0x20] sm:$0xf] %vm2375_vm11, %v2288_v9  ;;  %v1985_v15 = vpop.permute.xlu0 %1984  ;;  %v2977_v9 = vrot.slane %v2975_v53, 4  ;;  %v1898_v12 = vshll.u32 %v1552_v58, 16 }
 0x162   : > { %2060 = vst.msk [vmem:[#allocation2 + $0xa8] sm:$0xf] %vm2038_vm10, %v1985_v15  ;;  %1964 = vrot.lane.b32.xlu1 %v1701_v5, %s4344_s10  ;;  %v3299_v5 = vsel %vm4561_vm6, %v3297_v59, %v3298_v60  ;;  %v2642_v15 = vld [vmem:[%s4785_s9 + $0xa4] sm:$0x1]  ;;  %v3352_v22 = vsel %vm4561_vm6, %v4157_v17, %v3351_v6 }
 0x163   : > { %1962 = vrot.lane.b32.xlu0 %v1691_v11, %s4344_s10  ;;  %v2964_v11 = vrot.slane %v2962_v54, 4  ;;  %3413 = vst.msk [vmem:[#allocation2 + $0x5c] sm:$0xf] %vm380_vm3, %v3299_v5  ;;  %v2978_v25 = vor.u32 %v2977_v9, %v5456_v3  ;;  %v2981_v26 = vshll.u32 %v2642_v15, 16  ;;  %3428 = vst.msk [vmem:[#allocation2 + $0xd4] sm:$0xf] %vm380_vm3, %v3352_v22 }
 0x164   : > { %v2320_v21 = vpop.permute.xlu1 %2319  ;;  %v1708_v9 = vrot.slane %v1706_v56, 5 }
 0x165   : > { %2396 = vst.msk [vmem:[#allocation2 + $0xa0] sm:$0xf] %vm2375_vm11, %v2320_v21  ;;  %v2290_v28 = vpop.permute.xlu0 %2289  ;;  %v2968_v32 = vor.u32 %v2967_v16, %v2964_v11  ;;  %v2979_v36 = vrot.slane %v2978_v25, 4  ;;  %v2983_v37 = vrot.slane %v2981_v26, 5  ;;  %v1895_v11 = vshrl.u32 %v1552_v58, 16 }
 0x166   : > { %2381 = vst.msk [vmem:[#allocation2 + $0x28] sm:$0xf] %vm2375_vm11, %v2290_v28  ;;  %1996 = vrot.lane.b32.xlu1 %v1893_v18, %s4344_s10  ;;  %v3353_v18 = vrot.slane %v3351_v6, 4  ;;  %v1020_v28 = vld [vmem:[%s4406_s25 + $0xac] sm:$0xf] }
 0x167   : > { %1994 = vrot.lane.b32.xlu0 %v1883_v23, %s4344_s10  ;;  %v2787_v23 = vrot.slane %v2786_v7, 4  ;;  %v1176_v34 = vrot.slane %v1020_v28, 5  ;;  %v2969_v43 = vrot.slane %v2968_v32, 4  ;;  %v1530_v7 = vld [vmem:[%s4715_s30 + $0x50] sm:$0x1]  ;;  %v1897_v26 = vrot.slane %v1895_v11, 4 }
 0x168   : > { %v2481_v38 = vpop.permute.xlu1 %2480  ;;  %v3355_v21 = vsel %vm4561_vm6, %v3353_v18, %v3354_v19  ;;  %v4293_v16 = vld [vmem:[#allocation2 + $0xa4] ss:$8 sps:$4 sm:$0xff]   ;;  %v1554_v25 = vld [vmem:[%s4715_s30 + $0xb0] sm:$0x1]  ;;  %v1900_v28 = vrot.slane %v1898_v12, 5 }
 0x169   : > { %2573 = vst.msk [vmem:[#allocation2 + $0x20] sm:$0xf] %vm2568_vm12, %v2481_v38  ;;  %v2322_v41 = vpop.permute.xlu0 %2321  ;;  %v2792_v35 = vsel %vm4417_vm2, %v2787_v23, %v2791_v24  ;;  %v1021_v38 = vld [vmem:[%s4406_s25 + $0xb0] sm:$0x1]  ;;  %v1178_v47 = vrot.slane %v1176_v34, 4  ;;  %v2974_v54 = vsel %vm4417_vm2, %v2969_v43, %v5456_v3  ;;  %4212 = vmatprep.mubr.msk.bf16.mxu1 %vm3689_vm14, %v4293_v16  ;;  %v1709_v24 = vor.u32 %v1708_v9, %v1705_v8 }
 0x16a   : > { %2397 = vst.msk [vmem:[#allocation2 + $0xa8] sm:$0xf] %vm2375_vm11, %v2322_v41  ;;  %2301 = vrot.lane.b32.xlu1 %v2208_v33, %s4345_s11  ;;  %v2782_v41 = vsel %vm4417_vm2, %v2777_v31, %v5437_v42  ;;  %v1179_v48 = vrot.slane %v1021_v38, 5  ;;  %v2984_v42 = vsel %vm4417_vm2, %v2979_v36, %v2983_v37  ;;  %v1330_v18 = vld [vmem:[%s4715_s30 + $0x4c] sm:$0xf]  ;;  %v1901_v38 = vor.u32 %v1900_v28, %v1897_v26 }
 0x16b   : > { %2299 = vrot.lane.b32.xlu0 %v2205_v39, %s4345_s11  ;;  %3429 = vst.msk [vmem:[#allocation2 + $0xdc] sm:$0xf] %vm380_vm3, %v3355_v21  ;;  %v1019_v39 = vld [vmem:[%s4406_s25 + $0xa8] sm:$0xe]  ;;  %v1710_v37 = vrot.slane %v1709_v24, 4 }
 0x16c   : > { %v2513_v57 = vpop.permute.xlu1 %2512  ;;  %v4126_v49 = vrot.slane %v1019_v39, 9  ;;  %v1180_v0 = vsel %vm4561_vm6, %v1178_v47, %v1179_v48  ;;  %v1329_v23 = vld [vmem:[%s4715_s30 + $0x48] sm:$0xf]  ;;  %v2090_v39 = vld [vmem:[%s4715_s30 + $0x4c] sm:$0xf]  ;;  %v1902_v48 = vrot.slane %v1901_v38, 4 }
 0x16d   : > { %2589 = vst.msk [vmem:[#allocation2 + $0xa0] sm:$0xf] %vm2568_vm12, %v2513_v57  ;;  %v2483_v61 = vpop.permute.xlu0 %2482  ;;  %v1553_v57 = vld [vmem:[%s4715_s30 + $0xac] sm:$0xf]  ;;  %v1345_v36 = vld [vmem:[%s4715_s30 + $0xa8] sm:$0xf] }
 0x16e   : > { %2574 = vst.msk [vmem:[#allocation2 + $0x28] sm:$0xf] %vm2568_vm12, %v2483_v61  ;;  %2333 = vrot.lane.b32.xlu1 %v2264_v51, %s4345_s11  ;;  %v1712_v51 = vshll.u32 %v1529_v44, 16  ;;  %v4291_v61 = vld [vmem:[#allocation2 + $0x24] ss:$8 sps:$4 sm:$0xff]   ;;  %v1904_v4 = vshll.u32 %v1553_v57, 16 }
 0x16f   : > { %2331 = vrot.lane.b32.xlu0 %v2261_v52, %s4345_s11  ;;  %v1716_v52 = vshrl.u32 %v1529_v44, 16  ;;  %4204 = vmatprep.mubr.msk.bf16.mxu0 %vm3689_vm14, %v4291_v61  ;;  %v1908_v5 = vshrl.u32 %v1553_v57, 16  ;;  %v2619_v58 = vld [vmem:[%s4785_s9 + $0x48] sm:$0xf]  ;;  %v2115_v61 = vld [vmem:[%s4715_s30 + $0xb0] sm:$0x1] }
 0x170   : > { %v3042_v14 = vpop.permute.xlu1 %3041  ;;  %v2644_v9 = vld [vmem:[%s4785_s9 + $0xac] sm:$0xf]  ;;  %v3180_v26 = vld [vmem:[%s4785_s9 + $0x48] sm:$0xe]  ;;  %v3182_v28 = vld [vmem:[%s4785_s9 + $0x50] sm:$0x1] }
 0x171   : > { %3134 = vst.msk [vmem:[#allocation2 + $0x20] sm:$0xf] %vm3129_vm13, %v3042_v14  ;;  %v2515_v20 = vpop.permute.xlu0 %2514  ;;  %v1718_v3 = vrot.slane %v1716_v52, 4  ;;  %v1910_v22 = vrot.slane %v1908_v5, 4  ;;  %v2089_v52 = vld [vmem:[%s4715_s30 + $0x48] sm:$0xe] }
 0x172   : > { %2590 = vst.msk [vmem:[#allocation2 + $0xa8] sm:$0xf] %vm2568_vm12, %v2515_v20  ;;  %2494 = vrot.lane.b32.xlu1 %v2419_v1, %s4347_s16  ;;  %v1177_v1 = vsel %vm4561_vm6, %v4126_v49, %v1176_v34  ;;  %v1722_v20 = vshll.u32 %v1530_v7, 16  ;;  %v1914_v34 = vshll.u32 %v1554_v25, 16  ;;  %v2091_v49 = vld [vmem:[%s4715_s30 + $0x50] sm:$0x1] }
 0x173   : > { %2492 = vrot.lane.b32.xlu0 %v2418_v2, %s4347_s16  ;;  %v5516_v2 = vrot.slane %v1712_v51, 5  ;;  %v2214_v56 = vrot.slane %v2091_v49, 5  ;;  %v2270_v7 = vrot.slane %v2115_v61, 5  ;;  %v2999_v24 = vshrl.u32 %v2644_v9, 16  ;;  %v2420_v38 = vld [vmem:[%s4785_s9 + $0x48] sm:$0xf] }
 0x174   : > { %v3074_v29 = vpop.permute.xlu1 %3073  ;;  %v1724_v32 = vrot.slane %v1722_v20, 5  ;;  %v1916_v44 = vrot.slane %v1914_v34, 5  ;;  %v3206_v49 = vld [vmem:[%s4785_s9 + $0xb0] sm:$0x1] }
 0x175   : > { %3150 = vst.msk [vmem:[#allocation2 + $0xa0] sm:$0xf] %vm3129_vm13, %v3074_v29  ;;  %v3044_v33 = vpop.permute.xlu0 %3043  ;;  %v1719_v19 = vor.u32 %v1718_v3, %v5516_v2  ;;  %v1715_v47 = vsel %vm4417_vm2, %v1710_v37, %v5516_v2  ;;  %v2794_v3 = vshrl.u32 %v2619_v58, 16  ;;  %v2421_v37 = vld [vmem:[%s4785_s9 + $0x4c] sm:$0xf] }
 0x176   : > { %3135 = vst.msk [vmem:[#allocation2 + $0x28] sm:$0xf] %vm3129_vm13, %v3044_v33  ;;  %2526 = vrot.lane.b32.xlu1 %v2435_v10, %s4347_s16  ;;  %v5526_v10 = vrot.slane %v1904_v4, 5  ;;  %v2797_v4 = vshll.u32 %v2619_v58, 16 }
 0x177   : > { %2524 = vrot.lane.b32.xlu0 %v2434_v30, %s4347_s16  ;;  %v1346_v30 = vld [vmem:[%s4715_s30 + $0xac] sm:$0xf]  ;;  %v1720_v31 = vrot.slane %v1719_v19, 4  ;;  %v2796_v19 = vrot.slane %v2794_v3, 4 }
 0x178   : > { %v1394_v40 = vpop.permute.xlu1 %1393  ;;  %v3438_v59 = vld [vmem:[#allocation2 + $0x20] sm:$0xff]  ;;  %v1911_v33 = vor.u32 %v1910_v22, %v5526_v10  ;;  %v2799_v20 = vrot.slane %v2797_v4, 5 }
 0x179   : > { %1484 = vst.msk [vmem:[#allocation2 + $0x30] sm:$0xf] %vm1477_vm9, %v1394_v40  ;;  %v3076_v45 = vpop.permute.xlu0 %3075 }
 0x17a   : > { %3151 = vst.msk [vmem:[#allocation2 + $0xa8] sm:$0xf] %vm3129_vm13, %v3076_v45  ;;  %3055 = vrot.lane.b32.xlu1 %v2792_v35, %s4348_s26  ;;  %v1912_v43 = vrot.slane %v1911_v33, 4  ;;  %v2211_v45 = vrot.slane %v2090_v39, 5  ;;  %v3305_v33 = vrot.slane %v3182_v28, 5 }
 0x17b   : > { %3053 = vrot.lane.b32.xlu0 %v2782_v41, %s4348_s26  ;;  %v1725_v41 = vsel %vm4417_vm2, %v1720_v31, %v1724_v32  ;;  %v4150_v31 = vrot.slane %v3180_v26, 9 }
 0x17c   : > { %v1426_v53 = vpop.permute.xlu1 %1425  ;;  %v3454_v14 = vld [vmem:[#allocation2 + $0xa0] sm:$0xff]  ;;  %v2213_v55 = vrot.slane %v2211_v45, 4 }
 0x17d   : > { %1500 = vst.msk [vmem:[#allocation2 + $0xb0] sm:$0xf] %vm1477_vm9, %v1426_v53  ;;  %v1396_v50 = vpop.permute.xlu0 %1395  ;;  %v3439_v60 = vld [vmem:[#allocation2 + $0x28] sm:$0xff] }
 0x17e   : > { %1485 = vst.msk [vmem:[#allocation2 + $0x38] sm:$0xf] %vm1477_vm9, %v1396_v50  ;;  %3087 = vrot.lane.b32.xlu1 %v2984_v42, %s4348_s26  ;;  %v4165_v63 = vcombine.low %v3438_v59, %v3439_v60  ;;  %v2114_v42 = vld [vmem:[%s4715_s30 + $0xac] sm:$0xf]  ;;  %v1907_v59 = vsel %vm4417_vm2, %v1902_v48, %v5526_v10  ;;  %v4134_v60 = vrot.slane %v2089_v52, 9  ;;  %v2215_v5 = vsel %vm4561_vm6, %v2213_v55, %v2214_v56 }
 0x17f   : > { %3085 = vrot.lane.b32.xlu0 %v2974_v54, %s4348_s26  ;;  %v2620_v53 = vld [vmem:[%s4785_s9 + $0x4c] sm:$0xf]  ;;  %v1917_v54 = vsel %vm4417_vm2, %v1912_v43, %v1916_v44  ;;  %v2267_v57 = vrot.slane %v2114_v42, 5  ;;  %v2995_v10 = vshll.u32 %v2644_v9, 16  ;;  %v3204_v48 = vld [vmem:[%s4785_s9 + $0xa8] sm:$0xe] }
 0x180   : > { %v1955_v6 = vpop.permute.xlu1 %1954  ;;  %3787 = vmatmul.mubr.bf16.gmra.mxu0 %v4165_v63  ;;  %v2113_v63 = vld [vmem:[%s4715_s30 + $0xa8] sm:$0xe]  ;;  %v2807_v2 = vshrl.u32 %v2620_v53, 16  ;;  %v2212_v12 = vsel %vm4561_vm6, %v4134_v60, %v2211_v45  ;;  %v2800_v45 = vor.u32 %v2799_v20, %v2796_v19  ;;  %v3361_v55 = vrot.slane %v3206_v49, 5 }
 0x181   : > { %2045 = vst.msk [vmem:[#allocation2 + $0x30] sm:$0xf] %vm2038_vm10, %v1955_v6  ;;  %v1428_v13 = vpop.permute.xlu0 %1427  ;;  %v3455_v15 = vld [vmem:[#allocation2 + $0xa8] sm:$0xff]  ;;  %v2269_v6 = vrot.slane %v2267_v57, 4  ;;  %v4142_v8 = vrot.slane %v2113_v63, 9  ;;  %v5593_v39 = vrot.slane %v2995_v10, 5 }
 0x182   : > { %1501 = vst.msk [vmem:[#allocation2 + $0xb8] sm:$0xf] %vm1477_vm9, %v1428_v13  ;;  %1246 = vrot.lane.b32.xlu1 %v1180_v0, %s4342_s27  ;;  %v4181_v17 = vcombine.low %v3454_v14, %v3455_v15  ;;  %v2643_v13 = vld [vmem:[%s4785_s9 + $0xa8] sm:$0xf]  ;;  %v2809_v16 = vrot.slane %v2807_v2, 4  ;;  %v2801_v3 = vrot.slane %v2800_v45, 4 }
 0x183   : > { %1244 = vrot.lane.b32.xlu0 %v1177_v1, %s4342_s27  ;;  %v2803_v1 = vshll.u32 %v2620_v53, 16  ;;  %v2986_v25 = vshrl.u32 %v2643_v13, 16  ;;  %v4158_v53 = vrot.slane %v3204_v48, 9  ;;  %v2436_v2 = vld [vmem:[%s4785_s9 + $0xa8] sm:$0xf] }
 0x184   : > { %v1987_v21 = vpop.permute.xlu1 %1986  ;;  %3851 = vmatmul.mubr.bf16.gmra.mxu1 %v4181_v17  ;;  %v3181_v17 = vld [vmem:[%s4785_s9 + $0x4c] sm:$0xf]  ;;  %v1533_v48 = vld [vmem:[%s4715_s30 + $0x5c] sm:$0x1] }
 0x185   : > { %2061 = vst.msk [vmem:[#allocation2 + $0xb0] sm:$0xf] %vm2038_vm10, %v1987_v21  ;;  %v1957_v29 = vpop.permute.xlu0 %1956  ;;  %v5574_v15 = vrot.slane %v2803_v1, 5  ;;  %v3302_v22 = vrot.slane %v3181_v17, 5  ;;  %v2271_v21 = vsel %vm4561_vm6, %v2269_v6, %v2270_v7  ;;  %v1532_v17 = vld [vmem:[%s4715_s30 + $0x58] sm:$0xf] }
 0x186   : > { %2046 = vst.msk [vmem:[#allocation2 + $0x38] sm:$0xf] %vm2038_vm10, %v1957_v29  ;;  %1407 = vrot.lane.b32.xlu1 %v1330_v18, %s4343_s6  ;;  %v2621_v18 = vld [vmem:[%s4785_s9 + $0x50] sm:$0x1]  ;;  %v1736_v26 = vshll.u32 %v1532_v17, 16  ;;  %v1740_v28 = vshrl.u32 %v1532_v17, 16 }
 0x187   : > { %1405 = vrot.lane.b32.xlu0 %v1329_v23, %s4343_s6  ;;  %v2268_v23 = vsel %vm4561_vm6, %v4142_v8, %v2267_v57  ;;  %v3304_v32 = vrot.slane %v3302_v22, 4  ;;  %v2810_v44 = vor.u32 %v2809_v16, %v5574_v15  ;;  %v2437_v57 = vld [vmem:[%s4785_s9 + $0xac] sm:$0xf] }
 0x188   : > { %v2292_v35 = vpop.permute.xlu1 %2291 }
 0x189   : > { %2382 = vst.msk [vmem:[#allocation2 + $0x30] sm:$0xf] %vm2375_vm11, %v2292_v35  ;;  %v1989_v40 = vpop.permute.xlu0 %1988  ;;  %v2813_v35 = vshll.u32 %v2621_v18, 16  ;;  %v1531_v18 = vld [vmem:[%s4715_s30 + $0x54] sm:$0xf] }
 0x18a   : > { %2062 = vst.msk [vmem:[#allocation2 + $0xb8] sm:$0xf] %vm2038_vm10, %v1989_v40  ;;  %1439 = vrot.lane.b32.xlu1 %v1346_v30, %s4343_s6  ;;  %v2989_v30 = vshll.u32 %v2643_v13, 16  ;;  %v3303_v40 = vsel %vm4561_vm6, %v4150_v31, %v3302_v22  ;;  %v4295_v22 = vld [vmem:[#allocation2 + $0x34] ss:$8 sps:$4 sm:$0xff]   ;;  %v1727_v31 = vshrl.u32 %v1531_v18, 16 }
 0x18b   : > { %1437 = vrot.lane.b32.xlu0 %v1345_v36, %s4343_s6  ;;  %v3205_v36 = vld [vmem:[%s4785_s9 + $0xac] sm:$0xf]  ;;  %3414 = vst.msk [vmem:[#allocation2 + $0x64] sm:$0xf] %vm380_vm3, %v3303_v40  ;;  %v2815_v60 = vrot.slane %v2813_v35, 5  ;;  %4205 = vmatprep.mubr.msk.bf16.mxu0 %vm3689_vm14, %v4295_v22 }
 0x18c   : > { %v2324_v46 = vpop.permute.xlu1 %2323  ;;  %v3358_v43 = vrot.slane %v3205_v36, 5  ;;  %v2991_v52 = vrot.slane %v2989_v30, 5  ;;  %v1729_v49 = vrot.slane %v1727_v31, 4  ;;  %v2094_v22 = vld [vmem:[%s4715_s30 + $0x5c] sm:$0x1] }
 0x18d   : > { %2398 = vst.msk [vmem:[#allocation2 + $0xb0] sm:$0xf] %vm2375_vm11, %v2324_v46  ;;  %v2294_v51 = vpop.permute.xlu0 %2293  ;;  %v3001_v46 = vrot.slane %v2999_v24, 4 }
 0x18e   : > { %2383 = vst.msk [vmem:[#allocation2 + $0x38] sm:$0xf] %vm2375_vm11, %v2294_v51  ;;  %1968 = vrot.lane.b32.xlu1 %v1725_v41, %s4344_s10  ;;  %v3306_v41 = vsel %vm4561_vm6, %v3304_v32, %v3305_v33  ;;  %v2645_v51 = vld [vmem:[%s4785_s9 + $0xb0] sm:$0x1]  ;;  %v3359_v58 = vsel %vm4561_vm6, %v4158_v53, %v3358_v43  ;;  %v1730_v32 = vshll.u32 %v1531_v18, 16 }
 0x18f   : > { %1966 = vrot.lane.b32.xlu0 %v1715_v47, %s4344_s10  ;;  %v2988_v47 = vrot.slane %v2986_v25, 4  ;;  %3415 = vst.msk [vmem:[#allocation2 + $0x6c] sm:$0xf] %vm380_vm3, %v3306_v41  ;;  %v3002_v61 = vor.u32 %v3001_v46, %v5593_v39  ;;  %v3005_v63 = vshll.u32 %v2645_v51, 16  ;;  %3430 = vst.msk [vmem:[#allocation2 + $0xe4] sm:$0xf] %vm380_vm3, %v3359_v58 }
 0x190   : > { %v2485_v50 = vpop.permute.xlu1 %2484  ;;  %v1556_v33 = vld [vmem:[%s4715_s30 + $0xb8] sm:$0xf] }
 0x191   : > { %2575 = vst.msk [vmem:[#allocation2 + $0x30] sm:$0xf] %vm2568_vm12, %v2485_v50  ;;  %v2326_v0 = vpop.permute.xlu0 %2325  ;;  %v2992_v4 = vor.u32 %v2991_v52, %v2988_v47  ;;  %v3003_v8 = vrot.slane %v3002_v61, 4  ;;  %v3007_v9 = vrot.slane %v3005_v63, 5  ;;  %v1928_v45 = vshll.u32 %v1556_v33, 16 }
 0x192   : > { %2399 = vst.msk [vmem:[#allocation2 + $0xb8] sm:$0xf] %vm2375_vm11, %v2326_v0  ;;  %2000 = vrot.lane.b32.xlu1 %v1917_v54, %s4344_s10  ;;  %v3360_v54 = vrot.slane %v3358_v43, 4  ;;  %v1023_v0 = vld [vmem:[%s4406_s25 + $0xb8] sm:$0xf]  ;;  %v1738_v43 = vrot.slane %v1736_v26, 5 }
 0x193   : > { %1998 = vrot.lane.b32.xlu0 %v1907_v59, %s4344_s10  ;;  %v2811_v59 = vrot.slane %v2810_v44, 4  ;;  %v1183_v6 = vrot.slane %v1023_v0, 5  ;;  %v2993_v16 = vrot.slane %v2992_v4, 4  ;;  %v1742_v44 = vrot.slane %v1740_v28, 4  ;;  %v1557_v61 = vld [vmem:[%s4715_s30 + $0xbc] sm:$0x1] }
 0x194   : > { %v2517_v11 = vpop.permute.xlu1 %2516  ;;  %v3362_v50 = vsel %vm4561_vm6, %v3360_v54, %v3361_v55  ;;  %v1932_v46 = vshrl.u32 %v1556_v33, 16  ;;  %v1332_v54 = vld [vmem:[%s4715_s30 + $0x58] sm:$0xf]  ;;  %v2221_v28 = vrot.slane %v2094_v22, 5  ;;  %v3209_v22 = vld [vmem:[%s4785_s9 + $0xbc] sm:$0x1] }
 0x195   : > { %2591 = vst.msk [vmem:[#allocation2 + $0xb0] sm:$0xf] %vm2568_vm12, %v2517_v11  ;;  %v2487_v14 = vpop.permute.xlu0 %2486  ;;  %v2816_v7 = vsel %vm4417_vm2, %v2811_v59, %v2815_v60  ;;  %v1024_v11 = vld [vmem:[%s4406_s25 + $0xbc] sm:$0x1]  ;;  %v2998_v30 = vsel %vm4417_vm2, %v2993_v16, %v5593_v39  ;;  %v1743_v55 = vor.u32 %v1742_v44, %v1738_v43  ;;  %v1331_v59 = vld [vmem:[%s4715_s30 + $0x54] sm:$0xf] }
 0x196   : > { %2576 = vst.msk [vmem:[#allocation2 + $0x38] sm:$0xf] %vm2568_vm12, %v2487_v14  ;;  %2305 = vrot.lane.b32.xlu1 %v2215_v5, %s4345_s11  ;;  %v2806_v14 = vsel %vm4417_vm2, %v2801_v3, %v5574_v15  ;;  %v1186_v24 = vrot.slane %v1024_v11, 5  ;;  %v3008_v15 = vsel %vm4417_vm2, %v3003_v8, %v3007_v9  ;;  %v1934_v58 = vrot.slane %v1932_v46, 4  ;;  %v1347_v8 = vld [vmem:[%s4715_s30 + $0xb4] sm:$0xf] }
 0x197   : > { %2303 = vrot.lane.b32.xlu0 %v2212_v12, %s4345_s11  ;;  %3431 = vst.msk [vmem:[#allocation2 + $0xec] sm:$0xf] %vm380_vm3, %v3362_v50  ;;  %v1022_v12 = vld [vmem:[%s4406_s25 + $0xb4] sm:$0xe]  ;;  %v1744_v3 = vrot.slane %v1743_v55, 4 }
 0x198   : > { %v3046_v29 = vpop.permute.xlu1 %3045  ;;  %v4127_v25 = vrot.slane %v1022_v12, 9  ;;  %v2093_v12 = vld [vmem:[%s4715_s30 + $0x58] sm:$0xf] }
 0x199   : > { %3136 = vst.msk [vmem:[#allocation2 + $0x30] sm:$0xf] %vm3129_vm13, %v3046_v29  ;;  %v2519_v34 = vpop.permute.xlu0 %2518  ;;  %v2218_v18 = vrot.slane %v2093_v12, 5  ;;  %v2647_v46 = vld [vmem:[%s4785_s9 + $0xb8] sm:$0xf] }
 0x19a   : > { %2592 = vst.msk [vmem:[#allocation2 + $0xb8] sm:$0xf] %vm2568_vm12, %v2519_v34  ;;  %2337 = vrot.lane.b32.xlu1 %v2271_v21, %s4345_s11  ;;  %v1555_v34 = vld [vmem:[%s4715_s30 + $0xb4] sm:$0xf]  ;;  %v1184_v39 = vsel %vm4561_vm6, %v4127_v25, %v1183_v6  ;;  %v2623_v25 = vld [vmem:[%s4785_s9 + $0x58] sm:$0xf] }
 0x19b   : > { %2335 = vrot.lane.b32.xlu0 %v2268_v23, %s4345_s11  ;;  %v1185_v23 = vrot.slane %v1183_v6, 4  ;;  %v1919_v51 = vshrl.u32 %v1555_v34, 16  ;;  %v1922_v52 = vshll.u32 %v1555_v34, 16  ;;  %v1938_v6 = vshll.u32 %v1557_v61, 16  ;;  %v2118_v34 = vld [vmem:[%s4715_s30 + $0xbc] sm:$0x1] }
 0x19c   : > { %v3078_v42 = vpop.permute.xlu1 %3077  ;;  %v2220_v26 = vrot.slane %v2218_v18, 4  ;;  %v2277_v44 = vrot.slane %v2118_v34, 5 }
 0x19d   : > { %3152 = vst.msk [vmem:[#allocation2 + $0xb0] sm:$0xf] %vm3129_vm13, %v3078_v42  ;;  %v3048_v56 = vpop.permute.xlu0 %3047  ;;  %v1187_v41 = vsel %vm4561_vm6, %v1185_v23, %v1186_v24  ;;  %v1732_v42 = vrot.slane %v1730_v32, 5  ;;  %v1921_v63 = vrot.slane %v1919_v51, 4  ;;  %v1924_v0 = vrot.slane %v1922_v52, 5 }
 0x19e   : > { %3137 = vst.msk [vmem:[#allocation2 + $0x38] sm:$0xf] %vm3129_vm13, %v3048_v56  ;;  %2498 = vrot.lane.b32.xlu1 %v2421_v37, %s4347_s16  ;;  %v1746_v56 = vshll.u32 %v1533_v48, 16  ;;  %v1940_v17 = vrot.slane %v1938_v6, 5  ;;  %v2092_v24 = vld [vmem:[%s4715_s30 + $0x54] sm:$0xe] }
 0x19f   : > { %2496 = vrot.lane.b32.xlu0 %v2420_v38, %s4347_s16  ;;  %v4297_v38 = vld [vmem:[#allocation2 + $0xb4] ss:$8 sps:$4 sm:$0xff]   ;;  %v1733_v60 = vor.u32 %v1732_v42, %v1729_v49  ;;  %v1925_v11 = vor.u32 %v1924_v0, %v1921_v63  ;;  %v4135_v33 = vrot.slane %v2092_v24, 9 }
 0x1a0   : > { %v1398_v1 = vpop.permute.xlu1 %1397  ;;  %v3440_v20 = vld [vmem:[#allocation2 + $0x30] sm:$0xff]  ;;  %4213 = vmatprep.mubr.msk.bf16.mxu1 %vm3689_vm14, %v4297_v38  ;;  %v1748_v4 = vrot.slane %v1746_v56, 5  ;;  %v2831_v38 = vshrl.u32 %v2623_v25, 16  ;;  %v3185_v0 = vld [vmem:[%s4785_s9 + $0x5c] sm:$0x1] }
 0x1a1   : > { %1486 = vst.msk [vmem:[#allocation2 + $0x40] sm:$0xf] %vm1477_vm9, %v1398_v1  ;;  %v3080_v5 = vpop.permute.xlu0 %3079  ;;  %v1734_v9 = vrot.slane %v1733_v60, 4  ;;  %v2219_v48 = vsel %vm4561_vm6, %v4135_v33, %v2218_v18  ;;  %v2646_v49 = vld [vmem:[%s4785_s9 + $0xb4] sm:$0xf]  ;;  %v3023_v60 = vshrl.u32 %v2647_v46, 16 }
 0x1a2   : > { %3153 = vst.msk [vmem:[#allocation2 + $0xb8] sm:$0xf] %vm3129_vm13, %v3080_v5  ;;  %2530 = vrot.lane.b32.xlu1 %v2437_v57, %s4347_s16  ;;  %v1930_v57 = vrot.slane %v1928_v45, 5  ;;  %v2833_v52 = vrot.slane %v2831_v38, 4  ;;  %v3010_v61 = vshrl.u32 %v2646_v49, 16 }
 0x1a3   : > { %2528 = vrot.lane.b32.xlu0 %v2436_v2, %s4347_s16  ;;  %v1348_v2 = vld [vmem:[%s4715_s30 + $0xb8] sm:$0xf]  ;;  %v3183_v63 = vld [vmem:[%s4785_s9 + $0x54] sm:$0xe] }
 0x1a4   : > { %v1430_v13 = vpop.permute.xlu1 %1429  ;;  %v3456_v36 = vld [vmem:[#allocation2 + $0xb0] sm:$0xff]  ;;  %v1935_v5 = vor.u32 %v1934_v58, %v1930_v57 }
 0x1a5   : > { %1502 = vst.msk [vmem:[#allocation2 + $0xc0] sm:$0xf] %vm1477_vm9, %v1430_v13  ;;  %v1400_v19 = vpop.permute.xlu0 %1399  ;;  %v3441_v10 = vld [vmem:[#allocation2 + $0x38] sm:$0xff] }
 0x1a6   : > { %1487 = vst.msk [vmem:[#allocation2 + $0x48] sm:$0xf] %vm1477_vm9, %v1400_v19  ;;  %3059 = vrot.lane.b32.xlu1 %v2816_v7, %s4348_s26  ;;  %v4167_v21 = vcombine.low %v3440_v20, %v3441_v10  ;;  %v1936_v16 = vrot.slane %v1935_v5, 4  ;;  %v1739_v20 = vsel %vm4417_vm2, %v1734_v9, %v1738_v43  ;;  %v1926_v10 = vrot.slane %v1925_v11, 4  ;;  %v2423_v9 = vld [vmem:[%s4785_s9 + $0x58] sm:$0xf] }
 0x1a7   : > { %3057 = vrot.lane.b32.xlu0 %v2806_v14, %s4348_s26  ;;  %v1749_v14 = vsel %vm4417_vm2, %v1744_v3, %v1748_v4  ;;  %v4151_v3 = vrot.slane %v3183_v63, 9  ;;  %v3312_v5 = vrot.slane %v3185_v0, 5  ;;  %v2422_v11 = vld [vmem:[%s4785_s9 + $0x54] sm:$0xf] }
 0x1a8   : > { %v1959_v29 = vpop.permute.xlu1 %1958  ;;  %3795 = vmatmul.mubr.bf16.gmra.mxu0 %v4167_v21  ;;  %v2117_v21 = vld [vmem:[%s4715_s30 + $0xb8] sm:$0xf]  ;;  %v1931_v32 = vsel %vm4417_vm2, %v1926_v10, %v1930_v57  ;;  %v3019_v57 = vshll.u32 %v2647_v46, 16  ;;  %v3207_v10 = vld [vmem:[%s4785_s9 + $0xb4] sm:$0xe] }
 0x1a9   : > { %2047 = vst.msk [vmem:[#allocation2 + $0x40] sm:$0xf] %vm2038_vm10, %v1959_v29  ;;  %v1432_v35 = vpop.permute.xlu0 %1431  ;;  %v3457_v37 = vld [vmem:[#allocation2 + $0xb8] sm:$0xff]  ;;  %v2274_v29 = vrot.slane %v2117_v21, 5 }
 0x1aa   : > { %1503 = vst.msk [vmem:[#allocation2 + $0xc8] sm:$0xf] %vm1477_vm9, %v1432_v35  ;;  %3091 = vrot.lane.b32.xlu1 %v3008_v15, %s4348_s26  ;;  %v4183_v40 = vcombine.low %v3456_v36, %v3457_v37  ;;  %v1941_v15 = vsel %vm4417_vm2, %v1936_v16, %v1940_v17  ;;  %v2116_v35 = vld [vmem:[%s4715_s30 + $0xb4] sm:$0xe]  ;;  %v2827_v37 = vshll.u32 %v2623_v25, 16  ;;  %v5722_v12 = vrot.slane %v3019_v57, 5 }
 0x1ab   : > { %3089 = vrot.lane.b32.xlu0 %v2998_v30, %s4348_s26  ;;  %v2622_v30 = vld [vmem:[%s4785_s9 + $0x54] sm:$0xf]  ;;  %v2276_v43 = vrot.slane %v2274_v29, 4  ;;  %v4143_v45 = vrot.slane %v2116_v35, 9  ;;  %v4159_v25 = vrot.slane %v3207_v10, 9  ;;  %s4220_s30 = sshll.u32 %s5967_s18, 8 }
 0x1ac   : > { %v1991_v47 = vpop.permute.xlu1 %1990  ;;  %3859 = vmatmul.mubr.bf16.gmra.mxu1 %v4183_v40  ;;  %v2818_v40 = vshrl.u32 %v2622_v30, 16  ;;  %v5703_v51 = vrot.slane %v2827_v37, 5  ;;  %v2438_v37 = vld [vmem:[%s4785_s9 + $0xb4] sm:$0xf] }
 0x1ad   : > { %2063 = vst.msk [vmem:[#allocation2 + $0xc0] sm:$0xf] %vm2038_vm10, %v1991_v47  ;;  %v1961_v53 = vpop.permute.xlu0 %1960 }
 0x1ae   : > { %2048 = vst.msk [vmem:[#allocation2 + $0x48] sm:$0xf] %vm2038_vm10, %v1961_v53  ;;  %1250 = vrot.lane.b32.xlu1 %v1187_v41, %s4342_s27  ;;  %v2821_v41 = vshll.u32 %v2622_v30, 16  ;;  %v3184_v53 = vld [vmem:[%s4785_s9 + $0x58] sm:$0xf]  ;;  %v2820_v55 = vrot.slane %v2818_v40, 4  ;;  %v2834_v17 = vor.u32 %v2833_v52, %v5703_v51 }
 0x1af   : > { %1248 = vrot.lane.b32.xlu0 %v1184_v39, %s4342_s27  ;;  %v2222_v39 = vsel %vm4561_vm6, %v2220_v26, %v2221_v28  ;;  %v3309_v58 = vrot.slane %v3184_v53, 5  ;;  %v3368_v26 = vrot.slane %v3209_v22, 5 }
 0x1b0   : > { %v2296_v50 = vpop.permute.xlu1 %2295  ;;  %v2823_v56 = vrot.slane %v2821_v41, 5 }
 0x1b1   : > { %2384 = vst.msk [vmem:[#allocation2 + $0x40] sm:$0xf] %vm2375_vm11, %v2296_v50  ;;  %v1993_v1 = vpop.permute.xlu0 %1992  ;;  %v2278_v50 = vsel %vm4561_vm6, %v2276_v43, %v2277_v44  ;;  %v3311_v4 = vrot.slane %v3309_v58, 4  ;;  %v4299_v43 = vld [vmem:[#allocation2 + $0x44] ss:$8 sps:$4 sm:$0xff]  }
 0x1b2   : > { %2064 = vst.msk [vmem:[#allocation2 + $0xc8] sm:$0xf] %vm2038_vm10, %v1993_v1  ;;  %1411 = vrot.lane.b32.xlu1 %v1332_v54, %s4343_s6  ;;  %v2624_v54 = vld [vmem:[%s4785_s9 + $0x5c] sm:$0x1]  ;;  %v2824_v18 = vor.u32 %v2823_v56, %v2820_v55  ;;  %4206 = vmatprep.mubr.msk.bf16.mxu0 %vm3689_vm14, %v4299_v43  ;;  %v4301_v55 = vld [vmem:[#allocation2 + $0xc4] ss:$8 sps:$4 sm:$0xff]  }
 0x1b3   : > { %1409 = vrot.lane.b32.xlu0 %v1331_v59, %s4343_s6  ;;  %v2275_v59 = vsel %vm4561_vm6, %v4143_v45, %v2274_v29  ;;  %4214 = vmatprep.mubr.msk.bf16.mxu1 %vm3689_vm14, %v4301_v55 }
 0x1b4   : > { %v2328_v7 = vpop.permute.xlu1 %2327  ;;  %v2825_v38 = vrot.slane %v2824_v18, 4 }
 0x1b5   : > { %2400 = vst.msk [vmem:[#allocation2 + $0xc0] sm:$0xf] %vm2375_vm11, %v2328_v7  ;;  %v2298_v13 = vpop.permute.xlu0 %2297  ;;  %v2837_v7 = vshll.u32 %v2624_v54, 16 }
 0x1b6   : > { %2385 = vst.msk [vmem:[#allocation2 + $0x48] sm:$0xf] %vm2375_vm11, %v2298_v13  ;;  %1443 = vrot.lane.b32.xlu1 %v1348_v2, %s4343_s6  ;;  %v3013_v2 = vshll.u32 %v2646_v49, 16  ;;  %v3310_v13 = vsel %vm4561_vm6, %v4151_v3, %v3309_v58  ;;  %v2830_v49 = vsel %vm4417_vm2, %v2825_v38, %v5703_v51 }
 0x1b7   : > { %1441 = vrot.lane.b32.xlu0 %v1347_v8, %s4343_s6  ;;  %v3208_v8 = vld [vmem:[%s4785_s9 + $0xb8] sm:$0xf]  ;;  %3416 = vst.msk [vmem:[#allocation2 + $0x74] sm:$0xf] %vm380_vm3, %v3310_v13  ;;  %v2839_v33 = vrot.slane %v2837_v7, 5 }
 0x1b8   : > { %v2489_v19 = vpop.permute.xlu1 %2488  ;;  %v3365_v16 = vrot.slane %v3208_v8, 5  ;;  %v3015_v24 = vrot.slane %v3013_v2, 5  ;;  %v5787_v7 = vld [vmem:[%s5956_s4] ss:$0 sm:$0xff] }
 0x1b9   : > { %2577 = vst.msk [vmem:[#allocation2 + $0x40] sm:$0xf] %vm2568_vm12, %v2489_v19  ;;  %v2330_v23 = vpop.permute.xlu0 %2329  ;;  %v3025_v19 = vrot.slane %v3023_v60, 4 }
 0x1ba   : > { %2401 = vst.msk [vmem:[#allocation2 + $0xc8] sm:$0xf] %vm2375_vm11, %v2330_v23  ;;  %1972 = vrot.lane.b32.xlu1 %v1749_v14, %s4344_s10  ;;  %v3313_v14 = vsel %vm4561_vm6, %v3311_v4, %v3312_v5  ;;  %v2648_v23 = vld [vmem:[%s4785_s9 + $0xbc] sm:$0x1]  ;;  %v3366_v29 = vsel %vm4561_vm6, %v4159_v25, %v3365_v16 }
 0x1bb   : > { %1970 = vrot.lane.b32.xlu0 %v1739_v20, %s4344_s10  ;;  %v3012_v20 = vrot.slane %v3010_v61, 4  ;;  %3417 = vst.msk [vmem:[#allocation2 + $0x7c] sm:$0xf] %vm380_vm3, %v3313_v14  ;;  %v3026_v34 = vor.u32 %v3025_v19, %v5722_v12  ;;  %v3029_v35 = vshll.u32 %v2648_v23, 16  ;;  %3432 = vst.msk [vmem:[#allocation2 + $0xf4] sm:$0xf] %vm380_vm3, %v3366_v29 }
 0x1bc   : > { %v2521_v31 = vpop.permute.xlu1 %2520 }
 0x1bd   : > { %2593 = vst.msk [vmem:[#allocation2 + $0xc0] sm:$0xf] %vm2568_vm12, %v2521_v31  ;;  %v2491_v36 = vpop.permute.xlu0 %2490  ;;  %v2439_v31 = vld [vmem:[%s4785_s9 + $0xb8] sm:$0xf]  ;;  %v3016_v40 = vor.u32 %v3015_v24, %v3012_v20  ;;  %v3027_v46 = vrot.slane %v3026_v34, 4 }
 0x1be   : > { %2578 = vst.msk [vmem:[#allocation2 + $0x48] sm:$0xf] %vm2568_vm12, %v2491_v36  ;;  %2004 = vrot.lane.b32.xlu1 %v1941_v15, %s4344_s10  ;;  %v3367_v15 = vrot.slane %v3365_v16, 4  ;;  %v4305_v34 = vld [vmem:[#allocation2 + $0xd4] ss:$8 sps:$4 sm:$0xff]  }
 0x1bf   : > { %2002 = vrot.lane.b32.xlu0 %v1931_v32, %s4344_s10  ;;  %v2835_v32 = vrot.slane %v2834_v17, 4  ;;  %s5796_s10 = scalar_lea.vmem %s5957_s5, %s4220_s30 }
 0x1c0   : > { %v3050_v47 = vpop.permute.xlu1 %3049  ;;  %v3369_v30 = vsel %vm4561_vm6, %v3367_v15, %v3368_v26 }
 0x1c1   : > { %3138 = vst.msk [vmem:[#allocation2 + $0x40] sm:$0xf] %vm3129_vm13, %v3050_v47  ;;  %v2523_v42 = vpop.permute.xlu0 %2522  ;;  %v2840_v45 = vsel %vm4417_vm2, %v2835_v32, %v2839_v33  ;;  %v3031_v47 = vrot.slane %v3029_v35, 5 }
 0x1c2   : > { %2594 = vst.msk [vmem:[#allocation2 + $0xc8] sm:$0xf] %vm2568_vm12, %v2523_v42  ;;  %2309 = vrot.lane.b32.xlu1 %v2222_v39, %s4345_s11  ;;  %v3017_v42 = vrot.slane %v3016_v40, 4 }
 0x1c3   : > { %2307 = vrot.lane.b32.xlu0 %v2219_v48, %s4345_s11  ;;  %3433 = vst.msk [vmem:[#allocation2 + $0xfc] sm:$0xf] %vm380_vm3, %v3369_v30  ;;  %v3032_v57 = vsel %vm4417_vm2, %v3027_v46, %v3031_v47 }
 0x1c4   : > { %v3082_v1 = vpop.permute.xlu1 %3081  ;;  %v3022_v58 = vsel %vm4417_vm2, %v3017_v42, %v5722_v12 }
 0x1c5   : > { %3154 = vst.msk [vmem:[#allocation2 + $0xc0] sm:$0xf] %vm3129_vm13, %v3082_v1  ;;  %v3052_v6 = vpop.permute.xlu0 %3051 }
 0x1c6   : > { %3139 = vst.msk [vmem:[#allocation2 + $0x48] sm:$0xf] %vm3129_vm13, %v3052_v6  ;;  %2341 = vrot.lane.b32.xlu1 %v2278_v50, %s4345_s11 }
 0x1c7   : > { %2339 = vrot.lane.b32.xlu0 %v2275_v59, %s4345_s11 }
 0x1c8   : > { %v1243_v21 = vpop.permute.xlu1 %1242  ;;  %v3442_v41 = vld [vmem:[#allocation2 + $0x40] sm:$0xff] }
 0x1c9   : > { %1312 = vst.msk [vmem:[#allocation2 + $0xd8] sm:$0xf] %vm1284_vm8, %v1243_v21  ;;  %v3084_v28 = vpop.permute.xlu0 %3083  ;;  %v4303_v21 = vld [vmem:[#allocation2 + $0x54] ss:$8 sps:$4 sm:$0xff]  }
 0x1ca   : > { %3155 = vst.msk [vmem:[#allocation2 + $0xc8] sm:$0xf] %vm3129_vm13, %v3084_v28  ;;  %2502 = vrot.lane.b32.xlu1 %v2423_v9, %s4347_s16 }
 0x1cb   : > { %2500 = vrot.lane.b32.xlu0 %v2422_v11, %s4347_s16 }
 0x1cc   : > { %v1404_v36 = vpop.permute.xlu1 %1403  ;;  %v3458_v53 = vld [vmem:[#allocation2 + $0xc0] sm:$0xff] }
 0x1cd   : > { %1489 = vst.msk [vmem:[#allocation2 + $0x58] sm:$0xf] %vm1477_vm9, %v1404_v36  ;;  %v1402_v62 = vpop.permute.xlu0 %1401  ;;  %v3443_v39 = vld [vmem:[#allocation2 + $0x48] sm:$0xff] }
 0x1ce   : > { %1488 = vst.msk [vmem:[#allocation2 + $0x50] sm:$0xf] %vm1477_vm9, %v1402_v62  ;;  %2534 = vrot.lane.b32.xlu1 %v2439_v31, %s4347_s16  ;;  %v4169_v44 = vcombine.low %v3442_v41, %v3443_v39 }
 0x1cf   : > { %2532 = vrot.lane.b32.xlu0 %v2438_v37, %s4347_s16 }
 0x1d0   : > { %v1436_v48 = vpop.permute.xlu1 %1435  ;;  %3803 = vmatmul.mubr.bf16.gmra.mxu0 %v4169_v44 }
 0x1d1   : > { %1505 = vst.msk [vmem:[#allocation2 + $0xd8] sm:$0xf] %vm1477_vm9, %v1436_v48  ;;  %v1434_v52 = vpop.permute.xlu0 %1433  ;;  %v3459_v54 = vld [vmem:[#allocation2 + $0xc8] sm:$0xff]  ;;  %4207 = vmatprep.mubr.msk.bf16.mxu0 %vm3689_vm14, %v4303_v21 }
 0x1d2   : > { %1504 = vst.msk [vmem:[#allocation2 + $0xd0] sm:$0xf] %vm1477_vm9, %v1434_v52  ;;  %3063 = vrot.lane.b32.xlu1 %v2840_v45, %s4348_s26  ;;  %v4185_v56 = vcombine.low %v3458_v53, %v3459_v54 }
 0x1d3   : > { %3061 = vrot.lane.b32.xlu0 %v2830_v49, %s4348_s26 }
 0x1d4   : > { %v1965_v51 = vpop.permute.xlu1 %1964  ;;  %3867 = vmatmul.mubr.bf16.gmra.mxu1 %v4185_v56 }
 0x1d5   : > { %2050 = vst.msk [vmem:[#allocation2 + $0x58] sm:$0xf] %vm2038_vm10, %v1965_v51  ;;  %v1963_v50 = vpop.permute.xlu0 %1962  ;;  %4215 = vmatprep.mubr.msk.bf16.mxu1 %vm3689_vm14, %v4305_v34 }
 0x1d6   : > { %2049 = vst.msk [vmem:[#allocation2 + $0x50] sm:$0xf] %vm2038_vm10, %v1963_v50  ;;  %3095 = vrot.lane.b32.xlu1 %v3032_v57, %s4348_s26 }
 0x1d7   : > { %3093 = vrot.lane.b32.xlu0 %v3022_v58, %s4348_s26 }
 0x1d8   : > { %v1997_v59 = vpop.permute.xlu1 %1996 }
 0x1d9   : > { %2066 = vst.msk [vmem:[#allocation2 + $0xd8] sm:$0xf] %vm2038_vm10, %v1997_v59  ;;  %v1995_v60 = vpop.permute.xlu0 %1994 }
 0x1da   : > { %2065 = vst.msk [vmem:[#allocation2 + $0xd0] sm:$0xf] %vm2038_vm10, %v1995_v60 }
 0x1dc   : > { %v2302_v61 = vpop.permute.xlu1 %2301 }
 0x1dd   : > { %2387 = vst.msk [vmem:[#allocation2 + $0x58] sm:$0xf] %vm2375_vm11, %v2302_v61  ;;  %v2300_v27 = vpop.permute.xlu0 %2299 }
 0x1de   : > { %2386 = vst.msk [vmem:[#allocation2 + $0x50] sm:$0xf] %vm2375_vm11, %v2300_v27 }
 0x1e0   : > { %v2334_v63 = vpop.permute.xlu1 %2333 }
 0x1e1   : > { %2403 = vst.msk [vmem:[#allocation2 + $0xd8] sm:$0xf] %vm2375_vm11, %v2334_v63  ;;  %v2332_v0 = vpop.permute.xlu0 %2331 }
 0x1e2   : > { %2402 = vst.msk [vmem:[#allocation2 + $0xd0] sm:$0xf] %vm2375_vm11, %v2332_v0 }
 0x1e4   : > { %v2495_v1 = vpop.permute.xlu1 %2494 }
 0x1e5   : > { %2580 = vst.msk [vmem:[#allocation2 + $0x58] sm:$0xf] %vm2568_vm12, %v2495_v1  ;;  %v2493_v2 = vpop.permute.xlu0 %2492 }
 0x1e6   : > { %2579 = vst.msk [vmem:[#allocation2 + $0x50] sm:$0xf] %vm2568_vm12, %v2493_v2 }
 0x1e8   : > { %v2527_v3 = vpop.permute.xlu1 %2526 }
 0x1e9   : > { %2596 = vst.msk [vmem:[#allocation2 + $0xd8] sm:$0xf] %vm2568_vm12, %v2527_v3  ;;  %v2525_v4 = vpop.permute.xlu0 %2524 }
 0x1ea   : > { %2595 = vst.msk [vmem:[#allocation2 + $0xd0] sm:$0xf] %vm2568_vm12, %v2525_v4 }
 0x1ec   : > { %v3056_v5 = vpop.permute.xlu1 %3055 }
 0x1ed   : > { %3141 = vst.msk [vmem:[#allocation2 + $0x58] sm:$0xf] %vm3129_vm13, %v3056_v5  ;;  %v3054_v6 = vpop.permute.xlu0 %3053 }
 0x1ee   : > { %3140 = vst.msk [vmem:[#allocation2 + $0x50] sm:$0xf] %vm3129_vm13, %v3054_v6  ;;  %v3772_v9 = vpop.f32.mrf.mxu0 }
 0x1ef   : > { %v3773_v12 = vadd.f32 %v5787_v7, %v3772_v9 }
 0x1f0   : > { %v3088_v8 = vpop.permute.xlu1 %3087  ;;  %v3774_v13 = vpop.f32.mrf.mxu0 }
 0x1f1   : > { %3157 = vst.msk [vmem:[#allocation2 + $0xd8] sm:$0xf] %vm3129_vm13, %v3088_v8  ;;  %v3086_v11 = vpop.permute.xlu0 %3085  ;;  %v3899_v14 = vmax.f32 %v3773_v12, 0.0 }
 0x1f2   : > { %3156 = vst.msk [vmem:[#allocation2 + $0xd0] sm:$0xf] %vm3129_vm13, %v3086_v11  ;;  %v3775_v17 = vpop.f32.mrf.mxu0  ;;  %v3836_v10 = vpop.f32.mrf.mxu1  ;;  %v4307_v11 = vld [vmem:[#allocation2 + $0x64] ss:$8 sps:$4 sm:$0xff]  }
 0x1f3   : > { %3932 = vst.msk [vmem:[%s5796_s10] sm:$0xff] %vm3931_vm15, %v3899_v14  ;;  %v3776_v20 = vadd.f32 %v5787_v7, %v3775_v17  ;;  %v3837_v23 = vadd.f32 %v5787_v7, %v3836_v10  ;;  %v4309_v10 = vld [vmem:[#allocation2 + $0xe4] ss:$8 sps:$4 sm:$0xff]  }
 0x1f4   : > { %v1247_v16 = vpop.permute.xlu1 %1246  ;;  %v3445_v18 = vld [vmem:[#allocation2 + $0x58] sm:$0xff]  ;;  %v3777_v24 = vpop.f32.mrf.mxu0 }
 0x1f5   : > { %1314 = vst.msk [vmem:[#allocation2 + $0xe8] sm:$0xf] %vm1284_vm8, %v1247_v16  ;;  %v1245_v19 = vpop.permute.xlu0 %1244  ;;  %v3444_v22 = vld [vmem:[#allocation2 + $0x50] sm:$0xff]  ;;  %v3900_v15 = vmax.f32 %v3776_v20, 0.0  ;;  %v3838_v26 = vpop.f32.mrf.mxu1  ;;  %v3915_v28 = vmax.f32 %v3837_v23, 0.0 }
 0x1f6   : > { %1313 = vst.msk [vmem:[#allocation2 + $0xe0] sm:$0xf] %vm1284_vm8, %v1245_v19  ;;  %v4171_v25 = vcombine.low %v3444_v22, %v3445_v18 }
 0x1f7   : > { %3933 = vst.msk [vmem:[%s5796_s10 + $0x8] sm:$0xff] %vm3931_vm15, %v3900_v15  ;;  %v3839_v32 = vpop.f32.mrf.mxu1  ;;  %3948 = vst.msk [vmem:[%s5796_s10 + $0x80] sm:$0xff] %vm3931_vm15, %v3915_v28 }
 0x1f8   : > { %v1408_v29 = vpop.permute.xlu1 %1407  ;;  %3811 = vmatmul.mubr.bf16.gmra.mxu0 %v4171_v25  ;;  %v3461_v30 = vld [vmem:[#allocation2 + $0xd8] sm:$0xff]  ;;  %v3840_v35 = vadd.f32 %v5787_v7, %v3839_v32 }
 0x1f9   : > { %1491 = vst.msk [vmem:[#allocation2 + $0x68] sm:$0xf] %vm1477_vm9, %v1408_v29  ;;  %v1406_v31 = vpop.permute.xlu0 %1405  ;;  %v3460_v33 = vld [vmem:[#allocation2 + $0xd0] sm:$0xff]  ;;  %v3841_v37 = vpop.f32.mrf.mxu1  ;;  %4208 = vmatprep.mubr.msk.bf16.mxu0 %vm3689_vm14, %v4307_v11 }
 0x1fa   : > { %1490 = vst.msk [vmem:[#allocation2 + $0x60] sm:$0xf] %vm1477_vm9, %v1406_v31  ;;  %v4187_v36 = vcombine.low %v3460_v33, %v3461_v30  ;;  %v3916_v38 = vmax.f32 %v3840_v35, 0.0 }
 0x1fc   : > { %v1440_v40 = vpop.permute.xlu1 %1439  ;;  %3875 = vmatmul.mubr.bf16.gmra.mxu1 %v4187_v36  ;;  %3949 = vst.msk [vmem:[%s5796_s10 + $0x88] sm:$0xff] %vm3931_vm15, %v3916_v38 }
 0x1fd   : > { %1507 = vst.msk [vmem:[#allocation2 + $0xe8] sm:$0xf] %vm1477_vm9, %v1440_v40  ;;  %v1438_v62 = vpop.permute.xlu0 %1437  ;;  %4216 = vmatprep.mubr.msk.bf16.mxu1 %vm3689_vm14, %v4309_v10 }
 0x1fe   : > { %1506 = vst.msk [vmem:[#allocation2 + $0xe0] sm:$0xf] %vm1477_vm9, %v1438_v62 }
 0x200   : > { %v1969_v41 = vpop.permute.xlu1 %1968 }
 0x201   : > { %2052 = vst.msk [vmem:[#allocation2 + $0x68] sm:$0xf] %vm2038_vm10, %v1969_v41  ;;  %v1967_v39 = vpop.permute.xlu0 %1966 }
 0x202   : > { %2051 = vst.msk [vmem:[#allocation2 + $0x60] sm:$0xf] %vm2038_vm10, %v1967_v39 }
 0x204   : > { %v2001_v43 = vpop.permute.xlu1 %2000 }
 0x205   : > { %2068 = vst.msk [vmem:[#allocation2 + $0xe8] sm:$0xf] %vm2038_vm10, %v2001_v43  ;;  %v1999_v44 = vpop.permute.xlu0 %1998 }
 0x206   : > { %2067 = vst.msk [vmem:[#allocation2 + $0xe0] sm:$0xf] %vm2038_vm10, %v1999_v44 }
 0x208   : > { %v2306_v45 = vpop.permute.xlu1 %2305 }
 0x209   : > { %2389 = vst.msk [vmem:[#allocation2 + $0x68] sm:$0xf] %vm2375_vm11, %v2306_v45  ;;  %v2304_v46 = vpop.permute.xlu0 %2303 }
 0x20a   : > { %2388 = vst.msk [vmem:[#allocation2 + $0x60] sm:$0xf] %vm2375_vm11, %v2304_v46 }
 0x20c   : > { %v2338_v47 = vpop.permute.xlu1 %2337 }
 0x20d   : > { %2405 = vst.msk [vmem:[#allocation2 + $0xe8] sm:$0xf] %vm2375_vm11, %v2338_v47  ;;  %v2336_v48 = vpop.permute.xlu0 %2335 }
 0x20e   : > { %2404 = vst.msk [vmem:[#allocation2 + $0xe0] sm:$0xf] %vm2375_vm11, %v2336_v48 }
 0x210   : > { %v2499_v49 = vpop.permute.xlu1 %2498 }
 0x211   : > { %2582 = vst.msk [vmem:[#allocation2 + $0x68] sm:$0xf] %vm2568_vm12, %v2499_v49  ;;  %v2497_v42 = vpop.permute.xlu0 %2496 }
 0x212   : > { %2581 = vst.msk [vmem:[#allocation2 + $0x60] sm:$0xf] %vm2568_vm12, %v2497_v42 }
 0x214   : > { %v2531_v52 = vpop.permute.xlu1 %2530 }
 0x215   : > { %2598 = vst.msk [vmem:[#allocation2 + $0xe8] sm:$0xf] %vm2568_vm12, %v2531_v52  ;;  %v2529_v53 = vpop.permute.xlu0 %2528 }
 0x216   : > { %2597 = vst.msk [vmem:[#allocation2 + $0xe0] sm:$0xf] %vm2568_vm12, %v2529_v53 }
 0x218   : > { %v3060_v54 = vpop.permute.xlu1 %3059  ;;  %v3780_v55 = vpop.f32.mrf.mxu0 }
 0x219   : > { %3143 = vst.msk [vmem:[#allocation2 + $0x68] sm:$0xf] %vm3129_vm13, %v3060_v54  ;;  %v3058_v56 = vpop.permute.xlu0 %3057  ;;  %v3781_v57 = vadd.f32 %v5787_v7, %v3780_v55 }
 0x21a   : > { %3142 = vst.msk [vmem:[#allocation2 + $0x60] sm:$0xf] %vm3129_vm13, %v3058_v56  ;;  %v3782_v51 = vpop.f32.mrf.mxu0 }
 0x21b   : > { %v3901_v58 = vmax.f32 %v3781_v57, 0.0  ;;  %v4311_v57 = vld [vmem:[#allocation2 + $0x74] ss:$8 sps:$4 sm:$0xff]  }
 0x21c   : > { %v3092_v50 = vpop.permute.xlu1 %3091  ;;  %v3783_v59 = vpop.f32.mrf.mxu0 }
 0x21d   : > { %3934 = vst.msk [vmem:[%s5796_s10 + $0x10] sm:$0xff] %vm3931_vm15, %v3901_v58  ;;  %v3090_v60 = vpop.permute.xlu0 %3089  ;;  %v3784_v61 = vadd.f32 %v5787_v7, %v3783_v59  ;;  %v3844_v27 = vpop.f32.mrf.mxu1  ;;  %v4314_v58 = vld [vmem:[#allocation2 + $0xf4] ss:$8 sps:$4 sm:$0xff]  }
 0x21e   : > { %3159 = vst.msk [vmem:[#allocation2 + $0xe8] sm:$0xf] %vm3129_vm13, %v3092_v50  ;;  %3158 = vst.msk [vmem:[#allocation2 + $0xe0] sm:$0xf] %vm3129_vm13, %v3090_v60  ;;  %v3845_v63 = vadd.f32 %v5787_v7, %v3844_v27  ;;  %v3785_v0 = vpop.f32.mrf.mxu0 }
 0x21f   : > { %v3902_v1 = vmax.f32 %v3784_v61, 0.0  ;;  %v3846_v2 = vpop.f32.mrf.mxu1 }
 0x220   : > { %v3917_v3 = vmax.f32 %v3845_v63, 0.0  ;;  %v1251_v4 = vpop.permute.xlu1 %1250  ;;  %v3447_v5 = vld [vmem:[#allocation2 + $0x68] sm:$0xff] }
 0x221   : > { %3935 = vst.msk [vmem:[%s5796_s10 + $0x18] sm:$0xff] %vm3931_vm15, %v3902_v1  ;;  %v1249_v6 = vpop.permute.xlu0 %1248  ;;  %v3847_v8 = vpop.f32.mrf.mxu1  ;;  %v3446_v9 = vld [vmem:[#allocation2 + $0x60] sm:$0xff] }
 0x222   : > { %1316 = vst.msk [vmem:[#allocation2 + $0xf8] sm:$0xf] %vm1284_vm8, %v1251_v4  ;;  %1315 = vst.msk [vmem:[#allocation2 + $0xf0] sm:$0xf] %vm1284_vm8, %v1249_v6  ;;  %v3848_v12 = vadd.f32 %v5787_v7, %v3847_v8  ;;  %v4173_v13 = vcombine.low %v3446_v9, %v3447_v5 }
 0x223   : > { %3950 = vst.msk [vmem:[%s5796_s10 + $0x90] sm:$0xff] %vm3931_vm15, %v3917_v3  ;;  %v3849_v14 = vpop.f32.mrf.mxu1 }
 0x224   : > { %v3918_v16 = vmax.f32 %v3848_v12, 0.0  ;;  %v1412_v17 = vpop.permute.xlu1 %1411  ;;  %3819 = vmatmul.mubr.bf16.gmra.mxu0 %v4173_v13 }
 0x225   : > { %v3463_v18 = vld [vmem:[#allocation2 + $0xe8] sm:$0xff]  ;;  %1493 = vst.msk [vmem:[#allocation2 + $0x78] sm:$0xf] %vm1477_vm9, %v1412_v17  ;;  %v1410_v19 = vpop.permute.xlu0 %1409  ;;  %v3462_v20 = vld [vmem:[#allocation2 + $0xe0] sm:$0xff]  ;;  %4209 = vmatprep.mubr.msk.bf16.mxu0 %vm3689_vm14, %v4311_v57 }
 0x226   : > { %3951 = vst.msk [vmem:[%s5796_s10 + $0x98] sm:$0xff] %vm3931_vm15, %v3918_v16  ;;  %v4189_v22 = vcombine.low %v3462_v20, %v3463_v18 }
 0x227   : > { %1492 = vst.msk [vmem:[#allocation2 + $0x70] sm:$0xf] %vm1477_vm9, %v1410_v19 }
 0x228   : > { %v1444_v21 = vpop.permute.xlu1 %1443  ;;  %3883 = vmatmul.mubr.bf16.gmra.mxu1 %v4189_v22 }
 0x229   : > { %1509 = vst.msk [vmem:[#allocation2 + $0xf8] sm:$0xf] %vm1477_vm9, %v1444_v21  ;;  %v1442_v23 = vpop.permute.xlu0 %1441  ;;  %4217 = vmatprep.mubr.msk.bf16.mxu1 %vm3689_vm14, %v4314_v58 }
 0x22a   : > { %1508 = vst.msk [vmem:[#allocation2 + $0xf0] sm:$0xf] %vm1477_vm9, %v1442_v23 }
 0x22c   : > { %v1973_v24 = vpop.permute.xlu1 %1972 }
 0x22d   : > { %2054 = vst.msk [vmem:[#allocation2 + $0x78] sm:$0xf] %vm2038_vm10, %v1973_v24  ;;  %v1971_v25 = vpop.permute.xlu0 %1970 }
 0x22e   : > { %2053 = vst.msk [vmem:[#allocation2 + $0x70] sm:$0xf] %vm2038_vm10, %v1971_v25 }
 0x230   : > { %v2005_v15 = vpop.permute.xlu1 %2004 }
 0x231   : > { %2070 = vst.msk [vmem:[#allocation2 + $0xf8] sm:$0xf] %vm2038_vm10, %v2005_v15  ;;  %v2003_v26 = vpop.permute.xlu0 %2002 }
 0x232   : > { %2069 = vst.msk [vmem:[#allocation2 + $0xf0] sm:$0xf] %vm2038_vm10, %v2003_v26 }
 0x234   : > { %v2310_v28 = vpop.permute.xlu1 %2309 }
 0x235   : > { %2391 = vst.msk [vmem:[#allocation2 + $0x78] sm:$0xf] %vm2375_vm11, %v2310_v28  ;;  %v2308_v29 = vpop.permute.xlu0 %2307 }
 0x236   : > { %2390 = vst.msk [vmem:[#allocation2 + $0x70] sm:$0xf] %vm2375_vm11, %v2308_v29 }
 0x238   : > { %v2342_v30 = vpop.permute.xlu1 %2341 }
 0x239   : > { %2407 = vst.msk [vmem:[#allocation2 + $0xf8] sm:$0xf] %vm2375_vm11, %v2342_v30  ;;  %v2340_v31 = vpop.permute.xlu0 %2339 }
 0x23a   : > { %2406 = vst.msk [vmem:[#allocation2 + $0xf0] sm:$0xf] %vm2375_vm11, %v2340_v31 }
 0x23c   : > { %v2503_v32 = vpop.permute.xlu1 %2502 }
 0x23d   : > { %2584 = vst.msk [vmem:[#allocation2 + $0x78] sm:$0xf] %vm2568_vm12, %v2503_v32  ;;  %v2501_v33 = vpop.permute.xlu0 %2500 }
 0x23e   : > { %2583 = vst.msk [vmem:[#allocation2 + $0x70] sm:$0xf] %vm2568_vm12, %v2501_v33 }
 0x240   : > { %v2535_v34 = vpop.permute.xlu1 %2534  ;;  %v3788_v35 = vpop.f32.mrf.mxu0 }
 0x241   : > { %2600 = vst.msk [vmem:[#allocation2 + $0xf8] sm:$0xf] %vm2568_vm12, %v2535_v34  ;;  %v2533_v36 = vpop.permute.xlu0 %2532  ;;  %v3789_v37 = vadd.f32 %v5787_v7, %v3788_v35 }
 0x242   : > { %2599 = vst.msk [vmem:[#allocation2 + $0xf0] sm:$0xf] %vm2568_vm12, %v2533_v36  ;;  %v3790_v38 = vpop.f32.mrf.mxu0 }
 0x243   : > { %v3903_v40 = vmax.f32 %v3789_v37, 0.0 }
 0x244   : > { %v3064_v62 = vpop.permute.xlu1 %3063  ;;  %v3791_v41 = vpop.f32.mrf.mxu0 }
 0x245   : > { %3936 = vst.msk [vmem:[%s5796_s10 + $0x20] sm:$0xff] %vm3931_vm15, %v3903_v40  ;;  %v3062_v39 = vpop.permute.xlu0 %3061  ;;  %v3792_v43 = vadd.f32 %v5787_v7, %v3791_v41  ;;  %v3852_v44 = vpop.f32.mrf.mxu1 }
 0x246   : > { %3145 = vst.msk [vmem:[#allocation2 + $0x78] sm:$0xf] %vm3129_vm13, %v3064_v62  ;;  %3144 = vst.msk [vmem:[#allocation2 + $0x70] sm:$0xf] %vm3129_vm13, %v3062_v39  ;;  %v3853_v45 = vadd.f32 %v5787_v7, %v3852_v44  ;;  %v3793_v46 = vpop.f32.mrf.mxu0 }
 0x247   : > { %v3904_v47 = vmax.f32 %v3792_v43, 0.0  ;;  %v3854_v48 = vpop.f32.mrf.mxu1 }
 0x248   : > { %v3919_v49 = vmax.f32 %v3853_v45, 0.0  ;;  %v3096_v42 = vpop.permute.xlu1 %3095 }
 0x249   : > { %3937 = vst.msk [vmem:[%s5796_s10 + $0x28] sm:$0xff] %vm3931_vm15, %v3904_v47  ;;  %v3094_v52 = vpop.permute.xlu0 %3093  ;;  %v3855_v53 = vpop.f32.mrf.mxu1 }
 0x24a   : > { %3161 = vst.msk [vmem:[#allocation2 + $0xf8] sm:$0xf] %vm3129_vm13, %v3096_v42  ;;  %3160 = vst.msk [vmem:[#allocation2 + $0xf0] sm:$0xf] %vm3129_vm13, %v3094_v52  ;;  %v3856_v54 = vadd.f32 %v5787_v7, %v3855_v53 }
 0x24b   : > { %3952 = vst.msk [vmem:[%s5796_s10 + $0xa0] sm:$0xff] %vm3931_vm15, %v3919_v49  ;;  %v3857_v55 = vpop.f32.mrf.mxu1 }
 0x24c   : > { %v3920_v56 = vmax.f32 %v3856_v54, 0.0 }
 0x24d   : > { %v4313_v51 = vld [vmem:[#allocation2 + $0x70] ss:$8 sps:$4 sm:$0xff]  }
 0x24e   : > { %3953 = vst.msk [vmem:[%s5796_s10 + $0xa8] sm:$0xff] %vm3931_vm15, %v3920_v56  ;;  %3827 = vmatmul.mubr.bf16.gmra.mxu0 %v4313_v51 }
 0x251   : > { %v4316_v50 = vld [vmem:[#allocation2 + $0xf0] ss:$8 sps:$4 sm:$0xff]  }
 0x252   : > { %3891 = vmatmul.mubr.bf16.gmra.mxu1 %v4316_v50 }
 0x268   : > { %v3796_v59 = vpop.f32.mrf.mxu0 }
 0x269   : > { %v3797_v60 = vadd.f32 %v5787_v7, %v3796_v59 }
 0x26a   : > { %v3798_v61 = vpop.f32.mrf.mxu0 }
 0x26b   : > { %v3905_v27 = vmax.f32 %v3797_v60, 0.0 }
 0x26c   : > { %v3799_v63 = vpop.f32.mrf.mxu0  ;;  %v3860_v0 = vpop.f32.mrf.mxu1 }
 0x26d   : > { %3938 = vst.msk [vmem:[%s5796_s10 + $0x30] sm:$0xff] %vm3931_vm15, %v3905_v27  ;;  %v3800_v1 = vadd.f32 %v5787_v7, %v3799_v63  ;;  %v3861_v2 = vadd.f32 %v5787_v7, %v3860_v0 }
 0x26e   : > { %v3801_v3 = vpop.f32.mrf.mxu0  ;;  %v3862_v4 = vpop.f32.mrf.mxu1 }
 0x26f   : > { %v3906_v5 = vmax.f32 %v3800_v1, 0.0  ;;  %v3921_v6 = vmax.f32 %v3861_v2, 0.0 }
 0x270   : > { %v3863_v8 = vpop.f32.mrf.mxu1 }
 0x271   : > { %3939 = vst.msk [vmem:[%s5796_s10 + $0x38] sm:$0xff] %vm3931_vm15, %v3906_v5  ;;  %3954 = vst.msk [vmem:[%s5796_s10 + $0xb0] sm:$0xff] %vm3931_vm15, %v3921_v6  ;;  %v3864_v9 = vadd.f32 %v5787_v7, %v3863_v8 }
 0x272   : > { %v3865_v11 = vpop.f32.mrf.mxu1 }
 0x273   : > { %v3922_v12 = vmax.f32 %v3864_v9, 0.0 }
 0x275   : > { %3955 = vst.msk [vmem:[%s5796_s10 + $0xb8] sm:$0xff] %vm3931_vm15, %v3922_v12 }
 0x290   : > { %v3804_v13 = vpop.f32.mrf.mxu0 }
 0x291   : > { %v3805_v14 = vadd.f32 %v5787_v7, %v3804_v13 }
 0x292   : > { %v3806_v16 = vpop.f32.mrf.mxu0 }
 0x293   : > { %v3907_v17 = vmax.f32 %v3805_v14, 0.0 }
 0x294   : > { %v3807_v18 = vpop.f32.mrf.mxu0  ;;  %v3868_v19 = vpop.f32.mrf.mxu1 }
 0x295   : > { %3940 = vst.msk [vmem:[%s5796_s10 + $0x40] sm:$0xff] %vm3931_vm15, %v3907_v17  ;;  %v3808_v20 = vadd.f32 %v5787_v7, %v3807_v18  ;;  %v3869_v10 = vadd.f32 %v5787_v7, %v3868_v19 }
 0x296   : > { %v3809_v22 = vpop.f32.mrf.mxu0  ;;  %v3870_v21 = vpop.f32.mrf.mxu1 }
 0x297   : > { %v3908_v23 = vmax.f32 %v3808_v20, 0.0  ;;  %v3923_v24 = vmax.f32 %v3869_v10, 0.0 }
 0x298   : > { %v3871_v25 = vpop.f32.mrf.mxu1 }
 0x299   : > { %3941 = vst.msk [vmem:[%s5796_s10 + $0x48] sm:$0xff] %vm3931_vm15, %v3908_v23  ;;  %3956 = vst.msk [vmem:[%s5796_s10 + $0xc0] sm:$0xff] %vm3931_vm15, %v3923_v24  ;;  %v3872_v15 = vadd.f32 %v5787_v7, %v3871_v25 }
 0x29a   : > { %v3873_v26 = vpop.f32.mrf.mxu1 }
 0x29b   : > { %v3924_v28 = vmax.f32 %v3872_v15, 0.0 }
 0x29d   : > { %3957 = vst.msk [vmem:[%s5796_s10 + $0xc8] sm:$0xff] %vm3931_vm15, %v3924_v28 }
 0x2b8   : > { %v3812_v29 = vpop.f32.mrf.mxu0 }
 0x2b9   : > { %v3813_v30 = vadd.f32 %v5787_v7, %v3812_v29 }
 0x2ba   : > { %v3814_v31 = vpop.f32.mrf.mxu0 }
 0x2bb   : > { %v3909_v32 = vmax.f32 %v3813_v30, 0.0 }
 0x2bc   : > { %v3815_v33 = vpop.f32.mrf.mxu0  ;;  %v3876_v34 = vpop.f32.mrf.mxu1 }
 0x2bd   : > { %3942 = vst.msk [vmem:[%s5796_s10 + $0x50] sm:$0xff] %vm3931_vm15, %v3909_v32  ;;  %v3816_v35 = vadd.f32 %v5787_v7, %v3815_v33  ;;  %v3877_v36 = vadd.f32 %v5787_v7, %v3876_v34 }
 0x2be   : > { %v3817_v37 = vpop.f32.mrf.mxu0  ;;  %v3878_v38 = vpop.f32.mrf.mxu1 }
 0x2bf   : > { %v3910_v40 = vmax.f32 %v3816_v35, 0.0  ;;  %v3925_v62 = vmax.f32 %v3877_v36, 0.0 }
 0x2c0   : > { %v3879_v41 = vpop.f32.mrf.mxu1 }
 0x2c1   : > { %3943 = vst.msk [vmem:[%s5796_s10 + $0x58] sm:$0xff] %vm3931_vm15, %v3910_v40  ;;  %3958 = vst.msk [vmem:[%s5796_s10 + $0xd0] sm:$0xff] %vm3931_vm15, %v3925_v62  ;;  %v3880_v39 = vadd.f32 %v5787_v7, %v3879_v41 }
 0x2c2   : > { %v3881_v43 = vpop.f32.mrf.mxu1 }
 0x2c3   : > { %v3926_v44 = vmax.f32 %v3880_v39, 0.0 }
 0x2c5   : > { %3959 = vst.msk [vmem:[%s5796_s10 + $0xd8] sm:$0xff] %vm3931_vm15, %v3926_v44 }
 0x2e4   : > { %v3820_v45 = vpop.f32.mrf.mxu0 }
 0x2e5   : > { %v3821_v46 = vadd.f32 %v5787_v7, %v3820_v45 }
 0x2e6   : > { %v3822_v47 = vpop.f32.mrf.mxu0 }
 0x2e7   : > { %v3911_v48 = vmax.f32 %v3821_v46, 0.0 }
 0x2e8   : > { %v3823_v49 = vpop.f32.mrf.mxu0  ;;  %v3884_v42 = vpop.f32.mrf.mxu1 }
 0x2e9   : > { %3944 = vst.msk [vmem:[%s5796_s10 + $0x60] sm:$0xff] %vm3931_vm15, %v3911_v48  ;;  %v3824_v52 = vadd.f32 %v5787_v7, %v3823_v49  ;;  %v3885_v53 = vadd.f32 %v5787_v7, %v3884_v42 }
 0x2ea   : > { %v3825_v54 = vpop.f32.mrf.mxu0  ;;  %v3886_v55 = vpop.f32.mrf.mxu1 }
 0x2eb   : > { %v3912_v56 = vmax.f32 %v3824_v52, 0.0  ;;  %v3927_v57 = vmax.f32 %v3885_v53, 0.0 }
 0x2ec   : > { %v3887_v51 = vpop.f32.mrf.mxu1 }
 0x2ed   : > { %3945 = vst.msk [vmem:[%s5796_s10 + $0x68] sm:$0xff] %vm3931_vm15, %v3912_v56  ;;  %3960 = vst.msk [vmem:[%s5796_s10 + $0xe0] sm:$0xff] %vm3931_vm15, %v3927_v57  ;;  %v3888_v58 = vadd.f32 %v5787_v7, %v3887_v51 }
 0x2ee   : > { %v3889_v50 = vpop.f32.mrf.mxu1 }
 0x2ef   : > { %v3928_v59 = vmax.f32 %v3888_v58, 0.0 }
 0x2f1   : > { %3961 = vst.msk [vmem:[%s5796_s10 + $0xe8] sm:$0xff] %vm3931_vm15, %v3928_v59 }
 0x30e   : > { %v3828_v60 = vpop.f32.mrf.mxu0 }
 0x30f   : > { %v3829_v61 = vadd.f32 %v5787_v7, %v3828_v60 }
 0x310   : > { %v3830_v27 = vpop.f32.mrf.mxu0 }
 0x311   : > { %v3913_v63 = vmax.f32 %v3829_v61, 0.0 }
 0x312   : > { %v3831_v0 = vpop.f32.mrf.mxu0  ;;  %v3892_v1 = vpop.f32.mrf.mxu1 }
 0x313   : > { %3946 = vst.msk [vmem:[%s5796_s10 + $0x70] sm:$0xff] %vm3931_vm15, %v3913_v63  ;;  %v3832_v2 = vadd.f32 %v5787_v7, %v3831_v0  ;;  %v3893_v3 = vadd.f32 %v5787_v7, %v3892_v1 }
 0x314   : > { %v3833_v4 = vpop.f32.mrf.mxu0  ;;  %v3894_v5 = vpop.f32.mrf.mxu1 }
 0x315   : > { %v3914_v6 = vmax.f32 %v3832_v2, 0.0  ;;  %v3929_v8 = vmax.f32 %v3893_v3, 0.0 }
 0x316   : > { %v3895_v9 = vpop.f32.mrf.mxu1 }
 0x317   : > { %3947 = vst.msk [vmem:[%s5796_s10 + $0x78] sm:$0xff] %vm3931_vm15, %v3914_v6  ;;  %3962 = vst.msk [vmem:[%s5796_s10 + $0xf0] sm:$0xff] %vm3931_vm15, %v3929_v8  ;;  %v3896_v11 = vadd.f32 %v5787_v7, %v3895_v9 }
 0x318   : > { %v3897_v12 = vpop.f32.mrf.mxu1 }
 0x319   : > { %v3930_v13 = vmax.f32 %v3896_v11, 0.0 }
 0x31b   : > { %3963 = vst.msk [vmem:[%s5796_s10 + $0xf8] sm:$0xff] %vm3931_vm15, %v3930_v13 }
 0x31c PF: > { %s15_s20 = sadd.s32 1, %s4339_s20   ;;  %s5962_s18 = smov %s4335_s19 }
 0x31d   : > { %p12_p5 = scmp.ge.s32.totalorder %s15_s20, 4   ;;  %s5963_s19 = smov %s5965_s21 }
 0x31f   :  { %14 = sbr.rel (!%p12_p5) target bundleno = 2 (0x2), region = 76 }

</bundles_post_ra>
